<compile_context>
chip_gen: v6e
topology: v6e:2x2x1
jax: 0.10.0
libtpu: 0.0.40
codegen_flags: <defaults>
</compile_context>

<pallas_src>
import functools

import jax
import jax.numpy as jnp
from jax import lax
from jax.experimental import pallas as pl
from jax.experimental.pallas import tpu as pltpu

NP = 128                       # padded channel / feature width (lane-dense)
VMEM_LIMIT = 32 * 1024 * 1024  # safe scoped-VMEM request on v5e/v6e/v7x


def _round_up(x, m):
    return ((x + m - 1) // m) * m


# ---------------- fused conv + bias + ReLU + 2x2 max-pool kernel ----------------

def _conv_relu_pool_kernel(x_ref, w_ref, b_ref, o_ref, row_ref, *, kh, kw, H, W):
    """One batch element per grid step.

    x_ref  : (H+2p, W+2p, NP)   spatially pre-padded input, bf16
    w_ref  : (kh*kw, NP, NP)    per-tap weights, bf16 (zero-padded channels)
    b_ref  : (1, NP)            bias, f32 (zero-padded)
    o_ref  : (H//2, W//2, NP)   pooled output, bf16
    row_ref: (W, NP) f32 scratch for the vertically-pooled conv row pair
    """
    H2, W2 = H // 2, W // 2
    n = o_ref.shape[-1]

    def conv_row(y):
        # stride-1 conv for output row `y`: one small MXU matmul per tap,
        # accumulated in f32 (in-kernel im2col, nothing materialized in HBM).
        acc = jnp.zeros((W, n), jnp.float32)
        for t in range(kh * kw):
            di, dj = t // kw, t % kw
            xs = x_ref[y + di, pl.ds(dj, W), :]               # (W, NP) bf16
            acc = acc + jnp.dot(xs, w_ref[t],
                                preferred_element_type=jnp.float32)
        return jnp.maximum(acc + b_ref[...], 0.0)             # fused bias + ReLU

    def body(yo, carry):
        r0 = conv_row(2 * yo)
        r1 = conv_row(2 * yo + 1)
        row_ref[...] = jnp.maximum(r0, r1)                    # vertical 2-max
        even = row_ref[pl.ds(0, W2, stride=2), :]             # horizontal 2-max
        odd = row_ref[pl.ds(1, W2, stride=2), :]
        o_ref[yo, :, :] = jnp.maximum(even, odd).astype(o_ref.dtype)
        return carry

    lax.fori_loop(0, H2, body, 0)


def conv_relu_pool(xp, w_taps, bias, *, kh, kw, H, W):
    """xp: (B, H+2p, W+2p, NP) bf16 (p = kh//2, spatial pre-padded).
    Returns (B, H//2, W//2, NP) bf16 (conv -> ReLU -> 2x2 maxpool)."""
    B, Hp, Wp, Cin = xp.shape
    assert Hp == H + 2 * (kh // 2) and Wp == W + 2 * (kw // 2)
    assert H % 2 == 0 and W % 2 == 0
    n = w_taps.shape[-1]
    H2, W2 = H // 2, W // 2
    kernel = functools.partial(_conv_relu_pool_kernel, kh=kh, kw=kw, H=H, W=W)
    return pl.pallas_call(
        kernel,
        out_shape=jax.ShapeDtypeStruct((B, H2, W2, n), jnp.bfloat16),
        grid=(B,),
        in_specs=[
            pl.BlockSpec((None, Hp, Wp, Cin), lambda b: (b, 0, 0, 0)),
            pl.BlockSpec((kh * kw, Cin, n), lambda b: (0, 0, 0)),
            pl.BlockSpec((1, n), lambda b: (0, 0)),
        ],
        out_specs=pl.BlockSpec((None, H2, W2, n), lambda b: (b, 0, 0, 0)),
        scratch_shapes=[pltpu.VMEM((W, n), jnp.float32)],
        compiler_params=pltpu.CompilerParams(
            dimension_semantics=("parallel",),
            vmem_limit_bytes=VMEM_LIMIT),
    )(xp, w_taps, bias)


# ---------------------------- fused FC1 + FC2 kernel ----------------------------

def _fc_fused_kernel(x_ref, w1_ref, b1_ref, w2_ref, b2_ref, o_ref):
    h = jnp.dot(x_ref[...], w1_ref[...], preferred_element_type=jnp.float32)
    h = h + b1_ref[...]                                       # (tm, NP) f32
    out = jnp.dot(h.astype(jnp.bfloat16), w2_ref[...],
                  preferred_element_type=jnp.float32)
    out = out + b2_ref[...]
    o_ref[...] = out.astype(o_ref.dtype)


def fc_fused(x, w1, b1, w2, b2, *, tm):
    """(M, K) @ (K, NP) + b1, then @ (NP, NP) + b2 — one kernel, M-tiled."""
    M, K = x.shape
    _, N1 = w1.shape
    _, N2 = w2.shape
    assert M % tm == 0
    return pl.pallas_call(
        _fc_fused_kernel,
        out_shape=jax.ShapeDtypeStruct((M, N2), jnp.float32),
        grid=(M // tm,),
        in_specs=[
            pl.BlockSpec((tm, K), lambda i: (i, 0)),
            pl.BlockSpec((K, N1), lambda i: (0, 0)),
            pl.BlockSpec((1, N1), lambda i: (0, 0)),
            pl.BlockSpec((N1, N2), lambda i: (0, 0)),
            pl.BlockSpec((1, N2), lambda i: (0, 0)),
        ],
        out_specs=pl.BlockSpec((tm, N2), lambda i: (i, 0)),
        compiler_params=pltpu.CompilerParams(
            dimension_semantics=("parallel",),
            vmem_limit_bytes=VMEM_LIMIT),
    )(x, w1, b1, w2, b2)


# ------------------- parameters (PyTorch layout) and repacking -------------------

def init_params(key, in_dim, n_class):
    ks = jax.random.split(key, 8)
    s = 0.05
    return dict(
        w1=s * jax.random.normal(ks[0], (16, in_dim, 5, 5), jnp.float32),
        b1=s * jax.random.normal(ks[1], (16,), jnp.float32),
        w2=s * jax.random.normal(ks[2], (32, 16, 3, 3), jnp.float32),
        b2=s * jax.random.normal(ks[3], (32,), jnp.float32),
        wf1=s * jax.random.normal(ks[4], (32 * 7 * 7, 120), jnp.float32),
        bf1=s * jax.random.normal(ks[5], (120,), jnp.float32),
        wf2=s * jax.random.normal(ks[6], (120, n_class), jnp.float32),
        bf2=s * jax.random.normal(ks[7], (n_class,), jnp.float32),
    )


def prepare_params(p):
    """One-time repack: per-tap conv weights with channels zero-padded to 128,
    bf16 matmul operands, and FC1 rows permuted to the NHWC(-padded) flatten
    order so no runtime transpose is needed before the FC layers."""

    def prep_conv(w, b):
        cout, cin, kh, kw = w.shape
        wt = jnp.transpose(w, (2, 3, 1, 0)).reshape(kh * kw, cin, cout)
        wt = jnp.pad(wt, ((0, 0), (0, NP - cin), (0, NP - cout)))
        bp = jnp.pad(b, (0, NP - cout)).reshape(1, NP).astype(jnp.float32)
        return wt.astype(jnp.bfloat16), bp

    w1, b1 = prep_conv(p["w1"], p["b1"])
    w2, b2 = prep_conv(p["w2"], p["b2"])

    # FC1: PyTorch flatten order is (c, h, w); ours is (h, w, c_padded_to_128).
    n_class = p["wf2"].shape[1]
    wf1 = p["wf1"].reshape(32, 7, 7, 120)
    wf1 = jnp.transpose(wf1, (1, 2, 0, 3))                    # (h, w, c, n)
    wf1 = jnp.pad(wf1, ((0, 0), (0, 0), (0, NP - 32), (0, NP - 120)))
    wf1 = wf1.reshape(7 * 7 * NP, NP).astype(jnp.bfloat16)
    bf1 = jnp.pad(p["bf1"], (0, NP - 120)).reshape(1, NP).astype(jnp.float32)
    wf2 = jnp.pad(p["wf2"], ((0, NP - 120), (0, NP - n_class))).astype(jnp.bfloat16)
    bf2 = jnp.pad(p["bf2"], (0, NP - n_class)).reshape(1, NP).astype(jnp.float32)

    return dict(w1=w1, b1=b1, w2=w2, b2=b2, wf1=wf1, bf1=bf1, wf2=wf2, bf2=bf2)


# ------------------------------------ forward ------------------------------------

@functools.partial(jax.jit, static_argnames=("n_class",))
def cnn_forward(params, x_nchw, *, n_class):
    """Matches CNN.forward: x (B, in_dim, 28, 28) -> logits (B, n_class)."""
    B, cin, H, W = x_nchw.shape
    cin_pad = params["w1"].shape[1]                            # = NP

    x = jnp.transpose(x_nchw, (0, 2, 3, 1))                    # NCHW -> NHWC
    x = jnp.pad(x, ((0, 0), (2, 2), (2, 2), (0, cin_pad - cin)))
    x = x.astype(jnp.bfloat16)                                 # (B, 32, 32, 128)

    y1 = conv_relu_pool(x, params["w1"], params["b1"],
                        kh=5, kw=5, H=H, W=W)                  # (B, 14, 14, 128)
    y1 = jnp.pad(y1, ((0, 0), (1, 1), (1, 1), (0, 0)))         # (B, 16, 16, 128)

    y2 = conv_relu_pool(y1, params["w2"], params["b2"],
                        kh=3, kw=3, H=H // 2, W=W // 2)        # (B, 7, 7, 128)

    xf = y2.reshape(B, -1)                                     # NHWC-padded flatten
    if B <= 128:
        tm = _round_up(B, 8)
        mpad = tm
    else:
        tm = 128
        mpad = _round_up(B, 128)
    xf = jnp.pad(xf, ((0, mpad - B), (0, 0)))

    logits = fc_fused(xf, params["wf1"], params["bf1"],
                      params["wf2"], params["bf2"], tm=tm)     # (mpad, 128) f32
    return logits[:B, :n_class]


# ----------------------------- pure-jnp references --------------------------------

def im2col(x, kh, kw, pad):
    B, H, W, C = x.shape
    xp = jnp.pad(x, ((0, 0), (pad, pad), (pad, pad), (0, 0)))
    cols = []
    for i in range(kh):
        for j in range(kw):
            cols.append(xp[:, i:i + H, j:j + W, :])
    return jnp.concatenate(cols, axis=-1)


def _ref_conv(x, w, b, d):
    B, H, W, Cin = x.shape
    Cout, _, kh, kw = w.shape
    p = im2col(x, kh, kw, pad=kh // 2).reshape(B * H * W, kh * kw * Cin)
    w2 = jnp.transpose(w, (2, 3, 1, 0)).reshape(kh * kw * Cin, Cout).astype(d)
    y = jnp.dot(p.astype(d), w2, preferred_element_type=jnp.float32) + b
    return jnp.maximum(y, 0.0).reshape(B, H, W, Cout)


def _ref_pool(x):
    B, H, W, C = x.shape
    return x.reshape(B, H // 2, 2, W // 2, 2, C).max(axis=(2, 4))


def cnn_reference(params, x_nchw, *, matmul_dtype):
    """matmul_dtype=bfloat16 mirrors the kernel's precision (bf16 MXU inputs,
    f32 accumulation, bf16 inter-layer activations); float32 is the exact
    PyTorch-module math."""
    d = matmul_dtype
    x = jnp.transpose(x_nchw, (0, 2, 3, 1)).astype(d)
    x = _ref_pool(_ref_conv(x, params["w1"], params["b1"], d)).astype(d)
    x = _ref_pool(_ref_conv(x, params["w2"], params["b2"], d)).astype(d)
    x = jnp.transpose(x, (0, 3, 1, 2)).reshape(x.shape[0], -1)   # NCHW flatten
    h = jnp.dot(x, params["wf1"].astype(d),
                preferred_element_type=jnp.float32) + params["bf1"]
    h = h.astype(d)
    out = jnp.dot(h, params["wf2"].astype(d),
                  preferred_element_type=jnp.float32) + params["bf2"]
    return out


if __name__ == "__main__":
    key = jax.random.PRNGKey(0)
    kp, kx = jax.random.split(key)

    in_dim, n_class, batch = 1, 10, 2        # 28x28 input implied by 32*7*7 FC
    params = init_params(kp, in_dim, n_class)
    prepped = prepare_params(params)
    x = jax.random.normal(kx, (batch, in_dim, 28, 28), jnp.float32)

    out = jax.block_until_ready(cnn_forward(prepped, x, n_class=n_class))

    ref_bf16 = jax.block_until_ready(
        cnn_reference(params, x, matmul_dtype=jnp.bfloat16))
    ref_f32 = jax.block_until_ready(
        cnn_reference(params, x, matmul_dtype=jnp.float32))

    assert out.shape == (batch, n_class), out.shape
    # strict check vs a reference mirroring the kernel's bf16/f32 precision mix
    assert jnp.allclose(out, ref_bf16, atol=5e-3, rtol=5e-3), "mismatch vs bf16 ref"
    # semantic check vs full-f32 PyTorch-equivalent math (bf16-sized tolerance)
    assert jnp.allclose(out, ref_f32, atol=5e-2, rtol=5e-2), "mismatch vs f32 ref"
    print("KERNEL_OK")
</pallas_src>

<mosaic_0001>
module attributes {stable_mosaic.version = 11 : i64} {
  func.func @_conv_relu_pool_kernel(%arg0: i32, %arg1: memref<1x32x32x128xbf16, #tpu.memory_space<vmem>>, %arg2: memref<25x128x128xbf16, #tpu.memory_space<vmem>>, %arg3: memref<1x128xf32, #tpu.memory_space<vmem>>, %arg4: memref<1x14x14x128xbf16, #tpu.memory_space<vmem>>, %arg5: memref<28x128xf32, #tpu.memory_space<vmem>>) attributes {dimension_semantics = [#tpu.dimension_semantics<parallel>], iteration_bounds = array<i64: 2>, scalar_prefetch = 0 : i64, scratch_operands = 1 : i64, tpu.core_type = #tpu.core_type<tc>, window_params = [{transform_indices = @transform_0, window_bounds = array<i64: 1, 32, 32, 128>}, {pipeline_mode = #tpu.pipeline_mode<synchronous>, transform_indices = @transform_1, window_bounds = array<i64: 25, 128, 128>}, {pipeline_mode = #tpu.pipeline_mode<synchronous>, transform_indices = @transform_2, window_bounds = array<i64: 1, 128>}, {transform_indices = @transform_3, window_bounds = array<i64: 1, 14, 14, 128>}]} {
    %c0_i32 = arith.constant 0 : i32
    %c14_i32 = arith.constant 14 : i32
    %0 = arith.addi %c0_i32, %c14_i32 : i32
    %c1_i32 = arith.constant 1 : i32
    scf.for %arg6 = %c0_i32 to %0 step %c1_i32  : i32 {
      %c2_i32 = arith.constant 2 : i32
      %1 = arith.muli %c2_i32, %arg6 : i32
      %cst = arith.constant 0.000000e+00 : f32
      %2 = vector.broadcast %cst : f32 to vector<28x128xf32>
      %c0_i32_1 = arith.constant 0 : i32
      %3 = arith.addi %1, %c0_i32_1 : i32
      %c0 = arith.constant 0 : index
      %4 = arith.index_cast %3 : i32 to index
      %c0_2 = arith.constant 0 : index
      %c0_3 = arith.constant 0 : index
      %5 = vector.load %arg1[%c0, %4, %c0_2, %c0_3] : memref<1x32x32x128xbf16, #tpu.memory_space<vmem>>, vector<1x1x28x128xbf16>
      %6 = vector.shape_cast %5 : vector<1x1x28x128xbf16> to vector<28x128xbf16>
      %c0_4 = arith.constant 0 : index
      %c0_5 = arith.constant 0 : index
      %c0_6 = arith.constant 0 : index
      %7 = vector.load %arg2[%c0_4, %c0_5, %c0_6] : memref<25x128x128xbf16, #tpu.memory_space<vmem>>, vector<1x128x128xbf16>
      %8 = vector.shape_cast %7 : vector<1x128x128xbf16> to vector<128x128xbf16>
      %cst_7 = arith.constant dense<0.000000e+00> : vector<28x128xf32>
      %9 = tpu.matmul %6, %8, %cst_7 {dimension_numbers = #tpu.dot_dimension_numbers<[1], [0], [0], [1], [0, 0, 1, 1], [], []>} : vector<28x128xbf16>, vector<128x128xbf16>, vector<28x128xf32> -> vector<28x128xf32>
      %10 = arith.addf %2, %9 : vector<28x128xf32>
      %c0_i32_8 = arith.constant 0 : i32
      %11 = arith.addi %1, %c0_i32_8 : i32
      %c0_9 = arith.constant 0 : index
      %12 = arith.index_cast %11 : i32 to index
      %c1 = arith.constant 1 : index
      %c0_10 = arith.constant 0 : index
      %13 = vector.load %arg1[%c0_9, %12, %c1, %c0_10] : memref<1x32x32x128xbf16, #tpu.memory_space<vmem>>, vector<1x1x28x128xbf16>
      %14 = vector.shape_cast %13 : vector<1x1x28x128xbf16> to vector<28x128xbf16>
      %c1_11 = arith.constant 1 : index
      %c0_12 = arith.constant 0 : index
      %c0_13 = arith.constant 0 : index
      %15 = vector.load %arg2[%c1_11, %c0_12, %c0_13] : memref<25x128x128xbf16, #tpu.memory_space<vmem>>, vector<1x128x128xbf16>
      %16 = vector.shape_cast %15 : vector<1x128x128xbf16> to vector<128x128xbf16>
      %cst_14 = arith.constant dense<0.000000e+00> : vector<28x128xf32>
      %17 = tpu.matmul %14, %16, %cst_14 {dimension_numbers = #tpu.dot_dimension_numbers<[1], [0], [0], [1], [0, 0, 1, 1], [], []>} : vector<28x128xbf16>, vector<128x128xbf16>, vector<28x128xf32> -> vector<28x128xf32>
      %18 = arith.addf %10, %17 : vector<28x128xf32>
      %c0_i32_15 = arith.constant 0 : i32
      %19 = arith.addi %1, %c0_i32_15 : i32
      %c0_16 = arith.constant 0 : index
      %20 = arith.index_cast %19 : i32 to index
      %c2 = arith.constant 2 : index
      %c0_17 = arith.constant 0 : index
      %21 = vector.load %arg1[%c0_16, %20, %c2, %c0_17] : memref<1x32x32x128xbf16, #tpu.memory_space<vmem>>, vector<1x1x28x128xbf16>
      %22 = vector.shape_cast %21 : vector<1x1x28x128xbf16> to vector<28x128xbf16>
      %c2_18 = arith.constant 2 : index
      %c0_19 = arith.constant 0 : index
      %c0_20 = arith.constant 0 : index
      %23 = vector.load %arg2[%c2_18, %c0_19, %c0_20] : memref<25x128x128xbf16, #tpu.memory_space<vmem>>, vector<1x128x128xbf16>
      %24 = vector.shape_cast %23 : vector<1x128x128xbf16> to vector<128x128xbf16>
      %cst_21 = arith.constant dense<0.000000e+00> : vector<28x128xf32>
      %25 = tpu.matmul %22, %24, %cst_21 {dimension_numbers = #tpu.dot_dimension_numbers<[1], [0], [0], [1], [0, 0, 1, 1], [], []>} : vector<28x128xbf16>, vector<128x128xbf16>, vector<28x128xf32> -> vector<28x128xf32>
      %26 = arith.addf %18, %25 : vector<28x128xf32>
      %c0_i32_22 = arith.constant 0 : i32
      %27 = arith.addi %1, %c0_i32_22 : i32
      %c0_23 = arith.constant 0 : index
      %28 = arith.index_cast %27 : i32 to index
      %c3 = arith.constant 3 : index
      %c0_24 = arith.constant 0 : index
      %29 = vector.load %arg1[%c0_23, %28, %c3, %c0_24] : memref<1x32x32x128xbf16, #tpu.memory_space<vmem>>, vector<1x1x28x128xbf16>
      %30 = vector.shape_cast %29 : vector<1x1x28x128xbf16> to vector<28x128xbf16>
      %c3_25 = arith.constant 3 : index
      %c0_26 = arith.constant 0 : index
      %c0_27 = arith.constant 0 : index
      %31 = vector.load %arg2[%c3_25, %c0_26, %c0_27] : memref<25x128x128xbf16, #tpu.memory_space<vmem>>, vector<1x128x128xbf16>
      %32 = vector.shape_cast %31 : vector<1x128x128xbf16> to vector<128x128xbf16>
      %cst_28 = arith.constant dense<0.000000e+00> : vector<28x128xf32>
      %33 = tpu.matmul %30, %32, %cst_28 {dimension_numbers = #tpu.dot_dimension_numbers<[1], [0], [0], [1], [0, 0, 1, 1], [], []>} : vector<28x128xbf16>, vector<128x128xbf16>, vector<28x128xf32> -> vector<28x128xf32>
      %34 = arith.addf %26, %33 : vector<28x128xf32>
      %c0_i32_29 = arith.constant 0 : i32
      %35 = arith.addi %1, %c0_i32_29 : i32
      %c0_30 = arith.constant 0 : index
      %36 = arith.index_cast %35 : i32 to index
      %c4 = arith.constant 4 : index
      %c0_31 = arith.constant 0 : index
      %37 = vector.load %arg1[%c0_30, %36, %c4, %c0_31] : memref<1x32x32x128xbf16, #tpu.memory_space<vmem>>, vector<1x1x28x128xbf16>
      %38 = vector.shape_cast %37 : vector<1x1x28x128xbf16> to vector<28x128xbf16>
      %c4_32 = arith.constant 4 : index
      %c0_33 = arith.constant 0 : index
      %c0_34 = arith.constant 0 : index
      %39 = vector.load %arg2[%c4_32, %c0_33, %c0_34] : memref<25x128x128xbf16, #tpu.memory_space<vmem>>, vector<1x128x128xbf16>
      %40 = vector.shape_cast %39 : vector<1x128x128xbf16> to vector<128x128xbf16>
      %cst_35 = arith.constant dense<0.000000e+00> : vector<28x128xf32>
      %41 = tpu.matmul %38, %40, %cst_35 {dimension_numbers = #tpu.dot_dimension_numbers<[1], [0], [0], [1], [0, 0, 1, 1], [], []>} : vector<28x128xbf16>, vector<128x128xbf16>, vector<28x128xf32> -> vector<28x128xf32>
      %42 = arith.addf %34, %41 : vector<28x128xf32>
      %c1_i32_36 = arith.constant 1 : i32
      %43 = arith.addi %1, %c1_i32_36 : i32
      %c0_37 = arith.constant 0 : index
      %44 = arith.index_cast %43 : i32 to index
      %c0_38 = arith.constant 0 : index
      %c0_39 = arith.constant 0 : index
      %45 = vector.load %arg1[%c0_37, %44, %c0_38, %c0_39] : memref<1x32x32x128xbf16, #tpu.memory_space<vmem>>, vector<1x1x28x128xbf16>
      %46 = vector.shape_cast %45 : vector<1x1x28x128xbf16> to vector<28x128xbf16>
      %c5 = arith.constant 5 : index
      %c0_40 = arith.constant 0 : index
      %c0_41 = arith.constant 0 : index
      %47 = vector.load %arg2[%c5, %c0_40, %c0_41] : memref<25x128x128xbf16, #tpu.memory_space<vmem>>, vector<1x128x128xbf16>
      %48 = vector.shape_cast %47 : vector<1x128x128xbf16> to vector<128x128xbf16>
      %cst_42 = arith.constant dense<0.000000e+00> : vector<28x128xf32>
      %49 = tpu.matmul %46, %48, %cst_42 {dimension_numbers = #tpu.dot_dimension_numbers<[1], [0], [0], [1], [0, 0, 1, 1], [], []>} : vector<28x128xbf16>, vector<128x128xbf16>, vector<28x128xf32> -> vector<28x128xf32>
      %50 = arith.addf %42, %49 : vector<28x128xf32>
      %c1_i32_43 = arith.constant 1 : i32
      %51 = arith.addi %1, %c1_i32_43 : i32
      %c0_44 = arith.constant 0 : index
      %52 = arith.index_cast %51 : i32 to index
      %c1_45 = arith.constant 1 : index
      %c0_46 = arith.constant 0 : index
      %53 = vector.load %arg1[%c0_44, %52, %c1_45, %c0_46] : memref<1x32x32x128xbf16, #tpu.memory_space<vmem>>, vector<1x1x28x128xbf16>
      %54 = vector.shape_cast %53 : vector<1x1x28x128xbf16> to vector<28x128xbf16>
      %c6 = arith.constant 6 : index
      %c0_47 = arith.constant 0 : index
      %c0_48 = arith.constant 0 : index
      %55 = vector.load %arg2[%c6, %c0_47, %c0_48] : memref<25x128x128xbf16, #tpu.memory_space<vmem>>, vector<1x128x128xbf16>
      %56 = vector.shape_cast %55 : vector<1x128x128xbf16> to vector<128x128xbf16>
      %cst_49 = arith.constant dense<0.000000e+00> : vector<28x128xf32>
      %57 = tpu.matmul %54, %56, %cst_49 {dimension_numbers = #tpu.dot_dimension_numbers<[1], [0], [0], [1], [0, 0, 1, 1], [], []>} : vector<28x128xbf16>, vector<128x128xbf16>, vector<28x128xf32> -> vector<28x128xf32>
      %58 = arith.addf %50, %57 : vector<28x128xf32>
      %c1_i32_50 = arith.constant 1 : i32
      %59 = arith.addi %1, %c1_i32_50 : i32
      %c0_51 = arith.constant 0 : index
      %60 = arith.index_cast %59 : i32 to index
      %c2_52 = arith.constant 2 : index
      %c0_53 = arith.constant 0 : index
      %61 = vector.load %arg1[%c0_51, %60, %c2_52, %c0_53] : memref<1x32x32x128xbf16, #tpu.memory_space<vmem>>, vector<1x1x28x128xbf16>
      %62 = vector.shape_cast %61 : vector<1x1x28x128xbf16> to vector<28x128xbf16>
      %c7 = arith.constant 7 : index
      %c0_54 = arith.constant 0 : index
      %c0_55 = arith.constant 0 : index
      %63 = vector.load %arg2[%c7, %c0_54, %c0_55] : memref<25x128x128xbf16, #tpu.memory_space<vmem>>, vector<1x128x128xbf16>
      %64 = vector.shape_cast %63 : vector<1x128x128xbf16> to vector<128x128xbf16>
      %cst_56 = arith.constant dense<0.000000e+00> : vector<28x128xf32>
      %65 = tpu.matmul %62, %64, %cst_56 {dimension_numbers = #tpu.dot_dimension_numbers<[1], [0], [0], [1], [0, 0, 1, 1], [], []>} : vector<28x128xbf16>, vector<128x128xbf16>, vector<28x128xf32> -> vector<28x128xf32>
      %66 = arith.addf %58, %65 : vector<28x128xf32>
      %c1_i32_57 = arith.constant 1 : i32
      %67 = arith.addi %1, %c1_i32_57 : i32
      %c0_58 = arith.constant 0 : index
      %68 = arith.index_cast %67 : i32 to index
      %c3_59 = arith.constant 3 : index
      %c0_60 = arith.constant 0 : index
      %69 = vector.load %arg1[%c0_58, %68, %c3_59, %c0_60] : memref<1x32x32x128xbf16, #tpu.memory_space<vmem>>, vector<1x1x28x128xbf16>
      %70 = vector.shape_cast %69 : vector<1x1x28x128xbf16> to vector<28x128xbf16>
      %c8 = arith.constant 8 : index
      %c0_61 = arith.constant 0 : index
      %c0_62 = arith.constant 0 : index
      %71 = vector.load %arg2[%c8, %c0_61, %c0_62] : memref<25x128x128xbf16, #tpu.memory_space<vmem>>, vector<1x128x128xbf16>
      %72 = vector.shape_cast %71 : vector<1x128x128xbf16> to vector<128x128xbf16>
      %cst_63 = arith.constant dense<0.000000e+00> : vector<28x128xf32>
      %73 = tpu.matmul %70, %72, %cst_63 {dimension_numbers = #tpu.dot_dimension_numbers<[1], [0], [0], [1], [0, 0, 1, 1], [], []>} : vector<28x128xbf16>, vector<128x128xbf16>, vector<28x128xf32> -> vector<28x128xf32>
      %74 = arith.addf %66, %73 : vector<28x128xf32>
      %c1_i32_64 = arith.constant 1 : i32
      %75 = arith.addi %1, %c1_i32_64 : i32
      %c0_65 = arith.constant 0 : index
      %76 = arith.index_cast %75 : i32 to index
      %c4_66 = arith.constant 4 : index
      %c0_67 = arith.constant 0 : index
      %77 = vector.load %arg1[%c0_65, %76, %c4_66, %c0_67] : memref<1x32x32x128xbf16, #tpu.memory_space<vmem>>, vector<1x1x28x128xbf16>
      %78 = vector.shape_cast %77 : vector<1x1x28x128xbf16> to vector<28x128xbf16>
      %c9 = arith.constant 9 : index
      %c0_68 = arith.constant 0 : index
      %c0_69 = arith.constant 0 : index
      %79 = vector.load %arg2[%c9, %c0_68, %c0_69] : memref<25x128x128xbf16, #tpu.memory_space<vmem>>, vector<1x128x128xbf16>
      %80 = vector.shape_cast %79 : vector<1x128x128xbf16> to vector<128x128xbf16>
      %cst_70 = arith.constant dense<0.000000e+00> : vector<28x128xf32>
      %81 = tpu.matmul %78, %80, %cst_70 {dimension_numbers = #tpu.dot_dimension_numbers<[1], [0], [0], [1], [0, 0, 1, 1], [], []>} : vector<28x128xbf16>, vector<128x128xbf16>, vector<28x128xf32> -> vector<28x128xf32>
      %82 = arith.addf %74, %81 : vector<28x128xf32>
      %c2_i32_71 = arith.constant 2 : i32
      %83 = arith.addi %1, %c2_i32_71 : i32
      %c0_72 = arith.constant 0 : index
      %84 = arith.index_cast %83 : i32 to index
      %c0_73 = arith.constant 0 : index
      %c0_74 = arith.constant 0 : index
      %85 = vector.load %arg1[%c0_72, %84, %c0_73, %c0_74] : memref<1x32x32x128xbf16, #tpu.memory_space<vmem>>, vector<1x1x28x128xbf16>
      %86 = vector.shape_cast %85 : vector<1x1x28x128xbf16> to vector<28x128xbf16>
      %c10 = arith.constant 10 : index
      %c0_75 = arith.constant 0 : index
      %c0_76 = arith.constant 0 : index
      %87 = vector.load %arg2[%c10, %c0_75, %c0_76] : memref<25x128x128xbf16, #tpu.memory_space<vmem>>, vector<1x128x128xbf16>
      %88 = vector.shape_cast %87 : vector<1x128x128xbf16> to vector<128x128xbf16>
      %cst_77 = arith.constant dense<0.000000e+00> : vector<28x128xf32>
      %89 = tpu.matmul %86, %88, %cst_77 {dimension_numbers = #tpu.dot_dimension_numbers<[1], [0], [0], [1], [0, 0, 1, 1], [], []>} : vector<28x128xbf16>, vector<128x128xbf16>, vector<28x128xf32> -> vector<28x128xf32>
      %90 = arith.addf %82, %89 : vector<28x128xf32>
      %c2_i32_78 = arith.constant 2 : i32
      %91 = arith.addi %1, %c2_i32_78 : i32
      %c0_79 = arith.constant 0 : index
      %92 = arith.index_cast %91 : i32 to index
      %c1_80 = arith.constant 1 : index
      %c0_81 = arith.constant 0 : index
      %93 = vector.load %arg1[%c0_79, %92, %c1_80, %c0_81] : memref<1x32x32x128xbf16, #tpu.memory_space<vmem>>, vector<1x1x28x128xbf16>
      %94 = vector.shape_cast %93 : vector<1x1x28x128xbf16> to vector<28x128xbf16>
      %c11 = arith.constant 11 : index
      %c0_82 = arith.constant 0 : index
      %c0_83 = arith.constant 0 : index
      %95 = vector.load %arg2[%c11, %c0_82, %c0_83] : memref<25x128x128xbf16, #tpu.memory_space<vmem>>, vector<1x128x128xbf16>
      %96 = vector.shape_cast %95 : vector<1x128x128xbf16> to vector<128x128xbf16>
      %cst_84 = arith.constant dense<0.000000e+00> : vector<28x128xf32>
      %97 = tpu.matmul %94, %96, %cst_84 {dimension_numbers = #tpu.dot_dimension_numbers<[1], [0], [0], [1], [0, 0, 1, 1], [], []>} : vector<28x128xbf16>, vector<128x128xbf16>, vector<28x128xf32> -> vector<28x128xf32>
      %98 = arith.addf %90, %97 : vector<28x128xf32>
      %c2_i32_85 = arith.constant 2 : i32
      %99 = arith.addi %1, %c2_i32_85 : i32
      %c0_86 = arith.constant 0 : index
      %100 = arith.index_cast %99 : i32 to index
      %c2_87 = arith.constant 2 : index
      %c0_88 = arith.constant 0 : index
      %101 = vector.load %arg1[%c0_86, %100, %c2_87, %c0_88] : memref<1x32x32x128xbf16, #tpu.memory_space<vmem>>, vector<1x1x28x128xbf16>
      %102 = vector.shape_cast %101 : vector<1x1x28x128xbf16> to vector<28x128xbf16>
      %c12 = arith.constant 12 : index
      %c0_89 = arith.constant 0 : index
      %c0_90 = arith.constant 0 : index
      %103 = vector.load %arg2[%c12, %c0_89, %c0_90] : memref<25x128x128xbf16, #tpu.memory_space<vmem>>, vector<1x128x128xbf16>
      %104 = vector.shape_cast %103 : vector<1x128x128xbf16> to vector<128x128xbf16>
      %cst_91 = arith.constant dense<0.000000e+00> : vector<28x128xf32>
      %105 = tpu.matmul %102, %104, %cst_91 {dimension_numbers = #tpu.dot_dimension_numbers<[1], [0], [0], [1], [0, 0, 1, 1], [], []>} : vector<28x128xbf16>, vector<128x128xbf16>, vector<28x128xf32> -> vector<28x128xf32>
      %106 = arith.addf %98, %105 : vector<28x128xf32>
      %c2_i32_92 = arith.constant 2 : i32
      %107 = arith.addi %1, %c2_i32_92 : i32
      %c0_93 = arith.constant 0 : index
      %108 = arith.index_cast %107 : i32 to index
      %c3_94 = arith.constant 3 : index
      %c0_95 = arith.constant 0 : index
      %109 = vector.load %arg1[%c0_93, %108, %c3_94, %c0_95] : memref<1x32x32x128xbf16, #tpu.memory_space<vmem>>, vector<1x1x28x128xbf16>
      %110 = vector.shape_cast %109 : vector<1x1x28x128xbf16> to vector<28x128xbf16>
      %c13 = arith.constant 13 : index
      %c0_96 = arith.constant 0 : index
      %c0_97 = arith.constant 0 : index
      %111 = vector.load %arg2[%c13, %c0_96, %c0_97] : memref<25x128x128xbf16, #tpu.memory_space<vmem>>, vector<1x128x128xbf16>
      %112 = vector.shape_cast %111 : vector<1x128x128xbf16> to vector<128x128xbf16>
      %cst_98 = arith.constant dense<0.000000e+00> : vector<28x128xf32>
      %113 = tpu.matmul %110, %112, %cst_98 {dimension_numbers = #tpu.dot_dimension_numbers<[1], [0], [0], [1], [0, 0, 1, 1], [], []>} : vector<28x128xbf16>, vector<128x128xbf16>, vector<28x128xf32> -> vector<28x128xf32>
      %114 = arith.addf %106, %113 : vector<28x128xf32>
      %c2_i32_99 = arith.constant 2 : i32
      %115 = arith.addi %1, %c2_i32_99 : i32
      %c0_100 = arith.constant 0 : index
      %116 = arith.index_cast %115 : i32 to index
      %c4_101 = arith.constant 4 : index
      %c0_102 = arith.constant 0 : index
      %117 = vector.load %arg1[%c0_100, %116, %c4_101, %c0_102] : memref<1x32x32x128xbf16, #tpu.memory_space<vmem>>, vector<1x1x28x128xbf16>
      %118 = vector.shape_cast %117 : vector<1x1x28x128xbf16> to vector<28x128xbf16>
      %c14 = arith.constant 14 : index
      %c0_103 = arith.constant 0 : index
      %c0_104 = arith.constant 0 : index
      %119 = vector.load %arg2[%c14, %c0_103, %c0_104] : memref<25x128x128xbf16, #tpu.memory_space<vmem>>, vector<1x128x128xbf16>
      %120 = vector.shape_cast %119 : vector<1x128x128xbf16> to vector<128x128xbf16>
      %cst_105 = arith.constant dense<0.000000e+00> : vector<28x128xf32>
      %121 = tpu.matmul %118, %120, %cst_105 {dimension_numbers = #tpu.dot_dimension_numbers<[1], [0], [0], [1], [0, 0, 1, 1], [], []>} : vector<28x128xbf16>, vector<128x128xbf16>, vector<28x128xf32> -> vector<28x128xf32>
      %122 = arith.addf %114, %121 : vector<28x128xf32>
      %c3_i32 = arith.constant 3 : i32
      %123 = arith.addi %1, %c3_i32 : i32
      %c0_106 = arith.constant 0 : index
      %124 = arith.index_cast %123 : i32 to index
      %c0_107 = arith.constant 0 : index
      %c0_108 = arith.constant 0 : index
      %125 = vector.load %arg1[%c0_106, %124, %c0_107, %c0_108] : memref<1x32x32x128xbf16, #tpu.memory_space<vmem>>, vector<1x1x28x128xbf16>
      %126 = vector.shape_cast %125 : vector<1x1x28x128xbf16> to vector<28x128xbf16>
      %c15 = arith.constant 15 : index
      %c0_109 = arith.constant 0 : index
      %c0_110 = arith.constant 0 : index
      %127 = vector.load %arg2[%c15, %c0_109, %c0_110] : memref<25x128x128xbf16, #tpu.memory_space<vmem>>, vector<1x128x128xbf16>
      %128 = vector.shape_cast %127 : vector<1x128x128xbf16> to vector<128x128xbf16>
      %cst_111 = arith.constant dense<0.000000e+00> : vector<28x128xf32>
      %129 = tpu.matmul %126, %128, %cst_111 {dimension_numbers = #tpu.dot_dimension_numbers<[1], [0], [0], [1], [0, 0, 1, 1], [], []>} : vector<28x128xbf16>, vector<128x128xbf16>, vector<28x128xf32> -> vector<28x128xf32>
      %130 = arith.addf %122, %129 : vector<28x128xf32>
      %c3_i32_112 = arith.constant 3 : i32
      %131 = arith.addi %1, %c3_i32_112 : i32
      %c0_113 = arith.constant 0 : index
      %132 = arith.index_cast %131 : i32 to index
      %c1_114 = arith.constant 1 : index
      %c0_115 = arith.constant 0 : index
      %133 = vector.load %arg1[%c0_113, %132, %c1_114, %c0_115] : memref<1x32x32x128xbf16, #tpu.memory_space<vmem>>, vector<1x1x28x128xbf16>
      %134 = vector.shape_cast %133 : vector<1x1x28x128xbf16> to vector<28x128xbf16>
      %c16 = arith.constant 16 : index
      %c0_116 = arith.constant 0 : index
      %c0_117 = arith.constant 0 : index
      %135 = vector.load %arg2[%c16, %c0_116, %c0_117] : memref<25x128x128xbf16, #tpu.memory_space<vmem>>, vector<1x128x128xbf16>
      %136 = vector.shape_cast %135 : vector<1x128x128xbf16> to vector<128x128xbf16>
      %cst_118 = arith.constant dense<0.000000e+00> : vector<28x128xf32>
      %137 = tpu.matmul %134, %136, %cst_118 {dimension_numbers = #tpu.dot_dimension_numbers<[1], [0], [0], [1], [0, 0, 1, 1], [], []>} : vector<28x128xbf16>, vector<128x128xbf16>, vector<28x128xf32> -> vector<28x128xf32>
      %138 = arith.addf %130, %137 : vector<28x128xf32>
      %c3_i32_119 = arith.constant 3 : i32
      %139 = arith.addi %1, %c3_i32_119 : i32
      %c0_120 = arith.constant 0 : index
      %140 = arith.index_cast %139 : i32 to index
      %c2_121 = arith.constant 2 : index
      %c0_122 = arith.constant 0 : index
      %141 = vector.load %arg1[%c0_120, %140, %c2_121, %c0_122] : memref<1x32x32x128xbf16, #tpu.memory_space<vmem>>, vector<1x1x28x128xbf16>
      %142 = vector.shape_cast %141 : vector<1x1x28x128xbf16> to vector<28x128xbf16>
      %c17 = arith.constant 17 : index
      %c0_123 = arith.constant 0 : index
      %c0_124 = arith.constant 0 : index
      %143 = vector.load %arg2[%c17, %c0_123, %c0_124] : memref<25x128x128xbf16, #tpu.memory_space<vmem>>, vector<1x128x128xbf16>
      %144 = vector.shape_cast %143 : vector<1x128x128xbf16> to vector<128x128xbf16>
      %cst_125 = arith.constant dense<0.000000e+00> : vector<28x128xf32>
      %145 = tpu.matmul %142, %144, %cst_125 {dimension_numbers = #tpu.dot_dimension_numbers<[1], [0], [0], [1], [0, 0, 1, 1], [], []>} : vector<28x128xbf16>, vector<128x128xbf16>, vector<28x128xf32> -> vector<28x128xf32>
      %146 = arith.addf %138, %145 : vector<28x128xf32>
      %c3_i32_126 = arith.constant 3 : i32
      %147 = arith.addi %1, %c3_i32_126 : i32
      %c0_127 = arith.constant 0 : index
      %148 = arith.index_cast %147 : i32 to index
      %c3_128 = arith.constant 3 : index
      %c0_129 = arith.constant 0 : index
      %149 = vector.load %arg1[%c0_127, %148, %c3_128, %c0_129] : memref<1x32x32x128xbf16, #tpu.memory_space<vmem>>, vector<1x1x28x128xbf16>
      %150 = vector.shape_cast %149 : vector<1x1x28x128xbf16> to vector<28x128xbf16>
      %c18 = arith.constant 18 : index
      %c0_130 = arith.constant 0 : index
      %c0_131 = arith.constant 0 : index
      %151 = vector.load %arg2[%c18, %c0_130, %c0_131] : memref<25x128x128xbf16, #tpu.memory_space<vmem>>, vector<1x128x128xbf16>
      %152 = vector.shape_cast %151 : vector<1x128x128xbf16> to vector<128x128xbf16>
      %cst_132 = arith.constant dense<0.000000e+00> : vector<28x128xf32>
      %153 = tpu.matmul %150, %152, %cst_132 {dimension_numbers = #tpu.dot_dimension_numbers<[1], [0], [0], [1], [0, 0, 1, 1], [], []>} : vector<28x128xbf16>, vector<128x128xbf16>, vector<28x128xf32> -> vector<28x128xf32>
      %154 = arith.addf %146, %153 : vector<28x128xf32>
      %c3_i32_133 = arith.constant 3 : i32
      %155 = arith.addi %1, %c3_i32_133 : i32
      %c0_134 = arith.constant 0 : index
      %156 = arith.index_cast %155 : i32 to index
      %c4_135 = arith.constant 4 : index
      %c0_136 = arith.constant 0 : index
      %157 = vector.load %arg1[%c0_134, %156, %c4_135, %c0_136] : memref<1x32x32x128xbf16, #tpu.memory_space<vmem>>, vector<1x1x28x128xbf16>
      %158 = vector.shape_cast %157 : vector<1x1x28x128xbf16> to vector<28x128xbf16>
      %c19 = arith.constant 19 : index
      %c0_137 = arith.constant 0 : index
      %c0_138 = arith.constant 0 : index
      %159 = vector.load %arg2[%c19, %c0_137, %c0_138] : memref<25x128x128xbf16, #tpu.memory_space<vmem>>, vector<1x128x128xbf16>
      %160 = vector.shape_cast %159 : vector<1x128x128xbf16> to vector<128x128xbf16>
      %cst_139 = arith.constant dense<0.000000e+00> : vector<28x128xf32>
      %161 = tpu.matmul %158, %160, %cst_139 {dimension_numbers = #tpu.dot_dimension_numbers<[1], [0], [0], [1], [0, 0, 1, 1], [], []>} : vector<28x128xbf16>, vector<128x128xbf16>, vector<28x128xf32> -> vector<28x128xf32>
      %162 = arith.addf %154, %161 : vector<28x128xf32>
      %c4_i32 = arith.constant 4 : i32
      %163 = arith.addi %1, %c4_i32 : i32
      %c0_140 = arith.constant 0 : index
      %164 = arith.index_cast %163 : i32 to index
      %c0_141 = arith.constant 0 : index
      %c0_142 = arith.constant 0 : index
      %165 = vector.load %arg1[%c0_140, %164, %c0_141, %c0_142] : memref<1x32x32x128xbf16, #tpu.memory_space<vmem>>, vector<1x1x28x128xbf16>
      %166 = vector.shape_cast %165 : vector<1x1x28x128xbf16> to vector<28x128xbf16>
      %c20 = arith.constant 20 : index
      %c0_143 = arith.constant 0 : index
      %c0_144 = arith.constant 0 : index
      %167 = vector.load %arg2[%c20, %c0_143, %c0_144] : memref<25x128x128xbf16, #tpu.memory_space<vmem>>, vector<1x128x128xbf16>
      %168 = vector.shape_cast %167 : vector<1x128x128xbf16> to vector<128x128xbf16>
      %cst_145 = arith.constant dense<0.000000e+00> : vector<28x128xf32>
      %169 = tpu.matmul %166, %168, %cst_145 {dimension_numbers = #tpu.dot_dimension_numbers<[1], [0], [0], [1], [0, 0, 1, 1], [], []>} : vector<28x128xbf16>, vector<128x128xbf16>, vector<28x128xf32> -> vector<28x128xf32>
      %170 = arith.addf %162, %169 : vector<28x128xf32>
      %c4_i32_146 = arith.constant 4 : i32
      %171 = arith.addi %1, %c4_i32_146 : i32
      %c0_147 = arith.constant 0 : index
      %172 = arith.index_cast %171 : i32 to index
      %c1_148 = arith.constant 1 : index
      %c0_149 = arith.constant 0 : index
      %173 = vector.load %arg1[%c0_147, %172, %c1_148, %c0_149] : memref<1x32x32x128xbf16, #tpu.memory_space<vmem>>, vector<1x1x28x128xbf16>
      %174 = vector.shape_cast %173 : vector<1x1x28x128xbf16> to vector<28x128xbf16>
      %c21 = arith.constant 21 : index
      %c0_150 = arith.constant 0 : index
      %c0_151 = arith.constant 0 : index
      %175 = vector.load %arg2[%c21, %c0_150, %c0_151] : memref<25x128x128xbf16, #tpu.memory_space<vmem>>, vector<1x128x128xbf16>
      %176 = vector.shape_cast %175 : vector<1x128x128xbf16> to vector<128x128xbf16>
      %cst_152 = arith.constant dense<0.000000e+00> : vector<28x128xf32>
      %177 = tpu.matmul %174, %176, %cst_152 {dimension_numbers = #tpu.dot_dimension_numbers<[1], [0], [0], [1], [0, 0, 1, 1], [], []>} : vector<28x128xbf16>, vector<128x128xbf16>, vector<28x128xf32> -> vector<28x128xf32>
      %178 = arith.addf %170, %177 : vector<28x128xf32>
      %c4_i32_153 = arith.constant 4 : i32
      %179 = arith.addi %1, %c4_i32_153 : i32
      %c0_154 = arith.constant 0 : index
      %180 = arith.index_cast %179 : i32 to index
      %c2_155 = arith.constant 2 : index
      %c0_156 = arith.constant 0 : index
      %181 = vector.load %arg1[%c0_154, %180, %c2_155, %c0_156] : memref<1x32x32x128xbf16, #tpu.memory_space<vmem>>, vector<1x1x28x128xbf16>
      %182 = vector.shape_cast %181 : vector<1x1x28x128xbf16> to vector<28x128xbf16>
      %c22 = arith.constant 22 : index
      %c0_157 = arith.constant 0 : index
      %c0_158 = arith.constant 0 : index
      %183 = vector.load %arg2[%c22, %c0_157, %c0_158] : memref<25x128x128xbf16, #tpu.memory_space<vmem>>, vector<1x128x128xbf16>
      %184 = vector.shape_cast %183 : vector<1x128x128xbf16> to vector<128x128xbf16>
      %cst_159 = arith.constant dense<0.000000e+00> : vector<28x128xf32>
      %185 = tpu.matmul %182, %184, %cst_159 {dimension_numbers = #tpu.dot_dimension_numbers<[1], [0], [0], [1], [0, 0, 1, 1], [], []>} : vector<28x128xbf16>, vector<128x128xbf16>, vector<28x128xf32> -> vector<28x128xf32>
      %186 = arith.addf %178, %185 : vector<28x128xf32>
      %c4_i32_160 = arith.constant 4 : i32
      %187 = arith.addi %1, %c4_i32_160 : i32
      %c0_161 = arith.constant 0 : index
      %188 = arith.index_cast %187 : i32 to index
      %c3_162 = arith.constant 3 : index
      %c0_163 = arith.constant 0 : index
      %189 = vector.load %arg1[%c0_161, %188, %c3_162, %c0_163] : memref<1x32x32x128xbf16, #tpu.memory_space<vmem>>, vector<1x1x28x128xbf16>
      %190 = vector.shape_cast %189 : vector<1x1x28x128xbf16> to vector<28x128xbf16>
      %c23 = arith.constant 23 : index
      %c0_164 = arith.constant 0 : index
      %c0_165 = arith.constant 0 : index
      %191 = vector.load %arg2[%c23, %c0_164, %c0_165] : memref<25x128x128xbf16, #tpu.memory_space<vmem>>, vector<1x128x128xbf16>
      %192 = vector.shape_cast %191 : vector<1x128x128xbf16> to vector<128x128xbf16>
      %cst_166 = arith.constant dense<0.000000e+00> : vector<28x128xf32>
      %193 = tpu.matmul %190, %192, %cst_166 {dimension_numbers = #tpu.dot_dimension_numbers<[1], [0], [0], [1], [0, 0, 1, 1], [], []>} : vector<28x128xbf16>, vector<128x128xbf16>, vector<28x128xf32> -> vector<28x128xf32>
      %194 = arith.addf %186, %193 : vector<28x128xf32>
      %c4_i32_167 = arith.constant 4 : i32
      %195 = arith.addi %1, %c4_i32_167 : i32
      %c0_168 = arith.constant 0 : index
      %196 = arith.index_cast %195 : i32 to index
      %c4_169 = arith.constant 4 : index
      %c0_170 = arith.constant 0 : index
      %197 = vector.load %arg1[%c0_168, %196, %c4_169, %c0_170] : memref<1x32x32x128xbf16, #tpu.memory_space<vmem>>, vector<1x1x28x128xbf16>
      %198 = vector.shape_cast %197 : vector<1x1x28x128xbf16> to vector<28x128xbf16>
      %c24 = arith.constant 24 : index
      %c0_171 = arith.constant 0 : index
      %c0_172 = arith.constant 0 : index
      %199 = vector.load %arg2[%c24, %c0_171, %c0_172] : memref<25x128x128xbf16, #tpu.memory_space<vmem>>, vector<1x128x128xbf16>
      %200 = vector.shape_cast %199 : vector<1x128x128xbf16> to vector<128x128xbf16>
      %cst_173 = arith.constant dense<0.000000e+00> : vector<28x128xf32>
      %201 = tpu.matmul %198, %200, %cst_173 {dimension_numbers = #tpu.dot_dimension_numbers<[1], [0], [0], [1], [0, 0, 1, 1], [], []>} : vector<28x128xbf16>, vector<128x128xbf16>, vector<28x128xf32> -> vector<28x128xf32>
      %202 = arith.addf %194, %201 : vector<28x128xf32>
      %c0_174 = arith.constant 0 : index
      %c0_175 = arith.constant 0 : index
      %203 = vector.load %arg3[%c0_174, %c0_175] : memref<1x128xf32, #tpu.memory_space<vmem>>, vector<1x128xf32>
      %204 = vector.broadcast %203 : vector<1x128xf32> to vector<28x128xf32>
      %205 = arith.addf %202, %204 : vector<28x128xf32>
      %cst_176 = arith.constant 0.000000e+00 : f32
      %206 = vector.broadcast %cst_176 : f32 to vector<28x128xf32>
      %207 = arith.maximumf %205, %206 : vector<28x128xf32>
      %c2_i32_177 = arith.constant 2 : i32
      %208 = arith.muli %c2_i32_177, %arg6 : i32
      %c1_i32_178 = arith.constant 1 : i32
      %209 = arith.addi %208, %c1_i32_178 : i32
      %cst_179 = arith.constant 0.000000e+00 : f32
      %210 = vector.broadcast %cst_179 : f32 to vector<28x128xf32>
      %c0_i32_180 = arith.constant 0 : i32
      %211 = arith.addi %209, %c0_i32_180 : i32
      %c0_181 = arith.constant 0 : index
      %212 = arith.index_cast %211 : i32 to index
      %c0_182 = arith.constant 0 : index
      %c0_183 = arith.constant 0 : index
      %213 = vector.load %arg1[%c0_181, %212, %c0_182, %c0_183] : memref<1x32x32x128xbf16, #tpu.memory_space<vmem>>, vector<1x1x28x128xbf16>
      %214 = vector.shape_cast %213 : vector<1x1x28x128xbf16> to vector<28x128xbf16>
      %c0_184 = arith.constant 0 : index
      %c0_185 = arith.constant 0 : index
      %c0_186 = arith.constant 0 : index
      %215 = vector.load %arg2[%c0_184, %c0_185, %c0_186] : memref<25x128x128xbf16, #tpu.memory_space<vmem>>, vector<1x128x128xbf16>
      %216 = vector.shape_cast %215 : vector<1x128x128xbf16> to vector<128x128xbf16>
      %cst_187 = arith.constant dense<0.000000e+00> : vector<28x128xf32>
      %217 = tpu.matmul %214, %216, %cst_187 {dimension_numbers = #tpu.dot_dimension_numbers<[1], [0], [0], [1], [0, 0, 1, 1], [], []>} : vector<28x128xbf16>, vector<128x128xbf16>, vector<28x128xf32> -> vector<28x128xf32>
      %218 = arith.addf %210, %217 : vector<28x128xf32>
      %c0_i32_188 = arith.constant 0 : i32
      %219 = arith.addi %209, %c0_i32_188 : i32
      %c0_189 = arith.constant 0 : index
      %220 = arith.index_cast %219 : i32 to index
      %c1_190 = arith.constant 1 : index
      %c0_191 = arith.constant 0 : index
      %221 = vector.load %arg1[%c0_189, %220, %c1_190, %c0_191] : memref<1x32x32x128xbf16, #tpu.memory_space<vmem>>, vector<1x1x28x128xbf16>
      %222 = vector.shape_cast %221 : vector<1x1x28x128xbf16> to vector<28x128xbf16>
      %c1_192 = arith.constant 1 : index
      %c0_193 = arith.constant 0 : index
      %c0_194 = arith.constant 0 : index
      %223 = vector.load %arg2[%c1_192, %c0_193, %c0_194] : memref<25x128x128xbf16, #tpu.memory_space<vmem>>, vector<1x128x128xbf16>
      %224 = vector.shape_cast %223 : vector<1x128x128xbf16> to vector<128x128xbf16>
      %cst_195 = arith.constant dense<0.000000e+00> : vector<28x128xf32>
      %225 = tpu.matmul %222, %224, %cst_195 {dimension_numbers = #tpu.dot_dimension_numbers<[1], [0], [0], [1], [0, 0, 1, 1], [], []>} : vector<28x128xbf16>, vector<128x128xbf16>, vector<28x128xf32> -> vector<28x128xf32>
      %226 = arith.addf %218, %225 : vector<28x128xf32>
      %c0_i32_196 = arith.constant 0 : i32
      %227 = arith.addi %209, %c0_i32_196 : i32
      %c0_197 = arith.constant 0 : index
      %228 = arith.index_cast %227 : i32 to index
      %c2_198 = arith.constant 2 : index
      %c0_199 = arith.constant 0 : index
      %229 = vector.load %arg1[%c0_197, %228, %c2_198, %c0_199] : memref<1x32x32x128xbf16, #tpu.memory_space<vmem>>, vector<1x1x28x128xbf16>
      %230 = vector.shape_cast %229 : vector<1x1x28x128xbf16> to vector<28x128xbf16>
      %c2_200 = arith.constant 2 : index
      %c0_201 = arith.constant 0 : index
      %c0_202 = arith.constant 0 : index
      %231 = vector.load %arg2[%c2_200, %c0_201, %c0_202] : memref<25x128x128xbf16, #tpu.memory_space<vmem>>, vector<1x128x128xbf16>
      %232 = vector.shape_cast %231 : vector<1x128x128xbf16> to vector<128x128xbf16>
      %cst_203 = arith.constant dense<0.000000e+00> : vector<28x128xf32>
      %233 = tpu.matmul %230, %232, %cst_203 {dimension_numbers = #tpu.dot_dimension_numbers<[1], [0], [0], [1], [0, 0, 1, 1], [], []>} : vector<28x128xbf16>, vector<128x128xbf16>, vector<28x128xf32> -> vector<28x128xf32>
      %234 = arith.addf %226, %233 : vector<28x128xf32>
      %c0_i32_204 = arith.constant 0 : i32
      %235 = arith.addi %209, %c0_i32_204 : i32
      %c0_205 = arith.constant 0 : index
      %236 = arith.index_cast %235 : i32 to index
      %c3_206 = arith.constant 3 : index
      %c0_207 = arith.constant 0 : index
      %237 = vector.load %arg1[%c0_205, %236, %c3_206, %c0_207] : memref<1x32x32x128xbf16, #tpu.memory_space<vmem>>, vector<1x1x28x128xbf16>
      %238 = vector.shape_cast %237 : vector<1x1x28x128xbf16> to vector<28x128xbf16>
      %c3_208 = arith.constant 3 : index
      %c0_209 = arith.constant 0 : index
      %c0_210 = arith.constant 0 : index
      %239 = vector.load %arg2[%c3_208, %c0_209, %c0_210] : memref<25x128x128xbf16, #tpu.memory_space<vmem>>, vector<1x128x128xbf16>
      %240 = vector.shape_cast %239 : vector<1x128x128xbf16> to vector<128x128xbf16>
      %cst_211 = arith.constant dense<0.000000e+00> : vector<28x128xf32>
      %241 = tpu.matmul %238, %240, %cst_211 {dimension_numbers = #tpu.dot_dimension_numbers<[1], [0], [0], [1], [0, 0, 1, 1], [], []>} : vector<28x128xbf16>, vector<128x128xbf16>, vector<28x128xf32> -> vector<28x128xf32>
      %242 = arith.addf %234, %241 : vector<28x128xf32>
      %c0_i32_212 = arith.constant 0 : i32
      %243 = arith.addi %209, %c0_i32_212 : i32
      %c0_213 = arith.constant 0 : index
      %244 = arith.index_cast %243 : i32 to index
      %c4_214 = arith.constant 4 : index
      %c0_215 = arith.constant 0 : index
      %245 = vector.load %arg1[%c0_213, %244, %c4_214, %c0_215] : memref<1x32x32x128xbf16, #tpu.memory_space<vmem>>, vector<1x1x28x128xbf16>
      %246 = vector.shape_cast %245 : vector<1x1x28x128xbf16> to vector<28x128xbf16>
      %c4_216 = arith.constant 4 : index
      %c0_217 = arith.constant 0 : index
      %c0_218 = arith.constant 0 : index
      %247 = vector.load %arg2[%c4_216, %c0_217, %c0_218] : memref<25x128x128xbf16, #tpu.memory_space<vmem>>, vector<1x128x128xbf16>
      %248 = vector.shape_cast %247 : vector<1x128x128xbf16> to vector<128x128xbf16>
      %cst_219 = arith.constant dense<0.000000e+00> : vector<28x128xf32>
      %249 = tpu.matmul %246, %248, %cst_219 {dimension_numbers = #tpu.dot_dimension_numbers<[1], [0], [0], [1], [0, 0, 1, 1], [], []>} : vector<28x128xbf16>, vector<128x128xbf16>, vector<28x128xf32> -> vector<28x128xf32>
      %250 = arith.addf %242, %249 : vector<28x128xf32>
      %c1_i32_220 = arith.constant 1 : i32
      %251 = arith.addi %209, %c1_i32_220 : i32
      %c0_221 = arith.constant 0 : index
      %252 = arith.index_cast %251 : i32 to index
      %c0_222 = arith.constant 0 : index
      %c0_223 = arith.constant 0 : index
      %253 = vector.load %arg1[%c0_221, %252, %c0_222, %c0_223] : memref<1x32x32x128xbf16, #tpu.memory_space<vmem>>, vector<1x1x28x128xbf16>
      %254 = vector.shape_cast %253 : vector<1x1x28x128xbf16> to vector<28x128xbf16>
      %c5_224 = arith.constant 5 : index
      %c0_225 = arith.constant 0 : index
      %c0_226 = arith.constant 0 : index
      %255 = vector.load %arg2[%c5_224, %c0_225, %c0_226] : memref<25x128x128xbf16, #tpu.memory_space<vmem>>, vector<1x128x128xbf16>
      %256 = vector.shape_cast %255 : vector<1x128x128xbf16> to vector<128x128xbf16>
      %cst_227 = arith.constant dense<0.000000e+00> : vector<28x128xf32>
      %257 = tpu.matmul %254, %256, %cst_227 {dimension_numbers = #tpu.dot_dimension_numbers<[1], [0], [0], [1], [0, 0, 1, 1], [], []>} : vector<28x128xbf16>, vector<128x128xbf16>, vector<28x128xf32> -> vector<28x128xf32>
      %258 = arith.addf %250, %257 : vector<28x128xf32>
      %c1_i32_228 = arith.constant 1 : i32
      %259 = arith.addi %209, %c1_i32_228 : i32
      %c0_229 = arith.constant 0 : index
      %260 = arith.index_cast %259 : i32 to index
      %c1_230 = arith.constant 1 : index
      %c0_231 = arith.constant 0 : index
      %261 = vector.load %arg1[%c0_229, %260, %c1_230, %c0_231] : memref<1x32x32x128xbf16, #tpu.memory_space<vmem>>, vector<1x1x28x128xbf16>
      %262 = vector.shape_cast %261 : vector<1x1x28x128xbf16> to vector<28x128xbf16>
      %c6_232 = arith.constant 6 : index
      %c0_233 = arith.constant 0 : index
      %c0_234 = arith.constant 0 : index
      %263 = vector.load %arg2[%c6_232, %c0_233, %c0_234] : memref<25x128x128xbf16, #tpu.memory_space<vmem>>, vector<1x128x128xbf16>
      %264 = vector.shape_cast %263 : vector<1x128x128xbf16> to vector<128x128xbf16>
      %cst_235 = arith.constant dense<0.000000e+00> : vector<28x128xf32>
      %265 = tpu.matmul %262, %264, %cst_235 {dimension_numbers = #tpu.dot_dimension_numbers<[1], [0], [0], [1], [0, 0, 1, 1], [], []>} : vector<28x128xbf16>, vector<128x128xbf16>, vector<28x128xf32> -> vector<28x128xf32>
      %266 = arith.addf %258, %265 : vector<28x128xf32>
      %c1_i32_236 = arith.constant 1 : i32
      %267 = arith.addi %209, %c1_i32_236 : i32
      %c0_237 = arith.constant 0 : index
      %268 = arith.index_cast %267 : i32 to index
      %c2_238 = arith.constant 2 : index
      %c0_239 = arith.constant 0 : index
      %269 = vector.load %arg1[%c0_237, %268, %c2_238, %c0_239] : memref<1x32x32x128xbf16, #tpu.memory_space<vmem>>, vector<1x1x28x128xbf16>
      %270 = vector.shape_cast %269 : vector<1x1x28x128xbf16> to vector<28x128xbf16>
      %c7_240 = arith.constant 7 : index
      %c0_241 = arith.constant 0 : index
      %c0_242 = arith.constant 0 : index
      %271 = vector.load %arg2[%c7_240, %c0_241, %c0_242] : memref<25x128x128xbf16, #tpu.memory_space<vmem>>, vector<1x128x128xbf16>
      %272 = vector.shape_cast %271 : vector<1x128x128xbf16> to vector<128x128xbf16>
      %cst_243 = arith.constant dense<0.000000e+00> : vector<28x128xf32>
      %273 = tpu.matmul %270, %272, %cst_243 {dimension_numbers = #tpu.dot_dimension_numbers<[1], [0], [0], [1], [0, 0, 1, 1], [], []>} : vector<28x128xbf16>, vector<128x128xbf16>, vector<28x128xf32> -> vector<28x128xf32>
      %274 = arith.addf %266, %273 : vector<28x128xf32>
      %c1_i32_244 = arith.constant 1 : i32
      %275 = arith.addi %209, %c1_i32_244 : i32
      %c0_245 = arith.constant 0 : index
      %276 = arith.index_cast %275 : i32 to index
      %c3_246 = arith.constant 3 : index
      %c0_247 = arith.constant 0 : index
      %277 = vector.load %arg1[%c0_245, %276, %c3_246, %c0_247] : memref<1x32x32x128xbf16, #tpu.memory_space<vmem>>, vector<1x1x28x128xbf16>
      %278 = vector.shape_cast %277 : vector<1x1x28x128xbf16> to vector<28x128xbf16>
      %c8_248 = arith.constant 8 : index
      %c0_249 = arith.constant 0 : index
      %c0_250 = arith.constant 0 : index
      %279 = vector.load %arg2[%c8_248, %c0_249, %c0_250] : memref<25x128x128xbf16, #tpu.memory_space<vmem>>, vector<1x128x128xbf16>
      %280 = vector.shape_cast %279 : vector<1x128x128xbf16> to vector<128x128xbf16>
      %cst_251 = arith.constant dense<0.000000e+00> : vector<28x128xf32>
      %281 = tpu.matmul %278, %280, %cst_251 {dimension_numbers = #tpu.dot_dimension_numbers<[1], [0], [0], [1], [0, 0, 1, 1], [], []>} : vector<28x128xbf16>, vector<128x128xbf16>, vector<28x128xf32> -> vector<28x128xf32>
      %282 = arith.addf %274, %281 : vector<28x128xf32>
      %c1_i32_252 = arith.constant 1 : i32
      %283 = arith.addi %209, %c1_i32_252 : i32
      %c0_253 = arith.constant 0 : index
      %284 = arith.index_cast %283 : i32 to index
      %c4_254 = arith.constant 4 : index
      %c0_255 = arith.constant 0 : index
      %285 = vector.load %arg1[%c0_253, %284, %c4_254, %c0_255] : memref<1x32x32x128xbf16, #tpu.memory_space<vmem>>, vector<1x1x28x128xbf16>
      %286 = vector.shape_cast %285 : vector<1x1x28x128xbf16> to vector<28x128xbf16>
      %c9_256 = arith.constant 9 : index
      %c0_257 = arith.constant 0 : index
      %c0_258 = arith.constant 0 : index
      %287 = vector.load %arg2[%c9_256, %c0_257, %c0_258] : memref<25x128x128xbf16, #tpu.memory_space<vmem>>, vector<1x128x128xbf16>
      %288 = vector.shape_cast %287 : vector<1x128x128xbf16> to vector<128x128xbf16>
      %cst_259 = arith.constant dense<0.000000e+00> : vector<28x128xf32>
      %289 = tpu.matmul %286, %288, %cst_259 {dimension_numbers = #tpu.dot_dimension_numbers<[1], [0], [0], [1], [0, 0, 1, 1], [], []>} : vector<28x128xbf16>, vector<128x128xbf16>, vector<28x128xf32> -> vector<28x128xf32>
      %290 = arith.addf %282, %289 : vector<28x128xf32>
      %c2_i32_260 = arith.constant 2 : i32
      %291 = arith.addi %209, %c2_i32_260 : i32
      %c0_261 = arith.constant 0 : index
      %292 = arith.index_cast %291 : i32 to index
      %c0_262 = arith.constant 0 : index
      %c0_263 = arith.constant 0 : index
      %293 = vector.load %arg1[%c0_261, %292, %c0_262, %c0_263] : memref<1x32x32x128xbf16, #tpu.memory_space<vmem>>, vector<1x1x28x128xbf16>
      %294 = vector.shape_cast %293 : vector<1x1x28x128xbf16> to vector<28x128xbf16>
      %c10_264 = arith.constant 10 : index
      %c0_265 = arith.constant 0 : index
      %c0_266 = arith.constant 0 : index
      %295 = vector.load %arg2[%c10_264, %c0_265, %c0_266] : memref<25x128x128xbf16, #tpu.memory_space<vmem>>, vector<1x128x128xbf16>
      %296 = vector.shape_cast %295 : vector<1x128x128xbf16> to vector<128x128xbf16>
      %cst_267 = arith.constant dense<0.000000e+00> : vector<28x128xf32>
      %297 = tpu.matmul %294, %296, %cst_267 {dimension_numbers = #tpu.dot_dimension_numbers<[1], [0], [0], [1], [0, 0, 1, 1], [], []>} : vector<28x128xbf16>, vector<128x128xbf16>, vector<28x128xf32> -> vector<28x128xf32>
      %298 = arith.addf %290, %297 : vector<28x128xf32>
      %c2_i32_268 = arith.constant 2 : i32
      %299 = arith.addi %209, %c2_i32_268 : i32
      %c0_269 = arith.constant 0 : index
      %300 = arith.index_cast %299 : i32 to index
      %c1_270 = arith.constant 1 : index
      %c0_271 = arith.constant 0 : index
      %301 = vector.load %arg1[%c0_269, %300, %c1_270, %c0_271] : memref<1x32x32x128xbf16, #tpu.memory_space<vmem>>, vector<1x1x28x128xbf16>
      %302 = vector.shape_cast %301 : vector<1x1x28x128xbf16> to vector<28x128xbf16>
      %c11_272 = arith.constant 11 : index
      %c0_273 = arith.constant 0 : index
      %c0_274 = arith.constant 0 : index
      %303 = vector.load %arg2[%c11_272, %c0_273, %c0_274] : memref<25x128x128xbf16, #tpu.memory_space<vmem>>, vector<1x128x128xbf16>
      %304 = vector.shape_cast %303 : vector<1x128x128xbf16> to vector<128x128xbf16>
      %cst_275 = arith.constant dense<0.000000e+00> : vector<28x128xf32>
      %305 = tpu.matmul %302, %304, %cst_275 {dimension_numbers = #tpu.dot_dimension_numbers<[1], [0], [0], [1], [0, 0, 1, 1], [], []>} : vector<28x128xbf16>, vector<128x128xbf16>, vector<28x128xf32> -> vector<28x128xf32>
      %306 = arith.addf %298, %305 : vector<28x128xf32>
      %c2_i32_276 = arith.constant 2 : i32
      %307 = arith.addi %209, %c2_i32_276 : i32
      %c0_277 = arith.constant 0 : index
      %308 = arith.index_cast %307 : i32 to index
      %c2_278 = arith.constant 2 : index
      %c0_279 = arith.constant 0 : index
      %309 = vector.load %arg1[%c0_277, %308, %c2_278, %c0_279] : memref<1x32x32x128xbf16, #tpu.memory_space<vmem>>, vector<1x1x28x128xbf16>
      %310 = vector.shape_cast %309 : vector<1x1x28x128xbf16> to vector<28x128xbf16>
      %c12_280 = arith.constant 12 : index
      %c0_281 = arith.constant 0 : index
      %c0_282 = arith.constant 0 : index
      %311 = vector.load %arg2[%c12_280, %c0_281, %c0_282] : memref<25x128x128xbf16, #tpu.memory_space<vmem>>, vector<1x128x128xbf16>
      %312 = vector.shape_cast %311 : vector<1x128x128xbf16> to vector<128x128xbf16>
      %cst_283 = arith.constant dense<0.000000e+00> : vector<28x128xf32>
      %313 = tpu.matmul %310, %312, %cst_283 {dimension_numbers = #tpu.dot_dimension_numbers<[1], [0], [0], [1], [0, 0, 1, 1], [], []>} : vector<28x128xbf16>, vector<128x128xbf16>, vector<28x128xf32> -> vector<28x128xf32>
      %314 = arith.addf %306, %313 : vector<28x128xf32>
      %c2_i32_284 = arith.constant 2 : i32
      %315 = arith.addi %209, %c2_i32_284 : i32
      %c0_285 = arith.constant 0 : index
      %316 = arith.index_cast %315 : i32 to index
      %c3_286 = arith.constant 3 : index
      %c0_287 = arith.constant 0 : index
      %317 = vector.load %arg1[%c0_285, %316, %c3_286, %c0_287] : memref<1x32x32x128xbf16, #tpu.memory_space<vmem>>, vector<1x1x28x128xbf16>
      %318 = vector.shape_cast %317 : vector<1x1x28x128xbf16> to vector<28x128xbf16>
      %c13_288 = arith.constant 13 : index
      %c0_289 = arith.constant 0 : index
      %c0_290 = arith.constant 0 : index
      %319 = vector.load %arg2[%c13_288, %c0_289, %c0_290] : memref<25x128x128xbf16, #tpu.memory_space<vmem>>, vector<1x128x128xbf16>
      %320 = vector.shape_cast %319 : vector<1x128x128xbf16> to vector<128x128xbf16>
      %cst_291 = arith.constant dense<0.000000e+00> : vector<28x128xf32>
      %321 = tpu.matmul %318, %320, %cst_291 {dimension_numbers = #tpu.dot_dimension_numbers<[1], [0], [0], [1], [0, 0, 1, 1], [], []>} : vector<28x128xbf16>, vector<128x128xbf16>, vector<28x128xf32> -> vector<28x128xf32>
      %322 = arith.addf %314, %321 : vector<28x128xf32>
      %c2_i32_292 = arith.constant 2 : i32
      %323 = arith.addi %209, %c2_i32_292 : i32
      %c0_293 = arith.constant 0 : index
      %324 = arith.index_cast %323 : i32 to index
      %c4_294 = arith.constant 4 : index
      %c0_295 = arith.constant 0 : index
      %325 = vector.load %arg1[%c0_293, %324, %c4_294, %c0_295] : memref<1x32x32x128xbf16, #tpu.memory_space<vmem>>, vector<1x1x28x128xbf16>
      %326 = vector.shape_cast %325 : vector<1x1x28x128xbf16> to vector<28x128xbf16>
      %c14_296 = arith.constant 14 : index
      %c0_297 = arith.constant 0 : index
      %c0_298 = arith.constant 0 : index
      %327 = vector.load %arg2[%c14_296, %c0_297, %c0_298] : memref<25x128x128xbf16, #tpu.memory_space<vmem>>, vector<1x128x128xbf16>
      %328 = vector.shape_cast %327 : vector<1x128x128xbf16> to vector<128x128xbf16>
      %cst_299 = arith.constant dense<0.000000e+00> : vector<28x128xf32>
      %329 = tpu.matmul %326, %328, %cst_299 {dimension_numbers = #tpu.dot_dimension_numbers<[1], [0], [0], [1], [0, 0, 1, 1], [], []>} : vector<28x128xbf16>, vector<128x128xbf16>, vector<28x128xf32> -> vector<28x128xf32>
      %330 = arith.addf %322, %329 : vector<28x128xf32>
      %c3_i32_300 = arith.constant 3 : i32
      %331 = arith.addi %209, %c3_i32_300 : i32
      %c0_301 = arith.constant 0 : index
      %332 = arith.index_cast %331 : i32 to index
      %c0_302 = arith.constant 0 : index
      %c0_303 = arith.constant 0 : index
      %333 = vector.load %arg1[%c0_301, %332, %c0_302, %c0_303] : memref<1x32x32x128xbf16, #tpu.memory_space<vmem>>, vector<1x1x28x128xbf16>
      %334 = vector.shape_cast %333 : vector<1x1x28x128xbf16> to vector<28x128xbf16>
      %c15_304 = arith.constant 15 : index
      %c0_305 = arith.constant 0 : index
      %c0_306 = arith.constant 0 : index
      %335 = vector.load %arg2[%c15_304, %c0_305, %c0_306] : memref<25x128x128xbf16, #tpu.memory_space<vmem>>, vector<1x128x128xbf16>
      %336 = vector.shape_cast %335 : vector<1x128x128xbf16> to vector<128x128xbf16>
      %cst_307 = arith.constant dense<0.000000e+00> : vector<28x128xf32>
      %337 = tpu.matmul %334, %336, %cst_307 {dimension_numbers = #tpu.dot_dimension_numbers<[1], [0], [0], [1], [0, 0, 1, 1], [], []>} : vector<28x128xbf16>, vector<128x128xbf16>, vector<28x128xf32> -> vector<28x128xf32>
      %338 = arith.addf %330, %337 : vector<28x128xf32>
      %c3_i32_308 = arith.constant 3 : i32
      %339 = arith.addi %209, %c3_i32_308 : i32
      %c0_309 = arith.constant 0 : index
      %340 = arith.index_cast %339 : i32 to index
      %c1_310 = arith.constant 1 : index
      %c0_311 = arith.constant 0 : index
      %341 = vector.load %arg1[%c0_309, %340, %c1_310, %c0_311] : memref<1x32x32x128xbf16, #tpu.memory_space<vmem>>, vector<1x1x28x128xbf16>
      %342 = vector.shape_cast %341 : vector<1x1x28x128xbf16> to vector<28x128xbf16>
      %c16_312 = arith.constant 16 : index
      %c0_313 = arith.constant 0 : index
      %c0_314 = arith.constant 0 : index
      %343 = vector.load %arg2[%c16_312, %c0_313, %c0_314] : memref<25x128x128xbf16, #tpu.memory_space<vmem>>, vector<1x128x128xbf16>
      %344 = vector.shape_cast %343 : vector<1x128x128xbf16> to vector<128x128xbf16>
      %cst_315 = arith.constant dense<0.000000e+00> : vector<28x128xf32>
      %345 = tpu.matmul %342, %344, %cst_315 {dimension_numbers = #tpu.dot_dimension_numbers<[1], [0], [0], [1], [0, 0, 1, 1], [], []>} : vector<28x128xbf16>, vector<128x128xbf16>, vector<28x128xf32> -> vector<28x128xf32>
      %346 = arith.addf %338, %345 : vector<28x128xf32>
      %c3_i32_316 = arith.constant 3 : i32
      %347 = arith.addi %209, %c3_i32_316 : i32
      %c0_317 = arith.constant 0 : index
      %348 = arith.index_cast %347 : i32 to index
      %c2_318 = arith.constant 2 : index
      %c0_319 = arith.constant 0 : index
      %349 = vector.load %arg1[%c0_317, %348, %c2_318, %c0_319] : memref<1x32x32x128xbf16, #tpu.memory_space<vmem>>, vector<1x1x28x128xbf16>
      %350 = vector.shape_cast %349 : vector<1x1x28x128xbf16> to vector<28x128xbf16>
      %c17_320 = arith.constant 17 : index
      %c0_321 = arith.constant 0 : index
      %c0_322 = arith.constant 0 : index
      %351 = vector.load %arg2[%c17_320, %c0_321, %c0_322] : memref<25x128x128xbf16, #tpu.memory_space<vmem>>, vector<1x128x128xbf16>
      %352 = vector.shape_cast %351 : vector<1x128x128xbf16> to vector<128x128xbf16>
      %cst_323 = arith.constant dense<0.000000e+00> : vector<28x128xf32>
      %353 = tpu.matmul %350, %352, %cst_323 {dimension_numbers = #tpu.dot_dimension_numbers<[1], [0], [0], [1], [0, 0, 1, 1], [], []>} : vector<28x128xbf16>, vector<128x128xbf16>, vector<28x128xf32> -> vector<28x128xf32>
      %354 = arith.addf %346, %353 : vector<28x128xf32>
      %c3_i32_324 = arith.constant 3 : i32
      %355 = arith.addi %209, %c3_i32_324 : i32
      %c0_325 = arith.constant 0 : index
      %356 = arith.index_cast %355 : i32 to index
      %c3_326 = arith.constant 3 : index
      %c0_327 = arith.constant 0 : index
      %357 = vector.load %arg1[%c0_325, %356, %c3_326, %c0_327] : memref<1x32x32x128xbf16, #tpu.memory_space<vmem>>, vector<1x1x28x128xbf16>
      %358 = vector.shape_cast %357 : vector<1x1x28x128xbf16> to vector<28x128xbf16>
      %c18_328 = arith.constant 18 : index
      %c0_329 = arith.constant 0 : index
      %c0_330 = arith.constant 0 : index
      %359 = vector.load %arg2[%c18_328, %c0_329, %c0_330] : memref<25x128x128xbf16, #tpu.memory_space<vmem>>, vector<1x128x128xbf16>
      %360 = vector.shape_cast %359 : vector<1x128x128xbf16> to vector<128x128xbf16>
      %cst_331 = arith.constant dense<0.000000e+00> : vector<28x128xf32>
      %361 = tpu.matmul %358, %360, %cst_331 {dimension_numbers = #tpu.dot_dimension_numbers<[1], [0], [0], [1], [0, 0, 1, 1], [], []>} : vector<28x128xbf16>, vector<128x128xbf16>, vector<28x128xf32> -> vector<28x128xf32>
      %362 = arith.addf %354, %361 : vector<28x128xf32>
      %c3_i32_332 = arith.constant 3 : i32
      %363 = arith.addi %209, %c3_i32_332 : i32
      %c0_333 = arith.constant 0 : index
      %364 = arith.index_cast %363 : i32 to index
      %c4_334 = arith.constant 4 : index
      %c0_335 = arith.constant 0 : index
      %365 = vector.load %arg1[%c0_333, %364, %c4_334, %c0_335] : memref<1x32x32x128xbf16, #tpu.memory_space<vmem>>, vector<1x1x28x128xbf16>
      %366 = vector.shape_cast %365 : vector<1x1x28x128xbf16> to vector<28x128xbf16>
      %c19_336 = arith.constant 19 : index
      %c0_337 = arith.constant 0 : index
      %c0_338 = arith.constant 0 : index
      %367 = vector.load %arg2[%c19_336, %c0_337, %c0_338] : memref<25x128x128xbf16, #tpu.memory_space<vmem>>, vector<1x128x128xbf16>
      %368 = vector.shape_cast %367 : vector<1x128x128xbf16> to vector<128x128xbf16>
      %cst_339 = arith.constant dense<0.000000e+00> : vector<28x128xf32>
      %369 = tpu.matmul %366, %368, %cst_339 {dimension_numbers = #tpu.dot_dimension_numbers<[1], [0], [0], [1], [0, 0, 1, 1], [], []>} : vector<28x128xbf16>, vector<128x128xbf16>, vector<28x128xf32> -> vector<28x128xf32>
      %370 = arith.addf %362, %369 : vector<28x128xf32>
      %c4_i32_340 = arith.constant 4 : i32
      %371 = arith.addi %209, %c4_i32_340 : i32
      %c0_341 = arith.constant 0 : index
      %372 = arith.index_cast %371 : i32 to index
      %c0_342 = arith.constant 0 : index
      %c0_343 = arith.constant 0 : index
      %373 = vector.load %arg1[%c0_341, %372, %c0_342, %c0_343] : memref<1x32x32x128xbf16, #tpu.memory_space<vmem>>, vector<1x1x28x128xbf16>
      %374 = vector.shape_cast %373 : vector<1x1x28x128xbf16> to vector<28x128xbf16>
      %c20_344 = arith.constant 20 : index
      %c0_345 = arith.constant 0 : index
      %c0_346 = arith.constant 0 : index
      %375 = vector.load %arg2[%c20_344, %c0_345, %c0_346] : memref<25x128x128xbf16, #tpu.memory_space<vmem>>, vector<1x128x128xbf16>
      %376 = vector.shape_cast %375 : vector<1x128x128xbf16> to vector<128x128xbf16>
      %cst_347 = arith.constant dense<0.000000e+00> : vector<28x128xf32>
      %377 = tpu.matmul %374, %376, %cst_347 {dimension_numbers = #tpu.dot_dimension_numbers<[1], [0], [0], [1], [0, 0, 1, 1], [], []>} : vector<28x128xbf16>, vector<128x128xbf16>, vector<28x128xf32> -> vector<28x128xf32>
      %378 = arith.addf %370, %377 : vector<28x128xf32>
      %c4_i32_348 = arith.constant 4 : i32
      %379 = arith.addi %209, %c4_i32_348 : i32
      %c0_349 = arith.constant 0 : index
      %380 = arith.index_cast %379 : i32 to index
      %c1_350 = arith.constant 1 : index
      %c0_351 = arith.constant 0 : index
      %381 = vector.load %arg1[%c0_349, %380, %c1_350, %c0_351] : memref<1x32x32x128xbf16, #tpu.memory_space<vmem>>, vector<1x1x28x128xbf16>
      %382 = vector.shape_cast %381 : vector<1x1x28x128xbf16> to vector<28x128xbf16>
      %c21_352 = arith.constant 21 : index
      %c0_353 = arith.constant 0 : index
      %c0_354 = arith.constant 0 : index
      %383 = vector.load %arg2[%c21_352, %c0_353, %c0_354] : memref<25x128x128xbf16, #tpu.memory_space<vmem>>, vector<1x128x128xbf16>
      %384 = vector.shape_cast %383 : vector<1x128x128xbf16> to vector<128x128xbf16>
      %cst_355 = arith.constant dense<0.000000e+00> : vector<28x128xf32>
      %385 = tpu.matmul %382, %384, %cst_355 {dimension_numbers = #tpu.dot_dimension_numbers<[1], [0], [0], [1], [0, 0, 1, 1], [], []>} : vector<28x128xbf16>, vector<128x128xbf16>, vector<28x128xf32> -> vector<28x128xf32>
      %386 = arith.addf %378, %385 : vector<28x128xf32>
      %c4_i32_356 = arith.constant 4 : i32
      %387 = arith.addi %209, %c4_i32_356 : i32
      %c0_357 = arith.constant 0 : index
      %388 = arith.index_cast %387 : i32 to index
      %c2_358 = arith.constant 2 : index
      %c0_359 = arith.constant 0 : index
      %389 = vector.load %arg1[%c0_357, %388, %c2_358, %c0_359] : memref<1x32x32x128xbf16, #tpu.memory_space<vmem>>, vector<1x1x28x128xbf16>
      %390 = vector.shape_cast %389 : vector<1x1x28x128xbf16> to vector<28x128xbf16>
      %c22_360 = arith.constant 22 : index
      %c0_361 = arith.constant 0 : index
      %c0_362 = arith.constant 0 : index
      %391 = vector.load %arg2[%c22_360, %c0_361, %c0_362] : memref<25x128x128xbf16, #tpu.memory_space<vmem>>, vector<1x128x128xbf16>
      %392 = vector.shape_cast %391 : vector<1x128x128xbf16> to vector<128x128xbf16>
      %cst_363 = arith.constant dense<0.000000e+00> : vector<28x128xf32>
      %393 = tpu.matmul %390, %392, %cst_363 {dimension_numbers = #tpu.dot_dimension_numbers<[1], [0], [0], [1], [0, 0, 1, 1], [], []>} : vector<28x128xbf16>, vector<128x128xbf16>, vector<28x128xf32> -> vector<28x128xf32>
      %394 = arith.addf %386, %393 : vector<28x128xf32>
      %c4_i32_364 = arith.constant 4 : i32
      %395 = arith.addi %209, %c4_i32_364 : i32
      %c0_365 = arith.constant 0 : index
      %396 = arith.index_cast %395 : i32 to index
      %c3_366 = arith.constant 3 : index
      %c0_367 = arith.constant 0 : index
      %397 = vector.load %arg1[%c0_365, %396, %c3_366, %c0_367] : memref<1x32x32x128xbf16, #tpu.memory_space<vmem>>, vector<1x1x28x128xbf16>
      %398 = vector.shape_cast %397 : vector<1x1x28x128xbf16> to vector<28x128xbf16>
      %c23_368 = arith.constant 23 : index
      %c0_369 = arith.constant 0 : index
      %c0_370 = arith.constant 0 : index
      %399 = vector.load %arg2[%c23_368, %c0_369, %c0_370] : memref<25x128x128xbf16, #tpu.memory_space<vmem>>, vector<1x128x128xbf16>
      %400 = vector.shape_cast %399 : vector<1x128x128xbf16> to vector<128x128xbf16>
      %cst_371 = arith.constant dense<0.000000e+00> : vector<28x128xf32>
      %401 = tpu.matmul %398, %400, %cst_371 {dimension_numbers = #tpu.dot_dimension_numbers<[1], [0], [0], [1], [0, 0, 1, 1], [], []>} : vector<28x128xbf16>, vector<128x128xbf16>, vector<28x128xf32> -> vector<28x128xf32>
      %402 = arith.addf %394, %401 : vector<28x128xf32>
      %c4_i32_372 = arith.constant 4 : i32
      %403 = arith.addi %209, %c4_i32_372 : i32
      %c0_373 = arith.constant 0 : index
      %404 = arith.index_cast %403 : i32 to index
      %c4_374 = arith.constant 4 : index
      %c0_375 = arith.constant 0 : index
      %405 = vector.load %arg1[%c0_373, %404, %c4_374, %c0_375] : memref<1x32x32x128xbf16, #tpu.memory_space<vmem>>, vector<1x1x28x128xbf16>
      %406 = vector.shape_cast %405 : vector<1x1x28x128xbf16> to vector<28x128xbf16>
      %c24_376 = arith.constant 24 : index
      %c0_377 = arith.constant 0 : index
      %c0_378 = arith.constant 0 : index
      %407 = vector.load %arg2[%c24_376, %c0_377, %c0_378] : memref<25x128x128xbf16, #tpu.memory_space<vmem>>, vector<1x128x128xbf16>
      %408 = vector.shape_cast %407 : vector<1x128x128xbf16> to vector<128x128xbf16>
      %cst_379 = arith.constant dense<0.000000e+00> : vector<28x128xf32>
      %409 = tpu.matmul %406, %408, %cst_379 {dimension_numbers = #tpu.dot_dimension_numbers<[1], [0], [0], [1], [0, 0, 1, 1], [], []>} : vector<28x128xbf16>, vector<128x128xbf16>, vector<28x128xf32> -> vector<28x128xf32>
      %410 = arith.addf %402, %409 : vector<28x128xf32>
      %c0_380 = arith.constant 0 : index
      %c0_381 = arith.constant 0 : index
      %411 = vector.load %arg3[%c0_380, %c0_381] : memref<1x128xf32, #tpu.memory_space<vmem>>, vector<1x128xf32>
      %412 = vector.broadcast %411 : vector<1x128xf32> to vector<28x128xf32>
      %413 = arith.addf %410, %412 : vector<28x128xf32>
      %cst_382 = arith.constant 0.000000e+00 : f32
      %414 = vector.broadcast %cst_382 : f32 to vector<28x128xf32>
      %415 = arith.maximumf %413, %414 : vector<28x128xf32>
      %416 = arith.maximumf %207, %415 : vector<28x128xf32>
      %c0_383 = arith.constant 0 : index
      %c0_384 = arith.constant 0 : index
      %417 = vector.load %arg5[%c0_383, %c0_384] : memref<28x128xf32, #tpu.memory_space<vmem>>, vector<28x128xf32>
      tpu.vector_store %arg5[%c0_383, %c0_384], %416 {strides = array<i32>} : memref<28x128xf32, #tpu.memory_space<vmem>>, vector<28x128xf32>,
      %c0_385 = arith.constant 0 : index
      %c0_386 = arith.constant 0 : index
      %418 = tpu.strided_load %arg5[%c0_385, %c0_386] {strides = array<i32: 2, 1>} : memref<28x128xf32, #tpu.memory_space<vmem>>, vector<14x128xf32>
      %c1_387 = arith.constant 1 : index
      %c0_388 = arith.constant 0 : index
      %419 = tpu.strided_load %arg5[%c1_387, %c0_388] {strides = array<i32: 2, 1>} : memref<28x128xf32, #tpu.memory_space<vmem>>, vector<14x128xf32>
      %420 = arith.maximumf %418, %419 : vector<14x128xf32>
      %421 = arith.truncf %420 : vector<14x128xf32> to vector<14x128xbf16>
      %c0_389 = arith.constant 0 : index
      %422 = arith.index_cast %arg6 : i32 to index
      %c0_390 = arith.constant 0 : index
      %c0_391 = arith.constant 0 : index
      %423 = vector.load %arg4[%c0_389, %422, %c0_390, %c0_391] : memref<1x14x14x128xbf16, #tpu.memory_space<vmem>>, vector<1x1x14x128xbf16>
      %424 = vector.shape_cast %423 : vector<1x1x14x128xbf16> to vector<14x128xbf16>
      %425 = vector.shape_cast %421 : vector<14x128xbf16> to vector<1x1x14x128xbf16>
      tpu.vector_store %arg4[%c0_389, %422, %c0_390, %c0_391], %425 {strides = array<i32>} : memref<1x14x14x128xbf16, #tpu.memory_space<vmem>>, vector<1x1x14x128xbf16>,
    }
    %c14_i32_0 = arith.constant 14 : i32
    return
  }
  func.func @transform_0(%arg0: i32) -> (i32, i32, i32, i32) {
    %c0_i32 = arith.constant 0 : i32
    %c0_i32_0 = arith.constant 0 : i32
    %c0_i32_1 = arith.constant 0 : i32
    %c0_i32_2 = arith.constant 0 : i32
    return %arg0, %c0_i32, %c0_i32_0, %c0_i32_1 : i32, i32, i32, i32
  }
  func.func @transform_1(%arg0: i32) -> (i32, i32, i32) {
    %c0_i32 = arith.constant 0 : i32
    %c0_i32_0 = arith.constant 0 : i32
    %c0_i32_1 = arith.constant 0 : i32
    %c0_i32_2 = arith.constant 0 : i32
    return %c0_i32, %c0_i32_0, %c0_i32_1 : i32, i32, i32
  }
  func.func @transform_2(%arg0: i32) -> (i32, i32) {
    %c0_i32 = arith.constant 0 : i32
    %c0_i32_0 = arith.constant 0 : i32
    %c0_i32_1 = arith.constant 0 : i32
    return %c0_i32, %c0_i32_0 : i32, i32
  }
  func.func @transform_3(%arg0: i32) -> (i32, i32, i32, i32) {
    %c0_i32 = arith.constant 0 : i32
    %c0_i32_0 = arith.constant 0 : i32
    %c0_i32_1 = arith.constant 0 : i32
    %c0_i32_2 = arith.constant 0 : i32
    return %arg0, %c0_i32, %c0_i32_0, %c0_i32_1 : i32, i32, i32, i32
  }
}

module attributes {stable_mosaic.version = 11 : i64} {
  func.func @_conv_relu_pool_kernel(%arg0: i32, %arg1: memref<1x16x16x128xbf16, #tpu.memory_space<vmem>>, %arg2: memref<9x128x128xbf16, #tpu.memory_space<vmem>>, %arg3: memref<1x128xf32, #tpu.memory_space<vmem>>, %arg4: memref<1x7x7x128xbf16, #tpu.memory_space<vmem>>, %arg5: memref<14x128xf32, #tpu.memory_space<vmem>>) attributes {dimension_semantics = [#tpu.dimension_semantics<parallel>], iteration_bounds = array<i64: 2>, scalar_prefetch = 0 : i64, scratch_operands = 1 : i64, tpu.core_type = #tpu.core_type<tc>, window_params = [{transform_indices = @transform_0, window_bounds = array<i64: 1, 16, 16, 128>}, {pipeline_mode = #tpu.pipeline_mode<synchronous>, transform_indices = @transform_1, window_bounds = array<i64: 9, 128, 128>}, {pipeline_mode = #tpu.pipeline_mode<synchronous>, transform_indices = @transform_2, window_bounds = array<i64: 1, 128>}, {transform_indices = @transform_3, window_bounds = array<i64: 1, 7, 7, 128>}]} {
    %c0_i32 = arith.constant 0 : i32
    %c7_i32 = arith.constant 7 : i32
    %0 = arith.addi %c0_i32, %c7_i32 : i32
    %c1_i32 = arith.constant 1 : i32
    scf.for %arg6 = %c0_i32 to %0 step %c1_i32  : i32 {
      %c2_i32 = arith.constant 2 : i32
      %1 = arith.muli %c2_i32, %arg6 : i32
      %cst = arith.constant 0.000000e+00 : f32
      %2 = vector.broadcast %cst : f32 to vector<14x128xf32>
      %c0_i32_1 = arith.constant 0 : i32
      %3 = arith.addi %1, %c0_i32_1 : i32
      %c0 = arith.constant 0 : index
      %4 = arith.index_cast %3 : i32 to index
      %c0_2 = arith.constant 0 : index
      %c0_3 = arith.constant 0 : index
      %5 = vector.load %arg1[%c0, %4, %c0_2, %c0_3] : memref<1x16x16x128xbf16, #tpu.memory_space<vmem>>, vector<1x1x14x128xbf16>
      %6 = vector.shape_cast %5 : vector<1x1x14x128xbf16> to vector<14x128xbf16>
      %c0_4 = arith.constant 0 : index
      %c0_5 = arith.constant 0 : index
      %c0_6 = arith.constant 0 : index
      %7 = vector.load %arg2[%c0_4, %c0_5, %c0_6] : memref<9x128x128xbf16, #tpu.memory_space<vmem>>, vector<1x128x128xbf16>
      %8 = vector.shape_cast %7 : vector<1x128x128xbf16> to vector<128x128xbf16>
      %cst_7 = arith.constant dense<0.000000e+00> : vector<14x128xf32>
      %9 = tpu.matmul %6, %8, %cst_7 {dimension_numbers = #tpu.dot_dimension_numbers<[1], [0], [0], [1], [0, 0, 1, 1], [], []>} : vector<14x128xbf16>, vector<128x128xbf16>, vector<14x128xf32> -> vector<14x128xf32>
      %10 = arith.addf %2, %9 : vector<14x128xf32>
      %c0_i32_8 = arith.constant 0 : i32
      %11 = arith.addi %1, %c0_i32_8 : i32
      %c0_9 = arith.constant 0 : index
      %12 = arith.index_cast %11 : i32 to index
      %c1 = arith.constant 1 : index
      %c0_10 = arith.constant 0 : index
      %13 = vector.load %arg1[%c0_9, %12, %c1, %c0_10] : memref<1x16x16x128xbf16, #tpu.memory_space<vmem>>, vector<1x1x14x128xbf16>
      %14 = vector.shape_cast %13 : vector<1x1x14x128xbf16> to vector<14x128xbf16>
      %c1_11 = arith.constant 1 : index
      %c0_12 = arith.constant 0 : index
      %c0_13 = arith.constant 0 : index
      %15 = vector.load %arg2[%c1_11, %c0_12, %c0_13] : memref<9x128x128xbf16, #tpu.memory_space<vmem>>, vector<1x128x128xbf16>
      %16 = vector.shape_cast %15 : vector<1x128x128xbf16> to vector<128x128xbf16>
      %cst_14 = arith.constant dense<0.000000e+00> : vector<14x128xf32>
      %17 = tpu.matmul %14, %16, %cst_14 {dimension_numbers = #tpu.dot_dimension_numbers<[1], [0], [0], [1], [0, 0, 1, 1], [], []>} : vector<14x128xbf16>, vector<128x128xbf16>, vector<14x128xf32> -> vector<14x128xf32>
      %18 = arith.addf %10, %17 : vector<14x128xf32>
      %c0_i32_15 = arith.constant 0 : i32
      %19 = arith.addi %1, %c0_i32_15 : i32
      %c0_16 = arith.constant 0 : index
      %20 = arith.index_cast %19 : i32 to index
      %c2 = arith.constant 2 : index
      %c0_17 = arith.constant 0 : index
      %21 = vector.load %arg1[%c0_16, %20, %c2, %c0_17] : memref<1x16x16x128xbf16, #tpu.memory_space<vmem>>, vector<1x1x14x128xbf16>
      %22 = vector.shape_cast %21 : vector<1x1x14x128xbf16> to vector<14x128xbf16>
      %c2_18 = arith.constant 2 : index
      %c0_19 = arith.constant 0 : index
      %c0_20 = arith.constant 0 : index
      %23 = vector.load %arg2[%c2_18, %c0_19, %c0_20] : memref<9x128x128xbf16, #tpu.memory_space<vmem>>, vector<1x128x128xbf16>
      %24 = vector.shape_cast %23 : vector<1x128x128xbf16> to vector<128x128xbf16>
      %cst_21 = arith.constant dense<0.000000e+00> : vector<14x128xf32>
      %25 = tpu.matmul %22, %24, %cst_21 {dimension_numbers = #tpu.dot_dimension_numbers<[1], [0], [0], [1], [0, 0, 1, 1], [], []>} : vector<14x128xbf16>, vector<128x128xbf16>, vector<14x128xf32> -> vector<14x128xf32>
      %26 = arith.addf %18, %25 : vector<14x128xf32>
      %c1_i32_22 = arith.constant 1 : i32
      %27 = arith.addi %1, %c1_i32_22 : i32
      %c0_23 = arith.constant 0 : index
      %28 = arith.index_cast %27 : i32 to index
      %c0_24 = arith.constant 0 : index
      %c0_25 = arith.constant 0 : index
      %29 = vector.load %arg1[%c0_23, %28, %c0_24, %c0_25] : memref<1x16x16x128xbf16, #tpu.memory_space<vmem>>, vector<1x1x14x128xbf16>
      %30 = vector.shape_cast %29 : vector<1x1x14x128xbf16> to vector<14x128xbf16>
      %c3 = arith.constant 3 : index
      %c0_26 = arith.constant 0 : index
      %c0_27 = arith.constant 0 : index
      %31 = vector.load %arg2[%c3, %c0_26, %c0_27] : memref<9x128x128xbf16, #tpu.memory_space<vmem>>, vector<1x128x128xbf16>
      %32 = vector.shape_cast %31 : vector<1x128x128xbf16> to vector<128x128xbf16>
      %cst_28 = arith.constant dense<0.000000e+00> : vector<14x128xf32>
      %33 = tpu.matmul %30, %32, %cst_28 {dimension_numbers = #tpu.dot_dimension_numbers<[1], [0], [0], [1], [0, 0, 1, 1], [], []>} : vector<14x128xbf16>, vector<128x128xbf16>, vector<14x128xf32> -> vector<14x128xf32>
      %34 = arith.addf %26, %33 : vector<14x128xf32>
      %c1_i32_29 = arith.constant 1 : i32
      %35 = arith.addi %1, %c1_i32_29 : i32
      %c0_30 = arith.constant 0 : index
      %36 = arith.index_cast %35 : i32 to index
      %c1_31 = arith.constant 1 : index
      %c0_32 = arith.constant 0 : index
      %37 = vector.load %arg1[%c0_30, %36, %c1_31, %c0_32] : memref<1x16x16x128xbf16, #tpu.memory_space<vmem>>, vector<1x1x14x128xbf16>
      %38 = vector.shape_cast %37 : vector<1x1x14x128xbf16> to vector<14x128xbf16>
      %c4 = arith.constant 4 : index
      %c0_33 = arith.constant 0 : index
      %c0_34 = arith.constant 0 : index
      %39 = vector.load %arg2[%c4, %c0_33, %c0_34] : memref<9x128x128xbf16, #tpu.memory_space<vmem>>, vector<1x128x128xbf16>
      %40 = vector.shape_cast %39 : vector<1x128x128xbf16> to vector<128x128xbf16>
      %cst_35 = arith.constant dense<0.000000e+00> : vector<14x128xf32>
      %41 = tpu.matmul %38, %40, %cst_35 {dimension_numbers = #tpu.dot_dimension_numbers<[1], [0], [0], [1], [0, 0, 1, 1], [], []>} : vector<14x128xbf16>, vector<128x128xbf16>, vector<14x128xf32> -> vector<14x128xf32>
      %42 = arith.addf %34, %41 : vector<14x128xf32>
      %c1_i32_36 = arith.constant 1 : i32
      %43 = arith.addi %1, %c1_i32_36 : i32
      %c0_37 = arith.constant 0 : index
      %44 = arith.index_cast %43 : i32 to index
      %c2_38 = arith.constant 2 : index
      %c0_39 = arith.constant 0 : index
      %45 = vector.load %arg1[%c0_37, %44, %c2_38, %c0_39] : memref<1x16x16x128xbf16, #tpu.memory_space<vmem>>, vector<1x1x14x128xbf16>
      %46 = vector.shape_cast %45 : vector<1x1x14x128xbf16> to vector<14x128xbf16>
      %c5 = arith.constant 5 : index
      %c0_40 = arith.constant 0 : index
      %c0_41 = arith.constant 0 : index
      %47 = vector.load %arg2[%c5, %c0_40, %c0_41] : memref<9x128x128xbf16, #tpu.memory_space<vmem>>, vector<1x128x128xbf16>
      %48 = vector.shape_cast %47 : vector<1x128x128xbf16> to vector<128x128xbf16>
      %cst_42 = arith.constant dense<0.000000e+00> : vector<14x128xf32>
      %49 = tpu.matmul %46, %48, %cst_42 {dimension_numbers = #tpu.dot_dimension_numbers<[1], [0], [0], [1], [0, 0, 1, 1], [], []>} : vector<14x128xbf16>, vector<128x128xbf16>, vector<14x128xf32> -> vector<14x128xf32>
      %50 = arith.addf %42, %49 : vector<14x128xf32>
      %c2_i32_43 = arith.constant 2 : i32
      %51 = arith.addi %1, %c2_i32_43 : i32
      %c0_44 = arith.constant 0 : index
      %52 = arith.index_cast %51 : i32 to index
      %c0_45 = arith.constant 0 : index
      %c0_46 = arith.constant 0 : index
      %53 = vector.load %arg1[%c0_44, %52, %c0_45, %c0_46] : memref<1x16x16x128xbf16, #tpu.memory_space<vmem>>, vector<1x1x14x128xbf16>
      %54 = vector.shape_cast %53 : vector<1x1x14x128xbf16> to vector<14x128xbf16>
      %c6 = arith.constant 6 : index
      %c0_47 = arith.constant 0 : index
      %c0_48 = arith.constant 0 : index
      %55 = vector.load %arg2[%c6, %c0_47, %c0_48] : memref<9x128x128xbf16, #tpu.memory_space<vmem>>, vector<1x128x128xbf16>
      %56 = vector.shape_cast %55 : vector<1x128x128xbf16> to vector<128x128xbf16>
      %cst_49 = arith.constant dense<0.000000e+00> : vector<14x128xf32>
      %57 = tpu.matmul %54, %56, %cst_49 {dimension_numbers = #tpu.dot_dimension_numbers<[1], [0], [0], [1], [0, 0, 1, 1], [], []>} : vector<14x128xbf16>, vector<128x128xbf16>, vector<14x128xf32> -> vector<14x128xf32>
      %58 = arith.addf %50, %57 : vector<14x128xf32>
      %c2_i32_50 = arith.constant 2 : i32
      %59 = arith.addi %1, %c2_i32_50 : i32
      %c0_51 = arith.constant 0 : index
      %60 = arith.index_cast %59 : i32 to index
      %c1_52 = arith.constant 1 : index
      %c0_53 = arith.constant 0 : index
      %61 = vector.load %arg1[%c0_51, %60, %c1_52, %c0_53] : memref<1x16x16x128xbf16, #tpu.memory_space<vmem>>, vector<1x1x14x128xbf16>
      %62 = vector.shape_cast %61 : vector<1x1x14x128xbf16> to vector<14x128xbf16>
      %c7 = arith.constant 7 : index
      %c0_54 = arith.constant 0 : index
      %c0_55 = arith.constant 0 : index
      %63 = vector.load %arg2[%c7, %c0_54, %c0_55] : memref<9x128x128xbf16, #tpu.memory_space<vmem>>, vector<1x128x128xbf16>
      %64 = vector.shape_cast %63 : vector<1x128x128xbf16> to vector<128x128xbf16>
      %cst_56 = arith.constant dense<0.000000e+00> : vector<14x128xf32>
      %65 = tpu.matmul %62, %64, %cst_56 {dimension_numbers = #tpu.dot_dimension_numbers<[1], [0], [0], [1], [0, 0, 1, 1], [], []>} : vector<14x128xbf16>, vector<128x128xbf16>, vector<14x128xf32> -> vector<14x128xf32>
      %66 = arith.addf %58, %65 : vector<14x128xf32>
      %c2_i32_57 = arith.constant 2 : i32
      %67 = arith.addi %1, %c2_i32_57 : i32
      %c0_58 = arith.constant 0 : index
      %68 = arith.index_cast %67 : i32 to index
      %c2_59 = arith.constant 2 : index
      %c0_60 = arith.constant 0 : index
      %69 = vector.load %arg1[%c0_58, %68, %c2_59, %c0_60] : memref<1x16x16x128xbf16, #tpu.memory_space<vmem>>, vector<1x1x14x128xbf16>
      %70 = vector.shape_cast %69 : vector<1x1x14x128xbf16> to vector<14x128xbf16>
      %c8 = arith.constant 8 : index
      %c0_61 = arith.constant 0 : index
      %c0_62 = arith.constant 0 : index
      %71 = vector.load %arg2[%c8, %c0_61, %c0_62] : memref<9x128x128xbf16, #tpu.memory_space<vmem>>, vector<1x128x128xbf16>
      %72 = vector.shape_cast %71 : vector<1x128x128xbf16> to vector<128x128xbf16>
      %cst_63 = arith.constant dense<0.000000e+00> : vector<14x128xf32>
      %73 = tpu.matmul %70, %72, %cst_63 {dimension_numbers = #tpu.dot_dimension_numbers<[1], [0], [0], [1], [0, 0, 1, 1], [], []>} : vector<14x128xbf16>, vector<128x128xbf16>, vector<14x128xf32> -> vector<14x128xf32>
      %74 = arith.addf %66, %73 : vector<14x128xf32>
      %c0_64 = arith.constant 0 : index
      %c0_65 = arith.constant 0 : index
      %75 = vector.load %arg3[%c0_64, %c0_65] : memref<1x128xf32, #tpu.memory_space<vmem>>, vector<1x128xf32>
      %76 = vector.broadcast %75 : vector<1x128xf32> to vector<14x128xf32>
      %77 = arith.addf %74, %76 : vector<14x128xf32>
      %cst_66 = arith.constant 0.000000e+00 : f32
      %78 = vector.broadcast %cst_66 : f32 to vector<14x128xf32>
      %79 = arith.maximumf %77, %78 : vector<14x128xf32>
      %c2_i32_67 = arith.constant 2 : i32
      %80 = arith.muli %c2_i32_67, %arg6 : i32
      %c1_i32_68 = arith.constant 1 : i32
      %81 = arith.addi %80, %c1_i32_68 : i32
      %cst_69 = arith.constant 0.000000e+00 : f32
      %82 = vector.broadcast %cst_69 : f32 to vector<14x128xf32>
      %c0_i32_70 = arith.constant 0 : i32
      %83 = arith.addi %81, %c0_i32_70 : i32
      %c0_71 = arith.constant 0 : index
      %84 = arith.index_cast %83 : i32 to index
      %c0_72 = arith.constant 0 : index
      %c0_73 = arith.constant 0 : index
      %85 = vector.load %arg1[%c0_71, %84, %c0_72, %c0_73] : memref<1x16x16x128xbf16, #tpu.memory_space<vmem>>, vector<1x1x14x128xbf16>
      %86 = vector.shape_cast %85 : vector<1x1x14x128xbf16> to vector<14x128xbf16>
      %c0_74 = arith.constant 0 : index
      %c0_75 = arith.constant 0 : index
      %c0_76 = arith.constant 0 : index
      %87 = vector.load %arg2[%c0_74, %c0_75, %c0_76] : memref<9x128x128xbf16, #tpu.memory_space<vmem>>, vector<1x128x128xbf16>
      %88 = vector.shape_cast %87 : vector<1x128x128xbf16> to vector<128x128xbf16>
      %cst_77 = arith.constant dense<0.000000e+00> : vector<14x128xf32>
      %89 = tpu.matmul %86, %88, %cst_77 {dimension_numbers = #tpu.dot_dimension_numbers<[1], [0], [0], [1], [0, 0, 1, 1], [], []>} : vector<14x128xbf16>, vector<128x128xbf16>, vector<14x128xf32> -> vector<14x128xf32>
      %90 = arith.addf %82, %89 : vector<14x128xf32>
      %c0_i32_78 = arith.constant 0 : i32
      %91 = arith.addi %81, %c0_i32_78 : i32
      %c0_79 = arith.constant 0 : index
      %92 = arith.index_cast %91 : i32 to index
      %c1_80 = arith.constant 1 : index
      %c0_81 = arith.constant 0 : index
      %93 = vector.load %arg1[%c0_79, %92, %c1_80, %c0_81] : memref<1x16x16x128xbf16, #tpu.memory_space<vmem>>, vector<1x1x14x128xbf16>
      %94 = vector.shape_cast %93 : vector<1x1x14x128xbf16> to vector<14x128xbf16>
      %c1_82 = arith.constant 1 : index
      %c0_83 = arith.constant 0 : index
      %c0_84 = arith.constant 0 : index
      %95 = vector.load %arg2[%c1_82, %c0_83, %c0_84] : memref<9x128x128xbf16, #tpu.memory_space<vmem>>, vector<1x128x128xbf16>
      %96 = vector.shape_cast %95 : vector<1x128x128xbf16> to vector<128x128xbf16>
      %cst_85 = arith.constant dense<0.000000e+00> : vector<14x128xf32>
      %97 = tpu.matmul %94, %96, %cst_85 {dimension_numbers = #tpu.dot_dimension_numbers<[1], [0], [0], [1], [0, 0, 1, 1], [], []>} : vector<14x128xbf16>, vector<128x128xbf16>, vector<14x128xf32> -> vector<14x128xf32>
      %98 = arith.addf %90, %97 : vector<14x128xf32>
      %c0_i32_86 = arith.constant 0 : i32
      %99 = arith.addi %81, %c0_i32_86 : i32
      %c0_87 = arith.constant 0 : index
      %100 = arith.index_cast %99 : i32 to index
      %c2_88 = arith.constant 2 : index
      %c0_89 = arith.constant 0 : index
      %101 = vector.load %arg1[%c0_87, %100, %c2_88, %c0_89] : memref<1x16x16x128xbf16, #tpu.memory_space<vmem>>, vector<1x1x14x128xbf16>
      %102 = vector.shape_cast %101 : vector<1x1x14x128xbf16> to vector<14x128xbf16>
      %c2_90 = arith.constant 2 : index
      %c0_91 = arith.constant 0 : index
      %c0_92 = arith.constant 0 : index
      %103 = vector.load %arg2[%c2_90, %c0_91, %c0_92] : memref<9x128x128xbf16, #tpu.memory_space<vmem>>, vector<1x128x128xbf16>
      %104 = vector.shape_cast %103 : vector<1x128x128xbf16> to vector<128x128xbf16>
      %cst_93 = arith.constant dense<0.000000e+00> : vector<14x128xf32>
      %105 = tpu.matmul %102, %104, %cst_93 {dimension_numbers = #tpu.dot_dimension_numbers<[1], [0], [0], [1], [0, 0, 1, 1], [], []>} : vector<14x128xbf16>, vector<128x128xbf16>, vector<14x128xf32> -> vector<14x128xf32>
      %106 = arith.addf %98, %105 : vector<14x128xf32>
      %c1_i32_94 = arith.constant 1 : i32
      %107 = arith.addi %81, %c1_i32_94 : i32
      %c0_95 = arith.constant 0 : index
      %108 = arith.index_cast %107 : i32 to index
      %c0_96 = arith.constant 0 : index
      %c0_97 = arith.constant 0 : index
      %109 = vector.load %arg1[%c0_95, %108, %c0_96, %c0_97] : memref<1x16x16x128xbf16, #tpu.memory_space<vmem>>, vector<1x1x14x128xbf16>
      %110 = vector.shape_cast %109 : vector<1x1x14x128xbf16> to vector<14x128xbf16>
      %c3_98 = arith.constant 3 : index
      %c0_99 = arith.constant 0 : index
      %c0_100 = arith.constant 0 : index
      %111 = vector.load %arg2[%c3_98, %c0_99, %c0_100] : memref<9x128x128xbf16, #tpu.memory_space<vmem>>, vector<1x128x128xbf16>
      %112 = vector.shape_cast %111 : vector<1x128x128xbf16> to vector<128x128xbf16>
      %cst_101 = arith.constant dense<0.000000e+00> : vector<14x128xf32>
      %113 = tpu.matmul %110, %112, %cst_101 {dimension_numbers = #tpu.dot_dimension_numbers<[1], [0], [0], [1], [0, 0, 1, 1], [], []>} : vector<14x128xbf16>, vector<128x128xbf16>, vector<14x128xf32> -> vector<14x128xf32>
      %114 = arith.addf %106, %113 : vector<14x128xf32>
      %c1_i32_102 = arith.constant 1 : i32
      %115 = arith.addi %81, %c1_i32_102 : i32
      %c0_103 = arith.constant 0 : index
      %116 = arith.index_cast %115 : i32 to index
      %c1_104 = arith.constant 1 : index
      %c0_105 = arith.constant 0 : index
      %117 = vector.load %arg1[%c0_103, %116, %c1_104, %c0_105] : memref<1x16x16x128xbf16, #tpu.memory_space<vmem>>, vector<1x1x14x128xbf16>
      %118 = vector.shape_cast %117 : vector<1x1x14x128xbf16> to vector<14x128xbf16>
      %c4_106 = arith.constant 4 : index
      %c0_107 = arith.constant 0 : index
      %c0_108 = arith.constant 0 : index
      %119 = vector.load %arg2[%c4_106, %c0_107, %c0_108] : memref<9x128x128xbf16, #tpu.memory_space<vmem>>, vector<1x128x128xbf16>
      %120 = vector.shape_cast %119 : vector<1x128x128xbf16> to vector<128x128xbf16>
      %cst_109 = arith.constant dense<0.000000e+00> : vector<14x128xf32>
      %121 = tpu.matmul %118, %120, %cst_109 {dimension_numbers = #tpu.dot_dimension_numbers<[1], [0], [0], [1], [0, 0, 1, 1], [], []>} : vector<14x128xbf16>, vector<128x128xbf16>, vector<14x128xf32> -> vector<14x128xf32>
      %122 = arith.addf %114, %121 : vector<14x128xf32>
      %c1_i32_110 = arith.constant 1 : i32
      %123 = arith.addi %81, %c1_i32_110 : i32
      %c0_111 = arith.constant 0 : index
      %124 = arith.index_cast %123 : i32 to index
      %c2_112 = arith.constant 2 : index
      %c0_113 = arith.constant 0 : index
      %125 = vector.load %arg1[%c0_111, %124, %c2_112, %c0_113] : memref<1x16x16x128xbf16, #tpu.memory_space<vmem>>, vector<1x1x14x128xbf16>
      %126 = vector.shape_cast %125 : vector<1x1x14x128xbf16> to vector<14x128xbf16>
      %c5_114 = arith.constant 5 : index
      %c0_115 = arith.constant 0 : index
      %c0_116 = arith.constant 0 : index
      %127 = vector.load %arg2[%c5_114, %c0_115, %c0_116] : memref<9x128x128xbf16, #tpu.memory_space<vmem>>, vector<1x128x128xbf16>
      %128 = vector.shape_cast %127 : vector<1x128x128xbf16> to vector<128x128xbf16>
      %cst_117 = arith.constant dense<0.000000e+00> : vector<14x128xf32>
      %129 = tpu.matmul %126, %128, %cst_117 {dimension_numbers = #tpu.dot_dimension_numbers<[1], [0], [0], [1], [0, 0, 1, 1], [], []>} : vector<14x128xbf16>, vector<128x128xbf16>, vector<14x128xf32> -> vector<14x128xf32>
      %130 = arith.addf %122, %129 : vector<14x128xf32>
      %c2_i32_118 = arith.constant 2 : i32
      %131 = arith.addi %81, %c2_i32_118 : i32
      %c0_119 = arith.constant 0 : index
      %132 = arith.index_cast %131 : i32 to index
      %c0_120 = arith.constant 0 : index
      %c0_121 = arith.constant 0 : index
      %133 = vector.load %arg1[%c0_119, %132, %c0_120, %c0_121] : memref<1x16x16x128xbf16, #tpu.memory_space<vmem>>, vector<1x1x14x128xbf16>
      %134 = vector.shape_cast %133 : vector<1x1x14x128xbf16> to vector<14x128xbf16>
      %c6_122 = arith.constant 6 : index
      %c0_123 = arith.constant 0 : index
      %c0_124 = arith.constant 0 : index
      %135 = vector.load %arg2[%c6_122, %c0_123, %c0_124] : memref<9x128x128xbf16, #tpu.memory_space<vmem>>, vector<1x128x128xbf16>
      %136 = vector.shape_cast %135 : vector<1x128x128xbf16> to vector<128x128xbf16>
      %cst_125 = arith.constant dense<0.000000e+00> : vector<14x128xf32>
      %137 = tpu.matmul %134, %136, %cst_125 {dimension_numbers = #tpu.dot_dimension_numbers<[1], [0], [0], [1], [0, 0, 1, 1], [], []>} : vector<14x128xbf16>, vector<128x128xbf16>, vector<14x128xf32> -> vector<14x128xf32>
      %138 = arith.addf %130, %137 : vector<14x128xf32>
      %c2_i32_126 = arith.constant 2 : i32
      %139 = arith.addi %81, %c2_i32_126 : i32
      %c0_127 = arith.constant 0 : index
      %140 = arith.index_cast %139 : i32 to index
      %c1_128 = arith.constant 1 : index
      %c0_129 = arith.constant 0 : index
      %141 = vector.load %arg1[%c0_127, %140, %c1_128, %c0_129] : memref<1x16x16x128xbf16, #tpu.memory_space<vmem>>, vector<1x1x14x128xbf16>
      %142 = vector.shape_cast %141 : vector<1x1x14x128xbf16> to vector<14x128xbf16>
      %c7_130 = arith.constant 7 : index
      %c0_131 = arith.constant 0 : index
      %c0_132 = arith.constant 0 : index
      %143 = vector.load %arg2[%c7_130, %c0_131, %c0_132] : memref<9x128x128xbf16, #tpu.memory_space<vmem>>, vector<1x128x128xbf16>
      %144 = vector.shape_cast %143 : vector<1x128x128xbf16> to vector<128x128xbf16>
      %cst_133 = arith.constant dense<0.000000e+00> : vector<14x128xf32>
      %145 = tpu.matmul %142, %144, %cst_133 {dimension_numbers = #tpu.dot_dimension_numbers<[1], [0], [0], [1], [0, 0, 1, 1], [], []>} : vector<14x128xbf16>, vector<128x128xbf16>, vector<14x128xf32> -> vector<14x128xf32>
      %146 = arith.addf %138, %145 : vector<14x128xf32>
      %c2_i32_134 = arith.constant 2 : i32
      %147 = arith.addi %81, %c2_i32_134 : i32
      %c0_135 = arith.constant 0 : index
      %148 = arith.index_cast %147 : i32 to index
      %c2_136 = arith.constant 2 : index
      %c0_137 = arith.constant 0 : index
      %149 = vector.load %arg1[%c0_135, %148, %c2_136, %c0_137] : memref<1x16x16x128xbf16, #tpu.memory_space<vmem>>, vector<1x1x14x128xbf16>
      %150 = vector.shape_cast %149 : vector<1x1x14x128xbf16> to vector<14x128xbf16>
      %c8_138 = arith.constant 8 : index
      %c0_139 = arith.constant 0 : index
      %c0_140 = arith.constant 0 : index
      %151 = vector.load %arg2[%c8_138, %c0_139, %c0_140] : memref<9x128x128xbf16, #tpu.memory_space<vmem>>, vector<1x128x128xbf16>
      %152 = vector.shape_cast %151 : vector<1x128x128xbf16> to vector<128x128xbf16>
      %cst_141 = arith.constant dense<0.000000e+00> : vector<14x128xf32>
      %153 = tpu.matmul %150, %152, %cst_141 {dimension_numbers = #tpu.dot_dimension_numbers<[1], [0], [0], [1], [0, 0, 1, 1], [], []>} : vector<14x128xbf16>, vector<128x128xbf16>, vector<14x128xf32> -> vector<14x128xf32>
      %154 = arith.addf %146, %153 : vector<14x128xf32>
      %c0_142 = arith.constant 0 : index
      %c0_143 = arith.constant 0 : index
      %155 = vector.load %arg3[%c0_142, %c0_143] : memref<1x128xf32, #tpu.memory_space<vmem>>, vector<1x128xf32>
      %156 = vector.broadcast %155 : vector<1x128xf32> to vector<14x128xf32>
      %157 = arith.addf %154, %156 : vector<14x128xf32>
      %cst_144 = arith.constant 0.000000e+00 : f32
      %158 = vector.broadcast %cst_144 : f32 to vector<14x128xf32>
      %159 = arith.maximumf %157, %158 : vector<14x128xf32>
      %160 = arith.maximumf %79, %159 : vector<14x128xf32>
      %c0_145 = arith.constant 0 : index
      %c0_146 = arith.constant 0 : index
      %161 = vector.load %arg5[%c0_145, %c0_146] : memref<14x128xf32, #tpu.memory_space<vmem>>, vector<14x128xf32>
      tpu.vector_store %arg5[%c0_145, %c0_146], %160 {strides = array<i32>} : memref<14x128xf32, #tpu.memory_space<vmem>>, vector<14x128xf32>,
      %c0_147 = arith.constant 0 : index
      %c0_148 = arith.constant 0 : index
      %162 = tpu.strided_load %arg5[%c0_147, %c0_148] {strides = array<i32: 2, 1>} : memref<14x128xf32, #tpu.memory_space<vmem>>, vector<7x128xf32>
      %c1_149 = arith.constant 1 : index
      %c0_150 = arith.constant 0 : index
      %163 = tpu.strided_load %arg5[%c1_149, %c0_150] {strides = array<i32: 2, 1>} : memref<14x128xf32, #tpu.memory_space<vmem>>, vector<7x128xf32>
      %164 = arith.maximumf %162, %163 : vector<7x128xf32>
      %165 = arith.truncf %164 : vector<7x128xf32> to vector<7x128xbf16>
      %c0_151 = arith.constant 0 : index
      %166 = arith.index_cast %arg6 : i32 to index
      %c0_152 = arith.constant 0 : index
      %c0_153 = arith.constant 0 : index
      %167 = vector.load %arg4[%c0_151, %166, %c0_152, %c0_153] : memref<1x7x7x128xbf16, #tpu.memory_space<vmem>>, vector<1x1x7x128xbf16>
      %168 = vector.shape_cast %167 : vector<1x1x7x128xbf16> to vector<7x128xbf16>
      %169 = vector.shape_cast %165 : vector<7x128xbf16> to vector<1x1x7x128xbf16>
      tpu.vector_store %arg4[%c0_151, %166, %c0_152, %c0_153], %169 {strides = array<i32>} : memref<1x7x7x128xbf16, #tpu.memory_space<vmem>>, vector<1x1x7x128xbf16>,
    }
    %c7_i32_0 = arith.constant 7 : i32
    return
  }
  func.func @transform_0(%arg0: i32) -> (i32, i32, i32, i32) {
    %c0_i32 = arith.constant 0 : i32
    %c0_i32_0 = arith.constant 0 : i32
    %c0_i32_1 = arith.constant 0 : i32
    %c0_i32_2 = arith.constant 0 : i32
    return %arg0, %c0_i32, %c0_i32_0, %c0_i32_1 : i32, i32, i32, i32
  }
  func.func @transform_1(%arg0: i32) -> (i32, i32, i32) {
    %c0_i32 = arith.constant 0 : i32
    %c0_i32_0 = arith.constant 0 : i32
    %c0_i32_1 = arith.constant 0 : i32
    %c0_i32_2 = arith.constant 0 : i32
    return %c0_i32, %c0_i32_0, %c0_i32_1 : i32, i32, i32
  }
  func.func @transform_2(%arg0: i32) -> (i32, i32) {
    %c0_i32 = arith.constant 0 : i32
    %c0_i32_0 = arith.constant 0 : i32
    %c0_i32_1 = arith.constant 0 : i32
    return %c0_i32, %c0_i32_0 : i32, i32
  }
  func.func @transform_3(%arg0: i32) -> (i32, i32, i32, i32) {
    %c0_i32 = arith.constant 0 : i32
    %c0_i32_0 = arith.constant 0 : i32
    %c0_i32_1 = arith.constant 0 : i32
    %c0_i32_2 = arith.constant 0 : i32
    return %arg0, %c0_i32, %c0_i32_0, %c0_i32_1 : i32, i32, i32, i32
  }
}

module attributes {stable_mosaic.version = 11 : i64} {
  func.func @_fc_fused_kernel(%arg0: i32, %arg1: memref<8x6272xbf16, #tpu.memory_space<vmem>>, %arg2: memref<6272x128xbf16, #tpu.memory_space<vmem>>, %arg3: memref<1x128xf32, #tpu.memory_space<vmem>>, %arg4: memref<128x128xbf16, #tpu.memory_space<vmem>>, %arg5: memref<1x128xf32, #tpu.memory_space<vmem>>, %arg6: memref<8x128xf32, #tpu.memory_space<vmem>>) attributes {dimension_semantics = [#tpu.dimension_semantics<parallel>], iteration_bounds = array<i64: 1>, scalar_prefetch = 0 : i64, scratch_operands = 0 : i64, tpu.core_type = #tpu.core_type<tc>, window_params = [{transform_indices = @transform_0, window_bounds = array<i64: 8, 6272>}, {pipeline_mode = #tpu.pipeline_mode<synchronous>, transform_indices = @transform_1, window_bounds = array<i64: 6272, 128>}, {pipeline_mode = #tpu.pipeline_mode<synchronous>, transform_indices = @transform_2, window_bounds = array<i64: 1, 128>}, {pipeline_mode = #tpu.pipeline_mode<synchronous>, transform_indices = @transform_3, window_bounds = array<i64: 128, 128>}, {pipeline_mode = #tpu.pipeline_mode<synchronous>, transform_indices = @transform_4, window_bounds = array<i64: 1, 128>}, {transform_indices = @transform_5, window_bounds = array<i64: 8, 128>}]} {
    %c0 = arith.constant 0 : index
    %c0_0 = arith.constant 0 : index
    %0 = vector.load %arg1[%c0, %c0_0] : memref<8x6272xbf16, #tpu.memory_space<vmem>>, vector<8x6272xbf16>
    %c0_1 = arith.constant 0 : index
    %c0_2 = arith.constant 0 : index
    %1 = vector.load %arg2[%c0_1, %c0_2] : memref<6272x128xbf16, #tpu.memory_space<vmem>>, vector<6272x128xbf16>
    %cst = arith.constant dense<0.000000e+00> : vector<8x128xf32>
    %2 = tpu.matmul %0, %1, %cst {dimension_numbers = #tpu.dot_dimension_numbers<[1], [0], [0], [1], [0, 0, 1, 1], [], []>} : vector<8x6272xbf16>, vector<6272x128xbf16>, vector<8x128xf32> -> vector<8x128xf32>
    %c0_3 = arith.constant 0 : index
    %c0_4 = arith.constant 0 : index
    %3 = vector.load %arg3[%c0_3, %c0_4] : memref<1x128xf32, #tpu.memory_space<vmem>>, vector<1x128xf32>
    %4 = vector.broadcast %3 : vector<1x128xf32> to vector<8x128xf32>
    %5 = arith.addf %2, %4 : vector<8x128xf32>
    %6 = arith.truncf %5 : vector<8x128xf32> to vector<8x128xbf16>
    %c0_5 = arith.constant 0 : index
    %c0_6 = arith.constant 0 : index
    %7 = vector.load %arg4[%c0_5, %c0_6] : memref<128x128xbf16, #tpu.memory_space<vmem>>, vector<128x128xbf16>
    %cst_7 = arith.constant dense<0.000000e+00> : vector<8x128xf32>
    %8 = tpu.matmul %6, %7, %cst_7 {dimension_numbers = #tpu.dot_dimension_numbers<[1], [0], [0], [1], [0, 0, 1, 1], [], []>} : vector<8x128xbf16>, vector<128x128xbf16>, vector<8x128xf32> -> vector<8x128xf32>
    %c0_8 = arith.constant 0 : index
    %c0_9 = arith.constant 0 : index
    %9 = vector.load %arg5[%c0_8, %c0_9] : memref<1x128xf32, #tpu.memory_space<vmem>>, vector<1x128xf32>
    %10 = vector.broadcast %9 : vector<1x128xf32> to vector<8x128xf32>
    %11 = arith.addf %8, %10 : vector<8x128xf32>
    %c0_10 = arith.constant 0 : index
    %c0_11 = arith.constant 0 : index
    %12 = vector.load %arg6[%c0_10, %c0_11] : memref<8x128xf32, #tpu.memory_space<vmem>>, vector<8x128xf32>
    tpu.vector_store %arg6[%c0_10, %c0_11], %11 {strides = array<i32>} : memref<8x128xf32, #tpu.memory_space<vmem>>, vector<8x128xf32>,
    return
  }
  func.func @transform_0(%arg0: i32) -> (i32, i32) {
    %c0_i32 = arith.constant 0 : i32
    %c0_i32_0 = arith.constant 0 : i32
    return %arg0, %c0_i32 : i32, i32
  }
  func.func @transform_1(%arg0: i32) -> (i32, i32) {
    %c0_i32 = arith.constant 0 : i32
    %c0_i32_0 = arith.constant 0 : i32
    %c0_i32_1 = arith.constant 0 : i32
    return %c0_i32, %c0_i32_0 : i32, i32
  }
  func.func @transform_2(%arg0: i32) -> (i32, i32) {
    %c0_i32 = arith.constant 0 : i32
    %c0_i32_0 = arith.constant 0 : i32
    %c0_i32_1 = arith.constant 0 : i32
    return %c0_i32, %c0_i32_0 : i32, i32
  }
  func.func @transform_3(%arg0: i32) -> (i32, i32) {
    %c0_i32 = arith.constant 0 : i32
    %c0_i32_0 = arith.constant 0 : i32
    %c0_i32_1 = arith.constant 0 : i32
    return %c0_i32, %c0_i32_0 : i32, i32
  }
  func.func @transform_4(%arg0: i32) -> (i32, i32) {
    %c0_i32 = arith.constant 0 : i32
    %c0_i32_0 = arith.constant 0 : i32
    %c0_i32_1 = arith.constant 0 : i32
    return %c0_i32, %c0_i32_0 : i32, i32
  }
  func.func @transform_5(%arg0: i32) -> (i32, i32) {
    %c0_i32 = arith.constant 0 : i32
    %c0_i32_0 = arith.constant 0 : i32
    return %arg0, %c0_i32 : i32, i32
  }
}

</mosaic_0001>

<bundles_post_ra>
// kernel: cnn_forward.4
= control target key start
LH: loop header
LB: loop body
LE: loop exit
PB: predicated region body
PF: predicated region fallthrough
CT: control target
= control target key end

     0   :  { %s2670_s12 = smov 0   ;;  %s3440_s0 = inlined_call_operand.vmem [shape: bf16[2,16,16,128], index: 0, kind: input, shape index: {}]   ;;  %s3441_s1 = inlined_call_operand.vmem [shape: bf16[9,128,128], index: 1, kind: input, shape index: {}]   ;;  %s3442_s2 = inlined_call_operand.vmem [shape: f32[1,128], index: 2, kind: input, shape index: {}]   ;;  %s3443_s3 = inlined_call_operand.vmem [shape: bf16[2,7,7,128], index: 3, kind: output, shape index: {}]  }
   0x1 LB: > { %s1756_s13 = sadd.s32 4294967295, %s2642_s12   ;;  %p1760_p0 = scmp.ge.s32.totalorder %s2642_s12, 1  ;;  %s2642_s12 = sphi %s2670_s12, %s13_s12  }
   0x2   : > { %p137_p1 = scmp.lt.s32.totalorder %s2642_s12, 3 }
   0x4   : > { %p138_p2 = pnand %p1760_p0, %p137_p1 }
   0x5   : > { %p161_p3 = scmp.lt.s32.totalorder (!%p138_p2), %s1756_s13, 1  ;;  %s2688_s22 = smov (!%p138_p2), 0  }
   0x6   : > { %141 = sbr.rel (%p138_p2) target bundleno = 525 (0x20d), region = 32 }
   0xb   : > { %s3484_s13 = smov (!%p161_p3, %s1756_s13), 1 }
   0xc   : > { %s2001_s14 = sshll.u32 %s3484_s13, 7  ;;  %s2529_s15 = smul.u32 28, %s3484_s13 }
   0xd   : > { %s2681_s18 = scalar_lea.vmem %s3440_s0, %s2001_s14 }
   0xe   : > { %s2686_s21 = scalar_lea.vmem %s3443_s3, %s2529_s15 }
   0xf LB: >> { %v2696_v0 = vld [vmem:[%s3441_s1 + $0x78] sm:$0xff]   ;;  %v2648_v1 = vmov 0.0   ;;  %v2709_v3 = vld [vmem:[%s3441_s1 + $0x70] sm:$0xff]   ;;  %vm2649_vm0 = vmmov 0   ;;  %v2727_v5 = vld [vmem:[%s3441_s1 + $0x68] sm:$0xff]   ;;  %s2003_s10 = sshll.u32 %s2646_s22, 4  ;;  %s2646_s22 = sphi %s2688_s22, %s177_s22  }
  0x10   : >> { %2169 = vmatprep.subr.bf16.mxu0 %v2648_v1  ;;  %2189 = vmatprep.subr.bf16.mxu1 %v2648_v1  ;;  %v2703_v2 = vld [vmem:[%s3441_s1 + $0x38] sm:$0xff]   ;;  %v2718_v4 = vld [vmem:[%s3441_s1 + $0x30] sm:$0xff]   ;;  %v2734_v6 = vld [vmem:[%s3441_s1 + $0x28] sm:$0xff]   ;;  %s2753_s14 = scalar_lea.vmem %s2681_s18, %s2003_s10  ;;  %s1998_s10 = sshll.u32 %s2646_s22, 2  ;;  %vm1674_vm1 = vcmask 1043456  }
  0x11   : >> { %2170 = vmatpush3.bf16.msra.mxu0 %v2696_v0  ;;  %2185 = vmatprep.mubr.msk.bf16.mxu0 %vm2649_vm0, %v2648_v1  ;;  %v2741_v7 = vld [vmem:[%s3441_s1 + $0x60] sm:$0xff]   ;;  %v2759_v9 = vld [vmem:[%s3441_s1 + $0x58] sm:$0xff]   ;;  %v2778_v14 = vld [vmem:[%s3441_s1 + $0x50] sm:$0xff]   ;;  %s1673_s11 = scalar_lea.vmem %s2686_s21, %s1998_s10  ;;  %vm1675_vm2 = vsmask.f32 3328  ;;  %s177_s22 = sadd.s32 1, %s2646_s22  }
  0x12   : >> { %2190 = vmatpush3.bf16.msra.mxu1 %v2703_v2  ;;  %2171 = vmatprep.subr.bf16.mxu0 %v2648_v1  ;;  %v2749_v8 = vld [vmem:[%s3441_s1 + $0x20] sm:$0xff]   ;;  %v2766_v10 = vld [vmem:[%s3441_s1 + $0x18] sm:$0xff]   ;;  %v2785_v15 = vld [vmem:[%s3441_s1 + $0x10] sm:$0xff]   ;;  %p174_p4 = scmp.ge.s32.totalorder %s177_s22, 7  }
  0x13   : >> { %2191 = vmatprep.subr.bf16.mxu1 %v2648_v1  ;;  %2205 = vmatprep.mubr.msk.bf16.mxu1 %vm2649_vm0, %v2648_v1  ;;  %v182_v11 = vld [vmem:[%s2753_s14] sm:$0xf]  ;;  %v2771_v12 = vld [vmem:[%s2753_s14 + $0x4] sm:$0xf]  ;;  %v2792_v17 = vld [vmem:[%s3441_s1 + $0x48] sm:$0xff]  }
  0x14   : >> { %v1783_v13 = vcombine.low %v182_v11, %v2771_v12  ;;  %v2799_v18 = vld [vmem:[%s3441_s1 + $0x8] sm:$0xff]   ;;  %v2805_v19 = vld [vmem:[%s3441_s1 + $0x40] sm:$0xff]   ;;  %v2821_v26 = vld [vmem:[%s3441_s1 + $0xb8] sm:$0xff]  }
  0x15   : >> { %2172 = vmatpush3.bf16.msra.mxu0 %v2709_v3  ;;  %v2811_v22 = vld [vmem:[%s3441_s1] sm:$0xff]   ;;  %v2828_v27 = vld [vmem:[%s3441_s1 + $0xf8] sm:$0xff]   ;;  %v2835_v28 = vld [vmem:[%s3441_s1 + $0xb0] sm:$0xff]  }
  0x16   : >> { %2192 = vmatpush3.bf16.msra.mxu1 %v2718_v4  ;;  %2173 = vmatprep.subr.bf16.mxu0 %v2648_v1  ;;  %v226_v16 = vshll.u32 %v1783_v13, 16  ;;  %v224_v20 = vshrl.u32 %v1783_v13, 16  ;;  %v183_v23 = vld [vmem:[%s2753_s14 + $0x4] sm:$0x7]  ;;  %v2842_v29 = vld [vmem:[%s3441_s1 + $0xf0] sm:$0xff]   ;;  %v2853_v30 = vld [vmem:[%s3441_s1 + $0xa8] sm:$0xff]  }
  0x17   : >> { %2193 = vmatprep.subr.bf16.mxu1 %v2648_v1  ;;  %v1792_v25 = vcombine.low %v182_v11, %v183_v23  ;;  %v2860_v31 = vld [vmem:[%s3441_s1 + $0xe8] sm:$0xff]   ;;  %v2867_v32 = vld [vmem:[%s3441_s1 + $0xa0] sm:$0xff]   ;;  %v2881_v34 = vld [vmem:[%s3441_s1 + $0x98] sm:$0xff]  }
  0x18   : >> { %v228_v21 = vrot.slane %v226_v16, 1  ;;  %v2874_v33 = vld [vmem:[%s3441_s1 + $0xe0] sm:$0xff]   ;;  %v2888_v35 = vld [vmem:[%s3441_s1 + $0xd8] sm:$0xff]   ;;  %v2895_v36 = vld [vmem:[%s3441_s1 + $0x90] sm:$0xff]  }
  0x19   : >> { %2174 = vmatpush3.bf16.msra.mxu0 %v2727_v5  ;;  %v2902_v37 = vld [vmem:[%s3441_s1 + $0xd0] sm:$0xff]   ;;  %v2908_v38 = vld [vmem:[%s3441_s1 + $0x88] sm:$0xff]   ;;  %v413_v39 = vld [vmem:[%s2753_s14] sm:$0xe] }
  0x1a   : >> { %2194 = vmatpush3.bf16.msra.mxu1 %v2734_v6  ;;  %2175 = vmatprep.subr.bf16.mxu0 %v2648_v1  ;;  %v229_v24 = vor.u32 %v228_v21, %v224_v20  ;;  %v2917_v40 = vld [vmem:[%s3441_s1 + $0xc8] sm:$0xff]   ;;  %v2923_v41 = vld [vmem:[%s3441_s1 + $0x80] sm:$0xff]   ;;  %v1817_v43 = vcombine.low %v413_v39, %v2771_v12  ;;  %v2943_v48 = vld [vmem:[%s3441_s1 + $0x138] sm:$0xff]  }
  0x1b   : >> { %2195 = vmatprep.subr.bf16.mxu1 %v2648_v1  ;;  %v2928_v42 = vld [vmem:[%s3441_s1 + $0xc0] sm:$0xff]   ;;  %v1828_v44 = vld [vmem:[%s2753_s14 + $0x8] sm:$0xf]  ;;  %v1829_v45 = vld [vmem:[%s2753_s14 + $0xc] sm:$0x7] }
  0x1c   : >> { %v434_v46 = vrot.slane %v1817_v43, 1  ;;  %v2938_v47 = vcombine.low %v1828_v44, %v1829_v45  ;;  %v2950_v49 = vld [vmem:[%s3441_s1 + $0x178] sm:$0xff]   ;;  %v2958_v50 = vld [vmem:[%s3441_s1 + $0x130] sm:$0xff]   ;;  %v2976_v52 = vld [vmem:[%s3441_s1 + $0x128] sm:$0xff]  }
  0x1d   : >> { %2176 = vmatpush3.bf16.msra.mxu0 %v2741_v7  ;;  %v2965_v51 = vld [vmem:[%s3441_s1 + $0x170] sm:$0xff]   ;;  %v2983_v53 = vld [vmem:[%s3441_s1 + $0x168] sm:$0xff]   ;;  %v2990_v54 = vld [vmem:[%s3441_s1 + $0x120] sm:$0xff]  }
  0x1e   : >> { %2196 = vmatpush3.bf16.msra.mxu1 %v2749_v8  ;;  %2177 = vmatprep.subr.bf16.mxu0 %v2648_v1  ;;  %v2997_v55 = vld [vmem:[%s3441_s1 + $0x160] sm:$0xff]   ;;  %v1855_v56 = vld [vmem:[%s2753_s14 + $0xc] sm:$0xf]  ;;  %v3005_v57 = vld [vmem:[%s3441_s1 + $0x118] sm:$0xff]  }
  0x1f   : >> { %2197 = vmatprep.subr.bf16.mxu1 %v2648_v1  ;;  %v3012_v58 = vld [vmem:[%s3441_s1 + $0x158] sm:$0xff]   ;;  %v1872_v59 = vcombine.low %v1828_v44, %v1855_v56  ;;  %v3019_v60 = vld [vmem:[%s3441_s1 + $0x110] sm:$0xff]   ;;  %v3033_v63 = vld [vmem:[%s3441_s1 + $0x108] sm:$0xff]  }
  0x20   : >> { %3457 = vst [vmem:[#allocation3_spill] sm:$0xff] %v3012_v58  ;;  %v3026_v61 = vld [vmem:[%s3441_s1 + $0x150] sm:$0xff]   ;;  %v3040_v11 = vld [vmem:[%s3441_s1 + $0x148] sm:$0xff]   ;;  %v3048_v20 = vld [vmem:[%s3441_s1 + $0x100] sm:$0xff]  }
  0x21   : >> { %2178 = vmatpush3.bf16.msra.mxu0 %v2759_v9  ;;  %3458 = vst [vmem:[#allocation4_spill] sm:$0xff] %v3026_v61  ;;  %v671_v62 = vshll.u32 %v1872_v59, 16  ;;  %3459 = vst [vmem:[#allocation5_spill] sm:$0xff] %v3040_v11  ;;  %v1881_v12 = vld [vmem:[%s2753_s14 + $0x8] sm:$0xe]  ;;  %v669_v13 = vshrl.u32 %v1872_v59, 16 }
  0x22   : >> { %2198 = vmatpush3.bf16.msra.mxu1 %v2766_v10  ;;  %2179 = vmatprep.subr.bf16.mxu0 %v2648_v1  ;;  %v1898_v21 = vcombine.low %v1881_v12, %v1855_v56  ;;  %v3055_v23 = vld [vmem:[%s3441_s1 + $0x140] sm:$0xff]   ;;  %v3066_v39 = vld [vmem:[%s3441_s1 + $0x1b8] sm:$0xff]   ;;  %v3082_v44 = vld [vmem:[%s3441_s1 + $0x1b0] sm:$0xff]  }
  0x23   : >> { %2199 = vmatprep.subr.bf16.mxu1 %v2648_v1  ;;  %v673_v16 = vrot.slane %v671_v62, 1  ;;  %3460 = vst [vmem:[#allocation6_spill] sm:$0xff] %v3055_v23  ;;  %v3073_v43 = vld [vmem:[%s3441_s1 + $0x1f8] sm:$0xff]   ;;  %v3089_v45 = vld [vmem:[%s3441_s1 + $0x1f0] sm:$0xff]   ;;  %v3107_v56 = vld [vmem:[%s3441_s1 + $0x1e8] sm:$0xff]  }
  0x24   : >> { %3461 = vst [vmem:[#allocation7_spill] sm:$0xff] %v3073_v43  ;;  %3462 = vst [vmem:[#allocation8_spill] sm:$0xff] %v3089_v45  ;;  %v3114_v59 = vld [vmem:[%s3441_s1 + $0x1a0] sm:$0xff]   ;;  %v3128_v12 = vld [vmem:[%s3441_s1 + $0x198] sm:$0xff]  }
  0x25   : >> { %2180 = vmatpush3.bf16.msra.mxu0 %v2778_v14  ;;  %3463 = vst [vmem:[#allocation9_spill] sm:$0xff] %v3107_v56  ;;  %v3121_v62 = vld [vmem:[%s3441_s1 + $0x1e0] sm:$0xff]   ;;  %3465 = vst [vmem:[#allocation11_spill] sm:$0xff] %v3128_v12 }
  0x26   : >> { %2200 = vmatpush3.bf16.msra.mxu1 %v2785_v15  ;;  %2181 = vmatprep.subr.bf16.mxu0 %v2648_v1  ;;  %3464 = vst [vmem:[#allocation10_spill] sm:$0xff] %v3121_v62  ;;  %vm1676_vm3 = vmand %vm1674_vm1, %vm1675_vm2 }
  0x27   : >> { %2201 = vmatprep.subr.bf16.mxu1 %v2648_v1 }
  0x29   : >> { %2182 = vmatpush3.bf16.msra.mxu0 %v2792_v17 }
  0x2a   : >> { %2202 = vmatpush3.bf16.msra.mxu1 %v2799_v18  ;;  %2183 = vmatprep.subr.bf16.mxu0 %v2648_v1 }
  0x2b   : >> { %2203 = vmatprep.subr.bf16.mxu1 %v2648_v1 }
  0x2d   : >> { %2184 = vmatpush3.bf16.msra.mxu0 %v2805_v19 }
  0x2e   : >> { %2204 = vmatpush3.bf16.msra.mxu1 %v2811_v22  ;;  %2209 = vmatprep.subr.bf16.mxu0 %v2648_v1 }
  0x2f   : >> { %2229 = vmatprep.subr.bf16.mxu1 %v2648_v1 }
  0x30   : >> { %2186 = vmatmul.mubr.bf16.vlgmr.msra.gmra.mxu0 %v229_v24  ;;  %v3058_v24 = vor.u32 %v673_v16, %v669_v13  ;;  %v3135_v13 = vld [vmem:[%s3441_s1 + $0x1d8] sm:$0xff]   ;;  %v1909_v16 = vld [vmem:[%s2753_s14 + $0x10] sm:$0xf] }
  0x31   : >> { %2206 = vmatmul.mubr.bf16.vlgmr.msra.gmra.mxu1 %v1792_v25  ;;  %2210 = vmatpush3.bf16.msra.mxu0 %v2821_v26  ;;  %v3061_v25 = vrot.slane %v1898_v21, 1  ;;  %3466 = vst [vmem:[#allocation12_spill] sm:$0xff] %v3135_v13  ;;  %v3139_v21 = vld [vmem:[%s2753_s14 + $0x14] sm:$0xf] }
  0x32   : >> { %2230 = vmatpush3.bf16.msra.mxu1 %v2828_v27  ;;  %2211 = vmatprep.subr.bf16.mxu0 %v2648_v1 }
  0x33   : >> { %2231 = vmatprep.subr.bf16.mxu1 %v2648_v1  ;;  %2225 = vmatprep.mubr.msk.bf16.mxu0 %vm2649_vm0, %v2648_v1 }
  0x34   : >> { %2245 = vmatprep.mubr.msk.bf16.mxu1 %vm2649_vm0, %v2648_v1 }
  0x35   : >> { %2212 = vmatpush3.bf16.msra.mxu0 %v2835_v28 }
  0x36   : >> { %2232 = vmatpush3.bf16.msra.mxu1 %v2842_v29  ;;  %2213 = vmatprep.subr.bf16.mxu0 %v2648_v1 }
  0x37   : >> { %2233 = vmatprep.subr.bf16.mxu1 %v2648_v1 }
  0x39   : >> { %2214 = vmatpush3.bf16.msra.mxu0 %v2853_v30 }
  0x3a   : >> { %2234 = vmatpush3.bf16.msra.mxu1 %v2860_v31  ;;  %2215 = vmatprep.subr.bf16.mxu0 %v2648_v1 }
  0x3b   : >> { %2235 = vmatprep.subr.bf16.mxu1 %v2648_v1 }
  0x3d   : >> { %2216 = vmatpush3.bf16.msra.mxu0 %v2867_v32 }
  0x3e   : >> { %2236 = vmatpush3.bf16.msra.mxu1 %v2874_v33  ;;  %2217 = vmatprep.subr.bf16.mxu0 %v2648_v1 }
  0x3f   : >> { %2237 = vmatprep.subr.bf16.mxu1 %v2648_v1 }
  0x41   : >> { %2218 = vmatpush3.bf16.msra.mxu0 %v2881_v34 }
  0x42   : >> { %2238 = vmatpush3.bf16.msra.mxu1 %v2888_v35  ;;  %2219 = vmatprep.subr.bf16.mxu0 %v2648_v1 }
  0x43   : >> { %2239 = vmatprep.subr.bf16.mxu1 %v2648_v1 }
  0x45   : >> { %2220 = vmatpush3.bf16.msra.mxu0 %v2895_v36 }
  0x46   : >> { %2240 = vmatpush3.bf16.msra.mxu1 %v2902_v37  ;;  %2221 = vmatprep.subr.bf16.mxu0 %v2648_v1 }
  0x47   : >> { %2241 = vmatprep.subr.bf16.mxu1 %v2648_v1 }
  0x49   : >> { %2222 = vmatpush3.bf16.msra.mxu0 %v2908_v38 }
  0x4a   : >> { %2242 = vmatpush3.bf16.msra.mxu1 %v2917_v40  ;;  %2223 = vmatprep.subr.bf16.mxu0 %v2648_v1 }
  0x4b   : >> { %2243 = vmatprep.subr.bf16.mxu1 %v2648_v1 }
  0x4d   : >> { %2224 = vmatpush3.bf16.msra.mxu0 %v2923_v41 }
  0x4e   : >> { %2244 = vmatpush3.bf16.msra.mxu1 %v2928_v42  ;;  %2249 = vmatprep.subr.bf16.mxu0 %v2648_v1 }
  0x4f   : >> { %2269 = vmatprep.subr.bf16.mxu1 %v2648_v1 }
  0x50   : >> { %2226 = vmatmul.mubr.bf16.vlgmr.msra.gmra.mxu0 %v434_v46  ;;  %v3100_v46 = vld [vmem:[%s3441_s1 + $0x1a8] sm:$0xff]  }
  0x51   : >> { %2246 = vmatmul.mubr.bf16.vlgmr.msra.gmra.mxu1 %v2938_v47  ;;  %2250 = vmatpush3.bf16.msra.mxu0 %v2943_v48 }
  0x52   : >> { %2270 = vmatpush3.bf16.msra.mxu1 %v2950_v49  ;;  %2251 = vmatprep.subr.bf16.mxu0 %v2648_v1 }
  0x53   : >> { %2271 = vmatprep.subr.bf16.mxu1 %v2648_v1  ;;  %2265 = vmatprep.mubr.msk.bf16.mxu0 %vm2649_vm0, %v2648_v1 }
  0x54   : >> { %2285 = vmatprep.mubr.msk.bf16.mxu1 %vm2649_vm0, %v2648_v1 }
  0x55   : >> { %2252 = vmatpush3.bf16.msra.mxu0 %v2958_v50 }
  0x56   : >> { %2272 = vmatpush3.bf16.msra.mxu1 %v2965_v51  ;;  %2253 = vmatprep.subr.bf16.mxu0 %v2648_v1 }
  0x57   : >> { %2273 = vmatprep.subr.bf16.mxu1 %v2648_v1 }
  0x59   : >> { %2254 = vmatpush3.bf16.msra.mxu0 %v2976_v52 }
  0x5a   : >> { %2274 = vmatpush3.bf16.msra.mxu1 %v2983_v53  ;;  %2255 = vmatprep.subr.bf16.mxu0 %v2648_v1 }
  0x5b   : >> { %2275 = vmatprep.subr.bf16.mxu1 %v2648_v1 }
  0x5d   : >> { %2256 = vmatpush3.bf16.msra.mxu0 %v2990_v54 }
  0x5e   : >> { %2276 = vmatpush3.bf16.msra.mxu1 %v2997_v55  ;;  %2257 = vmatprep.subr.bf16.mxu0 %v2648_v1 }
  0x5f   : >> { %2277 = vmatprep.subr.bf16.mxu1 %v2648_v1 }
  0x61   : >> { %2258 = vmatpush3.bf16.msra.mxu0 %v3005_v57 }
  0x62   : >> { %2278 = vmatpush3.bf16.msra.mxu1 %v3012_v58  ;;  %2259 = vmatprep.subr.bf16.mxu0 %v2648_v1 }
  0x63   : >> { %2279 = vmatprep.subr.bf16.mxu1 %v2648_v1 }
  0x65   : >> { %2260 = vmatpush3.bf16.msra.mxu0 %v3019_v60 }
  0x66   : >> { %2280 = vmatpush3.bf16.msra.mxu1 %v3026_v61  ;;  %2261 = vmatprep.subr.bf16.mxu0 %v2648_v1 }
  0x67   : >> { %2281 = vmatprep.subr.bf16.mxu1 %v2648_v1 }
  0x69   : >> { %2262 = vmatpush3.bf16.msra.mxu0 %v3033_v63 }
  0x6a   : >> { %2282 = vmatpush3.bf16.msra.mxu1 %v3040_v11  ;;  %2263 = vmatprep.subr.bf16.mxu0 %v2648_v1  ;;  %v3175_v11 = vld [vmem:[%s3441_s1 + $0x180] sm:$0xff]  }
  0x6b   : >> { %2283 = vmatprep.subr.bf16.mxu1 %v2648_v1 }
  0x6d   : >> { %2264 = vmatpush3.bf16.msra.mxu0 %v3048_v20 }
  0x6e   : >> { %2284 = vmatpush3.bf16.msra.mxu1 %v3055_v23  ;;  %2289 = vmatprep.subr.bf16.mxu0 %v2648_v1 }
  0x6f   : >> { %2309 = vmatprep.subr.bf16.mxu1 %v2648_v1 }
  0x70   : >> { %2266 = vmatmul.mubr.bf16.vlgmr.msra.gmra.mxu0 %v3058_v24 }
  0x71   : >> { %2286 = vmatmul.mubr.bf16.vlgmr.msra.gmra.mxu1 %v3061_v25  ;;  %2290 = vmatpush3.bf16.msra.mxu0 %v3066_v39 }
  0x72   : >> { %2310 = vmatpush3.bf16.msra.mxu1 %v3073_v43  ;;  %2291 = vmatprep.subr.bf16.mxu0 %v2648_v1  ;;  %v3161_v43 = vld [vmem:[%s3441_s1 + $0x188] sm:$0xff]  }
  0x73   : >> { %2311 = vmatprep.subr.bf16.mxu1 %v2648_v1  ;;  %2305 = vmatprep.mubr.msk.bf16.mxu0 %vm2649_vm0, %v2648_v1  ;;  %3469 = vst [vmem:[#allocation15_spill] sm:$0xff] %v3161_v43 }
  0x74   : >> { %2325 = vmatprep.mubr.msk.bf16.mxu1 %vm2649_vm0, %v2648_v1 }
  0x75   : >> { %2292 = vmatpush3.bf16.msra.mxu0 %v3082_v44 }
  0x76   : >> { %2312 = vmatpush3.bf16.msra.mxu1 %v3089_v45  ;;  %2293 = vmatprep.subr.bf16.mxu0 %v2648_v1  ;;  %v3154_v45 = vld [vmem:[%s3441_s1 + $0x1d0] sm:$0xff]  }
  0x77   : >> { %2313 = vmatprep.subr.bf16.mxu1 %v2648_v1  ;;  %3468 = vst [vmem:[#allocation14_spill] sm:$0xff] %v3154_v45 }
  0x79   : >> { %2294 = vmatpush3.bf16.msra.mxu0 %v3100_v46 }
  0x7a   : >> { %2314 = vmatpush3.bf16.msra.mxu1 %v3107_v56  ;;  %2295 = vmatprep.subr.bf16.mxu0 %v2648_v1  ;;  %v3146_v56 = vld [vmem:[%s3441_s1 + $0x190] sm:$0xff]  }
  0x7b   : >> { %2315 = vmatprep.subr.bf16.mxu1 %v2648_v1  ;;  %3467 = vst [vmem:[#allocation13_spill] sm:$0xff] %v3146_v56 }
  0x7d   : >> { %2296 = vmatpush3.bf16.msra.mxu0 %v3114_v59 }
  0x7e   : >> { %2316 = vmatpush3.bf16.msra.mxu1 %v3121_v62  ;;  %2297 = vmatprep.subr.bf16.mxu0 %v2648_v1  ;;  %v1953_v62 = vcombine.low %v1909_v16, %v3139_v21 }
  0x7f   : >> { %2317 = vmatprep.subr.bf16.mxu1 %v2648_v1 }
  0x80   : >> { %v1025_v23 = vshll.u32 %v1953_v62, 16  ;;  %v1023_v61 = vshrl.u32 %v1953_v62, 16  ;;  %v1962_v62 = vld [vmem:[%s2753_s14 + $0x10] sm:$0xe] }
  0x81   : >> { %2298 = vmatpush3.bf16.msra.mxu0 %v3128_v12 }
  0x82   : >> { %2318 = vmatpush3.bf16.msra.mxu1 %v3135_v13  ;;  %2299 = vmatprep.subr.bf16.mxu0 %v2648_v1  ;;  %v3168_v13 = vld [vmem:[%s3441_s1 + $0x1c8] sm:$0xff]   ;;  %v1027_v12 = vrot.slane %v1025_v23, 1  ;;  %v3194_v23 = vld [vmem:[%s3441_s1 + $0x238] sm:$0xff]  }
  0x83   : >> { %2319 = vmatprep.subr.bf16.mxu1 %v2648_v1 }
  0x84   : >> { %v3189_v58 = vor.u32 %v1027_v12, %v1023_v61  ;;  %v3205_v61 = vld [vmem:[%s3441_s1 + $0x230] sm:$0xff]   ;;  %v3265_v12 = vld [vmem:[%s3441_s1 + $0x200] sm:$0xff]  }
  0x85   : >> { %2300 = vmatpush3.bf16.msra.mxu0 %v3146_v56  ;;  %v1910_v56 = vld [vmem:[%s2753_s14 + $0x14] sm:$0x7] }
  0x86   : >> { %2320 = vmatpush3.bf16.msra.mxu1 %v3154_v45  ;;  %2301 = vmatprep.subr.bf16.mxu0 %v2648_v1  ;;  %v3183_v45 = vld [vmem:[%s3441_s1 + $0x1c0] sm:$0xff]  }
  0x87   : >> { %2321 = vmatprep.subr.bf16.mxu1 %v2648_v1 }
  0x89   : >> { %2302 = vmatpush3.bf16.msra.mxu0 %v3161_v43  ;;  %v3186_v43 = vcombine.low %v1909_v16, %v1910_v56  ;;  %v3218_v56 = vld [vmem:[%s3441_s1 + $0x228] sm:$0xff]  }
  0x8a   : >> { %2322 = vmatpush3.bf16.msra.mxu1 %v3168_v13  ;;  %2303 = vmatprep.subr.bf16.mxu0 %v2648_v1 }
  0x8b   : >> { %2323 = vmatprep.subr.bf16.mxu1 %v2648_v1 }
  0x8d   : >> { %2304 = vmatpush3.bf16.msra.mxu0 %v3175_v11 }
  0x8e   : >> { %2324 = vmatpush3.bf16.msra.mxu1 %v3183_v45  ;;  %2329 = vmatprep.subr.bf16.mxu0 %v2648_v1 }
  0x8f   : >> { %2349 = vmatprep.subr.bf16.mxu1 %v2648_v1 }
  0x90   : >> { %2306 = vmatmul.mubr.bf16.vlgmr.msra.gmra.mxu0 %v3186_v43 }
  0x91   : >> { %2326 = vmatmul.mubr.bf16.vlgmr.msra.gmra.mxu1 %v3189_v58  ;;  %2330 = vmatpush3.bf16.msra.mxu0 %v3194_v23 }
  0x92   : >> { %2350 = vmatpush3.bf16.msra.mxu1 %v2696_v0  ;;  %2331 = vmatprep.subr.bf16.mxu0 %v2648_v1  ;;  %v3227_v0 = vld [vmem:[%s3441_s1 + $0x220] sm:$0xff]  }
  0x93   : >> { %2351 = vmatprep.subr.bf16.mxu1 %v2648_v1  ;;  %2345 = vmatprep.mubr.msk.bf16.mxu0 %vm2649_vm0, %v2648_v1 }
  0x94   : >> { %2365 = vmatprep.mubr.msk.bf16.mxu1 %vm2649_vm0, %v2648_v1 }
  0x95   : >> { %2332 = vmatpush3.bf16.msra.mxu0 %v3205_v61 }
  0x96   : >> { %2352 = vmatpush3.bf16.msra.mxu1 %v2709_v3  ;;  %2333 = vmatprep.subr.bf16.mxu0 %v2648_v1  ;;  %v3236_v3 = vld [vmem:[%s3441_s1 + $0x218] sm:$0xff]  }
  0x97   : >> { %2353 = vmatprep.subr.bf16.mxu1 %v2648_v1 }
  0x99   : >> { %2334 = vmatpush3.bf16.msra.mxu0 %v3218_v56 }
  0x9a   : >> { %2354 = vmatpush3.bf16.msra.mxu1 %v2727_v5  ;;  %2335 = vmatprep.subr.bf16.mxu0 %v2648_v1  ;;  %v3245_v5 = vld [vmem:[%s3441_s1 + $0x210] sm:$0xff]  }
  0x9b   : >> { %2355 = vmatprep.subr.bf16.mxu1 %v2648_v1 }
  0x9d   : >> { %2336 = vmatpush3.bf16.msra.mxu0 %v3227_v0 }
  0x9e   : >> { %2356 = vmatpush3.bf16.msra.mxu1 %v2741_v7  ;;  %2337 = vmatprep.subr.bf16.mxu0 %v2648_v1  ;;  %v3254_v7 = vld [vmem:[%s3441_s1 + $0x208] sm:$0xff]  }
  0x9f   : >> { %2357 = vmatprep.subr.bf16.mxu1 %v2648_v1 }
  0xa1   : >> { %2338 = vmatpush3.bf16.msra.mxu0 %v3236_v3 }
  0xa2   : >> { %2358 = vmatpush3.bf16.msra.mxu1 %v2759_v9  ;;  %2339 = vmatprep.subr.bf16.mxu0 %v2648_v1  ;;  %v1979_v9 = vcombine.low %v1962_v62, %v3139_v21 }
  0xa3   : >> { %2359 = vmatprep.subr.bf16.mxu1 %v2648_v1 }
  0xa5   : >> { %2340 = vmatpush3.bf16.msra.mxu0 %v3245_v5 }
  0xa6   : >> { %2360 = vmatpush3.bf16.msra.mxu1 %v2778_v14  ;;  %2341 = vmatprep.subr.bf16.mxu0 %v2648_v1  ;;  %v3270_v14 = vrot.slane %v1979_v9, 1 }
  0xa7   : >> { %2361 = vmatprep.subr.bf16.mxu1 %v2648_v1 }
  0xa9   : >> { %2342 = vmatpush3.bf16.msra.mxu0 %v3254_v7 }
  0xaa   : >> { %2362 = vmatpush3.bf16.msra.mxu1 %v2792_v17  ;;  %2343 = vmatprep.subr.bf16.mxu0 %v2648_v1 }
  0xab   : >> { %2363 = vmatprep.subr.bf16.mxu1 %v2648_v1 }
  0xad   : >> { %2344 = vmatpush3.bf16.msra.mxu0 %v3265_v12 }
  0xae   : >> { %2364 = vmatpush3.bf16.msra.mxu1 %v2805_v19  ;;  %2369 = vmatprep.subr.bf16.mxu0 %v2648_v1 }
  0xaf   : >> { %2389 = vmatprep.subr.bf16.mxu1 %v2648_v1 }
  0xb0   : >> { %2346 = vmatmul.mubr.bf16.vlgmr.msra.gmra.mxu0 %v3270_v14 }
  0xb1   : >> { %2366 = vmatmul.mubr.bf16.vlgmr.msra.gmra.mxu1 %v3058_v24  ;;  %2370 = vmatpush3.bf16.msra.mxu0 %v2703_v2  ;;  %v1996_v24 = vld [vmem:[%s2753_s14 + $0x18] sm:$0xe] }
  0xb2   : >> { %2390 = vmatpush3.bf16.msra.mxu1 %v2821_v26  ;;  %2371 = vmatprep.subr.bf16.mxu0 %v2648_v1  ;;  %v3470_v26 = vld [vmem:[#allocation3_spill] sm:$0xff] }
  0xb3   : >> { %2391 = vmatprep.subr.bf16.mxu1 %v2648_v1  ;;  %2385 = vmatprep.mubr.msk.bf16.mxu0 %vm2649_vm0, %v2648_v1 }
  0xb4   : >> { %2405 = vmatprep.mubr.msk.bf16.mxu1 %vm2649_vm0, %v2648_v1 }
  0xb5   : >> { %2372 = vmatpush3.bf16.msra.mxu0 %v2718_v4 }
  0xb6   : >> { %2392 = vmatpush3.bf16.msra.mxu1 %v2835_v28  ;;  %2373 = vmatprep.subr.bf16.mxu0 %v2648_v1  ;;  %v3472_v28 = vld [vmem:[#allocation4_spill] sm:$0xff] }
  0xb7   : >> { %2393 = vmatprep.subr.bf16.mxu1 %v2648_v1 }
  0xb9   : >> { %2374 = vmatpush3.bf16.msra.mxu0 %v2734_v6 }
  0xba   : >> { %2394 = vmatpush3.bf16.msra.mxu1 %v2853_v30  ;;  %2375 = vmatprep.subr.bf16.mxu0 %v2648_v1  ;;  %v3474_v30 = vld [vmem:[#allocation5_spill] sm:$0xff] }
  0xbb   : >> { %2395 = vmatprep.subr.bf16.mxu1 %v2648_v1 }
  0xbd   : >> { %2376 = vmatpush3.bf16.msra.mxu0 %v2749_v8 }
  0xbe   : >> { %2396 = vmatpush3.bf16.msra.mxu1 %v2867_v32  ;;  %2377 = vmatprep.subr.bf16.mxu0 %v2648_v1  ;;  %v1991_v32 = vld [vmem:[%s2753_s14 + $0x18] sm:$0xf] }
  0xbf   : >> { %2397 = vmatprep.subr.bf16.mxu1 %v2648_v1 }
  0xc1   : >> { %2378 = vmatpush3.bf16.msra.mxu0 %v2766_v10 }
  0xc2   : >> { %2398 = vmatpush3.bf16.msra.mxu1 %v2881_v34  ;;  %2379 = vmatprep.subr.bf16.mxu0 %v2648_v1  ;;  %v3476_v34 = vld [vmem:[#allocation6_spill] sm:$0xff] }
  0xc3   : >> { %2399 = vmatprep.subr.bf16.mxu1 %v2648_v1 }
  0xc5   : >> { %2380 = vmatpush3.bf16.msra.mxu0 %v2785_v15 }
  0xc6   : >> { %2400 = vmatpush3.bf16.msra.mxu1 %v2895_v36  ;;  %2381 = vmatprep.subr.bf16.mxu0 %v2648_v1 }
  0xc7   : >> { %2401 = vmatprep.subr.bf16.mxu1 %v2648_v1 }
  0xc9   : >> { %2382 = vmatpush3.bf16.msra.mxu0 %v2799_v18 }
  0xca   : >> { %2402 = vmatpush3.bf16.msra.mxu1 %v2908_v38  ;;  %2383 = vmatprep.subr.bf16.mxu0 %v2648_v1 }
  0xcb   : >> { %2403 = vmatprep.subr.bf16.mxu1 %v2648_v1 }
  0xcd   : >> { %2384 = vmatpush3.bf16.msra.mxu0 %v2811_v22 }
  0xce   : >> { %2404 = vmatpush3.bf16.msra.mxu1 %v2923_v41  ;;  %2409 = vmatprep.subr.bf16.mxu0 %v2648_v1 }
  0xcf   : >> { %2429 = vmatprep.subr.bf16.mxu1 %v2648_v1 }
  0xd0   : >> { %2386 = vmatmul.mubr.bf16.vlgmr.msra.gmra.mxu0 %v2938_v47 }
  0xd1   : >> { %2406 = vmatmul.mubr.bf16.vlgmr.msra.gmra.mxu1 %v3061_v25  ;;  %2410 = vmatpush3.bf16.msra.mxu0 %v2828_v27  ;;  %v3471_v27 = vld [vmem:[#allocation11_spill] sm:$0xff] }
  0xd2   : >> { %2430 = vmatpush3.bf16.msra.mxu1 %v2943_v48  ;;  %2411 = vmatprep.subr.bf16.mxu0 %v2648_v1 }
  0xd3   : >> { %2431 = vmatprep.subr.bf16.mxu1 %v2648_v1  ;;  %2425 = vmatprep.mubr.msk.bf16.mxu0 %vm2649_vm0, %v2648_v1 }
  0xd4   : >> { %2445 = vmatprep.mubr.msk.bf16.mxu1 %vm2649_vm0, %v2648_v1 }
  0xd5   : >> { %2412 = vmatpush3.bf16.msra.mxu0 %v2842_v29  ;;  %v3473_v29 = vld [vmem:[#allocation13_spill] sm:$0xff] }
  0xd6   : >> { %2432 = vmatpush3.bf16.msra.mxu1 %v2958_v50  ;;  %2413 = vmatprep.subr.bf16.mxu0 %v2648_v1 }
  0xd7   : >> { %2433 = vmatprep.subr.bf16.mxu1 %v2648_v1 }
  0xd9   : >> { %2414 = vmatpush3.bf16.msra.mxu0 %v2860_v31  ;;  %v3475_v31 = vld [vmem:[#allocation15_spill] sm:$0xff] }
  0xda   : >> { %2434 = vmatpush3.bf16.msra.mxu1 %v2976_v52  ;;  %2415 = vmatprep.subr.bf16.mxu0 %v2648_v1 }
  0xdb   : >> { %2435 = vmatprep.subr.bf16.mxu1 %v2648_v1 }
  0xdd   : >> { %2416 = vmatpush3.bf16.msra.mxu0 %v2874_v33  ;;  %v1992_v33 = vld [vmem:[%s2753_s14 + $0x1c] sm:$0x7] }
  0xde   : >> { %2436 = vmatpush3.bf16.msra.mxu1 %v2990_v54  ;;  %2417 = vmatprep.subr.bf16.mxu0 %v2648_v1 }
  0xdf   : >> { %2437 = vmatprep.subr.bf16.mxu1 %v2648_v1 }
  0xe1   : >> { %2418 = vmatpush3.bf16.msra.mxu0 %v2888_v35  ;;  %v1993_v35 = vcombine.low %v1991_v32, %v1992_v33 }
  0xe2   : >> { %2438 = vmatpush3.bf16.msra.mxu1 %v3005_v57  ;;  %2419 = vmatprep.subr.bf16.mxu0 %v2648_v1  ;;  %v1994_v57 = vld [vmem:[%s2753_s14 + $0x1c] sm:$0xf] }
  0xe3   : >> { %2439 = vmatprep.subr.bf16.mxu1 %v2648_v1 }
  0xe5   : >> { %2420 = vmatpush3.bf16.msra.mxu0 %v2902_v37 }
  0xe6   : >> { %2440 = vmatpush3.bf16.msra.mxu1 %v3019_v60  ;;  %2421 = vmatprep.subr.bf16.mxu0 %v2648_v1  ;;  %v1995_v60 = vcombine.low %v1991_v32, %v1994_v57 }
  0xe7   : >> { %2441 = vmatprep.subr.bf16.mxu1 %v2648_v1 }
  0xe8   : >> { %v1560_v25 = vshrl.u32 %v1995_v60, 16 }
  0xe9   : >> { %2422 = vmatpush3.bf16.msra.mxu0 %v2917_v40  ;;  %v3477_v40 = vld [vmem:[#allocation7_spill] sm:$0xff] }
  0xea   : >> { %2442 = vmatpush3.bf16.msra.mxu1 %v3033_v63  ;;  %2423 = vmatprep.subr.bf16.mxu0 %v2648_v1  ;;  %v3481_v63 = vld [vmem:[#allocation12_spill] sm:$0xff] }
  0xeb   : >> { %2443 = vmatprep.subr.bf16.mxu1 %v2648_v1 }
  0xed   : >> { %2424 = vmatpush3.bf16.msra.mxu0 %v2928_v42 }
  0xee   : >> { %2444 = vmatpush3.bf16.msra.mxu1 %v3048_v20  ;;  %2449 = vmatprep.subr.bf16.mxu0 %v2648_v1  ;;  %v3482_v20 = vld [vmem:[#allocation14_spill] sm:$0xff] }
  0xef   : >> { %2469 = vmatprep.subr.bf16.mxu1 %v2648_v1 }
  0xf0   : >> { %v313_v2 = vpop.f32.mrf.mxu0  ;;  %2426 = vmatmul.mubr.bf16.vlgmr.msra.gmra.mxu0 %v3186_v43  ;;  %v1997_v43 = vcombine.low %v1996_v24, %v1994_v57 }
  0xf1   : >> { %v406_v4 = vpop.f32.mrf.mxu1  ;;  %2446 = vmatmul.mubr.bf16.vlgmr.msra.gmra.mxu1 %v3189_v58  ;;  %2450 = vmatpush3.bf16.msra.mxu0 %v2950_v49  ;;  %v3480_v58 = vld [vmem:[#allocation10_spill] sm:$0xff] }
  0xf2   : >> { %v407_v6 = vadd.f32 %v406_v4, %v313_v2  ;;  %2470 = vmatpush3.bf16.msra.mxu1 %v3066_v39  ;;  %v2187_v8 = vpop.f32.mrf.mxu0  ;;  %2451 = vmatprep.subr.bf16.mxu0 %v2648_v1 }
  0xf3   : >> { %v2207_v10 = vpop.f32.mrf.mxu1  ;;  %2471 = vmatprep.subr.bf16.mxu1 %v2648_v1  ;;  %2465 = vmatprep.mubr.msk.bf16.mxu0 %vm2649_vm0, %v2648_v1 }
  0xf4   : >> { %v316_v15 = vpop.f32.mrf.mxu0  ;;  %2485 = vmatprep.mubr.msk.bf16.mxu1 %vm2649_vm0, %v2648_v1 }
  0xf5   : >> { %v409_v17 = vpop.f32.mrf.mxu1  ;;  %2452 = vmatpush3.bf16.msra.mxu0 %v2965_v51  ;;  %v3478_v51 = vld [vmem:[#allocation8_spill] sm:$0xff] }
  0xf6   : >> { %v410_v18 = vadd.f32 %v409_v17, %v316_v15  ;;  %2472 = vmatpush3.bf16.msra.mxu1 %v3082_v44  ;;  %v2188_v19 = vpop.f32.mrf.mxu0  ;;  %2453 = vmatprep.subr.bf16.mxu0 %v2648_v1 }
  0xf7   : >> { %v2208_v22 = vpop.f32.mrf.mxu1  ;;  %2473 = vmatprep.subr.bf16.mxu1 %v2648_v1 }
  0xf9   : >> { %2454 = vmatpush3.bf16.msra.mxu0 %v2983_v53 }
  0xfa   : >> { %2474 = vmatpush3.bf16.msra.mxu1 %v3100_v46  ;;  %2455 = vmatprep.subr.bf16.mxu0 %v2648_v1  ;;  %v1614_v46 = vrot.slane %v1997_v43, 1 }
  0xfb   : >> { %2475 = vmatprep.subr.bf16.mxu1 %v2648_v1 }
  0xfd   : >> { %2456 = vmatpush3.bf16.msra.mxu0 %v2997_v55  ;;  %v3479_v55 = vld [vmem:[#allocation9_spill] sm:$0xff] }
  0xfe   : >> { %2476 = vmatpush3.bf16.msra.mxu1 %v3114_v59  ;;  %2457 = vmatprep.subr.bf16.mxu0 %v2648_v1 }
  0xff   : >> { %2477 = vmatprep.subr.bf16.mxu1 %v2648_v1 }
 0x101   : >> { %2458 = vmatpush3.bf16.msra.mxu0 %v3470_v26 }
 0x102   : >> { %2478 = vmatpush3.bf16.msra.mxu1 %v3471_v27  ;;  %2459 = vmatprep.subr.bf16.mxu0 %v2648_v1 }
 0x103   : >> { %2479 = vmatprep.subr.bf16.mxu1 %v2648_v1 }
 0x105   : >> { %2460 = vmatpush3.bf16.msra.mxu0 %v3472_v28 }
 0x106   : >> { %2480 = vmatpush3.bf16.msra.mxu1 %v3473_v29  ;;  %2461 = vmatprep.subr.bf16.mxu0 %v2648_v1 }
 0x107   : >> { %2481 = vmatprep.subr.bf16.mxu1 %v2648_v1 }
 0x109   : >> { %2462 = vmatpush3.bf16.msra.mxu0 %v3474_v30 }
 0x10a   : >> { %2482 = vmatpush3.bf16.msra.mxu1 %v3475_v31  ;;  %2463 = vmatprep.subr.bf16.mxu0 %v2648_v1 }
 0x10b   : >> { %2483 = vmatprep.subr.bf16.mxu1 %v2648_v1 }
 0x10d   : >> { %2464 = vmatpush3.bf16.msra.mxu0 %v3476_v34 }
 0x10e   : >> { %2484 = vmatpush3.bf16.msra.mxu1 %v3175_v11  ;;  %2489 = vmatprep.subr.bf16.mxu0 %v2648_v1  ;;  %v1562_v11 = vshll.u32 %v1995_v60, 16 }
 0x10f   : >> { %2509 = vmatprep.subr.bf16.mxu1 %v2648_v1 }
 0x110   : >> { %v518_v36 = vpop.f32.mrf.mxu0  ;;  %2466 = vmatmul.mubr.bf16.vlgmr.msra.gmra.mxu0 %v3270_v14  ;;  %v1564_v39 = vrot.slane %v1562_v11, 1 }
 0x111   : >> { %v525_v37 = vadd.f32 %v518_v36, %v407_v6  ;;  %v638_v38 = vpop.f32.mrf.mxu1  ;;  %2486 = vmatmul.mubr.bf16.vlgmr.msra.gmra.mxu1 %v1993_v35  ;;  %2490 = vmatpush3.bf16.msra.mxu0 %v3477_v40 }
 0x112   : >> { %2510 = vmatpush3.bf16.msra.mxu1 %v3194_v23  ;;  %v2227_v41 = vpop.f32.mrf.mxu0  ;;  %2491 = vmatprep.subr.bf16.mxu0 %v2648_v1  ;;  %v1565_v44 = vor.u32 %v1564_v39, %v1560_v25 }
 0x113   : >> { %v645_v42 = vadd.f32 %v638_v38, %v525_v37  ;;  %v2247_v47 = vpop.f32.mrf.mxu1  ;;  %2511 = vmatprep.subr.bf16.mxu1 %v2648_v1  ;;  %2505 = vmatprep.mubr.msk.bf16.mxu0 %vm2649_vm0, %v2648_v1 }
 0x114   : >> { %v521_v48 = vpop.f32.mrf.mxu0  ;;  %2525 = vmatprep.mubr.msk.bf16.mxu1 %vm2649_vm0, %v2648_v1 }
 0x115   : >> { %v526_v49 = vadd.f32 %v521_v48, %v410_v18  ;;  %v641_v50 = vpop.f32.mrf.mxu1  ;;  %2492 = vmatpush3.bf16.msra.mxu0 %v3478_v51 }
 0x116   : >> { %2512 = vmatpush3.bf16.msra.mxu1 %v3205_v61  ;;  %v2228_v52 = vpop.f32.mrf.mxu0  ;;  %2493 = vmatprep.subr.bf16.mxu0 %v2648_v1 }
 0x117   : >> { %v646_v53 = vadd.f32 %v641_v50, %v526_v49  ;;  %v2248_v54 = vpop.f32.mrf.mxu1  ;;  %2513 = vmatprep.subr.bf16.mxu1 %v2648_v1 }
 0x119   : >> { %2494 = vmatpush3.bf16.msra.mxu0 %v3479_v55 }
 0x11a   : >> { %2514 = vmatpush3.bf16.msra.mxu1 %v3218_v56  ;;  %2495 = vmatprep.subr.bf16.mxu0 %v2648_v1 }
 0x11b   : >> { %2515 = vmatprep.subr.bf16.mxu1 %v2648_v1 }
 0x11d   : >> { %2496 = vmatpush3.bf16.msra.mxu0 %v3480_v58 }
 0x11e   : >> { %2516 = vmatpush3.bf16.msra.mxu1 %v3227_v0  ;;  %2497 = vmatprep.subr.bf16.mxu0 %v2648_v1 }
 0x11f   : >> { %2517 = vmatprep.subr.bf16.mxu1 %v2648_v1 }
 0x121   : >> { %2498 = vmatpush3.bf16.msra.mxu0 %v3481_v63 }
 0x122   : >> { %2518 = vmatpush3.bf16.msra.mxu1 %v3236_v3  ;;  %2499 = vmatprep.subr.bf16.mxu0 %v2648_v1 }
 0x123   : >> { %2519 = vmatprep.subr.bf16.mxu1 %v2648_v1 }
 0x125   : >> { %2500 = vmatpush3.bf16.msra.mxu0 %v3482_v20 }
 0x126   : >> { %2520 = vmatpush3.bf16.msra.mxu1 %v3245_v5  ;;  %2501 = vmatprep.subr.bf16.mxu0 %v2648_v1 }
 0x127   : >> { %2521 = vmatprep.subr.bf16.mxu1 %v2648_v1 }
 0x129   : >> { %2502 = vmatpush3.bf16.msra.mxu0 %v3168_v13 }
 0x12a   : >> { %2522 = vmatpush3.bf16.msra.mxu1 %v3254_v7  ;;  %2503 = vmatprep.subr.bf16.mxu0 %v2648_v1 }
 0x12b   : >> { %2523 = vmatprep.subr.bf16.mxu1 %v2648_v1 }
 0x12d   : >> { %2504 = vmatpush3.bf16.msra.mxu0 %v3183_v45 }
 0x12e   : >> { %2524 = vmatpush3.bf16.msra.mxu1 %v3265_v12 }
 0x130   : >> { %v758_v59 = vpop.f32.mrf.mxu0  ;;  %2506 = vmatmul.mubr.bf16.vlgmr.msra.gmra.mxu0 %v1565_v44 }
 0x131   : >> { %v765_v16 = vadd.f32 %v758_v59, %v645_v42  ;;  %v872_v21 = vpop.f32.mrf.mxu1  ;;  %2526 = vmatmul.mubr.bf16.vlgmr.msra.gmra.mxu1 %v1614_v46 }
 0x132   : >> { %v2267_v23 = vpop.f32.mrf.mxu0 }
 0x133   : >> { %v879_v13 = vadd.f32 %v872_v21, %v765_v16  ;;  %v2287_v61 = vpop.f32.mrf.mxu1 }
 0x134   : >> { %v761_v56 = vpop.f32.mrf.mxu0  ;;  %v1988_v61 = vld [vmem:[%s3442_s2] ss:$0 sm:$0xff] }
 0x135   : >> { %v766_v0 = vadd.f32 %v761_v56, %v646_v53  ;;  %v875_v3 = vpop.f32.mrf.mxu1 }
 0x136   : >> { %v2268_v5 = vpop.f32.mrf.mxu0 }
 0x137   : >> { %v880_v7 = vadd.f32 %v875_v3, %v766_v0  ;;  %v2288_v1 = vpop.f32.mrf.mxu1 }
 0x150   : >> { %v992_v62 = vpop.f32.mrf.mxu0 }
 0x151   : >> { %v999_v9 = vadd.f32 %v992_v62, %v879_v13  ;;  %v1112_v45 = vpop.f32.mrf.mxu1 }
 0x152   : >> { %v2307_v14 = vpop.f32.mrf.mxu0 }
 0x153   : >> { %v1119_v2 = vadd.f32 %v1112_v45, %v999_v9  ;;  %v2327_v12 = vpop.f32.mrf.mxu1 }
 0x154   : >> { %v995_v4 = vpop.f32.mrf.mxu0 }
 0x155   : >> { %v1000_v6 = vadd.f32 %v995_v4, %v880_v7  ;;  %v1115_v8 = vpop.f32.mrf.mxu1 }
 0x156   : >> { %v2308_v10 = vpop.f32.mrf.mxu0 }
 0x157   : >> { %v1120_v15 = vadd.f32 %v1115_v8, %v1000_v6  ;;  %v2328_v17 = vpop.f32.mrf.mxu1 }
 0x170   : >> { %v1226_v18 = vpop.f32.mrf.mxu0 }
 0x171   : >> { %v1233_v19 = vadd.f32 %v1226_v18, %v1119_v2  ;;  %v1280_v22 = vpop.f32.mrf.mxu1 }
 0x172   : >> { %v2347_v26 = vpop.f32.mrf.mxu0 }
 0x173   : >> { %v2367_v27 = vpop.f32.mrf.mxu1  ;;  %v1242_v7 = vadd.f32 %v1988_v61, %v1233_v19 }
 0x174   : >> { %v1229_v28 = vpop.f32.mrf.mxu0 }
 0x175   : >> { %v1234_v29 = vadd.f32 %v1229_v28, %v1120_v15  ;;  %v1283_v30 = vpop.f32.mrf.mxu1  ;;  %v1244_v6 = vmax.f32 %v1242_v7, 0.0 }
 0x176   : >> { %v2348_v31 = vpop.f32.mrf.mxu0 }
 0x177   : >> { %v2368_v32 = vpop.f32.mrf.mxu1  ;;  %v1243_v8 = vadd.f32 %v1988_v61, %v1234_v29 }
 0x178   : >> { %v1677_v32 = vld [vmem:[%s1673_s11] sm:$0xf] }
 0x179   : >> { %v1245_v26 = vmax.f32 %v1243_v8, 0.0 }
 0x190   : >> { %v1321_v33 = vpop.f32.mrf.mxu0 }
 0x191   : >> { %v1322_v34 = vadd.f32 %v1321_v33, %v1280_v22  ;;  %v1362_v35 = vpop.f32.mrf.mxu1 }
 0x192   : >> { %v2387_v36 = vpop.f32.mrf.mxu0 }
 0x193   : >> { %v1369_v37 = vadd.f32 %v1362_v35, %v1322_v34  ;;  %v2407_v38 = vpop.f32.mrf.mxu1 }
 0x194   : >> { %v1324_v40 = vpop.f32.mrf.mxu0 }
 0x195   : >> { %v1325_v41 = vadd.f32 %v1324_v40, %v1283_v30  ;;  %v1365_v42 = vpop.f32.mrf.mxu1 }
 0x196   : >> { %v2388_v47 = vpop.f32.mrf.mxu0 }
 0x197   : >> { %v1370_v48 = vadd.f32 %v1365_v42, %v1325_v41  ;;  %v2408_v49 = vpop.f32.mrf.mxu1 }
 0x1b0   : >> { %v1405_v50 = vpop.f32.mrf.mxu0 }
 0x1b1   : >> { %v1448_v51 = vpop.f32.mrf.mxu1  ;;  %v1412_v44 = vadd.f32 %v1405_v50, %v1369_v37 }
 0x1b2   : >> { %v2427_v52 = vpop.f32.mrf.mxu0 }
 0x1b3   : >> { %v2447_v53 = vpop.f32.mrf.mxu1  ;;  %v1455_v46 = vadd.f32 %v1448_v51, %v1412_v44 }
 0x1b4   : >> { %v1408_v54 = vpop.f32.mrf.mxu0 }
 0x1b5   : >> { %v1451_v55 = vpop.f32.mrf.mxu1  ;;  %v1413_v59 = vadd.f32 %v1408_v54, %v1370_v48 }
 0x1b6   : >> { %v2428_v57 = vpop.f32.mrf.mxu0 }
 0x1b7   : >> { %v2448_v58 = vpop.f32.mrf.mxu1  ;;  %v1456_v21 = vadd.f32 %v1451_v55, %v1413_v59 }
 0x1d0   : >> { %v1491_v60 = vpop.f32.mrf.mxu0 }
 0x1d1   : >> { %v1546_v63 = vpop.f32.mrf.mxu1  ;;  %v1498_v16 = vadd.f32 %v1491_v60, %v1455_v46 }
 0x1d2   : >> { %v2467_v11 = vpop.f32.mrf.mxu0 }
 0x1d3   : >> { %v2487_v20 = vpop.f32.mrf.mxu1  ;;  %v1553_v23 = vadd.f32 %v1546_v63, %v1498_v16 }
 0x1d4   : >> { %v1494_v24 = vpop.f32.mrf.mxu0 }
 0x1d5   : >> { %v1549_v25 = vpop.f32.mrf.mxu1  ;;  %v1499_v13 = vadd.f32 %v1494_v24, %v1456_v21 }
 0x1d6   : >> { %v2468_v39 = vpop.f32.mrf.mxu0 }
 0x1d7   : >> { %v2488_v43 = vpop.f32.mrf.mxu1  ;;  %v1554_v1 = vadd.f32 %v1549_v25, %v1499_v13 }
 0x1f0   : >> { %v1601_v56 = vpop.f32.mrf.mxu0 }
 0x1f1   : >> { %v1608_v0 = vadd.f32 %v1601_v56, %v1553_v23  ;;  %v1650_v3 = vpop.f32.mrf.mxu1 }
 0x1f2   : >> { %v2507_v5 = vpop.f32.mrf.mxu0 }
 0x1f3   : >> { %v1657_v62 = vadd.f32 %v1650_v3, %v1608_v0  ;;  %v2527_v9 = vpop.f32.mrf.mxu1 }
 0x1f4   : >> { %v1604_v45 = vpop.f32.mrf.mxu0 }
 0x1f5   : >> { %v1659_v14 = vadd.f32 %v1988_v61, %v1657_v62  ;;  %v1609_v2 = vadd.f32 %v1604_v45, %v1554_v1  ;;  %v1653_v12 = vpop.f32.mrf.mxu1 }
 0x1f6   : >> { %v2508_v4 = vpop.f32.mrf.mxu0 }
 0x1f7   : >> { %v1661_v10 = vmax.f32 %v1659_v14, 0.0  ;;  %v1658_v15 = vadd.f32 %v1653_v12, %v1609_v2  ;;  %v2528_v17 = vpop.f32.mrf.mxu1 }
 0x1f9   : >> { %v1663_v18 = vmax.f32 %v1244_v6, %v1661_v10  ;;  %v1660_v22 = vadd.f32 %v1988_v61, %v1658_v15 }
 0x1fb   : >> { %1665 = vst [vmem:[#allocation2] sm:$0xff] %v1663_v18  ;;  %v1662_v19 = vmax.f32 %v1660_v22, 0.0 }
 0x1fd   : >> { %v1664_v27 = vmax.f32 %v1245_v26, %v1662_v19 }
 0x1ff   : >> { %1666 = vst [vmem:[#allocation2 + $0x8] sm:$0x3f] %v1664_v27 }
 0x206   : >> { %v1667_v28 = vld [vmem:[#allocation2] ss:$2 sm:$0x7f]  ;;  %v1669_v30 = vld [vmem:[#allocation2 + $0x1] ss:$2 sm:$0x7f] }
 0x207   : >> { %v1670_v31 = vmax.f32 %v1667_v28, %v1669_v30 }
 0x208   : > { %176 = sbr.rel (!%p174_p4) target bundleno = 15 (0xf), region = 83 }
 0x209   : >> { %v1671_v29 = vpack.c.bf16 %v1670_v31, %v1670_v31 }
 0x20b   : >> { %v1678_v33 = vsel %vm1676_vm3, %v1671_v29, %v1677_v32 }
 0x20c   : >> { %1679 = vst [vmem:[%s1673_s11] sm:$0xf] %v1678_v33 }
 0x20d PF: > { %s13_s12 = sadd.s32 1, %s2642_s12  }
 0x20e   : > { %p10_p5 = scmp.ge.s32.totalorder %s13_s12, 4  }
 0x210   :  { %12 = sbr.rel (!%p10_p5) target bundleno = 1 (0x1), region = 94 }

// kernel: cnn_forward.3
= control target key start
LH: loop header
LB: loop body
LE: loop exit
PB: predicated region body
PF: predicated region fallthrough
CT: control target
= control target key end

     0   :  { %8 = vsyncpa [#allocation4], 0  ;;  %s7824_s12 = smov 0   ;;  %s9661_s0 = inlined_call_operand.vmem [shape: bf16[2,32,32,128], index: 0, kind: input, shape index: {}]   ;;  %s9662_s1 = inlined_call_operand.vmem [shape: bf16[25,128,128], index: 1, kind: input, shape index: {}]   ;;  %s9663_s2 = inlined_call_operand.hbm [shape: f32[1,128], index: 2, kind: input, shape index: {}]   ;;  %s9664_s3 = inlined_call_operand.vmem [shape: bf16[2,14,14,128], index: 3, kind: output, shape index: {}]  }
   0x1 LB: > { %s5093_s13 = sadd.s32 4294967295, %s7797_s12   ;;  %p5095_p0 = scmp.ge.s32.totalorder %s7797_s12, 1  ;;  %s7797_s12 = sphi %s7824_s12, %s14_s12  }
   0x2   : > { %p113_p1 = scmp.lt.s32.totalorder %s7797_s12, 3  ;;  %p7302_p3 = scmp.eq.s32.totalorder %s5093_s13, 0 }
   0x3   : > { %s7803_s15 = smov [#allocation3]  }
   0x4   : > { %p7832_p2 = pnand %p5095_p0, %p113_p1  ;;  %s129_s16 = sshll.u32 %s7803_s15, 4  ;;  %s130_s16 = int_to_ptr.vmem [resolvable:$true] %s129_s16 }
   0x5   : > { %s7768_s17 = scalar_lea.vmem %s130_s16, 16  ;;  %s7775_s18 = scalar_lea.vmem %s130_s16, 32 }
   0x6   : > { %p7298_p4 = pneg %p7832_p2  ;;  %p7769_p7 = scmp.ne.s32.totalorder %s130_s16, %s7768_s17 }
   0x7   : > { %p7776_p10 = scmp.lt.s32.totalorder %s130_s16, %s130_s16  ;;  %p7777_p11 = scmp.lt.s32.totalorder %s7775_s18, %s7768_s17 }
   0x8   : > { %p7299_p5 = pnand %p7302_p3, %p7298_p4 }
   0x9   : > { %p7778_p12 = por %p7777_p11, %p7776_p10 }
   0xa   : > { %p7759_p6 = pneg %p7299_p5 }
   0xc   : > { %p7771_p8 = pnand %p7769_p7, %p7759_p6 }
   0xe   : > { %p7772_p9 = pneg %p7771_p8 }
  0x10   : > { %p7779_p13 = pnand %p7778_p12, %p7772_p9 }
  0x12   : > { %7782 = shalt.err (!%p7779_p13)
}
  0x13   : > { %7301 = dma.hbm_to_vmem [thread:$0]  (!%p7299_p5), %s9663_s2, 16, %s130_s16, [#allocation4]  }
  0x14   : > { %150 = sbr.rel (%p7832_p2) target bundleno = 1055 (0x41f), region = 32 }
  0x19   : > { %7792 = dma.done.wait (%p7302_p3), [#allocation4], 16  }
  0x1a   : > { %7794 = vsyncadd (%p7302_p3), [#allocation4], 4294967280  ;;  %p174_p0 = scmp.lt.s32.totalorder %s5093_s13, 1  ;;  %s7856_s29 = smov 0  }
  0x1c   : > { %s9689_s13 = smov (!%p174_p0, %s5093_s13), 1 }
  0x1d   : > { %s5782_s21 = sshll.u32 %s9689_s13, 9  ;;  %s7293_s22 = smul.u32 112, %s9689_s13 }
  0x1e   : > { %s7849_s25 = scalar_lea.vmem %s9661_s0, %s5782_s21 }
  0x1f   : > { %s7854_s28 = scalar_lea.vmem %s9664_s3, %s7293_s22 }
  0x20 LB: >> { %v7321_v0 = vld [vmem:[%s9662_s1 + $0x78] sm:$0xff]   ;;  %v7323_v2 = vld [vmem:[%s9662_s1 + $0x70] sm:$0xff]   ;;  %v7325_v4 = vld [vmem:[%s9662_s1 + $0x68] sm:$0xff]   ;;  %s5784_s20 = sshll.u32 %s7801_s29, 5  ;;  %vm243_vm0 = vsmask.f32 7424  ;;  %s7801_s29 = sphi %s7856_s29, %s190_s29  }
  0x21   : >> { %v7322_v1 = vld [vmem:[%s9662_s1 + $0x38] sm:$0xff]   ;;  %6293 = vmatprep.subr.bf16.mxu0 %v7321_v0  ;;  %v7324_v3 = vld [vmem:[%s9662_s1 + $0x30] sm:$0xff]   ;;  %v7326_v5 = vld [vmem:[%s9662_s1 + $0x28] sm:$0xff]   ;;  %s7893_s26 = scalar_lea.vmem %s7849_s25, %s5784_s20  ;;  %vm481_vm1 = vcmask 1046528   ;;  %vm609_vm2 = vsmask.f32 6400 }
  0x22   : >> { %6313 = vmatprep.subr.bf16.mxu1 %v7322_v1  ;;  %6294 = vmatpush3.bf16.msra.mxu0 %v7321_v0  ;;  %v7327_v6 = vld [vmem:[%s9662_s1 + $0x60] sm:$0xff]   ;;  %v7329_v8 = vld [vmem:[%s9662_s1 + $0x58] sm:$0xff]   ;;  %v7331_v10 = vld [vmem:[%s9662_s1 + $0x50] sm:$0xff]   ;;  %vm751_vm3 = vcmask 1045504   ;;  %s5792_s10 = sshll.u32 %s7801_s29, 3  ;;  %s190_s29 = sadd.s32 1, %s7801_s29  }
  0x23   : >> { %6314 = vmatpush3.bf16.msra.mxu1 %v7322_v1  ;;  %6295 = vmatprep.subr.bf16.mxu0 %v7323_v2  ;;  %v7328_v7 = vld [vmem:[%s9662_s1 + $0x20] sm:$0xff]   ;;  %v7330_v9 = vld [vmem:[%s9662_s1 + $0x18] sm:$0xff]   ;;  %v197_v13 = vld [vmem:[%s7893_s26 + $0x8] sm:$0xf]  ;;  %s4994_s11 = scalar_lea.vmem %s7854_s28, %s5792_s10  ;;  %p187_p1 = scmp.ge.s32.totalorder %s190_s29, 14  }
  0x24   : >> { %6315 = vmatprep.subr.bf16.mxu1 %v7324_v3  ;;  %v195_v11 = vld [vmem:[%s7893_s26] sm:$0xf]  ;;  %v7900_v12 = vld [vmem:[%s7893_s26 + $0x4] sm:$0xf]  ;;  %v7332_v14 = vld [vmem:[%s9662_s1 + $0x10] sm:$0xff]  }
  0x25   : >> { %v215_v15 = vld [vmem:[%s7893_s26 + $0xc] sm:$0x7]  ;;  %v5122_v16 = vcombine.low %v195_v11, %v7900_v12  ;;  %v7335_v26 = vld [vmem:[%s9662_s1 + $0x40] sm:$0xff]   ;;  %v7340_v31 = vld [vmem:[%s9662_s1 + $0xb8] sm:$0xff]  }
  0x26   : >> { %6296 = vmatpush3.bf16.msra.mxu0 %v7323_v2  ;;  %v7908_v17 = vcombine.low %v197_v13, %v215_v15  ;;  %v7333_v20 = vld [vmem:[%s9662_s1 + $0x48] sm:$0xff]   ;;  %v7336_v27 = vld [vmem:[%s9662_s1] sm:$0xff]   ;;  %v7341_v32 = vld [vmem:[%s9662_s1 + $0xf8] sm:$0xff]  }
  0x27   : >> { %6316 = vmatpush3.bf16.msra.mxu1 %v7324_v3  ;;  %6297 = vmatprep.subr.bf16.mxu0 %v7325_v4  ;;  %v245_v18 = vshrl.u32 %v5122_v16, 16  ;;  %v247_v19 = vshll.u32 %v5122_v16, 16  ;;  %v7334_v22 = vld [vmem:[%s9662_s1 + $0x8] sm:$0xff]   ;;  %v7342_v35 = vld [vmem:[%s9662_s1 + $0xb0] sm:$0xff]   ;;  %v460_v37 = vld [vmem:[%s7893_s26] sm:$0xe] }
  0x28   : >> { %6317 = vmatprep.subr.bf16.mxu1 %v7326_v5  ;;  %6329 = vmatprep.mubr.bf16.mxu1 %v5122_v16  ;;  %v252_v21 = vshll.u32 %v7908_v17, 16  ;;  %v256_v29 = vshrl.u32 %v7908_v17, 16  ;;  %v198_v30 = vld [vmem:[%s7893_s26 + $0xc] sm:$0x3]  ;;  %v7343_v36 = vld [vmem:[%s9662_s1 + $0xf0] sm:$0xff]   ;;  %v5157_v40 = vcombine.low %v460_v37, %v7900_v12  ;;  %v483_v41 = vrot.slane %v7908_v17, 1 }
  0x29   : >> { %v249_v23 = vrot.slane %v247_v19, 1  ;;  %v5132_v34 = vcombine.low %v197_v13, %v198_v30  ;;  %v588_v38 = vld [vmem:[%s7893_s26 + $0xc] sm:$0xf]  ;;  %v7346_v49 = vld [vmem:[%s9662_s1 + $0xa0] sm:$0xff]   ;;  %v7348_v58 = vld [vmem:[%s9662_s1 + $0x98] sm:$0xff]  }
  0x2a   : >> { %6298 = vmatpush3.bf16.msra.mxu0 %v7325_v4  ;;  %v254_v24 = vrot.slane %v252_v21, 1  ;;  %v7344_v39 = vld [vmem:[%s9662_s1 + $0xa8] sm:$0xff]   ;;  %v7945_v42 = vcombine.low %v197_v13, %v588_v38  ;;  %v482_v44 = vrot.slane %v5157_v40, 1  ;;  %v611_v45 = vshrl.u32 %v5157_v40, 16  ;;  %v7347_v54 = vld [vmem:[%s9662_s1 + $0xe0] sm:$0xff]   ;;  %v7349_v60 = vld [vmem:[%s9662_s1 + $0xd8] sm:$0xff]  }
  0x2b   : >> { %6318 = vmatpush3.bf16.msra.mxu1 %v7326_v5  ;;  %6299 = vmatprep.subr.bf16.mxu0 %v7327_v6  ;;  %v250_v25 = vor.u32 %v249_v23, %v245_v18  ;;  %v7345_v43 = vld [vmem:[%s9662_s1 + $0xe8] sm:$0xff]   ;;  %v614_v46 = vshll.u32 %v5157_v40, 16  ;;  %v7350_v61 = vld [vmem:[%s9662_s1 + $0x90] sm:$0xff]   ;;  %v730_v1 = vld [vmem:[%s7893_s26] sm:$0xc] }
  0x2c   : >> { %6319 = vmatprep.subr.bf16.mxu1 %v7328_v7  ;;  %v258_v33 = vor.u32 %v256_v29, %v254_v24  ;;  %v619_v47 = vshrl.u32 %v7945_v42, 16  ;;  %v622_v48 = vshll.u32 %v7945_v42, 16  ;;  %v484_v50 = vsel %vm481_vm1, %v482_v44, %v483_v41  ;;  %v7351_v62 = vld [vmem:[%s9662_s1 + $0xd0] sm:$0xff]   ;;  %v7352_v63 = vld [vmem:[%s9662_s1 + $0x88] sm:$0xff]   ;;  %v7354_v2 = vld [vmem:[%s9662_s1 + $0x80] sm:$0xff]  }
  0x2d   : >> { %v255_v28 = vsel %vm243_vm0, %v250_v25, %v254_v24  ;;  %v613_v51 = vrot.slane %v611_v45, 1  ;;  %v616_v52 = vrot.slane %v614_v46, 2  ;;  %v7353_v0 = vld [vmem:[%s9662_s1 + $0xc8] sm:$0xff]   ;;  %v7355_v3 = vld [vmem:[%s9662_s1 + $0xc0] sm:$0xff]   ;;  %v5207_v4 = vcombine.low %v730_v1, %v7900_v12  ;;  %v7358_v5 = vld [vmem:[%s9662_s1 + $0x138] sm:$0xff]  }
  0x2e   : >> { %6300 = vmatpush3.bf16.msra.mxu0 %v7327_v6  ;;  %6309 = vmatprep.mubr.bf16.mxu0 %v255_v28  ;;  %v621_v53 = vrot.slane %v619_v47, 1  ;;  %v624_v55 = vrot.slane %v622_v48, 2  ;;  %v7359_v6 = vld [vmem:[%s9662_s1 + $0x178] sm:$0xff]   ;;  %v7360_v11 = vld [vmem:[%s9662_s1 + $0x130] sm:$0xff]   ;;  %v7362_v15 = vld [vmem:[%s9662_s1 + $0x128] sm:$0xff]  }
  0x2f   : >> { %6320 = vmatpush3.bf16.msra.mxu1 %v7328_v7  ;;  %6301 = vmatprep.subr.bf16.mxu0 %v7329_v8  ;;  %v617_v56 = vor.u32 %v616_v52, %v613_v51  ;;  %v5218_v7 = vld [vmem:[%s7893_s26 + $0x10] sm:$0xf]  ;;  %v7363_v16 = vld [vmem:[%s9662_s1 + $0x168] sm:$0xff]   ;;  %v7364_v17 = vld [vmem:[%s9662_s1 + $0x120] sm:$0xff]  }
  0x30   : >> { %6321 = vmatprep.subr.bf16.mxu1 %v7330_v9  ;;  %v625_v57 = vor.u32 %v624_v55, %v621_v53  ;;  %v7361_v12 = vld [vmem:[%s9662_s1 + $0x170] sm:$0xff]   ;;  %v7365_v18 = vld [vmem:[%s9662_s1 + $0x160] sm:$0xff]   ;;  %v7366_v19 = vld [vmem:[%s9662_s1 + $0x118] sm:$0xff]  }
  0x31   : >> { %v7368_v21 = vld [vmem:[%s9662_s1 + $0x110] sm:$0xff]   ;;  %v7370_v23 = vld [vmem:[%s9662_s1 + $0x108] sm:$0xff]   ;;  %v5248_v24 = vld [vmem:[%s7893_s26 + $0x1c] sm:$0x7] }
  0x32   : >> { %6302 = vmatpush3.bf16.msra.mxu0 %v7329_v8  ;;  %v626_v59 = vsel %vm609_vm2, %v617_v56, %v625_v57  ;;  %v752_v8 = vrot.slane %v5207_v4, 2  ;;  %v7371_v25 = vld [vmem:[%s9662_s1 + $0x148] sm:$0xff]   ;;  %v7372_v29 = vld [vmem:[%s9662_s1 + $0x100] sm:$0xff]   ;;  %v5274_v30 = vld [vmem:[%s7893_s26 + $0x10] sm:$0xe] }
  0x33   : >> { %6322 = vmatpush3.bf16.msra.mxu1 %v7330_v9  ;;  %6303 = vmatprep.subr.bf16.mxu0 %v7331_v10  ;;  %v753_v9 = vrot.slane %v7945_v42, 2  ;;  %v7378_v37 = vld [vmem:[%s9662_s1 + $0x1b8] sm:$0xff]   ;;  %v7380_v45 = vld [vmem:[%s9662_s1 + $0x1b0] sm:$0xff]   ;;  %v7383_v42 = vld [vmem:[%s9662_s1 + $0x1e8] sm:$0xff]  }
  0x34   : >> { %6323 = vmatprep.subr.bf16.mxu1 %v7332_v14  ;;  %v7379_v38 = vld [vmem:[%s9662_s1 + $0x1f8] sm:$0xff]   ;;  %v7381_v46 = vld [vmem:[%s9662_s1 + $0x1f0] sm:$0xff]   ;;  %v7385_v51 = vld [vmem:[%s9662_s1 + $0x1e0] sm:$0xff]  }
  0x35   : >> { %v754_v13 = vsel %vm751_vm3, %v752_v8, %v753_v9  ;;  %v7386_v52 = vld [vmem:[%s9662_s1 + $0x198] sm:$0xff]   ;;  %v7388_v56 = vld [vmem:[%s9662_s1 + $0x190] sm:$0xff]  }
  0x36   : >> { %6304 = vmatpush3.bf16.msra.mxu0 %v7331_v10  ;;  %v7997_v10 = vld [vmem:[%s7893_s26 + $0x14] sm:$0xf]  ;;  %v5300_v53 = vld [vmem:[%s7893_s26 + $0x1c] sm:$0xf]  ;;  %v5326_v1 = vld [vmem:[%s7893_s26 + $0x10] sm:$0xc] }
  0x37   : >> { %6324 = vmatpush3.bf16.msra.mxu1 %v7332_v14  ;;  %6305 = vmatprep.subr.bf16.mxu0 %v7333_v20  ;;  %v8011_v14 = vcombine.low %v5218_v7, %v7997_v10  ;;  %v5343_v8 = vcombine.low %v5326_v1, %v7997_v10 }
  0x38   : >> { %6325 = vmatprep.subr.bf16.mxu1 %v7334_v22 }
  0x39   : >> { %v1020_v28 = vshll.u32 %v8011_v14, 16 }
  0x3a   : >> { %6306 = vmatpush3.bf16.msra.mxu0 %v7333_v20  ;;  %v7367_v20 = vld [vmem:[%s9662_s1 + $0x158] sm:$0xff]  }
  0x3b   : >> { %6326 = vmatpush3.bf16.msra.mxu1 %v7334_v22  ;;  %6307 = vmatprep.subr.bf16.mxu0 %v7335_v26  ;;  %v7369_v22 = vld [vmem:[%s9662_s1 + $0x150] sm:$0xff]  }
  0x3c   : >> { %6327 = vmatprep.subr.bf16.mxu1 %v7336_v27 }
  0x3e   : >> { %6308 = vmatpush3.bf16.msra.mxu0 %v7335_v26  ;;  %v5220_v26 = vld [vmem:[%s7893_s26 + $0x18] sm:$0xf] }
  0x3f   : >> { %6328 = vmatpush3.bf16.msra.mxu1 %v7336_v27  ;;  %6333 = vmatprep.subr.bf16.mxu0 %v7340_v31  ;;  %v8046_v27 = vcombine.low %v5220_v26, %v5248_v24  ;;  %v5317_v55 = vcombine.low %v5220_v26, %v5300_v53  ;;  %v7403_v24 = vld [vmem:[%s9662_s1 + $0x260] sm:$0xff]   ;;  %v7417_v53 = vld [vmem:[%s9662_s1 + $0x2a8] sm:$0xff]  }
  0x40   : >> { %6353 = vmatprep.subr.bf16.mxu1 %v7341_v32 }
  0x41   : >> { %6310 = vmatmul.mubr.bf16.vlgmr.msra.gmra.mxu0 %v258_v33  ;;  %v1022_v33 = vrot.slane %v1020_v28, 1  ;;  %v8074_v44 = vrot.slane %v8046_v27, 1  ;;  %v5354_v28 = vld [vmem:[%s7893_s26 + $0x20] sm:$0xf] }
  0x42   : >> { %6330 = vmatmul.mubr.bf16.vlgmr.msra.gmra.mxu1 %v5132_v34  ;;  %6334 = vmatpush3.bf16.msra.mxu0 %v7340_v31  ;;  %v7373_v31 = vld [vmem:[%s9662_s1 + $0x140] sm:$0xff]   ;;  %v1025_v34 = vshll.u32 %v8046_v27, 16 }
  0x43   : >> { %6354 = vmatpush3.bf16.msra.mxu1 %v7341_v32  ;;  %6335 = vmatprep.subr.bf16.mxu0 %v7342_v35  ;;  %v1018_v32 = vshrl.u32 %v8011_v14, 16 }
  0x44   : >> { %6355 = vmatprep.subr.bf16.mxu1 %v7343_v36  ;;  %6349 = vmatprep.mubr.bf16.mxu0 %v484_v50  ;;  %v8068_v40 = vrot.slane %v1025_v34, 1  ;;  %v7384_v50 = vld [vmem:[%s9662_s1 + $0x1a0] sm:$0xff]   ;;  %v7408_v34 = vld [vmem:[%s9662_s1 + $0x208] sm:$0xff]  }
  0x45   : >> { %6369 = vmatprep.mubr.bf16.mxu1 %v626_v59  ;;  %v1292_v59 = vshrl.u32 %v5317_v55, 16 }
  0x46   : >> { %6336 = vmatpush3.bf16.msra.mxu0 %v7342_v35  ;;  %v5221_v35 = vld [vmem:[%s7893_s26 + $0x1c] sm:$0x3] }
  0x47   : >> { %6356 = vmatpush3.bf16.msra.mxu1 %v7343_v36  ;;  %6337 = vmatprep.subr.bf16.mxu0 %v7344_v39  ;;  %v8060_v36 = vcombine.low %v5274_v30, %v7997_v10  ;;  %v1294_v4 = vrot.slane %v1292_v59, 1  ;;  %v8148_v10 = vrot.slane %v5317_v55, 2  ;;  %v7407_v30 = vld [vmem:[%s9662_s1 + $0x250] sm:$0xff]   ;;  %v7422_v59 = vld [vmem:[%s9662_s1 + $0x2d8] sm:$0xff]  }
  0x48   : >> { %6357 = vmatprep.subr.bf16.mxu1 %v7345_v43 }
  0x4a   : >> { %6338 = vmatpush3.bf16.msra.mxu0 %v7344_v39  ;;  %v1023_v39 = vor.u32 %v1022_v33, %v1018_v32  ;;  %v5384_v33 = vld [vmem:[%s7893_s26 + $0x2c] sm:$0x7] }
  0x4b   : >> { %6358 = vmatpush3.bf16.msra.mxu1 %v7345_v43  ;;  %6339 = vmatprep.subr.bf16.mxu0 %v7346_v49  ;;  %v1156_v43 = vrot.slane %v8060_v36, 1 }
  0x4c   : >> { %6359 = vmatprep.subr.bf16.mxu1 %v7347_v54  ;;  %v8086_v47 = vsel %vm243_vm0, %v1023_v39, %v8068_v40  ;;  %v7411_v39 = vld [vmem:[%s9662_s1 + $0x240] sm:$0xff]  }
  0x4d   : >> { %v8091_v48 = vsel %vm481_vm1, %v1156_v43, %v8074_v44 }
  0x4e   : >> { %6340 = vmatpush3.bf16.msra.mxu0 %v7346_v49  ;;  %v7382_v49 = vld [vmem:[%s9662_s1 + $0x1a8] sm:$0xff]  }
  0x4f   : >> { %6360 = vmatpush3.bf16.msra.mxu1 %v7347_v54  ;;  %6341 = vmatprep.subr.bf16.mxu0 %v7348_v58  ;;  %v7387_v54 = vld [vmem:[%s9662_s1 + $0x1d8] sm:$0xff]  }
  0x50   : >> { %6361 = vmatprep.subr.bf16.mxu1 %v7349_v60 }
  0x52   : >> { %6342 = vmatpush3.bf16.msra.mxu0 %v7348_v58  ;;  %v7390_v58 = vld [vmem:[%s9662_s1 + $0x188] sm:$0xff]  }
  0x53   : >> { %6362 = vmatpush3.bf16.msra.mxu1 %v7349_v60  ;;  %6343 = vmatprep.subr.bf16.mxu0 %v7350_v61  ;;  %v7391_v60 = vld [vmem:[%s9662_s1 + $0x1c8] sm:$0xff]  }
  0x54   : >> { %6363 = vmatprep.subr.bf16.mxu1 %v7351_v62 }
  0x56   : >> { %6344 = vmatpush3.bf16.msra.mxu0 %v7350_v61  ;;  %v1295_v61 = vshll.u32 %v5317_v55, 16  ;;  %v7418_v55 = vld [vmem:[%s9662_s1 + $0x2e8] sm:$0xff]  }
  0x57   : >> { %6364 = vmatpush3.bf16.msra.mxu1 %v7351_v62  ;;  %6345 = vmatprep.subr.bf16.mxu0 %v7352_v63  ;;  %v1284_v62 = vshrl.u32 %v8060_v36, 16 }
  0x58   : >> { %6365 = vmatprep.subr.bf16.mxu1 %v7353_v0 }
  0x5a   : >> { %6346 = vmatpush3.bf16.msra.mxu0 %v7352_v63  ;;  %v1287_v63 = vshll.u32 %v8060_v36, 16 }
  0x5b   : >> { %6366 = vmatpush3.bf16.msra.mxu1 %v7353_v0  ;;  %6347 = vmatprep.subr.bf16.mxu0 %v7354_v2  ;;  %v7392_v0 = vld [vmem:[%s9662_s1 + $0x180] sm:$0xff]  }
  0x5c   : >> { %6367 = vmatprep.subr.bf16.mxu1 %v7355_v3  ;;  %v1289_v7 = vrot.slane %v1287_v63, 2  ;;  %v7424_v63 = vld [vmem:[%s9662_s1 + $0x2d0] sm:$0xff]  }
  0x5e   : >> { %6348 = vmatpush3.bf16.msra.mxu0 %v7354_v2  ;;  %v7393_v2 = vld [vmem:[%s9662_s1 + $0x1c0] sm:$0xff]  }
  0x5f   : >> { %6368 = vmatpush3.bf16.msra.mxu1 %v7355_v3  ;;  %6373 = vmatprep.subr.bf16.mxu0 %v7358_v5  ;;  %v1029_v3 = vshrl.u32 %v8046_v27, 16  ;;  %v7406_v27 = vld [vmem:[%s9662_s1 + $0x210] sm:$0xff]  }
  0x60   : >> { %6393 = vmatprep.subr.bf16.mxu1 %v7359_v6 }
  0x61   : >> { %6350 = vmatmul.mubr.bf16.vlgmr.msra.gmra.mxu0 %v483_v41  ;;  %v8070_v41 = vcombine.low %v5220_v26, %v5221_v35  ;;  %v7405_v26 = vld [vmem:[%s9662_s1 + $0x258] sm:$0xff]   ;;  %v7409_v35 = vld [vmem:[%s9662_s1 + $0x248] sm:$0xff]  }
  0x62   : >> { %6370 = vmatmul.mubr.bf16.vlgmr.msra.gmra.mxu1 %v625_v57  ;;  %6374 = vmatpush3.bf16.msra.mxu0 %v7358_v5  ;;  %v7389_v57 = vld [vmem:[%s9662_s1 + $0x1d0] sm:$0xff]   ;;  %v1297_v5 = vrot.slane %v1295_v61, 2  ;;  %v5436_v61 = vld [vmem:[%s7893_s26 + $0x2c] sm:$0xf] }
  0x63   : >> { %6394 = vmatpush3.bf16.msra.mxu1 %v7359_v6  ;;  %6375 = vmatprep.subr.bf16.mxu0 %v7360_v11  ;;  %v1286_v6 = vrot.slane %v1284_v62, 1  ;;  %v7423_v62 = vld [vmem:[%s9662_s1 + $0x290] sm:$0xff]  }
  0x64   : >> { %6395 = vmatprep.subr.bf16.mxu1 %v7361_v12  ;;  %6389 = vmatprep.mubr.bf16.mxu0 %v754_v13 }
  0x65   : >> { %6409 = vmatprep.mubr.bf16.mxu1 %v8011_v14  ;;  %v1290_v13 = vor.u32 %v1289_v7, %v1286_v6 }
  0x66   : >> { %6376 = vmatpush3.bf16.msra.mxu0 %v7360_v11  ;;  %v7397_v11 = vld [vmem:[%s9662_s1 + $0x278] sm:$0xff]  }
  0x67   : >> { %6396 = vmatpush3.bf16.msra.mxu1 %v7361_v12  ;;  %6377 = vmatprep.subr.bf16.mxu0 %v7362_v15  ;;  %v8144_v12 = vor.u32 %v1029_v3, %v8068_v40  ;;  %v7426_v3 = vld [vmem:[%s9662_s1 + $0x2c8] sm:$0xff]  }
  0x68   : >> { %6397 = vmatprep.subr.bf16.mxu1 %v7363_v16 }
  0x6a   : >> { %6378 = vmatpush3.bf16.msra.mxu0 %v7362_v15  ;;  %v8146_v15 = vor.u32 %v1297_v5, %v1294_v4 }
  0x6b   : >> { %6398 = vmatpush3.bf16.msra.mxu1 %v7363_v16  ;;  %6379 = vmatprep.subr.bf16.mxu0 %v7364_v17  ;;  %v1424_v16 = vrot.slane %v5343_v8, 2  ;;  %v7427_v8 = vld [vmem:[%s9662_s1 + $0x280] sm:$0xff]  }
  0x6c   : >> { %6399 = vmatprep.subr.bf16.mxu1 %v7365_v18 }
  0x6e   : >> { %6380 = vmatpush3.bf16.msra.mxu0 %v7364_v17  ;;  %v7398_v17 = vld [vmem:[%s9662_s1 + $0x230] sm:$0xff]  }
  0x6f   : >> { %6400 = vmatpush3.bf16.msra.mxu1 %v7365_v18  ;;  %6381 = vmatprep.subr.bf16.mxu0 %v7366_v19  ;;  %v7399_v18 = vld [vmem:[%s9662_s1 + $0x270] sm:$0xff]  }
  0x70   : >> { %6401 = vmatprep.subr.bf16.mxu1 %v7367_v20 }
  0x72   : >> { %6382 = vmatpush3.bf16.msra.mxu0 %v7366_v19  ;;  %v8159_v19 = vsel %vm609_vm2, %v1290_v13, %v8146_v15  ;;  %v5357_v13 = vld [vmem:[%s7893_s26 + $0x2c] sm:$0x3] }
  0x73   : >> { %6402 = vmatpush3.bf16.msra.mxu1 %v7367_v20  ;;  %6383 = vmatprep.subr.bf16.mxu0 %v7368_v21  ;;  %v8164_v20 = vsel %vm751_vm3, %v1424_v16, %v8148_v10 }
  0x74   : >> { %6403 = vmatprep.subr.bf16.mxu1 %v7369_v22 }
  0x76   : >> { %6384 = vmatpush3.bf16.msra.mxu0 %v7368_v21  ;;  %v7400_v21 = vld [vmem:[%s9662_s1 + $0x228] sm:$0xff]  }
  0x77   : >> { %6404 = vmatpush3.bf16.msra.mxu1 %v7369_v22  ;;  %6385 = vmatprep.subr.bf16.mxu0 %v7370_v23  ;;  %v7401_v22 = vld [vmem:[%s9662_s1 + $0x268] sm:$0xff]  }
  0x78   : >> { %6405 = vmatprep.subr.bf16.mxu1 %v7371_v25 }
  0x7a   : >> { %6386 = vmatpush3.bf16.msra.mxu0 %v7370_v23  ;;  %v7402_v23 = vld [vmem:[%s9662_s1 + $0x220] sm:$0xff]  }
  0x7b   : >> { %6406 = vmatpush3.bf16.msra.mxu1 %v7371_v25  ;;  %6387 = vmatprep.subr.bf16.mxu0 %v7372_v29  ;;  %v7404_v25 = vld [vmem:[%s9662_s1 + $0x218] sm:$0xff]  }
  0x7c   : >> { %6407 = vmatprep.subr.bf16.mxu1 %v7373_v31 }
  0x7e   : >> { %6388 = vmatpush3.bf16.msra.mxu0 %v7372_v29  ;;  %v8191_v29 = vld [vmem:[%s7893_s26 + $0x24] sm:$0xf] }
  0x7f   : >> { %6408 = vmatpush3.bf16.msra.mxu1 %v7373_v31  ;;  %6413 = vmatprep.subr.bf16.mxu0 %v7378_v37  ;;  %v8197_v31 = vld [vmem:[%s7893_s26 + $0x28] sm:$0xf]  ;;  %v8200_v32 = vcombine.low %v5354_v28, %v8191_v29 }
  0x80   : >> { %6433 = vmatprep.subr.bf16.mxu1 %v7379_v38  ;;  %v8210_v36 = vcombine.low %v8197_v31, %v5384_v33  ;;  %v8271_v1 = vcombine.low %v8197_v31, %v5436_v61  ;;  %v7434_v33 = vld [vmem:[%s9662_s1 + $0x330] sm:$0xff]  }
  0x81   : >> { %6390 = vmatmul.mubr.bf16.vlgmr.msra.gmra.mxu0 %v753_v9  ;;  %v7396_v9 = vld [vmem:[%s9662_s1 + $0x238] sm:$0xff]   ;;  %v1690_v43 = vshrl.u32 %v8200_v32, 16  ;;  %v7453_v61 = vld [vmem:[%s9662_s1 + $0x3f0] sm:$0xff]  }
  0x82   : >> { %6410 = vmatmul.mubr.bf16.vlgmr.msra.gmra.mxu1 %v8070_v41  ;;  %6414 = vmatpush3.bf16.msra.mxu0 %v7378_v37  ;;  %v1692_v37 = vshll.u32 %v8200_v32, 16  ;;  %v1697_v40 = vshll.u32 %v8210_v36, 16  ;;  %v1964_v6 = vshrl.u32 %v8271_v1, 16  ;;  %v1967_v7 = vshll.u32 %v8271_v1, 16 }
  0x83   : >> { %6434 = vmatpush3.bf16.msra.mxu1 %v7379_v38  ;;  %6415 = vmatprep.subr.bf16.mxu0 %v7380_v45  ;;  %v7410_v38 = vld [vmem:[%s9662_s1 + $0x200] sm:$0xff]  }
  0x84   : >> { %6435 = vmatprep.subr.bf16.mxu1 %v7381_v46  ;;  %6429 = vmatprep.mubr.bf16.mxu0 %v8086_v47 }
  0x85   : >> { %6449 = vmatprep.mubr.bf16.mxu1 %v8091_v48 }
  0x86   : >> { %6416 = vmatpush3.bf16.msra.mxu0 %v7380_v45  ;;  %v1694_v45 = vrot.slane %v1692_v37, 1  ;;  %v7437_v37 = vld [vmem:[%s9662_s1 + $0x368] sm:$0xff]  }
  0x87   : >> { %6436 = vmatpush3.bf16.msra.mxu1 %v7381_v46  ;;  %6417 = vmatprep.subr.bf16.mxu0 %v7382_v49  ;;  %v7413_v46 = vld [vmem:[%s9662_s1 + $0x2b8] sm:$0xff]  }
  0x88   : >> { %6437 = vmatprep.subr.bf16.mxu1 %v7383_v42 }
  0x8a   : >> { %6418 = vmatpush3.bf16.msra.mxu0 %v7382_v49  ;;  %v7414_v49 = vld [vmem:[%s9662_s1 + $0x2f8] sm:$0xff]  }
  0x8b   : >> { %6438 = vmatpush3.bf16.msra.mxu1 %v7383_v42  ;;  %6419 = vmatprep.subr.bf16.mxu0 %v7384_v50  ;;  %v8227_v42 = vrot.slane %v1697_v40, 1  ;;  %v7440_v40 = vld [vmem:[%s9662_s1 + $0x318] sm:$0xff]  }
  0x8c   : >> { %6439 = vmatprep.subr.bf16.mxu1 %v7385_v51 }
  0x8e   : >> { %6420 = vmatpush3.bf16.msra.mxu0 %v7384_v50  ;;  %v1695_v50 = vor.u32 %v1694_v45, %v1690_v43  ;;  %v7441_v43 = vld [vmem:[%s9662_s1 + $0x358] sm:$0xff]   ;;  %v7442_v45 = vld [vmem:[%s9662_s1 + $0x310] sm:$0xff]  }
  0x8f   : >> { %6440 = vmatpush3.bf16.msra.mxu1 %v7385_v51  ;;  %6421 = vmatprep.subr.bf16.mxu0 %v7386_v52  ;;  %v7415_v51 = vld [vmem:[%s9662_s1 + $0x2b0] sm:$0xff]  }
  0x90   : >> { %6441 = vmatprep.subr.bf16.mxu1 %v7387_v54 }
  0x92   : >> { %6422 = vmatpush3.bf16.msra.mxu0 %v7386_v52  ;;  %v7416_v52 = vld [vmem:[%s9662_s1 + $0x2f0] sm:$0xff]  }
  0x93   : >> { %6442 = vmatpush3.bf16.msra.mxu1 %v7387_v54  ;;  %6423 = vmatprep.subr.bf16.mxu0 %v7388_v56  ;;  %v8242_v54 = vsel %vm243_vm0, %v1695_v50, %v8227_v42  ;;  %v5462_v50 = vld [vmem:[%s7893_s26 + $0x20] sm:$0xc] }
  0x94   : >> { %6443 = vmatprep.subr.bf16.mxu1 %v7389_v57 }
  0x96   : >> { %6424 = vmatpush3.bf16.msra.mxu0 %v7388_v56  ;;  %v7419_v56 = vld [vmem:[%s9662_s1 + $0x2a0] sm:$0xff]  }
  0x97   : >> { %6444 = vmatpush3.bf16.msra.mxu1 %v7389_v57  ;;  %6425 = vmatprep.subr.bf16.mxu0 %v7390_v58  ;;  %v7420_v57 = vld [vmem:[%s9662_s1 + $0x2e0] sm:$0xff]  }
  0x98   : >> { %6445 = vmatprep.subr.bf16.mxu1 %v7391_v60 }
  0x9a   : >> { %6426 = vmatpush3.bf16.msra.mxu0 %v7390_v58  ;;  %v7421_v58 = vld [vmem:[%s9662_s1 + $0x298] sm:$0xff]  }
  0x9b   : >> { %6446 = vmatpush3.bf16.msra.mxu1 %v7391_v60  ;;  %6427 = vmatprep.subr.bf16.mxu0 %v7392_v0  ;;  %v5410_v60 = vld [vmem:[%s7893_s26 + $0x20] sm:$0xe] }
  0x9c   : >> { %6447 = vmatprep.subr.bf16.mxu1 %v7393_v2 }
  0x9e   : >> { %6428 = vmatpush3.bf16.msra.mxu0 %v7392_v0  ;;  %v5427_v0 = vcombine.low %v5410_v60, %v8191_v29  ;;  %v8373_v60 = vld [vmem:[%s7893_s26 + $0x34] sm:$0xf] }
  0x9f   : >> { %6448 = vmatpush3.bf16.msra.mxu1 %v7393_v2  ;;  %6453 = vmatprep.subr.bf16.mxu0 %v7396_v9  ;;  %v7425_v2 = vld [vmem:[%s9662_s1 + $0x288] sm:$0xff]  }
  0xa0   : >> { %6473 = vmatprep.subr.bf16.mxu1 %v7397_v11  ;;  %v1956_v4 = vshrl.u32 %v5427_v0, 16  ;;  %v1959_v5 = vshll.u32 %v5427_v0, 16 }
  0xa1   : >> { %6430 = vmatmul.mubr.bf16.vlgmr.msra.gmra.mxu0 %v8144_v12 }
  0xa2   : >> { %6450 = vmatmul.mubr.bf16.vlgmr.msra.gmra.mxu1 %v8074_v44  ;;  %6454 = vmatpush3.bf16.msra.mxu0 %v7396_v9  ;;  %v7428_v9 = vld [vmem:[%s9662_s1 + $0x2c0] sm:$0xff]   ;;  %v1958_v16 = vrot.slane %v1956_v4, 1  ;;  %v7454_v4 = vld [vmem:[%s9662_s1 + $0x3a8] sm:$0xff]  }
  0xa3   : >> { %6474 = vmatpush3.bf16.msra.mxu1 %v7397_v11  ;;  %6455 = vmatprep.subr.bf16.mxu0 %v7398_v17  ;;  %v1701_v11 = vshrl.u32 %v8210_v36, 16 }
  0xa4   : >> { %6475 = vmatprep.subr.bf16.mxu1 %v7399_v18  ;;  %6469 = vmatprep.mubr.bf16.mxu0 %v8159_v19 }
  0xa5   : >> { %6489 = vmatprep.mubr.bf16.mxu1 %v8164_v20 }
  0xa6   : >> { %6456 = vmatpush3.bf16.msra.mxu0 %v7398_v17  ;;  %v1961_v17 = vrot.slane %v1959_v5, 2 }
  0xa7   : >> { %6476 = vmatpush3.bf16.msra.mxu1 %v7399_v18  ;;  %6457 = vmatprep.subr.bf16.mxu0 %v7400_v21  ;;  %v1966_v18 = vrot.slane %v1964_v6, 1  ;;  %v7455_v6 = vld [vmem:[%s9662_s1 + $0x3e8] sm:$0xff]  }
  0xa8   : >> { %6477 = vmatprep.subr.bf16.mxu1 %v7401_v22  ;;  %v1962_v28 = vor.u32 %v1961_v17, %v1958_v16  ;;  %v7456_v16 = vld [vmem:[%s9662_s1 + $0x3a0] sm:$0xff]  }
  0xaa   : >> { %6458 = vmatpush3.bf16.msra.mxu0 %v7400_v21  ;;  %v1969_v21 = vrot.slane %v1967_v7, 2 }
  0xab   : >> { %6478 = vmatpush3.bf16.msra.mxu1 %v7401_v22  ;;  %6459 = vmatprep.subr.bf16.mxu0 %v7402_v23  ;;  %v7432_v22 = vld [vmem:[%s9662_s1 + $0x338] sm:$0xff]  }
  0xac   : >> { %6479 = vmatprep.subr.bf16.mxu1 %v7403_v24 }
  0xae   : >> { %6460 = vmatpush3.bf16.msra.mxu0 %v7402_v23  ;;  %v7433_v23 = vld [vmem:[%s9662_s1 + $0x378] sm:$0xff]  }
  0xaf   : >> { %6480 = vmatpush3.bf16.msra.mxu1 %v7403_v24  ;;  %6461 = vmatprep.subr.bf16.mxu0 %v7404_v25  ;;  %v1828_v24 = vrot.slane %v5427_v0, 1 }
  0xb0   : >> { %6481 = vmatprep.subr.bf16.mxu1 %v7405_v26 }
  0xb2   : >> { %6462 = vmatpush3.bf16.msra.mxu0 %v7404_v25  ;;  %v8296_v25 = vrot.slane %v8210_v36, 1 }
  0xb3   : >> { %6482 = vmatpush3.bf16.msra.mxu1 %v7405_v26  ;;  %6463 = vmatprep.subr.bf16.mxu0 %v7406_v27  ;;  %v8299_v26 = vcombine.low %v8197_v31, %v5357_v13  ;;  %v7436_v31 = vld [vmem:[%s9662_s1 + $0x328] sm:$0xff]  }
  0xb4   : >> { %6483 = vmatprep.subr.bf16.mxu1 %v7407_v30 }
  0xb6   : >> { %6464 = vmatpush3.bf16.msra.mxu0 %v7406_v27  ;;  %v8302_v27 = vor.u32 %v1701_v11, %v8227_v42  ;;  %v7445_v42 = vld [vmem:[%s9662_s1 + $0x348] sm:$0xff]  }
  0xb7   : >> { %6484 = vmatpush3.bf16.msra.mxu1 %v7407_v30  ;;  %6465 = vmatprep.subr.bf16.mxu0 %v7408_v34  ;;  %v8304_v30 = vor.u32 %v1969_v21, %v1966_v18  ;;  %v7457_v18 = vld [vmem:[%s9662_s1 + $0x3e0] sm:$0xff]  }
  0xb8   : >> { %6485 = vmatprep.subr.bf16.mxu1 %v7409_v35 }
  0xb9   : >> { %v8323_v36 = vsel %vm609_vm2, %v1962_v28, %v8304_v30  ;;  %v7461_v28 = vld [vmem:[%s9662_s1 + $0x3d0] sm:$0xff]  }
  0xba   : >> { %6466 = vmatpush3.bf16.msra.mxu0 %v7408_v34  ;;  %v7435_v34 = vld [vmem:[%s9662_s1 + $0x370] sm:$0xff]  }
  0xbb   : >> { %6486 = vmatpush3.bf16.msra.mxu1 %v7409_v35  ;;  %6467 = vmatprep.subr.bf16.mxu0 %v7410_v38  ;;  %v8318_v35 = vsel %vm481_vm1, %v1828_v24, %v8296_v25  ;;  %v7460_v24 = vld [vmem:[%s9662_s1 + $0x390] sm:$0xff]  }
  0xbc   : >> { %6487 = vmatprep.subr.bf16.mxu1 %v7411_v39 }
  0xbe   : >> { %6468 = vmatpush3.bf16.msra.mxu0 %v7410_v38  ;;  %v7438_v38 = vld [vmem:[%s9662_s1 + $0x320] sm:$0xff]  }
  0xbf   : >> { %6488 = vmatpush3.bf16.msra.mxu1 %v7411_v39  ;;  %6493 = vmatprep.subr.bf16.mxu0 %v7413_v46  ;;  %v7439_v39 = vld [vmem:[%s9662_s1 + $0x360] sm:$0xff]  }
  0xc0   : >> { %6513 = vmatprep.subr.bf16.mxu1 %v7414_v49 }
  0xc1   : >> { %6470 = vmatmul.mubr.bf16.vlgmr.msra.gmra.mxu0 %v8146_v15 }
  0xc2   : >> { %6490 = vmatmul.mubr.bf16.vlgmr.msra.gmra.mxu1 %v8148_v10  ;;  %6494 = vmatpush3.bf16.msra.mxu0 %v7413_v46  ;;  %v7443_v46 = vld [vmem:[%s9662_s1 + $0x350] sm:$0xff]  }
  0xc3   : >> { %6514 = vmatpush3.bf16.msra.mxu1 %v7414_v49  ;;  %6495 = vmatprep.subr.bf16.mxu0 %v7415_v51  ;;  %v7444_v49 = vld [vmem:[%s9662_s1 + $0x308] sm:$0xff]  }
  0xc4   : >> { %6515 = vmatprep.subr.bf16.mxu1 %v7416_v52  ;;  %6509 = vmatprep.mubr.bf16.mxu0 %v8200_v32 }
  0xc5   : >> { %6529 = vmatprep.mubr.bf16.mxu1 %v8242_v54 }
  0xc6   : >> { %6496 = vmatpush3.bf16.msra.mxu0 %v7415_v51  ;;  %v7446_v51 = vld [vmem:[%s9662_s1 + $0x300] sm:$0xff]  }
  0xc7   : >> { %6516 = vmatpush3.bf16.msra.mxu1 %v7416_v52  ;;  %6497 = vmatprep.subr.bf16.mxu0 %v7417_v53  ;;  %v7447_v52 = vld [vmem:[%s9662_s1 + $0x340] sm:$0xff]  }
  0xc8   : >> { %6517 = vmatprep.subr.bf16.mxu1 %v7418_v55 }
  0xca   : >> { %6498 = vmatpush3.bf16.msra.mxu0 %v7417_v53  ;;  %v5479_v53 = vcombine.low %v5462_v50, %v8191_v29  ;;  %v7452_v29 = vld [vmem:[%s9662_s1 + $0x3b0] sm:$0xff]  }
  0xcb   : >> { %6518 = vmatpush3.bf16.msra.mxu1 %v7418_v55  ;;  %6499 = vmatprep.subr.bf16.mxu0 %v7419_v56  ;;  %v7450_v55 = vld [vmem:[%s9662_s1 + $0x3b8] sm:$0xff]  }
  0xcc   : >> { %6519 = vmatprep.subr.bf16.mxu1 %v7420_v57 }
  0xce   : >> { %6500 = vmatpush3.bf16.msra.mxu0 %v7419_v56  ;;  %v7451_v56 = vld [vmem:[%s9662_s1 + $0x3f8] sm:$0xff]  }
  0xcf   : >> { %6520 = vmatpush3.bf16.msra.mxu1 %v7420_v57  ;;  %6501 = vmatprep.subr.bf16.mxu0 %v7421_v58  ;;  %v2096_v57 = vrot.slane %v5479_v53, 2  ;;  %v7471_v53 = vld [vmem:[%s9662_s1 + $0x478] sm:$0xff]  }
  0xd0   : >> { %6521 = vmatprep.subr.bf16.mxu1 %v7422_v59 }
  0xd2   : >> { %6502 = vmatpush3.bf16.msra.mxu0 %v7421_v58  ;;  %v8369_v58 = vrot.slane %v8271_v1, 2 }
  0xd3   : >> { %6522 = vmatpush3.bf16.msra.mxu1 %v7422_v59  ;;  %6503 = vmatprep.subr.bf16.mxu0 %v7423_v62  ;;  %v5490_v59 = vld [vmem:[%s7893_s26 + $0x30] sm:$0xf] }
  0xd4   : >> { %6523 = vmatprep.subr.bf16.mxu1 %v7424_v63  ;;  %v8387_v0 = vcombine.low %v5490_v59, %v8373_v60 }
  0xd6   : >> { %6504 = vmatpush3.bf16.msra.mxu0 %v7423_v62 }
  0xd7   : >> { %6524 = vmatpush3.bf16.msra.mxu1 %v7424_v63  ;;  %6505 = vmatprep.subr.bf16.mxu0 %v7425_v2  ;;  %v8384_v63 = vsel %vm751_vm3, %v2096_v57, %v8369_v58 }
  0xd8   : >> { %6525 = vmatprep.subr.bf16.mxu1 %v7426_v3 }
  0xda   : >> { %6506 = vmatpush3.bf16.msra.mxu0 %v7425_v2 }
  0xdb   : >> { %6526 = vmatpush3.bf16.msra.mxu1 %v7426_v3  ;;  %6507 = vmatprep.subr.bf16.mxu0 %v7427_v8 }
  0xdc   : >> { %6527 = vmatprep.subr.bf16.mxu1 %v7428_v9 }
  0xde   : >> { %6508 = vmatpush3.bf16.msra.mxu0 %v7427_v8 }
  0xdf   : >> { %6528 = vmatpush3.bf16.msra.mxu1 %v7428_v9  ;;  %6533 = vmatprep.subr.bf16.mxu0 %v7432_v22 }
  0xe0   : >> { %6553 = vmatprep.subr.bf16.mxu1 %v7433_v23 }
  0xe1   : >> { %6510 = vmatmul.mubr.bf16.vlgmr.msra.gmra.mxu0 %v8299_v26 }
  0xe2   : >> { %6530 = vmatmul.mubr.bf16.vlgmr.msra.gmra.mxu1 %v8302_v27  ;;  %6534 = vmatpush3.bf16.msra.mxu0 %v7432_v22  ;;  %v7458_v22 = vld [vmem:[%s9662_s1 + $0x398] sm:$0xff]  }
  0xe3   : >> { %6554 = vmatpush3.bf16.msra.mxu1 %v7433_v23  ;;  %6535 = vmatprep.subr.bf16.mxu0 %v7434_v33  ;;  %v7459_v23 = vld [vmem:[%s9662_s1 + $0x3d8] sm:$0xff]  }
  0xe4   : >> { %6555 = vmatprep.subr.bf16.mxu1 %v7435_v34  ;;  %6549 = vmatprep.mubr.bf16.mxu0 %v8318_v35 }
  0xe5   : >> { %6569 = vmatprep.mubr.bf16.mxu1 %v8323_v36 }
  0xe6   : >> { %6536 = vmatpush3.bf16.msra.mxu0 %v7434_v33  ;;  %v5520_v33 = vld [vmem:[%s7893_s26 + $0x3c] sm:$0x7] }
  0xe7   : >> { %6556 = vmatpush3.bf16.msra.mxu1 %v7435_v34  ;;  %6537 = vmatprep.subr.bf16.mxu0 %v7436_v31  ;;  %v7462_v34 = vld [vmem:[%s9662_s1 + $0x388] sm:$0xff]  }
  0xe8   : >> { %6557 = vmatprep.subr.bf16.mxu1 %v7437_v37 }
  0xea   : >> { %6538 = vmatpush3.bf16.msra.mxu0 %v7436_v31  ;;  %v7463_v31 = vld [vmem:[%s9662_s1 + $0x3c8] sm:$0xff]  }
  0xeb   : >> { %6558 = vmatpush3.bf16.msra.mxu1 %v7437_v37  ;;  %6539 = vmatprep.subr.bf16.mxu0 %v7438_v38  ;;  %v8432_v37 = vld [vmem:[%s7893_s26 + $0x38] sm:$0xf] }
  0xec   : >> { %6559 = vmatprep.subr.bf16.mxu1 %v7439_v39 }
  0xee   : >> { %6540 = vmatpush3.bf16.msra.mxu0 %v7438_v38  ;;  %v8435_v38 = vcombine.low %v8432_v37, %v5520_v33 }
  0xef   : >> { %6560 = vmatpush3.bf16.msra.mxu1 %v7439_v39  ;;  %6541 = vmatprep.subr.bf16.mxu0 %v7440_v40  ;;  %v2364_v39 = vshll.u32 %v8387_v0, 16 }
  0xf0   : >> { %6561 = vmatprep.subr.bf16.mxu1 %v7441_v43 }
  0xf2   : >> { %6542 = vmatpush3.bf16.msra.mxu0 %v7440_v40  ;;  %v7464_v40 = vld [vmem:[%s9662_s1 + $0x380] sm:$0xff]  }
  0xf3   : >> { %6562 = vmatpush3.bf16.msra.mxu1 %v7441_v43  ;;  %6543 = vmatprep.subr.bf16.mxu0 %v7442_v45  ;;  %v5546_v43 = vld [vmem:[%s7893_s26 + $0x30] sm:$0xe] }
  0xf4   : >> { %6563 = vmatprep.subr.bf16.mxu1 %v7443_v46  ;;  %v8448_v50 = vcombine.low %v5546_v43, %v8373_v60  ;;  %v5572_v43 = vld [vmem:[%s7893_s26 + $0x3c] sm:$0xf] }
  0xf6   : >> { %6544 = vmatpush3.bf16.msra.mxu0 %v7442_v45  ;;  %v7465_v45 = vld [vmem:[%s9662_s1 + $0x3c0] sm:$0xff]   ;;  %v2500_v59 = vrot.slane %v8448_v50, 1 }
  0xf7   : >> { %6564 = vmatpush3.bf16.msra.mxu1 %v7443_v46  ;;  %6545 = vmatprep.subr.bf16.mxu0 %v7444_v49  ;;  %v2362_v46 = vshrl.u32 %v8387_v0, 16 }
  0xf8   : >> { %6565 = vmatprep.subr.bf16.mxu1 %v7445_v42 }
  0xfa   : >> { %6546 = vmatpush3.bf16.msra.mxu0 %v7444_v49  ;;  %v2366_v49 = vrot.slane %v2364_v39, 1 }
  0xfb   : >> { %6566 = vmatpush3.bf16.msra.mxu1 %v7445_v42  ;;  %6547 = vmatprep.subr.bf16.mxu0 %v7446_v51  ;;  %v2369_v42 = vshll.u32 %v8435_v38, 16 }
  0xfc   : >> { %6567 = vmatprep.subr.bf16.mxu1 %v7447_v52 }
  0xfe   : >> { %6548 = vmatpush3.bf16.msra.mxu0 %v7446_v51  ;;  %v5493_v51 = vld [vmem:[%s7893_s26 + $0x3c] sm:$0x3] }
  0xff   : >> { %6568 = vmatpush3.bf16.msra.mxu1 %v7447_v52  ;;  %6573 = vmatprep.subr.bf16.mxu0 %v7450_v55  ;;  %v7470_v52 = vld [vmem:[%s9662_s1 + $0x438] sm:$0xff]   ;;  %v8460_v57 = vcombine.low %v8432_v37, %v5493_v51  ;;  %v7483_v51 = vld [vmem:[%s9662_s1 + $0x448] sm:$0xff]  }
 0x100   : >> { %6593 = vmatprep.subr.bf16.mxu1 %v7451_v56 }
 0x101   : >> { %v6311_v62 = vpop.f32.mrf.mxu0  ;;  %6550 = vmatmul.mubr.bf16.vlgmr.msra.gmra.mxu0 %v8296_v25 }
 0x102   : >> { %v6331_v1 = vpop.f32.mrf.mxu1  ;;  %6570 = vmatmul.mubr.bf16.vlgmr.msra.gmra.mxu1 %v8304_v30  ;;  %6574 = vmatpush3.bf16.msra.mxu0 %v7450_v55  ;;  %v2367_v55 = vor.u32 %v2366_v49, %v2362_v46  ;;  %v7481_v46 = vld [vmem:[%s9662_s1 + $0x450] sm:$0xff]   ;;  %v5589_v49 = vcombine.low %v8432_v37, %v5572_v43  ;;  %v7484_v37 = vld [vmem:[%s9662_s1 + $0x400] sm:$0xff]  }
 0x103   : >> { %v8390_v2 = vadd.f32 %v6331_v1, %v6311_v62  ;;  %6594 = vmatpush3.bf16.msra.mxu1 %v7451_v56  ;;  %v343_v3 = vpop.f32.mrf.mxu0  ;;  %6575 = vmatprep.subr.bf16.mxu0 %v7452_v29  ;;  %v8457_v56 = vrot.slane %v2369_v42, 1  ;;  %v7473_v62 = vld [vmem:[%s9662_s1 + $0x470] sm:$0xff]   ;;  %v7482_v42 = vld [vmem:[%s9662_s1 + $0x408] sm:$0xff]  }
 0x104   : >> { %v445_v5 = vpop.f32.mrf.mxu1  ;;  %6595 = vmatprep.subr.bf16.mxu1 %v7453_v61  ;;  %6589 = vmatprep.mubr.bf16.mxu0 %v8384_v63 }
 0x105   : >> { %v8399_v7 = vadd.f32 %v445_v5, %v343_v3  ;;  %v6312_v8 = vpop.f32.mrf.mxu0  ;;  %6609 = vmatprep.mubr.bf16.mxu1 %v8387_v0  ;;  %v8475_v3 = vsel %vm243_vm0, %v2367_v55, %v8457_v56  ;;  %v2636_v55 = vshrl.u32 %v5589_v49, 16 }
 0x106   : >> { %v6332_v9 = vpop.f32.mrf.mxu1  ;;  %6576 = vmatpush3.bf16.msra.mxu0 %v7452_v29  ;;  %v8464_v29 = vrot.slane %v8435_v38, 1 }
 0x107   : >> { %v8402_v11 = vadd.f32 %v6332_v9, %v6312_v8  ;;  %6596 = vmatpush3.bf16.msra.mxu1 %v7453_v61  ;;  %v346_v13 = vpop.f32.mrf.mxu0  ;;  %6577 = vmatprep.subr.bf16.mxu0 %v7454_v4  ;;  %v7472_v61 = vld [vmem:[%s9662_s1 + $0x430] sm:$0xff]   ;;  %v7474_v9 = vld [vmem:[%s9662_s1 + $0x428] sm:$0xff]  }
 0x108   : >> { %v448_v17 = vpop.f32.mrf.mxu1  ;;  %6597 = vmatprep.subr.bf16.mxu1 %v7455_v6 }
 0x109   : >> { %v8410_v21 = vadd.f32 %v448_v17, %v346_v13  ;;  %v7475_v17 = vld [vmem:[%s9662_s1 + $0x468] sm:$0xff]  }
 0x10a   : >> { %6578 = vmatpush3.bf16.msra.mxu0 %v7454_v4 }
 0x10b   : >> { %6598 = vmatpush3.bf16.msra.mxu1 %v7455_v6  ;;  %6579 = vmatprep.subr.bf16.mxu0 %v7456_v16  ;;  %v8481_v6 = vsel %vm481_vm1, %v2500_v59, %v8464_v29  ;;  %v2639_v59 = vshll.u32 %v5589_v49, 16 }
 0x10c   : >> { %6599 = vmatprep.subr.bf16.mxu1 %v7457_v18 }
 0x10e   : >> { %6580 = vmatpush3.bf16.msra.mxu0 %v7456_v16 }
 0x10f   : >> { %6600 = vmatpush3.bf16.msra.mxu1 %v7457_v18  ;;  %6581 = vmatprep.subr.bf16.mxu0 %v7458_v22 }
 0x110   : >> { %6601 = vmatprep.subr.bf16.mxu1 %v7459_v23 }
 0x112   : >> { %6582 = vmatpush3.bf16.msra.mxu0 %v7458_v22 }
 0x113   : >> { %6602 = vmatpush3.bf16.msra.mxu1 %v7459_v23  ;;  %6583 = vmatprep.subr.bf16.mxu0 %v7460_v24 }
 0x114   : >> { %6603 = vmatprep.subr.bf16.mxu1 %v7461_v28 }
 0x116   : >> { %6584 = vmatpush3.bf16.msra.mxu0 %v7460_v24 }
 0x117   : >> { %6604 = vmatpush3.bf16.msra.mxu1 %v7461_v28  ;;  %6585 = vmatprep.subr.bf16.mxu0 %v7462_v34  ;;  %v7476_v28 = vld [vmem:[%s9662_s1 + $0x420] sm:$0xff]  }
 0x118   : >> { %6605 = vmatprep.subr.bf16.mxu1 %v7463_v31 }
 0x11a   : >> { %6586 = vmatpush3.bf16.msra.mxu0 %v7462_v34 }
 0x11b   : >> { %6606 = vmatpush3.bf16.msra.mxu1 %v7463_v31  ;;  %6587 = vmatprep.subr.bf16.mxu0 %v7464_v40  ;;  %v7477_v31 = vld [vmem:[%s9662_s1 + $0x460] sm:$0xff]  }
 0x11c   : >> { %6607 = vmatprep.subr.bf16.mxu1 %v7465_v45 }
 0x11e   : >> { %6588 = vmatpush3.bf16.msra.mxu0 %v7464_v40  ;;  %v7478_v40 = vld [vmem:[%s9662_s1 + $0x418] sm:$0xff]  }
 0x11f   : >> { %6608 = vmatpush3.bf16.msra.mxu1 %v7465_v45  ;;  %6613 = vmatprep.subr.bf16.mxu0 %v7470_v52  ;;  %v7480_v45 = vld [vmem:[%s9662_s1 + $0x410] sm:$0xff]  }
 0x120   : >> { %6633 = vmatprep.subr.bf16.mxu1 %v7471_v53 }
 0x121   : >> { %v6351_v1 = vpop.f32.mrf.mxu0  ;;  %6590 = vmatmul.mubr.bf16.vlgmr.msra.gmra.mxu0 %v8369_v58 }
 0x122   : >> { %v586_v4 = vadd.f32 %v6351_v1, %v8390_v2  ;;  %v6371_v5 = vpop.f32.mrf.mxu1  ;;  %6610 = vmatmul.mubr.bf16.vlgmr.msra.gmra.mxu1 %v8460_v57  ;;  %6614 = vmatpush3.bf16.msra.mxu0 %v7470_v52  ;;  %v2628_v52 = vshrl.u32 %v8448_v50, 16  ;;  %v2373_v1 = vshrl.u32 %v8435_v38, 16 }
 0x123   : >> { %6634 = vmatpush3.bf16.msra.mxu1 %v7471_v53  ;;  %v569_v8 = vpop.f32.mrf.mxu0  ;;  %6615 = vmatprep.subr.bf16.mxu0 %v7472_v61  ;;  %v2631_v53 = vshll.u32 %v8448_v50, 16  ;;  %v2638_v50 = vrot.slane %v2636_v55, 1 }
 0x124   : >> { %v8486_v13 = vadd.f32 %v6371_v5, %v586_v4  ;;  %v584_v16 = vadd.f32 %v569_v8, %v8399_v7  ;;  %v711_v2 = vpop.f32.mrf.mxu1  ;;  %6635 = vmatprep.subr.bf16.mxu1 %v7473_v62  ;;  %6629 = vmatprep.mubr.bf16.mxu0 %v8475_v3  ;;  %v2630_v4 = vrot.slane %v2628_v52, 1  ;;  %v2641_v8 = vrot.slane %v2639_v59, 2 }
 0x125   : >> { %v6352_v18 = vpop.f32.mrf.mxu0  ;;  %6649 = vmatprep.mubr.bf16.mxu1 %v8481_v6  ;;  %v2633_v5 = vrot.slane %v2631_v53, 2  ;;  %v8546_v38 = vor.u32 %v2373_v1, %v8457_v56  ;;  %v7498_v1 = vld [vmem:[%s9662_s1 + $0x490] sm:$0xff]  }
 0x126   : >> { %v8494_v22 = vadd.f32 %v711_v2, %v584_v16  ;;  %v587_v23 = vadd.f32 %v6352_v18, %v8402_v11  ;;  %v6372_v24 = vpop.f32.mrf.mxu1  ;;  %6616 = vmatpush3.bf16.msra.mxu0 %v7472_v61  ;;  %v5598_v61 = vld [vmem:[%s7893_s26 + $0x30] sm:$0xc]  ;;  %v7488_v16 = vld [vmem:[%s9662_s1 + $0x4b8] sm:$0xff]   ;;  %v8548_v18 = vor.u32 %v2641_v8, %v2638_v50 }
 0x127   : >> { %6636 = vmatpush3.bf16.msra.mxu1 %v7473_v62  ;;  %v572_v7 = vpop.f32.mrf.mxu0  ;;  %6617 = vmatprep.subr.bf16.mxu0 %v7474_v9  ;;  %v7485_v62 = vld [vmem:[%s9662_s1 + $0x440] sm:$0xff]   ;;  %v7489_v2 = vld [vmem:[%s9662_s1 + $0x4f8] sm:$0xff]   ;;  %v7499_v50 = vld [vmem:[%s9662_s1 + $0x4d0] sm:$0xff]  }
 0x128   : >> { %v8500_v33 = vadd.f32 %v6372_v24, %v587_v23  ;;  %v585_v34 = vadd.f32 %v572_v7, %v8410_v21  ;;  %6637 = vmatprep.subr.bf16.mxu1 %v7475_v17  ;;  %v714_v11 = vpop.f32.mrf.mxu1  ;;  %v7479_v21 = vld [vmem:[%s9662_s1 + $0x458] sm:$0xff]   ;;  %v7490_v24 = vld [vmem:[%s9662_s1 + $0x4b0] sm:$0xff]  }
 0x129   : >> { %v7491_v7 = vld [vmem:[%s9662_s1 + $0x4f0] sm:$0xff]  }
 0x12a   : >> { %v8506_v39 = vadd.f32 %v714_v11, %v585_v34  ;;  %6618 = vmatpush3.bf16.msra.mxu0 %v7474_v9  ;;  %v5615_v9 = vcombine.low %v5598_v61, %v8373_v60  ;;  %v8550_v60 = vrot.slane %v5589_v49, 2 }
 0x12b   : >> { %6638 = vmatpush3.bf16.msra.mxu1 %v7475_v17  ;;  %6619 = vmatprep.subr.bf16.mxu0 %v7476_v28  ;;  %v2634_v17 = vor.u32 %v2633_v5, %v2630_v4  ;;  %v5626_v4 = vld [vmem:[%s7893_s26 + $0x40] sm:$0xf]  ;;  %v8605_v5 = vld [vmem:[%s7893_s26 + $0x44] sm:$0xf] }
 0x12c   : >> { %6639 = vmatprep.subr.bf16.mxu1 %v7477_v31  ;;  %v2768_v23 = vrot.slane %v5615_v9, 2  ;;  %v8611_v8 = vcombine.low %v5626_v4, %v8605_v5  ;;  %v7500_v9 = vld [vmem:[%s9662_s1 + $0x488] sm:$0xff]  }
 0x12e   : >> { %6620 = vmatpush3.bf16.msra.mxu0 %v7476_v28  ;;  %v8561_v28 = vsel %vm609_vm2, %v2634_v17, %v8548_v18  ;;  %v8567_v11 = vsel %vm751_vm3, %v2768_v23, %v8550_v60  ;;  %v7501_v17 = vld [vmem:[%s9662_s1 + $0x4c8] sm:$0xff]  }
 0x12f   : >> { %6640 = vmatpush3.bf16.msra.mxu1 %v7477_v31  ;;  %6621 = vmatprep.subr.bf16.mxu0 %v7478_v40 }
 0x130   : >> { %6641 = vmatprep.subr.bf16.mxu1 %v7479_v21 }
 0x132   : >> { %6622 = vmatpush3.bf16.msra.mxu0 %v7478_v40 }
 0x133   : >> { %6642 = vmatpush3.bf16.msra.mxu1 %v7479_v21  ;;  %6623 = vmatprep.subr.bf16.mxu0 %v7480_v45  ;;  %v7492_v21 = vld [vmem:[%s9662_s1 + $0x4a8] sm:$0xff]  }
 0x134   : >> { %6643 = vmatprep.subr.bf16.mxu1 %v7481_v46 }
 0x136   : >> { %6624 = vmatpush3.bf16.msra.mxu0 %v7480_v45 }
 0x137   : >> { %6644 = vmatpush3.bf16.msra.mxu1 %v7481_v46  ;;  %6625 = vmatprep.subr.bf16.mxu0 %v7482_v42  ;;  %v7493_v46 = vld [vmem:[%s9662_s1 + $0x4e8] sm:$0xff]  }
 0x138   : >> { %6645 = vmatprep.subr.bf16.mxu1 %v7483_v51 }
 0x13a   : >> { %6626 = vmatpush3.bf16.msra.mxu0 %v7482_v42 }
 0x13b   : >> { %6646 = vmatpush3.bf16.msra.mxu1 %v7483_v51  ;;  %6627 = vmatprep.subr.bf16.mxu0 %v7484_v37 }
 0x13c   : >> { %6647 = vmatprep.subr.bf16.mxu1 %v7485_v62 }
 0x13e   : >> { %6628 = vmatpush3.bf16.msra.mxu0 %v7484_v37 }
 0x13f   : >> { %6648 = vmatpush3.bf16.msra.mxu1 %v7485_v62  ;;  %6653 = vmatprep.subr.bf16.mxu0 %v7488_v16  ;;  %v7496_v62 = vld [vmem:[%s9662_s1 + $0x498] sm:$0xff]  }
 0x140   : >> { %6673 = vmatprep.subr.bf16.mxu1 %v7489_v2 }
 0x141   : >> { %v6391_v56 = vpop.f32.mrf.mxu0  ;;  %6630 = vmatmul.mubr.bf16.vlgmr.msra.gmra.mxu0 %v8546_v38 }
 0x142   : >> { %v856_v34 = vadd.f32 %v6391_v56, %v8486_v13  ;;  %v6411_v31 = vpop.f32.mrf.mxu1  ;;  %6650 = vmatmul.mubr.bf16.vlgmr.msra.gmra.mxu1 %v8464_v29  ;;  %6654 = vmatpush3.bf16.msra.mxu0 %v7488_v16  ;;  %v8617_v16 = vld [vmem:[%s7893_s26 + $0x48] sm:$0xf]  ;;  %v7503_v56 = vld [vmem:[%s9662_s1 + $0x4c0] sm:$0xff]  }
 0x143   : >> { %6674 = vmatpush3.bf16.msra.mxu1 %v7489_v2  ;;  %v839_v40 = vpop.f32.mrf.mxu0  ;;  %6655 = vmatprep.subr.bf16.mxu0 %v7490_v24  ;;  %v5656_v2 = vld [vmem:[%s7893_s26 + $0x4c] sm:$0x7] }
 0x144   : >> { %v8572_v43 = vadd.f32 %v6411_v31, %v856_v34  ;;  %v854_v45 = vadd.f32 %v839_v40, %v8494_v22  ;;  %v977_v13 = vpop.f32.mrf.mxu1  ;;  %6675 = vmatprep.subr.bf16.mxu1 %v7491_v7  ;;  %6669 = vmatprep.mubr.bf16.mxu0 %v8561_v28  ;;  %v7494_v22 = vld [vmem:[%s9662_s1 + $0x4a0] sm:$0xff]   ;;  %v8624_v23 = vcombine.low %v8617_v16, %v5656_v2  ;;  %v3034_v34 = vshrl.u32 %v8611_v8, 16 }
 0x145   : >> { %v6392_v49 = vpop.f32.mrf.mxu0  ;;  %6689 = vmatprep.mubr.bf16.mxu1 %v8567_v11 }
 0x146   : >> { %v8580_v42 = vadd.f32 %v977_v13, %v854_v45  ;;  %v857_v51 = vadd.f32 %v6392_v49, %v8500_v33  ;;  %v6412_v52 = vpop.f32.mrf.mxu1  ;;  %6656 = vmatpush3.bf16.msra.mxu0 %v7490_v24  ;;  %v7495_v33 = vld [vmem:[%s9662_s1 + $0x4e0] sm:$0xff]   ;;  %v3036_v24 = vshll.u32 %v8611_v8, 16  ;;  %v3041_v40 = vshll.u32 %v8624_v23, 16  ;;  %v7506_v45 = vld [vmem:[%s9662_s1 + $0x578] sm:$0xff]   ;;  %v7507_v49 = vld [vmem:[%s9662_s1 + $0x530] sm:$0xff]  }
 0x147   : >> { %6676 = vmatpush3.bf16.msra.mxu1 %v7491_v7  ;;  %v842_v53 = vpop.f32.mrf.mxu0  ;;  %6657 = vmatprep.subr.bf16.mxu0 %v7492_v21  ;;  %v7502_v7 = vld [vmem:[%s9662_s1 + $0x480] sm:$0xff]  }
 0x148   : >> { %v8586_v55 = vadd.f32 %v6412_v52, %v857_v51  ;;  %v855_v59 = vadd.f32 %v842_v53, %v8506_v39  ;;  %6677 = vmatprep.subr.bf16.mxu1 %v7493_v46  ;;  %v980_v37 = vpop.f32.mrf.mxu1  ;;  %v7497_v39 = vld [vmem:[%s9662_s1 + $0x4d8] sm:$0xff]   ;;  %v3038_v31 = vrot.slane %v3036_v24, 1  ;;  %v7508_v51 = vld [vmem:[%s9662_s1 + $0x570] sm:$0xff]  }
 0x14a   : >> { %v8592_v61 = vadd.f32 %v980_v37, %v855_v59  ;;  %6658 = vmatpush3.bf16.msra.mxu0 %v7492_v21  ;;  %v7505_v21 = vld [vmem:[%s9662_s1 + $0x538] sm:$0xff]   ;;  %v3039_v13 = vor.u32 %v3038_v31, %v3034_v34  ;;  %v7509_v37 = vld [vmem:[%s9662_s1 + $0x528] sm:$0xff]  }
 0x14b   : >> { %6678 = vmatpush3.bf16.msra.mxu1 %v7493_v46  ;;  %6659 = vmatprep.subr.bf16.mxu0 %v7494_v22  ;;  %v8641_v46 = vrot.slane %v3041_v40, 1  ;;  %v7513_v31 = vld [vmem:[%s9662_s1 + $0x518] sm:$0xff]   ;;  %v7515_v40 = vld [vmem:[%s9662_s1 + $0x510] sm:$0xff]  }
 0x14c   : >> { %6679 = vmatprep.subr.bf16.mxu1 %v7495_v33 }
 0x14d   : >> { %v8654_v59 = vsel %vm243_vm0, %v3039_v13, %v8641_v46  ;;  %v7516_v13 = vld [vmem:[%s9662_s1 + $0x550] sm:$0xff]  }
 0x14e   : >> { %6660 = vmatpush3.bf16.msra.mxu0 %v7494_v22 }
 0x14f   : >> { %6680 = vmatpush3.bf16.msra.mxu1 %v7495_v33  ;;  %6661 = vmatprep.subr.bf16.mxu0 %v7496_v62 }
 0x150   : >> { %6681 = vmatprep.subr.bf16.mxu1 %v7497_v39 }
 0x152   : >> { %6662 = vmatpush3.bf16.msra.mxu0 %v7496_v62 }
 0x153   : >> { %6682 = vmatpush3.bf16.msra.mxu1 %v7497_v39  ;;  %6663 = vmatprep.subr.bf16.mxu0 %v7498_v1 }
 0x154   : >> { %6683 = vmatprep.subr.bf16.mxu1 %v7499_v50 }
 0x156   : >> { %6664 = vmatpush3.bf16.msra.mxu0 %v7498_v1  ;;  %v7510_v1 = vld [vmem:[%s9662_s1 + $0x568] sm:$0xff]  }
 0x157   : >> { %6684 = vmatpush3.bf16.msra.mxu1 %v7499_v50  ;;  %6665 = vmatprep.subr.bf16.mxu0 %v7500_v9 }
 0x158   : >> { %6685 = vmatprep.subr.bf16.mxu1 %v7501_v17 }
 0x15a   : >> { %6666 = vmatpush3.bf16.msra.mxu0 %v7500_v9 }
 0x15b   : >> { %6686 = vmatpush3.bf16.msra.mxu1 %v7501_v17  ;;  %6667 = vmatprep.subr.bf16.mxu0 %v7502_v7 }
 0x15c   : >> { %6687 = vmatprep.subr.bf16.mxu1 %v7503_v56 }
 0x15e   : >> { %6668 = vmatpush3.bf16.msra.mxu0 %v7502_v7 }
 0x15f   : >> { %6688 = vmatpush3.bf16.msra.mxu1 %v7503_v56  ;;  %6693 = vmatprep.subr.bf16.mxu0 %v7505_v21 }
 0x160   : >> { %6713 = vmatprep.subr.bf16.mxu1 %v7506_v45 }
 0x161   : >> { %v6431_v52 = vpop.f32.mrf.mxu0  ;;  %6670 = vmatmul.mubr.bf16.vlgmr.msra.gmra.mxu0 %v8548_v18 }
 0x162   : >> { %v1133_v53 = vadd.f32 %v6431_v52, %v8572_v43  ;;  %v6451_v22 = vpop.f32.mrf.mxu1  ;;  %6690 = vmatmul.mubr.bf16.vlgmr.msra.gmra.mxu1 %v8550_v60  ;;  %6694 = vmatpush3.bf16.msra.mxu0 %v7505_v21  ;;  %v5682_v21 = vld [vmem:[%s7893_s26 + $0x40] sm:$0xe]  ;;  %v7517_v52 = vld [vmem:[%s9662_s1 + $0x508] sm:$0xff]  }
 0x163   : >> { %6714 = vmatpush3.bf16.msra.mxu1 %v7506_v45  ;;  %v1116_v33 = vpop.f32.mrf.mxu0  ;;  %6695 = vmatprep.subr.bf16.mxu0 %v7507_v49  ;;  %v5708_v45 = vld [vmem:[%s7893_s26 + $0x4c] sm:$0xf] }
 0x164   : >> { %v8659_v62 = vadd.f32 %v6451_v22, %v1133_v53  ;;  %v1131_v39 = vadd.f32 %v1116_v33, %v8580_v42  ;;  %v1243_v43 = vpop.f32.mrf.mxu1  ;;  %6715 = vmatprep.subr.bf16.mxu1 %v7508_v51  ;;  %6709 = vmatprep.mubr.bf16.mxu0 %v8611_v8  ;;  %v7511_v42 = vld [vmem:[%s9662_s1 + $0x520] sm:$0xff]   ;;  %v7518_v53 = vld [vmem:[%s9662_s1 + $0x548] sm:$0xff]  }
 0x165   : >> { %v6432_v4 = vpop.f32.mrf.mxu0  ;;  %6729 = vmatprep.mubr.bf16.mxu1 %v8654_v59 }
 0x166   : >> { %v8667_v50 = vadd.f32 %v1243_v43, %v1131_v39  ;;  %v1134_v9 = vadd.f32 %v6432_v4, %v8586_v55  ;;  %v6452_v2 = vpop.f32.mrf.mxu1  ;;  %6696 = vmatpush3.bf16.msra.mxu0 %v7507_v49  ;;  %v7512_v55 = vld [vmem:[%s9662_s1 + $0x560] sm:$0xff]   ;;  %v5699_v49 = vcombine.low %v5682_v21, %v8605_v5  ;;  %v3045_v4 = vshrl.u32 %v8624_v23, 16 }
 0x167   : >> { %6716 = vmatpush3.bf16.msra.mxu1 %v7508_v51  ;;  %v1119_v17 = vpop.f32.mrf.mxu0  ;;  %6697 = vmatprep.subr.bf16.mxu0 %v7509_v37  ;;  %v8697_v51 = vcombine.low %v8617_v16, %v5708_v45  ;;  %v7519_v43 = vld [vmem:[%s9662_s1 + $0x500] sm:$0xff]  }
 0x168   : >> { %v8673_v24 = vadd.f32 %v6452_v2, %v1134_v9  ;;  %v1132_v7 = vadd.f32 %v1119_v17, %v8592_v61  ;;  %6717 = vmatprep.subr.bf16.mxu1 %v7510_v1  ;;  %v1246_v56 = vpop.f32.mrf.mxu1  ;;  %v7514_v61 = vld [vmem:[%s9662_s1 + $0x558] sm:$0xff]   ;;  %v3300_v22 = vshrl.u32 %v5699_v49, 16  ;;  %v3303_v33 = vshll.u32 %v5699_v49, 16  ;;  %v5629_v9 = vld [vmem:[%s7893_s26 + $0x4c] sm:$0x3] }
 0x169   : >> { %v3311_v39 = vshll.u32 %v8697_v51, 16  ;;  %v8728_v21 = vor.u32 %v3045_v4, %v8641_v46 }
 0x16a   : >> { %v8679_v34 = vadd.f32 %v1246_v56, %v1132_v7  ;;  %6698 = vmatpush3.bf16.msra.mxu0 %v7509_v37  ;;  %v3308_v37 = vshrl.u32 %v8697_v51, 16  ;;  %v3302_v2 = vrot.slane %v3300_v22, 1  ;;  %v3305_v17 = vrot.slane %v3303_v33, 2  ;;  %v7525_v56 = vld [vmem:[%s9662_s1 + $0x5f8] sm:$0xff]  }
 0x16b   : >> { %6718 = vmatpush3.bf16.msra.mxu1 %v7510_v1  ;;  %6699 = vmatprep.subr.bf16.mxu0 %v7511_v42  ;;  %v7520_v1 = vld [vmem:[%s9662_s1 + $0x540] sm:$0xff]   ;;  %v3313_v7 = vrot.slane %v3311_v39, 2 }
 0x16c   : >> { %6719 = vmatprep.subr.bf16.mxu1 %v7512_v55  ;;  %v3306_v45 = vor.u32 %v3305_v17, %v3302_v2 }
 0x16e   : >> { %6700 = vmatpush3.bf16.msra.mxu0 %v7511_v42  ;;  %v3310_v42 = vrot.slane %v3308_v37, 1  ;;  %v7528_v37 = vld [vmem:[%s9662_s1 + $0x5a8] sm:$0xff]  }
 0x16f   : >> { %6720 = vmatpush3.bf16.msra.mxu1 %v7512_v55  ;;  %6701 = vmatprep.subr.bf16.mxu0 %v7513_v31  ;;  %v7524_v55 = vld [vmem:[%s9662_s1 + $0x5b8] sm:$0xff]  }
 0x170   : >> { %6721 = vmatprep.subr.bf16.mxu1 %v7514_v61 }
 0x172   : >> { %6702 = vmatpush3.bf16.msra.mxu0 %v7513_v31  ;;  %v8722_v31 = vcombine.low %v8617_v16, %v5629_v9  ;;  %v7527_v16 = vld [vmem:[%s9662_s1 + $0x5f0] sm:$0xff]  }
 0x173   : >> { %6722 = vmatpush3.bf16.msra.mxu1 %v7514_v61  ;;  %6703 = vmatprep.subr.bf16.mxu0 %v7515_v40  ;;  %v3172_v61 = vrot.slane %v5699_v49, 1 }
 0x174   : >> { %6723 = vmatprep.subr.bf16.mxu1 %v7516_v13 }
 0x176   : >> { %6704 = vmatpush3.bf16.msra.mxu0 %v7515_v40  ;;  %v8725_v40 = vrot.slane %v8624_v23, 1 }
 0x177   : >> { %6724 = vmatpush3.bf16.msra.mxu1 %v7516_v13  ;;  %6705 = vmatprep.subr.bf16.mxu0 %v7517_v52  ;;  %v8730_v13 = vor.u32 %v3313_v7, %v3310_v42 }
 0x178   : >> { %6725 = vmatprep.subr.bf16.mxu1 %v7518_v53  ;;  %v8741_v46 = vsel %vm481_vm1, %v3172_v61, %v8725_v40 }
 0x179   : >> { %v8747_v22 = vsel %vm609_vm2, %v3306_v45, %v8730_v13  ;;  %v7532_v45 = vld [vmem:[%s9662_s1 + $0x598] sm:$0xff]  }
 0x17a   : >> { %6706 = vmatpush3.bf16.msra.mxu0 %v7517_v52  ;;  %v7526_v52 = vld [vmem:[%s9662_s1 + $0x5b0] sm:$0xff]  }
 0x17b   : >> { %6726 = vmatpush3.bf16.msra.mxu1 %v7518_v53  ;;  %6707 = vmatprep.subr.bf16.mxu0 %v7519_v43 }
 0x17c   : >> { %6727 = vmatprep.subr.bf16.mxu1 %v7520_v1 }
 0x17e   : >> { %6708 = vmatpush3.bf16.msra.mxu0 %v7519_v43 }
 0x17f   : >> { %6728 = vmatpush3.bf16.msra.mxu1 %v7520_v1  ;;  %6733 = vmatprep.subr.bf16.mxu0 %v7524_v55  ;;  %v7529_v1 = vld [vmem:[%s9662_s1 + $0x5e8] sm:$0xff]  }
 0x180   : >> { %6753 = vmatprep.subr.bf16.mxu1 %v7525_v56 }
 0x181   : >> { %v6471_v23 = vpop.f32.mrf.mxu0  ;;  %6710 = vmatmul.mubr.bf16.vlgmr.msra.gmra.mxu0 %v8722_v31 }
 0x182   : >> { %v1401_v49 = vadd.f32 %v6471_v23, %v8659_v62  ;;  %v6491_v53 = vpop.f32.mrf.mxu1  ;;  %6730 = vmatmul.mubr.bf16.vlgmr.msra.gmra.mxu1 %v8728_v21  ;;  %6734 = vmatpush3.bf16.msra.mxu0 %v7524_v55  ;;  %v7536_v23 = vld [vmem:[%s9662_s1 + $0x588] sm:$0xff]  }
 0x183   : >> { %6754 = vmatpush3.bf16.msra.mxu1 %v7525_v56  ;;  %v1384_v33 = vpop.f32.mrf.mxu0  ;;  %6735 = vmatprep.subr.bf16.mxu0 %v7526_v52  ;;  %v7531_v56 = vld [vmem:[%s9662_s1 + $0x5e0] sm:$0xff]  }
 0x184   : >> { %v8752_v39 = vadd.f32 %v6491_v53, %v1401_v49  ;;  %v1399_v43 = vadd.f32 %v1384_v33, %v8667_v50  ;;  %v1511_v62 = vpop.f32.mrf.mxu1  ;;  %6755 = vmatprep.subr.bf16.mxu1 %v7527_v16  ;;  %6749 = vmatprep.mubr.bf16.mxu0 %v8741_v46  ;;  %v7530_v50 = vld [vmem:[%s9662_s1 + $0x5a0] sm:$0xff]   ;;  %v7537_v49 = vld [vmem:[%s9662_s1 + $0x5c8] sm:$0xff]  }
 0x185   : >> { %v6472_v4 = vpop.f32.mrf.mxu0  ;;  %6769 = vmatprep.mubr.bf16.mxu1 %v8747_v22  ;;  %v5734_v53 = vld [vmem:[%s7893_s26 + $0x40] sm:$0xc] }
 0x186   : >> { %v8760_v9 = vadd.f32 %v1511_v62, %v1399_v43  ;;  %v1402_v2 = vadd.f32 %v6472_v4, %v8673_v24  ;;  %v6492_v17 = vpop.f32.mrf.mxu1  ;;  %6736 = vmatpush3.bf16.msra.mxu0 %v7526_v52  ;;  %v7534_v52 = vld [vmem:[%s9662_s1 + $0x590] sm:$0xff]   ;;  %v7538_v33 = vld [vmem:[%s9662_s1 + $0x580] sm:$0xff]   ;;  %v5751_v43 = vcombine.low %v5734_v53, %v8605_v5  ;;  %v7542_v62 = vld [vmem:[%s9662_s1 + $0x638] sm:$0xff]   ;;  %v8804_v4 = vrot.slane %v8697_v51, 2 }
 0x187   : >> { %6756 = vmatpush3.bf16.msra.mxu1 %v7527_v16  ;;  %v1387_v42 = vpop.f32.mrf.mxu0  ;;  %6737 = vmatprep.subr.bf16.mxu0 %v7528_v37  ;;  %v7535_v16 = vld [vmem:[%s9662_s1 + $0x5d0] sm:$0xff]   ;;  %v7557_v5 = vld [vmem:[%s9662_s1 + $0x78] sm:$0xff]  }
 0x188   : >> { %v8766_v7 = vadd.f32 %v6492_v17, %v1402_v2  ;;  %v1400_v55 = vadd.f32 %v1387_v42, %v8679_v34  ;;  %6757 = vmatprep.subr.bf16.mxu1 %v7529_v1  ;;  %v1514_v61 = vpop.f32.mrf.mxu1  ;;  %v7533_v34 = vld [vmem:[%s9662_s1 + $0x5d8] sm:$0xff]   ;;  %v7543_v2 = vld [vmem:[%s9662_s1 + $0x630] sm:$0xff]  }
 0x18a   : >> { %v8772_v24 = vadd.f32 %v1514_v61, %v1400_v55  ;;  %6738 = vmatpush3.bf16.msra.mxu0 %v7528_v37  ;;  %v7539_v37 = vld [vmem:[%s9662_s1 + $0x5c0] sm:$0xff]  }
 0x18b   : >> { %6758 = vmatpush3.bf16.msra.mxu1 %v7529_v1  ;;  %6739 = vmatprep.subr.bf16.mxu0 %v7530_v50  ;;  %v3440_v1 = vrot.slane %v5751_v43, 2  ;;  %v7559_v43 = vld [vmem:[%s9662_s1 + $0x68] sm:$0xff]  }
 0x18c   : >> { %6759 = vmatprep.subr.bf16.mxu1 %v7531_v56 }
 0x18d   : >> { %v8815_v42 = vsel %vm751_vm3, %v3440_v1, %v8804_v4  ;;  %v7560_v1 = vld [vmem:[%s9662_s1 + $0x60] sm:$0xff]  }
 0x18e   : >> { %6740 = vmatpush3.bf16.msra.mxu0 %v7530_v50 }
 0x18f   : >> { %6760 = vmatpush3.bf16.msra.mxu1 %v7531_v56  ;;  %6741 = vmatprep.subr.bf16.mxu0 %v7532_v45  ;;  %v7544_v56 = vld [vmem:[%s9662_s1 + $0x628] sm:$0xff]  }
 0x190   : >> { %6761 = vmatprep.subr.bf16.mxu1 %v7533_v34 }
 0x192   : >> { %6742 = vmatpush3.bf16.msra.mxu0 %v7532_v45 }
 0x193   : >> { %6762 = vmatpush3.bf16.msra.mxu1 %v7533_v34  ;;  %6743 = vmatprep.subr.bf16.mxu0 %v7534_v52 }
 0x194   : >> { %6763 = vmatprep.subr.bf16.mxu1 %v7535_v16 }
 0x196   : >> { %6744 = vmatpush3.bf16.msra.mxu0 %v7534_v52  ;;  %v7558_v52 = vld [vmem:[%s9662_s1 + $0x70] sm:$0xff]  }
 0x197   : >> { %6764 = vmatpush3.bf16.msra.mxu1 %v7535_v16  ;;  %6745 = vmatprep.subr.bf16.mxu0 %v7536_v23 }
 0x198   : >> { %6765 = vmatprep.subr.bf16.mxu1 %v7537_v49 }
 0x19a   : >> { %6746 = vmatpush3.bf16.msra.mxu0 %v7536_v23 }
 0x19b   : >> { %6766 = vmatpush3.bf16.msra.mxu1 %v7537_v49  ;;  %6747 = vmatprep.subr.bf16.mxu0 %v7538_v33 }
 0x19c   : >> { %6767 = vmatprep.subr.bf16.mxu1 %v7539_v37 }
 0x19e   : >> { %6748 = vmatpush3.bf16.msra.mxu0 %v7538_v33 }
 0x19f   : >> { %6768 = vmatpush3.bf16.msra.mxu1 %v7539_v37  ;;  %6773 = vmatprep.subr.bf16.mxu0 %v7542_v62 }
 0x1a0   : >> { %6793 = vmatprep.subr.bf16.mxu1 %v7557_v5 }
 0x1a1   : >> { %v6511_v17 = vpop.f32.mrf.mxu0  ;;  %6750 = vmatmul.mubr.bf16.vlgmr.msra.gmra.mxu0 %v8725_v40 }
 0x1a2   : >> { %v1666_v51 = vadd.f32 %v6511_v17, %v8752_v39  ;;  %v6531_v50 = vpop.f32.mrf.mxu1  ;;  %6770 = vmatmul.mubr.bf16.vlgmr.msra.gmra.mxu1 %v8730_v13  ;;  %6774 = vmatpush3.bf16.msra.mxu0 %v7542_v62  ;;  %v7562_v17 = vld [vmem:[%s9662_s1 + $0x50] sm:$0xff]  }
 0x1a3   : >> { %6794 = vmatpush3.bf16.msra.mxu1 %v7557_v5  ;;  %v1649_v55 = vpop.f32.mrf.mxu0  ;;  %6775 = vmatprep.subr.bf16.mxu0 %v7543_v2  ;;  %v7548_v5 = vld [vmem:[%s9662_s1 + $0x608] sm:$0xff]  }
 0x1a4   : >> { %v1805_v61 = vadd.f32 %v6531_v50, %v1666_v51  ;;  %v1664_v45 = vadd.f32 %v1649_v55, %v8760_v9  ;;  %v1788_v34 = vpop.f32.mrf.mxu1  ;;  %6795 = vmatprep.subr.bf16.mxu1 %v7558_v52  ;;  %6789 = vmatprep.mubr.bf16.mxu0 %v8815_v42  ;;  %v7545_v9 = vld [vmem:[%s9662_s1 + $0x620] sm:$0xff]   ;;  %v7563_v50 = vld [vmem:[%s9662_s1 + $0x48] sm:$0xff]  }
 0x1a5   : >> { %v6512_v39 = vpop.f32.mrf.mxu0  ;;  %6809 = vmatprep.mubr.bf16.mxu1 %v8086_v47  ;;  %v7549_v51 = vld [vmem:[%s9662_s1 + $0x600] sm:$0xff]  }
 0x1a6   : >> { %v1803_v16 = vadd.f32 %v1788_v34, %v1664_v45  ;;  %v1667_v23 = vadd.f32 %v6512_v39, %v8766_v7  ;;  %v6532_v49 = vpop.f32.mrf.mxu1  ;;  %6776 = vmatpush3.bf16.msra.mxu0 %v7543_v2  ;;  %v7546_v7 = vld [vmem:[%s9662_s1 + $0x618] sm:$0xff]   ;;  %v7564_v55 = vld [vmem:[%s9662_s1 + $0x40] sm:$0xff]  }
 0x1a7   : >> { %6796 = vmatpush3.bf16.msra.mxu1 %v7558_v52  ;;  %v1652_v53 = vpop.f32.mrf.mxu0  ;;  %6777 = vmatprep.subr.bf16.mxu0 %v7544_v56  ;;  %v7561_v2 = vld [vmem:[%s9662_s1 + $0x58] sm:$0xff]  }
 0x1a8   : >> { %v1806_v33 = vadd.f32 %v6532_v49, %v1667_v23  ;;  %v1665_v37 = vadd.f32 %v1652_v53, %v8772_v24  ;;  %6797 = vmatprep.subr.bf16.mxu1 %v7559_v43  ;;  %v1791_v47 = vpop.f32.mrf.mxu1  ;;  %v7547_v24 = vld [vmem:[%s9662_s1 + $0x610] sm:$0xff]   ;;  %v7566_v45 = vld [vmem:[%s9662_s1 + $0xb8] sm:$0xff]  }
 0x1a9   : >> { %v7567_v49 = vld [vmem:[%s9662_s1 + $0x30] sm:$0xff]  }
 0x1aa   : >> { %v8836_v62 = vadd.f32 %v1791_v47, %v1665_v37  ;;  %6778 = vmatpush3.bf16.msra.mxu0 %v7544_v56  ;;  %v7565_v56 = vld [vmem:[%s9662_s1 + $0x38] sm:$0xff]  }
 0x1ab   : >> { %6798 = vmatpush3.bf16.msra.mxu1 %v7559_v43  ;;  %6779 = vmatprep.subr.bf16.mxu0 %v7545_v9  ;;  %v7568_v43 = vld [vmem:[%s9662_s1 + $0xb0] sm:$0xff]  }
 0x1ac   : >> { %6799 = vmatprep.subr.bf16.mxu1 %v7560_v1 }
 0x1ae   : >> { %6780 = vmatpush3.bf16.msra.mxu0 %v7545_v9 }
 0x1af   : >> { %6800 = vmatpush3.bf16.msra.mxu1 %v7560_v1  ;;  %6781 = vmatprep.subr.bf16.mxu0 %v7546_v7 }
 0x1b0   : >> { %6801 = vmatprep.subr.bf16.mxu1 %v7561_v2 }
 0x1b2   : >> { %6782 = vmatpush3.bf16.msra.mxu0 %v7546_v7 }
 0x1b3   : >> { %6802 = vmatpush3.bf16.msra.mxu1 %v7561_v2  ;;  %6783 = vmatprep.subr.bf16.mxu0 %v7547_v24 }
 0x1b4   : >> { %6803 = vmatprep.subr.bf16.mxu1 %v7562_v17 }
 0x1b6   : >> { %6784 = vmatpush3.bf16.msra.mxu0 %v7547_v24 }
 0x1b7   : >> { %6804 = vmatpush3.bf16.msra.mxu1 %v7562_v17  ;;  %6785 = vmatprep.subr.bf16.mxu0 %v7548_v5  ;;  %v7572_v17 = vld [vmem:[%s9662_s1 + $0xa0] sm:$0xff]  }
 0x1b8   : >> { %6805 = vmatprep.subr.bf16.mxu1 %v7563_v50 }
 0x1ba   : >> { %6786 = vmatpush3.bf16.msra.mxu0 %v7548_v5 }
 0x1bb   : >> { %6806 = vmatpush3.bf16.msra.mxu1 %v7563_v50  ;;  %6787 = vmatprep.subr.bf16.mxu0 %v7549_v51  ;;  %v7575_v50 = vld [vmem:[%s9662_s1 + $0x10] sm:$0xff]  }
 0x1bc   : >> { %6807 = vmatprep.subr.bf16.mxu1 %v7564_v55 }
 0x1be   : >> { %6788 = vmatpush3.bf16.msra.mxu0 %v7549_v51  ;;  %v7574_v51 = vld [vmem:[%s9662_s1 + $0x98] sm:$0xff]  }
 0x1bf   : >> { %6808 = vmatpush3.bf16.msra.mxu1 %v7564_v55  ;;  %6813 = vmatprep.subr.bf16.mxu0 %v7565_v56  ;;  %v7576_v55 = vld [vmem:[%s9662_s1 + $0x90] sm:$0xff]  }
 0x1c0   : >> { %6833 = vmatprep.subr.bf16.mxu1 %v7566_v45 }
 0x1c1   : >> { %v6551_v34 = vpop.f32.mrf.mxu0  ;;  %6790 = vmatmul.mubr.bf16.vlgmr.msra.gmra.mxu0 %v8804_v4 }
 0x1c2   : >> { %v1932_v52 = vadd.f32 %v6551_v34, %v1805_v61  ;;  %v6571_v39 = vpop.f32.mrf.mxu1  ;;  %6810 = vmatmul.mubr.bf16.vlgmr.msra.gmra.mxu1 %v8144_v12  ;;  %6814 = vmatpush3.bf16.msra.mxu0 %v7565_v56  ;;  %v7577_v56 = vld [vmem:[%s9662_s1 + $0x8] sm:$0xff]   ;;  %v7579_v34 = vld [vmem:[%s9662_s1] sm:$0xff]  }
 0x1c3   : >> { %6834 = vmatpush3.bf16.msra.mxu1 %v7566_v45  ;;  %v1915_v23 = vpop.f32.mrf.mxu0  ;;  %6815 = vmatprep.subr.bf16.mxu0 %v7567_v49  ;;  %v7578_v45 = vld [vmem:[%s9662_s1 + $0x88] sm:$0xff]  }
 0x1c4   : >> { %v2073_v53 = vadd.f32 %v6571_v39, %v1932_v52  ;;  %v1930_v9 = vadd.f32 %v1915_v23, %v1803_v16  ;;  %v2056_v37 = vpop.f32.mrf.mxu1  ;;  %6835 = vmatprep.subr.bf16.mxu1 %v7568_v43  ;;  %6829 = vmatprep.mubr.bf16.mxu0 %v8011_v14  ;;  %v7569_v16 = vld [vmem:[%s9662_s1 + $0x28] sm:$0xff]   ;;  %v7580_v52 = vld [vmem:[%s9662_s1 + $0x80] sm:$0xff]   ;;  %v7581_v39 = vld [vmem:[%s9662_s1 + $0xf8] sm:$0xff]  }
 0x1c5   : >> { %v6552_v61 = vpop.f32.mrf.mxu0  ;;  %6849 = vmatprep.mubr.bf16.mxu1 %v8091_v48  ;;  %v7570_v14 = vld [vmem:[%s9662_s1 + $0xa8] sm:$0xff]   ;;  %v7582_v23 = vld [vmem:[%s9662_s1 + $0x138] sm:$0xff]  }
 0x1c6   : >> { %v2071_v12 = vadd.f32 %v2056_v37, %v1930_v9  ;;  %v1933_v47 = vadd.f32 %v6552_v61, %v1806_v33  ;;  %v6572_v7 = vpop.f32.mrf.mxu1  ;;  %6816 = vmatpush3.bf16.msra.mxu0 %v7567_v49  ;;  %v7571_v33 = vld [vmem:[%s9662_s1 + $0x20] sm:$0xff]   ;;  %v7583_v61 = vld [vmem:[%s9662_s1 + $0xf0] sm:$0xff]  }
 0x1c7   : >> { %6836 = vmatpush3.bf16.msra.mxu1 %v7568_v43  ;;  %v1918_v1 = vpop.f32.mrf.mxu0  ;;  %6817 = vmatprep.subr.bf16.mxu0 %v7569_v16 }
 0x1c8   : >> { %v2074_v24 = vadd.f32 %v6572_v7, %v1933_v47  ;;  %v1931_v2 = vadd.f32 %v1918_v1, %v8836_v62  ;;  %6837 = vmatprep.subr.bf16.mxu1 %v7570_v14  ;;  %v2059_v48 = vpop.f32.mrf.mxu1  ;;  %v7573_v62 = vld [vmem:[%s9662_s1 + $0x18] sm:$0xff]  }
 0x1ca   : >> { %v8888_v5 = vadd.f32 %v2059_v48, %v1931_v2  ;;  %6818 = vmatpush3.bf16.msra.mxu0 %v7569_v16  ;;  %v7584_v16 = vld [vmem:[%s9662_s1 + $0x130] sm:$0xff]  }
 0x1cb   : >> { %6838 = vmatpush3.bf16.msra.mxu1 %v7570_v14  ;;  %6819 = vmatprep.subr.bf16.mxu0 %v7571_v33 }
 0x1cc   : >> { %6839 = vmatprep.subr.bf16.mxu1 %v7572_v17 }
 0x1ce   : >> { %6820 = vmatpush3.bf16.msra.mxu0 %v7571_v33 }
 0x1cf   : >> { %6840 = vmatpush3.bf16.msra.mxu1 %v7572_v17  ;;  %6821 = vmatprep.subr.bf16.mxu0 %v7573_v62 }
 0x1d0   : >> { %6841 = vmatprep.subr.bf16.mxu1 %v7574_v51 }
 0x1d2   : >> { %6822 = vmatpush3.bf16.msra.mxu0 %v7573_v62  ;;  %v7588_v62 = vld [vmem:[%s9662_s1 + $0x120] sm:$0xff]  }
 0x1d3   : >> { %6842 = vmatpush3.bf16.msra.mxu1 %v7574_v51  ;;  %6823 = vmatprep.subr.bf16.mxu0 %v7575_v50  ;;  %v7590_v51 = vld [vmem:[%s9662_s1 + $0x118] sm:$0xff]  }
 0x1d4   : >> { %6843 = vmatprep.subr.bf16.mxu1 %v7576_v55 }
 0x1d6   : >> { %6824 = vmatpush3.bf16.msra.mxu0 %v7575_v50  ;;  %v7591_v50 = vld [vmem:[%s9662_s1 + $0xd0] sm:$0xff]  }
 0x1d7   : >> { %6844 = vmatpush3.bf16.msra.mxu1 %v7576_v55  ;;  %6825 = vmatprep.subr.bf16.mxu0 %v7577_v56  ;;  %v7592_v55 = vld [vmem:[%s9662_s1 + $0x110] sm:$0xff]  }
 0x1d8   : >> { %6845 = vmatprep.subr.bf16.mxu1 %v7578_v45 }
 0x1da   : >> { %6826 = vmatpush3.bf16.msra.mxu0 %v7577_v56  ;;  %v7593_v56 = vld [vmem:[%s9662_s1 + $0xc8] sm:$0xff]  }
 0x1db   : >> { %6846 = vmatpush3.bf16.msra.mxu1 %v7578_v45  ;;  %6827 = vmatprep.subr.bf16.mxu0 %v7579_v34  ;;  %v7594_v45 = vld [vmem:[%s9662_s1 + $0x108] sm:$0xff]  }
 0x1dc   : >> { %6847 = vmatprep.subr.bf16.mxu1 %v7580_v52 }
 0x1de   : >> { %6828 = vmatpush3.bf16.msra.mxu0 %v7579_v34  ;;  %v7595_v34 = vld [vmem:[%s9662_s1 + $0xc0] sm:$0xff]  }
 0x1df   : >> { %6848 = vmatpush3.bf16.msra.mxu1 %v7580_v52  ;;  %6853 = vmatprep.subr.bf16.mxu0 %v7581_v39  ;;  %v7596_v52 = vld [vmem:[%s9662_s1 + $0x100] sm:$0xff]  }
 0x1e0   : >> { %6873 = vmatprep.subr.bf16.mxu1 %v7582_v23 }
 0x1e1   : >> { %v6591_v49 = vpop.f32.mrf.mxu0  ;;  %6830 = vmatmul.mubr.bf16.vlgmr.msra.gmra.mxu0 %v8070_v41 }
 0x1e2   : >> { %v2200_v9 = vadd.f32 %v6591_v49, %v2073_v53  ;;  %v6611_v37 = vpop.f32.mrf.mxu1  ;;  %6850 = vmatmul.mubr.bf16.vlgmr.msra.gmra.mxu1 %v8074_v44  ;;  %6854 = vmatpush3.bf16.msra.mxu0 %v7581_v39  ;;  %v7597_v39 = vld [vmem:[%s9662_s1 + $0x178] sm:$0xff]  }
 0x1e3   : >> { %6874 = vmatpush3.bf16.msra.mxu1 %v7582_v23  ;;  %v2183_v43 = vpop.f32.mrf.mxu0  ;;  %6855 = vmatprep.subr.bf16.mxu0 %v7583_v61  ;;  %v7598_v23 = vld [vmem:[%s9662_s1 + $0x1b8] sm:$0xff]  }
 0x1e4   : >> { %v2338_v47 = vadd.f32 %v6611_v37, %v2200_v9  ;;  %v2198_v7 = vadd.f32 %v2183_v43, %v2071_v12  ;;  %v2321_v1 = vpop.f32.mrf.mxu1  ;;  %6875 = vmatprep.subr.bf16.mxu1 %v7584_v16  ;;  %6869 = vmatprep.mubr.bf16.mxu0 %v8159_v19  ;;  %v7585_v12 = vld [vmem:[%s9662_s1 + $0xe8] sm:$0xff]  }
 0x1e5   : >> { %v6592_v41 = vpop.f32.mrf.mxu0  ;;  %6889 = vmatprep.mubr.bf16.mxu1 %v8164_v20  ;;  %v7586_v19 = vld [vmem:[%s9662_s1 + $0x128] sm:$0xff]  }
 0x1e6   : >> { %v2336_v44 = vadd.f32 %v2321_v1, %v2198_v7  ;;  %v2201_v53 = vadd.f32 %v6592_v41, %v2074_v24  ;;  %v6612_v2 = vpop.f32.mrf.mxu1  ;;  %6856 = vmatpush3.bf16.msra.mxu0 %v7583_v61  ;;  %v7587_v24 = vld [vmem:[%s9662_s1 + $0xe0] sm:$0xff]   ;;  %v7599_v61 = vld [vmem:[%s9662_s1 + $0x170] sm:$0xff]  }
 0x1e7   : >> { %6876 = vmatpush3.bf16.msra.mxu1 %v7584_v16  ;;  %v2186_v14 = vpop.f32.mrf.mxu0  ;;  %6857 = vmatprep.subr.bf16.mxu0 %v7585_v12  ;;  %v7600_v41 = vld [vmem:[%s9662_s1 + $0x1b0] sm:$0xff]  }
 0x1e8   : >> { %v2339_v48 = vadd.f32 %v6612_v2, %v2201_v53  ;;  %v2199_v33 = vadd.f32 %v2186_v14, %v8888_v5  ;;  %6877 = vmatprep.subr.bf16.mxu1 %v7586_v19  ;;  %v2324_v20 = vpop.f32.mrf.mxu1  ;;  %v7589_v5 = vld [vmem:[%s9662_s1 + $0xd8] sm:$0xff]  }
 0x1ea   : >> { %v8943_v17 = vadd.f32 %v2324_v20, %v2199_v33  ;;  %6858 = vmatpush3.bf16.msra.mxu0 %v7585_v12  ;;  %v7605_v20 = vld [vmem:[%s9662_s1 + $0x158] sm:$0xff]  }
 0x1eb   : >> { %6878 = vmatpush3.bf16.msra.mxu1 %v7586_v19  ;;  %6859 = vmatprep.subr.bf16.mxu0 %v7587_v24  ;;  %v7604_v19 = vld [vmem:[%s9662_s1 + $0x1a0] sm:$0xff]  }
 0x1ec   : >> { %6879 = vmatprep.subr.bf16.mxu1 %v7588_v62 }
 0x1ee   : >> { %6860 = vmatpush3.bf16.msra.mxu0 %v7587_v24  ;;  %v7607_v24 = vld [vmem:[%s9662_s1 + $0x150] sm:$0xff]  }
 0x1ef   : >> { %6880 = vmatpush3.bf16.msra.mxu1 %v7588_v62  ;;  %6861 = vmatprep.subr.bf16.mxu0 %v7589_v5  ;;  %v7608_v62 = vld [vmem:[%s9662_s1 + $0x190] sm:$0xff]  }
 0x1f0   : >> { %6881 = vmatprep.subr.bf16.mxu1 %v7590_v51 }
 0x1f2   : >> { %6862 = vmatpush3.bf16.msra.mxu0 %v7589_v5  ;;  %v7609_v5 = vld [vmem:[%s9662_s1 + $0x148] sm:$0xff]  }
 0x1f3   : >> { %6882 = vmatpush3.bf16.msra.mxu1 %v7590_v51  ;;  %6863 = vmatprep.subr.bf16.mxu0 %v7591_v50  ;;  %v7610_v51 = vld [vmem:[%s9662_s1 + $0x188] sm:$0xff]  }
 0x1f4   : >> { %6883 = vmatprep.subr.bf16.mxu1 %v7592_v55 }
 0x1f6   : >> { %6864 = vmatpush3.bf16.msra.mxu0 %v7591_v50  ;;  %v7611_v50 = vld [vmem:[%s9662_s1 + $0x140] sm:$0xff]  }
 0x1f7   : >> { %6884 = vmatpush3.bf16.msra.mxu1 %v7592_v55  ;;  %6865 = vmatprep.subr.bf16.mxu0 %v7593_v56  ;;  %v7612_v55 = vld [vmem:[%s9662_s1 + $0x180] sm:$0xff]  }
 0x1f8   : >> { %6885 = vmatprep.subr.bf16.mxu1 %v7594_v45 }
 0x1fa   : >> { %6866 = vmatpush3.bf16.msra.mxu0 %v7593_v56  ;;  %v7613_v56 = vld [vmem:[%s9662_s1 + $0x1f8] sm:$0xff]  }
 0x1fb   : >> { %6886 = vmatpush3.bf16.msra.mxu1 %v7594_v45  ;;  %6867 = vmatprep.subr.bf16.mxu0 %v7595_v34  ;;  %v7614_v45 = vld [vmem:[%s9662_s1 + $0x238] sm:$0xff]  }
 0x1fc   : >> { %6887 = vmatprep.subr.bf16.mxu1 %v7596_v52 }
 0x1fe   : >> { %6868 = vmatpush3.bf16.msra.mxu0 %v7595_v34 }
 0x1ff   : >> { %6888 = vmatpush3.bf16.msra.mxu1 %v7596_v52  ;;  %6893 = vmatprep.subr.bf16.mxu0 %v7597_v39 }
 0x200   : >> { %6913 = vmatprep.subr.bf16.mxu1 %v7598_v23 }
 0x201   : >> { %v6631_v49 = vpop.f32.mrf.mxu0  ;;  %6870 = vmatmul.mubr.bf16.vlgmr.msra.gmra.mxu0 %v8146_v15 }
 0x202   : >> { %v2477_v9 = vadd.f32 %v6631_v49, %v2338_v47  ;;  %v6651_v37 = vpop.f32.mrf.mxu1  ;;  %6890 = vmatmul.mubr.bf16.vlgmr.msra.gmra.mxu1 %v8148_v10  ;;  %6894 = vmatpush3.bf16.msra.mxu0 %v7597_v39  ;;  %v7615_v49 = vld [vmem:[%s9662_s1 + $0x1f0] sm:$0xff]  }
 0x203   : >> { %6914 = vmatpush3.bf16.msra.mxu1 %v7598_v23  ;;  %v2460_v43 = vpop.f32.mrf.mxu0  ;;  %6895 = vmatprep.subr.bf16.mxu0 %v7599_v61 }
 0x204   : >> { %v2604_v7 = vadd.f32 %v6651_v37, %v2477_v9  ;;  %v2475_v1 = vadd.f32 %v2460_v43, %v2336_v44  ;;  %v2587_v16 = vpop.f32.mrf.mxu1  ;;  %6915 = vmatprep.subr.bf16.mxu1 %v7600_v41  ;;  %6909 = vmatprep.mubr.bf16.mxu0 %v8200_v32  ;;  %v7601_v44 = vld [vmem:[%s9662_s1 + $0x168] sm:$0xff]  }
 0x205   : >> { %v6632_v15 = vpop.f32.mrf.mxu0  ;;  %6929 = vmatprep.mubr.bf16.mxu1 %v8242_v54  ;;  %v7602_v32 = vld [vmem:[%s9662_s1 + $0x1a8] sm:$0xff]  }
 0x206   : >> { %v2602_v10 = vadd.f32 %v2587_v16, %v2475_v1  ;;  %v2478_v47 = vadd.f32 %v6632_v15, %v2339_v48  ;;  %v6652_v53 = vpop.f32.mrf.mxu1  ;;  %6896 = vmatpush3.bf16.msra.mxu0 %v7599_v61  ;;  %v7603_v48 = vld [vmem:[%s9662_s1 + $0x160] sm:$0xff]   ;;  %v7616_v61 = vld [vmem:[%s9662_s1 + $0x230] sm:$0xff]  }
 0x207   : >> { %6916 = vmatpush3.bf16.msra.mxu1 %v7600_v41  ;;  %v2463_v2 = vpop.f32.mrf.mxu0  ;;  %6897 = vmatprep.subr.bf16.mxu0 %v7601_v44  ;;  %v7617_v41 = vld [vmem:[%s9662_s1 + $0x1e8] sm:$0xff]  }
 0x208   : >> { %v2605_v14 = vadd.f32 %v6652_v53, %v2478_v47  ;;  %v2476_v12 = vadd.f32 %v2463_v2, %v8943_v17  ;;  %6917 = vmatprep.subr.bf16.mxu1 %v7602_v32  ;;  %v2590_v54 = vpop.f32.mrf.mxu1  ;;  %v7606_v17 = vld [vmem:[%s9662_s1 + $0x198] sm:$0xff]   ;;  %v7619_v53 = vld [vmem:[%s9662_s1 + $0x1e0] sm:$0xff]  }
 0x209   : >> { %v7620_v2 = vld [vmem:[%s9662_s1 + $0x220] sm:$0xff]  }
 0x20a   : >> { %v8998_v33 = vadd.f32 %v2590_v54, %v2476_v12  ;;  %6898 = vmatpush3.bf16.msra.mxu0 %v7601_v44  ;;  %v7621_v44 = vld [vmem:[%s9662_s1 + $0x1d8] sm:$0xff]   ;;  %v7623_v12 = vld [vmem:[%s9662_s1 + $0x1d0] sm:$0xff]   ;;  %v7625_v54 = vld [vmem:[%s9662_s1 + $0x1c8] sm:$0xff]  }
 0x20b   : >> { %6918 = vmatpush3.bf16.msra.mxu1 %v7602_v32  ;;  %6899 = vmatprep.subr.bf16.mxu0 %v7603_v48  ;;  %v7624_v32 = vld [vmem:[%s9662_s1 + $0x210] sm:$0xff]  }
 0x20c   : >> { %6919 = vmatprep.subr.bf16.mxu1 %v7604_v19 }
 0x20e   : >> { %6900 = vmatpush3.bf16.msra.mxu0 %v7603_v48  ;;  %v7627_v48 = vld [vmem:[%s9662_s1 + $0x1c0] sm:$0xff]  }
 0x20f   : >> { %6920 = vmatpush3.bf16.msra.mxu1 %v7604_v19  ;;  %6901 = vmatprep.subr.bf16.mxu0 %v7605_v20  ;;  %v7628_v19 = vld [vmem:[%s9662_s1 + $0x200] sm:$0xff]  }
 0x210   : >> { %6921 = vmatprep.subr.bf16.mxu1 %v7606_v17 }
 0x212   : >> { %6902 = vmatpush3.bf16.msra.mxu0 %v7605_v20  ;;  %v7629_v20 = vld [vmem:[%s9662_s1 + $0x278] sm:$0xff]  }
 0x213   : >> { %6922 = vmatpush3.bf16.msra.mxu1 %v7606_v17  ;;  %6903 = vmatprep.subr.bf16.mxu0 %v7607_v24  ;;  %v7630_v17 = vld [vmem:[%s9662_s1 + $0x2b8] sm:$0xff]  }
 0x214   : >> { %6923 = vmatprep.subr.bf16.mxu1 %v7608_v62 }
 0x216   : >> { %6904 = vmatpush3.bf16.msra.mxu0 %v7607_v24 }
 0x217   : >> { %6924 = vmatpush3.bf16.msra.mxu1 %v7608_v62  ;;  %6905 = vmatprep.subr.bf16.mxu0 %v7609_v5 }
 0x218   : >> { %6925 = vmatprep.subr.bf16.mxu1 %v7610_v51 }
 0x21a   : >> { %6906 = vmatpush3.bf16.msra.mxu0 %v7609_v5 }
 0x21b   : >> { %6926 = vmatpush3.bf16.msra.mxu1 %v7610_v51  ;;  %6907 = vmatprep.subr.bf16.mxu0 %v7611_v50 }
 0x21c   : >> { %6927 = vmatprep.subr.bf16.mxu1 %v7612_v55 }
 0x21e   : >> { %6908 = vmatpush3.bf16.msra.mxu0 %v7611_v50  ;;  %v7631_v50 = vld [vmem:[%s9662_s1 + $0x270] sm:$0xff]  }
 0x21f   : >> { %6928 = vmatpush3.bf16.msra.mxu1 %v7612_v55  ;;  %6933 = vmatprep.subr.bf16.mxu0 %v7613_v56 }
 0x220   : >> { %6953 = vmatprep.subr.bf16.mxu1 %v7614_v45 }
 0x221   : >> { %v6671_v34 = vpop.f32.mrf.mxu0  ;;  %6910 = vmatmul.mubr.bf16.vlgmr.msra.gmra.mxu0 %v8299_v26 }
 0x222   : >> { %v2745_v52 = vadd.f32 %v6671_v34, %v2604_v7  ;;  %v6691_v39 = vpop.f32.mrf.mxu1  ;;  %6930 = vmatmul.mubr.bf16.vlgmr.msra.gmra.mxu1 %v8302_v27  ;;  %6934 = vmatpush3.bf16.msra.mxu0 %v7613_v56  ;;  %v7632_v34 = vld [vmem:[%s9662_s1 + $0x2b0] sm:$0xff]  }
 0x223   : >> { %6954 = vmatpush3.bf16.msra.mxu1 %v7614_v45  ;;  %v2728_v23 = vpop.f32.mrf.mxu0  ;;  %6935 = vmatprep.subr.bf16.mxu0 %v7615_v49 }
 0x224   : >> { %v2872_v9 = vadd.f32 %v6691_v39, %v2745_v52  ;;  %v2743_v37 = vadd.f32 %v2728_v23, %v2602_v10  ;;  %v2855_v43 = vpop.f32.mrf.mxu1  ;;  %6955 = vmatprep.subr.bf16.mxu1 %v7616_v61  ;;  %6949 = vmatprep.mubr.bf16.mxu0 %v8318_v35  ;;  %v7618_v35 = vld [vmem:[%s9662_s1 + $0x228] sm:$0xff]  }
 0x225   : >> { %v6672_v26 = vpop.f32.mrf.mxu0  ;;  %6969 = vmatprep.mubr.bf16.mxu1 %v8323_v36 }
 0x226   : >> { %v2870_v27 = vadd.f32 %v2855_v43, %v2743_v37  ;;  %v2746_v7 = vadd.f32 %v6672_v26, %v2605_v14  ;;  %v6692_v1 = vpop.f32.mrf.mxu1  ;;  %6936 = vmatpush3.bf16.msra.mxu0 %v7615_v49  ;;  %v7622_v14 = vld [vmem:[%s9662_s1 + $0x218] sm:$0xff]   ;;  %v7633_v49 = vld [vmem:[%s9662_s1 + $0x268] sm:$0xff]   ;;  %v7636_v26 = vld [vmem:[%s9662_s1 + $0x2a0] sm:$0xff]  }
 0x227   : >> { %6956 = vmatpush3.bf16.msra.mxu1 %v7616_v61  ;;  %v2731_v16 = vpop.f32.mrf.mxu0  ;;  %6937 = vmatprep.subr.bf16.mxu0 %v7617_v41  ;;  %v7635_v61 = vld [vmem:[%s9662_s1 + $0x260] sm:$0xff]  }
 0x228   : >> { %v2873_v15 = vadd.f32 %v6692_v1, %v2746_v7  ;;  %v2744_v10 = vadd.f32 %v2731_v16, %v8998_v33  ;;  %6957 = vmatprep.subr.bf16.mxu1 %v7618_v35  ;;  %v2858_v36 = vpop.f32.mrf.mxu1  ;;  %v7626_v33 = vld [vmem:[%s9662_s1 + $0x208] sm:$0xff]   ;;  %v7638_v7 = vld [vmem:[%s9662_s1 + $0x298] sm:$0xff]   ;;  %v7639_v1 = vld [vmem:[%s9662_s1 + $0x250] sm:$0xff]  }
 0x229   : >> { %v7640_v16 = vld [vmem:[%s9662_s1 + $0x290] sm:$0xff]  }
 0x22a   : >> { %v9053_v47 = vadd.f32 %v2858_v36, %v2744_v10  ;;  %6938 = vmatpush3.bf16.msra.mxu0 %v7617_v41  ;;  %v7641_v41 = vld [vmem:[%s9662_s1 + $0x248] sm:$0xff]   ;;  %v7643_v10 = vld [vmem:[%s9662_s1 + $0x240] sm:$0xff]   ;;  %v7645_v36 = vld [vmem:[%s9662_s1 + $0x2f8] sm:$0xff]  }
 0x22b   : >> { %6958 = vmatpush3.bf16.msra.mxu1 %v7618_v35  ;;  %6939 = vmatprep.subr.bf16.mxu0 %v7619_v53  ;;  %v7644_v35 = vld [vmem:[%s9662_s1 + $0x280] sm:$0xff]  }
 0x22c   : >> { %6959 = vmatprep.subr.bf16.mxu1 %v7620_v2 }
 0x22e   : >> { %6940 = vmatpush3.bf16.msra.mxu0 %v7619_v53 }
 0x22f   : >> { %6960 = vmatpush3.bf16.msra.mxu1 %v7620_v2  ;;  %6941 = vmatprep.subr.bf16.mxu0 %v7621_v44 }
 0x230   : >> { %6961 = vmatprep.subr.bf16.mxu1 %v7622_v14 }
 0x232   : >> { %6942 = vmatpush3.bf16.msra.mxu0 %v7621_v44 }
 0x233   : >> { %6962 = vmatpush3.bf16.msra.mxu1 %v7622_v14  ;;  %6943 = vmatprep.subr.bf16.mxu0 %v7623_v12 }
 0x234   : >> { %6963 = vmatprep.subr.bf16.mxu1 %v7624_v32 }
 0x236   : >> { %6944 = vmatpush3.bf16.msra.mxu0 %v7623_v12  ;;  %v7647_v12 = vld [vmem:[%s9662_s1 + $0x2f0] sm:$0xff]  }
 0x237   : >> { %6964 = vmatpush3.bf16.msra.mxu1 %v7624_v32  ;;  %6945 = vmatprep.subr.bf16.mxu0 %v7625_v54 }
 0x238   : >> { %6965 = vmatprep.subr.bf16.mxu1 %v7626_v33 }
 0x23a   : >> { %6946 = vmatpush3.bf16.msra.mxu0 %v7625_v54 }
 0x23b   : >> { %6966 = vmatpush3.bf16.msra.mxu1 %v7626_v33  ;;  %6947 = vmatprep.subr.bf16.mxu0 %v7627_v48 }
 0x23c   : >> { %6967 = vmatprep.subr.bf16.mxu1 %v7628_v19 }
 0x23e   : >> { %6948 = vmatpush3.bf16.msra.mxu0 %v7627_v48  ;;  %v7648_v48 = vld [vmem:[%s9662_s1 + $0x330] sm:$0xff]  }
 0x23f   : >> { %6968 = vmatpush3.bf16.msra.mxu1 %v7628_v19  ;;  %6973 = vmatprep.subr.bf16.mxu0 %v7629_v20 }
 0x240   : >> { %6993 = vmatprep.subr.bf16.mxu1 %v7630_v17 }
 0x241   : >> { %v6711_v24 = vpop.f32.mrf.mxu0  ;;  %6950 = vmatmul.mubr.bf16.vlgmr.msra.gmra.mxu0 %v8296_v25 }
 0x242   : >> { %v3010_v62 = vadd.f32 %v6711_v24, %v2872_v9  ;;  %v6731_v5 = vpop.f32.mrf.mxu1  ;;  %6970 = vmatmul.mubr.bf16.vlgmr.msra.gmra.mxu1 %v8304_v30  ;;  %6974 = vmatpush3.bf16.msra.mxu0 %v7629_v20  ;;  %v7649_v24 = vld [vmem:[%s9662_s1 + $0x2e8] sm:$0xff]  }
 0x243   : >> { %6994 = vmatpush3.bf16.msra.mxu1 %v7630_v17  ;;  %v2993_v51 = vpop.f32.mrf.mxu0  ;;  %6975 = vmatprep.subr.bf16.mxu0 %v7631_v50 }
 0x244   : >> { %v3149_v55 = vadd.f32 %v6731_v5, %v3010_v62  ;;  %v3008_v56 = vadd.f32 %v2993_v51, %v2870_v27  ;;  %v3132_v45 = vpop.f32.mrf.mxu1  ;;  %6995 = vmatprep.subr.bf16.mxu1 %v7632_v34  ;;  %6989 = vmatprep.mubr.bf16.mxu0 %v8384_v63  ;;  %v7634_v63 = vld [vmem:[%s9662_s1 + $0x2a8] sm:$0xff]   ;;  %v7637_v27 = vld [vmem:[%s9662_s1 + $0x258] sm:$0xff]  }
 0x245   : >> { %v6712_v25 = vpop.f32.mrf.mxu0  ;;  %7009 = vmatprep.mubr.bf16.mxu1 %v8387_v0 }
 0x246   : >> { %v3147_v30 = vadd.f32 %v3132_v45, %v3008_v56  ;;  %v3011_v52 = vadd.f32 %v6712_v25, %v2873_v15  ;;  %v6732_v39 = vpop.f32.mrf.mxu1  ;;  %6976 = vmatpush3.bf16.msra.mxu0 %v7631_v50  ;;  %v7642_v15 = vld [vmem:[%s9662_s1 + $0x288] sm:$0xff]   ;;  %v7651_v50 = vld [vmem:[%s9662_s1 + $0x2e0] sm:$0xff]   ;;  %v7653_v56 = vld [vmem:[%s9662_s1 + $0x2d8] sm:$0xff]  }
 0x247   : >> { %6996 = vmatpush3.bf16.msra.mxu1 %v7632_v34  ;;  %v2996_v23 = vpop.f32.mrf.mxu0  ;;  %6977 = vmatprep.subr.bf16.mxu0 %v7633_v49  ;;  %v7654_v45 = vld [vmem:[%s9662_s1 + $0x318] sm:$0xff]   ;;  %v7655_v34 = vld [vmem:[%s9662_s1 + $0x2d0] sm:$0xff]  }
 0x248   : >> { %v3150_v9 = vadd.f32 %v6732_v39, %v3011_v52  ;;  %v3009_v37 = vadd.f32 %v2996_v23, %v9053_v47  ;;  %6997 = vmatprep.subr.bf16.mxu1 %v7634_v63  ;;  %v3135_v0 = vpop.f32.mrf.mxu1  ;;  %v7646_v47 = vld [vmem:[%s9662_s1 + $0x338] sm:$0xff]   ;;  %v7656_v25 = vld [vmem:[%s9662_s1 + $0x310] sm:$0xff]   ;;  %v7658_v52 = vld [vmem:[%s9662_s1 + $0x308] sm:$0xff]  }
 0x249   : >> { %v7659_v39 = vld [vmem:[%s9662_s1 + $0x2c0] sm:$0xff]  }
 0x24a   : >> { %v9108_v43 = vadd.f32 %v3135_v0, %v3009_v37  ;;  %6978 = vmatpush3.bf16.msra.mxu0 %v7633_v49  ;;  %v7660_v23 = vld [vmem:[%s9662_s1 + $0x300] sm:$0xff]   ;;  %v7661_v49 = vld [vmem:[%s9662_s1 + $0x378] sm:$0xff]  }
 0x24b   : >> { %6998 = vmatpush3.bf16.msra.mxu1 %v7634_v63  ;;  %6979 = vmatprep.subr.bf16.mxu0 %v7635_v61 }
 0x24c   : >> { %6999 = vmatprep.subr.bf16.mxu1 %v7636_v26 }
 0x24e   : >> { %6980 = vmatpush3.bf16.msra.mxu0 %v7635_v61 }
 0x24f   : >> { %7000 = vmatpush3.bf16.msra.mxu1 %v7636_v26  ;;  %6981 = vmatprep.subr.bf16.mxu0 %v7637_v27  ;;  %v7664_v26 = vld [vmem:[%s9662_s1 + $0x3b0] sm:$0xff]  }
 0x250   : >> { %7001 = vmatprep.subr.bf16.mxu1 %v7638_v7 }
 0x252   : >> { %6982 = vmatpush3.bf16.msra.mxu0 %v7637_v27 }
 0x253   : >> { %7002 = vmatpush3.bf16.msra.mxu1 %v7638_v7  ;;  %6983 = vmatprep.subr.bf16.mxu0 %v7639_v1  ;;  %v7665_v7 = vld [vmem:[%s9662_s1 + $0x368] sm:$0xff]  }
 0x254   : >> { %7003 = vmatprep.subr.bf16.mxu1 %v7640_v16 }
 0x256   : >> { %6984 = vmatpush3.bf16.msra.mxu0 %v7639_v1 }
 0x257   : >> { %7004 = vmatpush3.bf16.msra.mxu1 %v7640_v16  ;;  %6985 = vmatprep.subr.bf16.mxu0 %v7641_v41  ;;  %v7666_v16 = vld [vmem:[%s9662_s1 + $0x3a8] sm:$0xff]  }
 0x258   : >> { %7005 = vmatprep.subr.bf16.mxu1 %v7642_v15 }
 0x25a   : >> { %6986 = vmatpush3.bf16.msra.mxu0 %v7641_v41  ;;  %v7669_v41 = vld [vmem:[%s9662_s1 + $0x358] sm:$0xff]  }
 0x25b   : >> { %7006 = vmatpush3.bf16.msra.mxu1 %v7642_v15  ;;  %6987 = vmatprep.subr.bf16.mxu0 %v7643_v10  ;;  %v7670_v15 = vld [vmem:[%s9662_s1 + $0x398] sm:$0xff]  }
 0x25c   : >> { %7007 = vmatprep.subr.bf16.mxu1 %v7644_v35 }
 0x25e   : >> { %6988 = vmatpush3.bf16.msra.mxu0 %v7643_v10  ;;  %v7671_v10 = vld [vmem:[%s9662_s1 + $0x350] sm:$0xff]  }
 0x25f   : >> { %7008 = vmatpush3.bf16.msra.mxu1 %v7644_v35  ;;  %7013 = vmatprep.subr.bf16.mxu0 %v7645_v36  ;;  %v7672_v35 = vld [vmem:[%s9662_s1 + $0x390] sm:$0xff]  }
 0x260   : >> { %7033 = vmatprep.subr.bf16.mxu1 %v7646_v47 }
 0x261   : >> { %v6751_v53 = vpop.f32.mrf.mxu0  ;;  %6990 = vmatmul.mubr.bf16.vlgmr.msra.gmra.mxu0 %v8369_v58 }
 0x262   : >> { %v3276_v2 = vadd.f32 %v6751_v53, %v3149_v55  ;;  %v6771_v44 = vpop.f32.mrf.mxu1  ;;  %7010 = vmatmul.mubr.bf16.vlgmr.msra.gmra.mxu1 %v8460_v57  ;;  %7014 = vmatpush3.bf16.msra.mxu0 %v7645_v36  ;;  %v7652_v55 = vld [vmem:[%s9662_s1 + $0x320] sm:$0xff]   ;;  %v7673_v36 = vld [vmem:[%s9662_s1 + $0x348] sm:$0xff]  }
 0x263   : >> { %7034 = vmatpush3.bf16.msra.mxu1 %v7646_v47  ;;  %v3259_v14 = vpop.f32.mrf.mxu0  ;;  %7015 = vmatprep.subr.bf16.mxu0 %v7647_v12  ;;  %v7674_v47 = vld [vmem:[%s9662_s1 + $0x388] sm:$0xff]   ;;  %v7675_v53 = vld [vmem:[%s9662_s1 + $0x340] sm:$0xff]  }
 0x264   : >> { %v3417_v32 = vadd.f32 %v6771_v44, %v3276_v2  ;;  %v3274_v54 = vadd.f32 %v3259_v14, %v3147_v30  ;;  %v3400_v33 = vpop.f32.mrf.mxu1  ;;  %7035 = vmatprep.subr.bf16.mxu1 %v7648_v48  ;;  %7029 = vmatprep.mubr.bf16.mxu0 %v8475_v3  ;;  %v7650_v3 = vld [vmem:[%s9662_s1 + $0x328] sm:$0xff]   ;;  %v7676_v2 = vld [vmem:[%s9662_s1 + $0x380] sm:$0xff]   ;;  %v7677_v44 = vld [vmem:[%s9662_s1 + $0x3f8] sm:$0xff]  }
 0x265   : >> { %v6752_v58 = vpop.f32.mrf.mxu0  ;;  %7049 = vmatprep.mubr.bf16.mxu1 %v8481_v6  ;;  %v7657_v30 = vld [vmem:[%s9662_s1 + $0x2c8] sm:$0xff]   ;;  %v7678_v14 = vld [vmem:[%s9662_s1 + $0x438] sm:$0xff]  }
 0x266   : >> { %v3415_v57 = vadd.f32 %v3400_v33, %v3274_v54  ;;  %v3277_v19 = vadd.f32 %v6752_v58, %v3150_v9  ;;  %v6772_v20 = vpop.f32.mrf.mxu1  ;;  %7016 = vmatpush3.bf16.msra.mxu0 %v7647_v12  ;;  %v7662_v9 = vld [vmem:[%s9662_s1 + $0x3b8] sm:$0xff]   ;;  %v7679_v12 = vld [vmem:[%s9662_s1 + $0x3f0] sm:$0xff]  }
 0x267   : >> { %7036 = vmatpush3.bf16.msra.mxu1 %v7648_v48  ;;  %v3262_v17 = vpop.f32.mrf.mxu0  ;;  %7017 = vmatprep.subr.bf16.mxu0 %v7649_v24  ;;  %v7685_v54 = vld [vmem:[%s9662_s1 + $0x3d8] sm:$0xff]   ;;  %v7687_v48 = vld [vmem:[%s9662_s1 + $0x3d0] sm:$0xff]  }
 0x268   : >> { %v3418_v62 = vadd.f32 %v6772_v20, %v3277_v19  ;;  %v3275_v5 = vadd.f32 %v3262_v17, %v9108_v43  ;;  %7037 = vmatprep.subr.bf16.mxu1 %v7650_v3  ;;  %v3403_v6 = vpop.f32.mrf.mxu1  ;;  %v7663_v43 = vld [vmem:[%s9662_s1 + $0x370] sm:$0xff]   ;;  %v7686_v33 = vld [vmem:[%s9662_s1 + $0x418] sm:$0xff]   ;;  %v7690_v19 = vld [vmem:[%s9662_s1 + $0x408] sm:$0xff]  }
 0x269   : >> { %v7688_v58 = vld [vmem:[%s9662_s1 + $0x410] sm:$0xff]   ;;  %v7691_v20 = vld [vmem:[%s9662_s1 + $0x3c0] sm:$0xff]  }
 0x26a   : >> { %v3416_v51 = vadd.f32 %v3403_v6, %v3275_v5  ;;  %7018 = vmatpush3.bf16.msra.mxu0 %v7649_v24  ;;  %v7692_v17 = vld [vmem:[%s9662_s1 + $0x400] sm:$0xff]   ;;  %v7693_v24 = vld [vmem:[%s9662_s1 + $0x478] sm:$0xff]   ;;  %v7695_v5 = vld [vmem:[%s9662_s1 + $0x470] sm:$0xff]  }
 0x26b   : >> { %7038 = vmatpush3.bf16.msra.mxu1 %v7650_v3  ;;  %7019 = vmatprep.subr.bf16.mxu0 %v7651_v50  ;;  %v7696_v3 = vld [vmem:[%s9662_s1 + $0x4b0] sm:$0xff]   ;;  %v7701_v6 = vld [vmem:[%s9662_s1 + $0x458] sm:$0xff]  }
 0x26c   : >> { %7039 = vmatprep.subr.bf16.mxu1 %v7652_v55 }
 0x26e   : >> { %7020 = vmatpush3.bf16.msra.mxu0 %v7651_v50  ;;  %v7703_v50 = vld [vmem:[%s9662_s1 + $0x450] sm:$0xff]  }
 0x26f   : >> { %7040 = vmatpush3.bf16.msra.mxu1 %v7652_v55  ;;  %7021 = vmatprep.subr.bf16.mxu0 %v7653_v56  ;;  %v7704_v55 = vld [vmem:[%s9662_s1 + $0x490] sm:$0xff]  }
 0x270   : >> { %7041 = vmatprep.subr.bf16.mxu1 %v7654_v45 }
 0x272   : >> { %7022 = vmatpush3.bf16.msra.mxu0 %v7653_v56  ;;  %v7705_v56 = vld [vmem:[%s9662_s1 + $0x448] sm:$0xff]  }
 0x273   : >> { %7042 = vmatpush3.bf16.msra.mxu1 %v7654_v45  ;;  %7023 = vmatprep.subr.bf16.mxu0 %v7655_v34  ;;  %v7706_v45 = vld [vmem:[%s9662_s1 + $0x488] sm:$0xff]  }
 0x274   : >> { %7043 = vmatprep.subr.bf16.mxu1 %v7656_v25 }
 0x276   : >> { %7024 = vmatpush3.bf16.msra.mxu0 %v7655_v34  ;;  %v7707_v34 = vld [vmem:[%s9662_s1 + $0x440] sm:$0xff]  }
 0x277   : >> { %7044 = vmatpush3.bf16.msra.mxu1 %v7656_v25  ;;  %7025 = vmatprep.subr.bf16.mxu0 %v7657_v30  ;;  %v7708_v25 = vld [vmem:[%s9662_s1 + $0x480] sm:$0xff]  }
 0x278   : >> { %7045 = vmatprep.subr.bf16.mxu1 %v7658_v52 }
 0x27a   : >> { %7026 = vmatpush3.bf16.msra.mxu0 %v7657_v30  ;;  %v5763_v30 = vld [vmem:[%s7893_s26 + $0x50] sm:$0xf] }
 0x27b   : >> { %7046 = vmatpush3.bf16.msra.mxu1 %v7658_v52  ;;  %7027 = vmatprep.subr.bf16.mxu0 %v7659_v39  ;;  %v9359_v52 = vld [vmem:[%s7893_s26 + $0x54] sm:$0xf] }
 0x27c   : >> { %7047 = vmatprep.subr.bf16.mxu1 %v7660_v23 }
 0x27e   : >> { %7028 = vmatpush3.bf16.msra.mxu0 %v7659_v39  ;;  %v7709_v39 = vld [vmem:[%s9662_s1 + $0x4f8] sm:$0xff]  }
 0x27f   : >> { %7048 = vmatpush3.bf16.msra.mxu1 %v7660_v23  ;;  %7053 = vmatprep.subr.bf16.mxu0 %v7661_v49  ;;  %v7710_v23 = vld [vmem:[%s9662_s1 + $0x538] sm:$0xff]  }
 0x280   : >> { %7073 = vmatprep.subr.bf16.mxu1 %v7662_v9 }
 0x281   : >> { %v6791_v37 = vpop.f32.mrf.mxu0  ;;  %7030 = vmatmul.mubr.bf16.vlgmr.msra.gmra.mxu0 %v8546_v38 }
 0x282   : >> { %v9200_v63 = vadd.f32 %v6791_v37, %v3417_v32  ;;  %7050 = vmatmul.mubr.bf16.vlgmr.msra.gmra.mxu1 %v8464_v29  ;;  %7054 = vmatpush3.bf16.msra.mxu0 %v7661_v49  ;;  %v7680_v32 = vld [vmem:[%s9662_s1 + $0x430] sm:$0xff]   ;;  %v5767_v49 = vcombine.low %v5763_v30, %v9359_v52 }
 0x283   : >> { %7074 = vmatpush3.bf16.msra.mxu1 %v7662_v9  ;;  %v3527_v0 = vpop.f32.mrf.mxu0  ;;  %7055 = vmatprep.subr.bf16.mxu0 %v7663_v43  ;;  %v7711_v9 = vld [vmem:[%s9662_s1 + $0x4f0] sm:$0xff]  }
 0x284   : >> { %9666 = vst [vmem:[#allocation6_spill] sm:$0xff] %v9200_v63  ;;  %v9206_v61 = vadd.f32 %v3527_v0, %v3415_v57  ;;  %7075 = vmatprep.subr.bf16.mxu1 %v7664_v26  ;;  %7069 = vmatprep.mubr.bf16.mxu0 %v8561_v28  ;;  %v7667_v28 = vld [vmem:[%s9662_s1 + $0x360] sm:$0xff]   ;;  %v7689_v57 = vld [vmem:[%s9662_s1 + $0x3c8] sm:$0xff]   ;;  %v7712_v37 = vld [vmem:[%s9662_s1 + $0x530] sm:$0xff]  }
 0x285   : >> { %v6792_v38 = vpop.f32.mrf.mxu0  ;;  %7089 = vmatprep.mubr.bf16.mxu1 %v8567_v11  ;;  %v7668_v11 = vld [vmem:[%s9662_s1 + $0x3a0] sm:$0xff]  }
 0x286   : >> { %9667 = vst [vmem:[#allocation7_spill] sm:$0xff] %v9206_v61  ;;  %v9213_v29 = vadd.f32 %v6792_v38, %v3418_v62  ;;  %7056 = vmatpush3.bf16.msra.mxu0 %v7663_v43  ;;  %v7694_v62 = vld [vmem:[%s9662_s1 + $0x4b8] sm:$0xff]   ;;  %v7716_v0 = vld [vmem:[%s9662_s1 + $0x520] sm:$0xff]  }
 0x287   : >> { %7076 = vmatpush3.bf16.msra.mxu1 %v7664_v26  ;;  %v3530_v27 = vpop.f32.mrf.mxu0  ;;  %7057 = vmatprep.subr.bf16.mxu0 %v7665_v7  ;;  %v7717_v43 = vld [vmem:[%s9662_s1 + $0x4d8] sm:$0xff]  }
 0x288   : >> { %9668 = vst [vmem:[#allocation8_spill] sm:$0xff] %v9213_v29  ;;  %v9218_v1 = vadd.f32 %v3530_v27, %v3416_v51  ;;  %7077 = vmatprep.subr.bf16.mxu1 %v7666_v16  ;;  %v7702_v51 = vld [vmem:[%s9662_s1 + $0x498] sm:$0xff]   ;;  %v7719_v27 = vld [vmem:[%s9662_s1 + $0x4d0] sm:$0xff]  }
 0x289   : >> { %v7718_v26 = vld [vmem:[%s9662_s1 + $0x518] sm:$0xff]  }
 0x28a   : >> { %9669 = vst [vmem:[#allocation9_spill] sm:$0xff] %v9218_v1  ;;  %7058 = vmatpush3.bf16.msra.mxu0 %v7665_v7  ;;  %v5769_v38 = vld [vmem:[%s7893_s26 + $0x5c] sm:$0x7]  ;;  %v7720_v7 = vld [vmem:[%s9662_s1 + $0x510] sm:$0xff]  }
 0x28b   : >> { %7078 = vmatpush3.bf16.msra.mxu1 %v7666_v16  ;;  %7059 = vmatprep.subr.bf16.mxu0 %v7667_v28  ;;  %v9403_v16 = vld [vmem:[%s7893_s26 + $0x58] sm:$0xf] }
 0x28c   : >> { %7079 = vmatprep.subr.bf16.mxu1 %v7668_v11 }
 0x28e   : >> { %7060 = vmatpush3.bf16.msra.mxu0 %v7667_v28  ;;  %v4693_v28 = vshll.u32 %v5767_v49, 16 }
 0x28f   : >> { %7080 = vmatpush3.bf16.msra.mxu1 %v7668_v11  ;;  %7061 = vmatprep.subr.bf16.mxu0 %v7669_v41  ;;  %v9406_v11 = vcombine.low %v9403_v16, %v5769_v38 }
 0x290   : >> { %7081 = vmatprep.subr.bf16.mxu1 %v7670_v15 }
 0x292   : >> { %7062 = vmatpush3.bf16.msra.mxu0 %v7669_v41  ;;  %v7721_v41 = vld [vmem:[%s9662_s1 + $0x4c8] sm:$0xff]  }
 0x293   : >> { %7082 = vmatpush3.bf16.msra.mxu1 %v7670_v15  ;;  %7063 = vmatprep.subr.bf16.mxu0 %v7671_v10  ;;  %v5771_v15 = vld [vmem:[%s7893_s26 + $0x50] sm:$0xe] }
 0x294   : >> { %7083 = vmatprep.subr.bf16.mxu1 %v7672_v35 }
 0x296   : >> { %7064 = vmatpush3.bf16.msra.mxu0 %v7671_v10  ;;  %v7722_v10 = vld [vmem:[%s9662_s1 + $0x508] sm:$0xff]  }
 0x297   : >> { %7084 = vmatpush3.bf16.msra.mxu1 %v7672_v35  ;;  %7065 = vmatprep.subr.bf16.mxu0 %v7673_v36  ;;  %v4691_v35 = vshrl.u32 %v5767_v49, 16 }
 0x298   : >> { %7085 = vmatprep.subr.bf16.mxu1 %v7674_v47 }
 0x29a   : >> { %7066 = vmatpush3.bf16.msra.mxu0 %v7673_v36  ;;  %v4695_v36 = vrot.slane %v4693_v28, 1  ;;  %v7746_v28 = vld [vmem:[%s9662_s1 + $0x628] sm:$0xff]  }
 0x29b   : >> { %7086 = vmatpush3.bf16.msra.mxu1 %v7674_v47  ;;  %7067 = vmatprep.subr.bf16.mxu0 %v7675_v53  ;;  %v4698_v47 = vshll.u32 %v9406_v11, 16 }
 0x29c   : >> { %7087 = vmatprep.subr.bf16.mxu1 %v7676_v2 }
 0x29e   : >> { %7068 = vmatpush3.bf16.msra.mxu0 %v7675_v53  ;;  %v9417_v53 = vcombine.low %v5771_v15, %v9359_v52  ;;  %v7749_v15 = vld [vmem:[%s9662_s1 + $0x5d8] sm:$0xff]  }
 0x29f   : >> { %7088 = vmatpush3.bf16.msra.mxu1 %v7676_v2  ;;  %7093 = vmatprep.subr.bf16.mxu0 %v7677_v44  ;;  %v7723_v2 = vld [vmem:[%s9662_s1 + $0x4c0] sm:$0xff]  }
 0x2a0   : >> { %7113 = vmatprep.subr.bf16.mxu1 %v7678_v14 }
 0x2a1   : >> { %7070 = vmatmul.mubr.bf16.vlgmr.msra.gmra.mxu0 %v8548_v18  ;;  %v7681_v18 = vld [vmem:[%s9662_s1 + $0x3e8] sm:$0xff]  }
 0x2a2   : >> { %7090 = vmatmul.mubr.bf16.vlgmr.msra.gmra.mxu1 %v8550_v60  ;;  %7094 = vmatpush3.bf16.msra.mxu0 %v7677_v44  ;;  %v7682_v60 = vld [vmem:[%s9662_s1 + $0x428] sm:$0xff]   ;;  %v5766_v44 = vld [vmem:[%s7893_s26 + $0x5c] sm:$0x3] }
 0x2a3   : >> { %7114 = vmatpush3.bf16.msra.mxu1 %v7678_v14  ;;  %7095 = vmatprep.subr.bf16.mxu0 %v7679_v12  ;;  %v7724_v14 = vld [vmem:[%s9662_s1 + $0x500] sm:$0xff]  }
 0x2a4   : >> { %7115 = vmatprep.subr.bf16.mxu1 %v7680_v32  ;;  %7109 = vmatprep.mubr.bf16.mxu0 %v8611_v8  ;;  %v7683_v8 = vld [vmem:[%s9662_s1 + $0x3e0] sm:$0xff]  }
 0x2a5   : >> { %7129 = vmatprep.mubr.bf16.mxu1 %v8654_v59  ;;  %v7684_v59 = vld [vmem:[%s9662_s1 + $0x420] sm:$0xff]  }
 0x2a6   : >> { %7096 = vmatpush3.bf16.msra.mxu0 %v7679_v12  ;;  %v4696_v12 = vor.u32 %v4695_v36, %v4691_v35  ;;  %v7751_v35 = vld [vmem:[%s9662_s1 + $0x5d0] sm:$0xff]  }
 0x2a7   : >> { %7116 = vmatpush3.bf16.msra.mxu1 %v7680_v32  ;;  %7097 = vmatprep.subr.bf16.mxu0 %v7681_v18  ;;  %v9426_v32 = vrot.slane %v4698_v47, 1  ;;  %v7752_v36 = vld [vmem:[%s9662_s1 + $0x610] sm:$0xff]   ;;  %v7753_v47 = vld [vmem:[%s9662_s1 + $0x5c8] sm:$0xff]  }
 0x2a8   : >> { %7117 = vmatprep.subr.bf16.mxu1 %v7682_v60 }
 0x2aa   : >> { %7098 = vmatpush3.bf16.msra.mxu0 %v7681_v18  ;;  %v5768_v18 = vcombine.low %v9403_v16, %v5766_v44  ;;  %v7756_v44 = vld [vmem:[%s9662_s1 + $0x600] sm:$0xff]  }
 0x2ab   : >> { %7118 = vmatpush3.bf16.msra.mxu1 %v7682_v60  ;;  %7099 = vmatprep.subr.bf16.mxu0 %v7683_v8  ;;  %v4764_v60 = vrot.slane %v9417_v53, 1 }
 0x2ac   : >> { %7119 = vmatprep.subr.bf16.mxu1 %v7684_v59 }
 0x2ae   : >> { %7100 = vmatpush3.bf16.msra.mxu0 %v7683_v8  ;;  %v4765_v8 = vrot.slane %v9406_v11, 1 }
 0x2af   : >> { %7120 = vmatpush3.bf16.msra.mxu1 %v7684_v59  ;;  %7101 = vmatprep.subr.bf16.mxu0 %v7685_v54  ;;  %v7725_v59 = vld [vmem:[%s9662_s1 + $0x578] sm:$0xff]  }
 0x2b0   : >> { %7121 = vmatprep.subr.bf16.mxu1 %v7686_v33 }
 0x2b2   : >> { %7102 = vmatpush3.bf16.msra.mxu0 %v7685_v54  ;;  %v7726_v54 = vld [vmem:[%s9662_s1 + $0x5b8] sm:$0xff]  }
 0x2b3   : >> { %7122 = vmatpush3.bf16.msra.mxu1 %v7686_v33  ;;  %7103 = vmatprep.subr.bf16.mxu0 %v7687_v48  ;;  %v4701_v33 = vsel %vm243_vm0, %v4696_v12, %v9426_v32 }
 0x2b4   : >> { %7123 = vmatprep.subr.bf16.mxu1 %v7688_v58 }
 0x2b6   : >> { %7104 = vmatpush3.bf16.msra.mxu0 %v7687_v48  ;;  %v4766_v48 = vsel %vm481_vm1, %v4764_v60, %v4765_v8  ;;  %v6831_v60 = vpop.f32.mrf.mxu0 }
 0x2b7   : >> { %7124 = vmatpush3.bf16.msra.mxu1 %v7688_v58  ;;  %7105 = vmatprep.subr.bf16.mxu0 %v7689_v57  ;;  %v7727_v58 = vld [vmem:[%s9662_s1 + $0x570] sm:$0xff]  }
 0x2b8   : >> { %7125 = vmatprep.subr.bf16.mxu1 %v7690_v19 }
 0x2ba   : >> { %7106 = vmatpush3.bf16.msra.mxu0 %v7689_v57  ;;  %v7728_v57 = vld [vmem:[%s9662_s1 + $0x5b0] sm:$0xff]  }
 0x2bb   : >> { %7126 = vmatpush3.bf16.msra.mxu1 %v7690_v19  ;;  %7107 = vmatprep.subr.bf16.mxu0 %v7691_v20  ;;  %v7730_v19 = vld [vmem:[%s9662_s1 + $0x5a8] sm:$0xff]  }
 0x2bc   : >> { %7127 = vmatprep.subr.bf16.mxu1 %v7692_v17 }
 0x2be   : >> { %7108 = vmatpush3.bf16.msra.mxu0 %v7691_v20  ;;  %v7731_v20 = vld [vmem:[%s9662_s1 + $0x560] sm:$0xff]  }
 0x2bf   : >> { %7128 = vmatpush3.bf16.msra.mxu1 %v7692_v17  ;;  %7133 = vmatprep.subr.bf16.mxu0 %v7693_v24  ;;  %v7732_v17 = vld [vmem:[%s9662_s1 + $0x5a0] sm:$0xff]  }
 0x2c0   : >> { %7153 = vmatprep.subr.bf16.mxu1 %v7694_v62 }
 0x2c1   : >> { %7110 = vmatmul.mubr.bf16.vlgmr.msra.gmra.mxu0 %v8722_v31  ;;  %v7697_v31 = vld [vmem:[%s9662_s1 + $0x468] sm:$0xff]  }
 0x2c2   : >> { %7130 = vmatmul.mubr.bf16.vlgmr.msra.gmra.mxu1 %v8728_v21  ;;  %7134 = vmatpush3.bf16.msra.mxu0 %v7693_v24  ;;  %v7698_v21 = vld [vmem:[%s9662_s1 + $0x4a8] sm:$0xff]   ;;  %v5773_v24 = vld [vmem:[%s7893_s26 + $0x5c] sm:$0xf] }
 0x2c3   : >> { %7154 = vmatpush3.bf16.msra.mxu1 %v7694_v62  ;;  %7135 = vmatprep.subr.bf16.mxu0 %v7695_v5  ;;  %v7733_v62 = vld [vmem:[%s9662_s1 + $0x558] sm:$0xff]  }
 0x2c4   : >> { %7155 = vmatprep.subr.bf16.mxu1 %v7696_v3  ;;  %7149 = vmatprep.mubr.bf16.mxu0 %v8741_v46  ;;  %v7699_v46 = vld [vmem:[%s9662_s1 + $0x460] sm:$0xff]  }
 0x2c5   : >> { %7169 = vmatprep.mubr.bf16.mxu1 %v8747_v22  ;;  %v7700_v22 = vld [vmem:[%s9662_s1 + $0x4a0] sm:$0xff]  }
 0x2c6   : >> { %7136 = vmatpush3.bf16.msra.mxu0 %v7695_v5  ;;  %v7734_v5 = vld [vmem:[%s9662_s1 + $0x598] sm:$0xff]  }
 0x2c7   : >> { %7156 = vmatpush3.bf16.msra.mxu1 %v7696_v3  ;;  %7137 = vmatprep.subr.bf16.mxu0 %v7697_v31  ;;  %v9469_v3 = vcombine.low %v9403_v16, %v5773_v24  ;;  %v7745_v16 = vld [vmem:[%s9662_s1 + $0x5e8] sm:$0xff]  }
 0x2c8   : >> { %7157 = vmatprep.subr.bf16.mxu1 %v7698_v21 }
 0x2ca   : >> { %7138 = vmatpush3.bf16.msra.mxu0 %v7697_v31  ;;  %v7735_v31 = vld [vmem:[%s9662_s1 + $0x550] sm:$0xff]  }
 0x2cb   : >> { %7158 = vmatpush3.bf16.msra.mxu1 %v7698_v21  ;;  %7139 = vmatprep.subr.bf16.mxu0 %v7699_v46  ;;  %v7736_v21 = vld [vmem:[%s9662_s1 + $0x590] sm:$0xff]  }
 0x2cc   : >> { %7159 = vmatprep.subr.bf16.mxu1 %v7700_v22 }
 0x2ce   : >> { %7140 = vmatpush3.bf16.msra.mxu0 %v7699_v46  ;;  %v4827_v46 = vshrl.u32 %v9417_v53, 16 }
 0x2cf   : >> { %7160 = vmatpush3.bf16.msra.mxu1 %v7700_v22  ;;  %7141 = vmatprep.subr.bf16.mxu0 %v7701_v6  ;;  %v4830_v22 = vshll.u32 %v9417_v53, 16  ;;  %v7754_v53 = vld [vmem:[%s9662_s1 + $0x608] sm:$0xff]  }
 0x2d0   : >> { %7161 = vmatprep.subr.bf16.mxu1 %v7702_v51 }
 0x2d2   : >> { %7142 = vmatpush3.bf16.msra.mxu0 %v7701_v6  ;;  %v4835_v6 = vshrl.u32 %v9469_v3, 16 }
 0x2d3   : >> { %7162 = vmatpush3.bf16.msra.mxu1 %v7702_v51  ;;  %7143 = vmatprep.subr.bf16.mxu0 %v7703_v50  ;;  %v4838_v51 = vshll.u32 %v9469_v3, 16 }
 0x2d4   : >> { %7163 = vmatprep.subr.bf16.mxu1 %v7704_v55  ;;  %v4837_v30 = vrot.slane %v4835_v6, 1 }
 0x2d6   : >> { %7144 = vmatpush3.bf16.msra.mxu0 %v7703_v50  ;;  %v7737_v50 = vld [vmem:[%s9662_s1 + $0x548] sm:$0xff]  }
 0x2d7   : >> { %7164 = vmatpush3.bf16.msra.mxu1 %v7704_v55  ;;  %7145 = vmatprep.subr.bf16.mxu0 %v7705_v56  ;;  %v5775_v55 = vld [vmem:[%s7893_s26 + $0x50] sm:$0xc] }
 0x2d8   : >> { %7165 = vmatprep.subr.bf16.mxu1 %v7706_v45 }
 0x2da   : >> { %7146 = vmatpush3.bf16.msra.mxu0 %v7705_v56  ;;  %v7738_v56 = vld [vmem:[%s9662_s1 + $0x588] sm:$0xff]  }
 0x2db   : >> { %7166 = vmatpush3.bf16.msra.mxu1 %v7706_v45  ;;  %7147 = vmatprep.subr.bf16.mxu0 %v7707_v34  ;;  %v4702_v45 = vshrl.u32 %v9406_v11, 16  ;;  %v7747_v11 = vld [vmem:[%s9662_s1 + $0x5e0] sm:$0xff]  }
 0x2dc   : >> { %7167 = vmatprep.subr.bf16.mxu1 %v7708_v25 }
 0x2de   : >> { %7148 = vmatpush3.bf16.msra.mxu0 %v7707_v34  ;;  %v4829_v34 = vrot.slane %v4827_v46, 1 }
 0x2df   : >> { %7168 = vmatpush3.bf16.msra.mxu1 %v7708_v25  ;;  %7173 = vmatprep.subr.bf16.mxu0 %v7709_v39  ;;  %v4832_v25 = vrot.slane %v4830_v22, 2 }
 0x2e0   : >> { %7193 = vmatprep.subr.bf16.mxu1 %v7710_v23 }
 0x2e1   : >> { %7150 = vmatmul.mubr.bf16.vlgmr.msra.gmra.mxu0 %v8725_v40  ;;  %v7713_v40 = vld [vmem:[%s9662_s1 + $0x4e8] sm:$0xff]  }
 0x2e2   : >> { %7170 = vmatmul.mubr.bf16.vlgmr.msra.gmra.mxu1 %v8730_v13  ;;  %7174 = vmatpush3.bf16.msra.mxu0 %v7709_v39  ;;  %v7714_v13 = vld [vmem:[%s9662_s1 + $0x528] sm:$0xff]   ;;  %v4840_v39 = vrot.slane %v4838_v51, 2 }
 0x2e3   : >> { %7194 = vmatpush3.bf16.msra.mxu1 %v7710_v23  ;;  %7175 = vmatprep.subr.bf16.mxu0 %v7711_v9  ;;  %v5776_v23 = vcombine.low %v5775_v55, %v9359_v52  ;;  %v7741_v52 = vld [vmem:[%s9662_s1 + $0x5f8] sm:$0xff]  }
 0x2e4   : >> { %7195 = vmatprep.subr.bf16.mxu1 %v7712_v37  ;;  %7189 = vmatprep.mubr.bf16.mxu0 %v8815_v42  ;;  %v7715_v42 = vld [vmem:[%s9662_s1 + $0x4e0] sm:$0xff]  }
 0x2e5   : >> { %7209 = vmatprep.mubr.bf16.mxu1 %v5767_v49  ;;  %v7739_v49 = vld [vmem:[%s9662_s1 + $0x540] sm:$0xff]  }
 0x2e6   : >> { %7176 = vmatpush3.bf16.msra.mxu0 %v7711_v9  ;;  %v7740_v9 = vld [vmem:[%s9662_s1 + $0x580] sm:$0xff]  }
 0x2e7   : >> { %7196 = vmatpush3.bf16.msra.mxu1 %v7712_v37  ;;  %7177 = vmatprep.subr.bf16.mxu0 %v7713_v40  ;;  %v4704_v37 = vor.u32 %v4702_v45, %v9426_v32 }
 0x2e8   : >> { %7197 = vmatprep.subr.bf16.mxu1 %v7714_v13 }
 0x2ea   : >> { %7178 = vmatpush3.bf16.msra.mxu0 %v7713_v40  ;;  %v4833_v40 = vor.u32 %v4832_v25, %v4829_v34 }
 0x2eb   : >> { %7198 = vmatpush3.bf16.msra.mxu1 %v7714_v13  ;;  %7179 = vmatprep.subr.bf16.mxu0 %v7715_v42  ;;  %v4841_v13 = vor.u32 %v4840_v39, %v4837_v30 }
 0x2ec   : >> { %7199 = vmatprep.subr.bf16.mxu1 %v7716_v0 }
 0x2ee   : >> { %7180 = vmatpush3.bf16.msra.mxu0 %v7715_v42  ;;  %v4902_v42 = vrot.slane %v5776_v23, 2 }
 0x2ef   : >> { %7200 = vmatpush3.bf16.msra.mxu1 %v7716_v0  ;;  %7181 = vmatprep.subr.bf16.mxu0 %v7717_v43  ;;  %v4903_v0 = vrot.slane %v9469_v3, 2 }
 0x2f0   : >> { %7201 = vmatprep.subr.bf16.mxu1 %v7718_v26 }
 0x2f1   : >> { %v4904_v38 = vsel %vm751_vm3, %v4902_v42, %v4903_v0 }
 0x2f2   : >> { %7182 = vmatpush3.bf16.msra.mxu0 %v7717_v43  ;;  %v7742_v43 = vld [vmem:[%s9662_s1 + $0x638] sm:$0xff]  }
 0x2f3   : >> { %7202 = vmatpush3.bf16.msra.mxu1 %v7718_v26  ;;  %7183 = vmatprep.subr.bf16.mxu0 %v7719_v27  ;;  %v4842_v26 = vsel %vm609_vm2, %v4833_v40, %v4841_v13 }
 0x2f4   : >> { %7203 = vmatprep.subr.bf16.mxu1 %v7720_v7 }
 0x2f6   : >> { %7184 = vmatpush3.bf16.msra.mxu0 %v7719_v27  ;;  %v7743_v27 = vld [vmem:[%s9662_s1 + $0x5f0] sm:$0xff]  }
 0x2f7   : >> { %7204 = vmatpush3.bf16.msra.mxu1 %v7720_v7  ;;  %7185 = vmatprep.subr.bf16.mxu0 %v7721_v41  ;;  %v7744_v7 = vld [vmem:[%s9662_s1 + $0x630] sm:$0xff]  }
 0x2f8   : >> { %7205 = vmatprep.subr.bf16.mxu1 %v7722_v10 }
 0x2fa   : >> { %7186 = vmatpush3.bf16.msra.mxu0 %v7721_v41  ;;  %v7748_v41 = vld [vmem:[%s9662_s1 + $0x620] sm:$0xff]  }
 0x2fb   : >> { %7206 = vmatpush3.bf16.msra.mxu1 %v7722_v10  ;;  %7187 = vmatprep.subr.bf16.mxu0 %v7723_v2  ;;  %v7750_v10 = vld [vmem:[%s9662_s1 + $0x618] sm:$0xff]  }
 0x2fc   : >> { %7207 = vmatprep.subr.bf16.mxu1 %v7724_v14 }
 0x2fe   : >> { %7188 = vmatpush3.bf16.msra.mxu0 %v7723_v2  ;;  %v7755_v2 = vld [vmem:[%s9662_s1 + $0x5c0] sm:$0xff]  }
 0x2ff   : >> { %7208 = vmatpush3.bf16.msra.mxu1 %v7724_v14  ;;  %7213 = vmatprep.subr.bf16.mxu0 %v7725_v59  ;;  %v6811_v14 = vpop.f32.mrf.mxu1 }
 0x300   : >> { %7233 = vmatprep.subr.bf16.mxu1 %v7726_v54 }
 0x301   : >> { %7190 = vmatmul.mubr.bf16.vlgmr.msra.gmra.mxu0 %v8804_v4  ;;  %v7729_v4 = vld [vmem:[%s9662_s1 + $0x568] sm:$0xff]   ;;  %v3595_v12 = vpop.f32.mrf.mxu1 }
 0x302   : >> { %7210 = vmatmul.mubr.bf16.vlgmr.msra.gmra.mxu1 %v5768_v18  ;;  %7214 = vmatpush3.bf16.msra.mxu0 %v7725_v59  ;;  %v3644_v59 = vpop.f32.mrf.mxu0 }
 0x303   : >> { %7234 = vmatpush3.bf16.msra.mxu1 %v7726_v54  ;;  %7215 = vmatprep.subr.bf16.mxu0 %v7727_v58  ;;  %v6812_v32 = vpop.f32.mrf.mxu1 }
 0x304   : >> { %7235 = vmatprep.subr.bf16.mxu1 %v7728_v57  ;;  %7229 = vmatprep.mubr.bf16.mxu0 %v4701_v33  ;;  %v6832_v33 = vpop.f32.mrf.mxu0 }
 0x305   : >> { %7249 = vmatprep.mubr.bf16.mxu1 %v4766_v48  ;;  %v3598_v18 = vpop.f32.mrf.mxu1  ;;  %v3656_v1 = vadd.f32 %v6832_v33, %v6812_v32 }
 0x306   : >> { %7216 = vmatpush3.bf16.msra.mxu0 %v7727_v58  ;;  %v3647_v58 = vpop.f32.mrf.mxu0 }
 0x307   : >> { %7236 = vmatpush3.bf16.msra.mxu1 %v7728_v57  ;;  %7217 = vmatprep.subr.bf16.mxu0 %v7729_v4  ;;  %v3648_v63 = vadd.f32 %v3647_v58, %v3598_v18 }
 0x308   : >> { %7237 = vmatprep.subr.bf16.mxu1 %v7730_v19 }
 0x30a   : >> { %7218 = vmatpush3.bf16.msra.mxu0 %v7729_v4  ;;  %v6871_v4 = vpop.f32.mrf.mxu0 }
 0x30b   : >> { %7238 = vmatpush3.bf16.msra.mxu1 %v7730_v19  ;;  %7219 = vmatprep.subr.bf16.mxu0 %v7731_v20 }
 0x30c   : >> { %7239 = vmatprep.subr.bf16.mxu1 %v7732_v17 }
 0x30e   : >> { %7220 = vmatpush3.bf16.msra.mxu0 %v7731_v20  ;;  %v3746_v20 = vpop.f32.mrf.mxu0 }
 0x30f   : >> { %7240 = vmatpush3.bf16.msra.mxu1 %v7732_v17  ;;  %7221 = vmatprep.subr.bf16.mxu0 %v7733_v62 }
 0x310   : >> { %7241 = vmatprep.subr.bf16.mxu1 %v7734_v5  ;;  %v6872_v24 = vpop.f32.mrf.mxu0 }
 0x312   : >> { %7222 = vmatpush3.bf16.msra.mxu0 %v7733_v62 }
 0x313   : >> { %7242 = vmatpush3.bf16.msra.mxu1 %v7734_v5  ;;  %7223 = vmatprep.subr.bf16.mxu0 %v7735_v31  ;;  %v3749_v5 = vpop.f32.mrf.mxu0 }
 0x314   : >> { %7243 = vmatprep.subr.bf16.mxu1 %v7736_v21 }
 0x316   : >> { %7224 = vmatpush3.bf16.msra.mxu0 %v7735_v31  ;;  %v6911_v31 = vpop.f32.mrf.mxu0 }
 0x317   : >> { %7244 = vmatpush3.bf16.msra.mxu1 %v7736_v21  ;;  %7225 = vmatprep.subr.bf16.mxu0 %v7737_v50 }
 0x318   : >> { %7245 = vmatprep.subr.bf16.mxu1 %v7738_v56  ;;  %v3852_v46 = vpop.f32.mrf.mxu0 }
 0x31a   : >> { %7226 = vmatpush3.bf16.msra.mxu0 %v7737_v50  ;;  %v6912_v6 = vpop.f32.mrf.mxu0 }
 0x31b   : >> { %7246 = vmatpush3.bf16.msra.mxu1 %v7738_v56  ;;  %7227 = vmatprep.subr.bf16.mxu0 %v7739_v49 }
 0x31c   : >> { %7247 = vmatprep.subr.bf16.mxu1 %v7740_v9  ;;  %v3855_v50 = vpop.f32.mrf.mxu0 }
 0x31e   : >> { %7228 = vmatpush3.bf16.msra.mxu0 %v7739_v49  ;;  %v6951_v56 = vpop.f32.mrf.mxu0 }
 0x31f   : >> { %7248 = vmatpush3.bf16.msra.mxu1 %v7740_v9  ;;  %7253 = vmatprep.subr.bf16.mxu0 %v7741_v52 }
 0x320   : >> { %7273 = vmatprep.subr.bf16.mxu1 %v7742_v43  ;;  %v3958_v34 = vpop.f32.mrf.mxu0 }
 0x321   : >> { %7230 = vmatmul.mubr.bf16.vlgmr.msra.gmra.mxu0 %v4704_v37 }
 0x322   : >> { %7250 = vmatmul.mubr.bf16.vlgmr.msra.gmra.mxu1 %v4765_v8  ;;  %7254 = vmatpush3.bf16.msra.mxu0 %v7741_v52  ;;  %v6851_v8 = vpop.f32.mrf.mxu1  ;;  %v6952_v30 = vpop.f32.mrf.mxu0 }
 0x323   : >> { %7274 = vmatpush3.bf16.msra.mxu1 %v7742_v43  ;;  %7255 = vmatprep.subr.bf16.mxu0 %v7743_v27 }
 0x324   : >> { %7275 = vmatprep.subr.bf16.mxu1 %v7744_v7  ;;  %7269 = vmatprep.mubr.bf16.mxu0 %v4842_v26  ;;  %v3693_v54 = vpop.f32.mrf.mxu1  ;;  %v9560_v23 = vpop.f32.mrf.mxu0 }
 0x325   : >> { %7289 = vmatprep.mubr.bf16.mxu1 %v4904_v38 }
 0x326   : >> { %7256 = vmatpush3.bf16.msra.mxu0 %v7743_v27  ;;  %v6852_v48 = vpop.f32.mrf.mxu1  ;;  %v9564_v9 = vpop.f32.mrf.mxu0 }
 0x327   : >> { %7276 = vmatpush3.bf16.msra.mxu1 %v7744_v7  ;;  %7257 = vmatprep.subr.bf16.mxu0 %v7745_v16 }
 0x328   : >> { %7277 = vmatprep.subr.bf16.mxu1 %v7746_v28  ;;  %v3696_v57 = vpop.f32.mrf.mxu1  ;;  %v9568_v40 = vpop.f32.mrf.mxu0 }
 0x32a   : >> { %7258 = vmatpush3.bf16.msra.mxu0 %v7745_v16  ;;  %v6891_v19 = vpop.f32.mrf.mxu1  ;;  %v9572_v42 = vpop.f32.mrf.mxu0 }
 0x32b   : >> { %7278 = vmatpush3.bf16.msra.mxu1 %v7746_v28  ;;  %7259 = vmatprep.subr.bf16.mxu0 %v7747_v11 }
 0x32c   : >> { %7279 = vmatprep.subr.bf16.mxu1 %v7748_v41  ;;  %v3799_v17 = vpop.f32.mrf.mxu1  ;;  %v9576_v52 = vpop.f32.mrf.mxu0 }
 0x32e   : >> { %7260 = vmatpush3.bf16.msra.mxu0 %v7747_v11  ;;  %v6892_v62 = vpop.f32.mrf.mxu1 }
 0x32f   : >> { %7280 = vmatpush3.bf16.msra.mxu1 %v7748_v41  ;;  %7261 = vmatprep.subr.bf16.mxu0 %v7749_v15 }
 0x330   : >> { %7281 = vmatprep.subr.bf16.mxu1 %v7750_v10  ;;  %v3802_v3 = vpop.f32.mrf.mxu1 }
 0x332   : >> { %7262 = vmatpush3.bf16.msra.mxu0 %v7749_v15  ;;  %v6931_v21 = vpop.f32.mrf.mxu1 }
 0x333   : >> { %7282 = vmatpush3.bf16.msra.mxu1 %v7750_v10  ;;  %7263 = vmatprep.subr.bf16.mxu0 %v7751_v35 }
 0x334   : >> { %7283 = vmatprep.subr.bf16.mxu1 %v7752_v36  ;;  %v3905_v22 = vpop.f32.mrf.mxu1 }
 0x336   : >> { %7264 = vmatpush3.bf16.msra.mxu0 %v7751_v35  ;;  %v9550_v51 = vpop.f32.mrf.mxu1 }
 0x337   : >> { %7284 = vmatpush3.bf16.msra.mxu1 %v7752_v36  ;;  %7265 = vmatprep.subr.bf16.mxu0 %v7753_v47  ;;  %v3653_v36 = vadd.f32 %v6831_v60, %v6811_v14  ;;  %v3709_v14 = vadd.f32 %v3696_v57, %v3648_v63 }
 0x338   : >> { %7285 = vmatprep.subr.bf16.mxu1 %v7754_v53  ;;  %v9552_v55 = vpop.f32.mrf.mxu1 }
 0x339   : >> { %v3762_v32 = vadd.f32 %v3749_v5, %v3709_v14 }
 0x33a   : >> { %7266 = vmatpush3.bf16.msra.mxu0 %v7753_v47  ;;  %v9554_v45 = vpop.f32.mrf.mxu1 }
 0x33b   : >> { %7286 = vmatpush3.bf16.msra.mxu1 %v7754_v53  ;;  %7267 = vmatprep.subr.bf16.mxu0 %v7755_v2  ;;  %v3645_v53 = vadd.f32 %v3644_v59, %v3595_v12 }
 0x33c   : >> { %7287 = vmatprep.subr.bf16.mxu1 %v7756_v44  ;;  %v9556_v25 = vpop.f32.mrf.mxu1 }
 0x33d   : >> { %v3708_v61 = vadd.f32 %v3693_v54, %v3645_v53 }
 0x33e   : >> { %7268 = vmatpush3.bf16.msra.mxu0 %v7755_v2  ;;  %v9558_v39 = vpop.f32.mrf.mxu1 }
 0x33f   : >> { %7288 = vmatpush3.bf16.msra.mxu1 %v7756_v44  ;;  %v3710_v44 = vadd.f32 %v6851_v8, %v3653_v36 }
 0x340   : >> { %v9562_v49 = vpop.f32.mrf.mxu1 }
 0x341   : >> { %7270 = vmatmul.mubr.bf16.vlgmr.msra.gmra.mxu0 %v4841_v13  ;;  %v9580_v26 = vpop.f32.mrf.mxu0 }
 0x342   : >> { %7290 = vmatmul.mubr.bf16.vlgmr.msra.gmra.mxu1 %v4903_v0  ;;  %v9566_v37 = vpop.f32.mrf.mxu1 }
 0x343   : >> { %v9584_v27 = vpop.f32.mrf.mxu0 }
 0x344   : >> { %v9570_v13 = vpop.f32.mrf.mxu1 }
 0x345   : >> { %v9588_v16 = vpop.f32.mrf.mxu0 }
 0x346   : >> { %v9574_v0 = vpop.f32.mrf.mxu1 }
 0x347   : >> { %v9592_v11 = vpop.f32.mrf.mxu0 }
 0x348   : >> { %v9578_v43 = vpop.f32.mrf.mxu1  ;;  %9671 = vst [vmem:[#allocation11_spill] sm:$0xff] %v9592_v11  ;;  %v3761_v11 = vadd.f32 %v3746_v20, %v3708_v61 }
 0x34a   : >> { %v9582_v38 = vpop.f32.mrf.mxu1  ;;  %v3814_v8 = vadd.f32 %v3799_v17, %v3761_v11 }
 0x34c   : >> { %v9586_v7 = vpop.f32.mrf.mxu1  ;;  %v3867_v18 = vadd.f32 %v3852_v46, %v3814_v8 }
 0x34e   : >> { %v9590_v28 = vpop.f32.mrf.mxu1 }
 0x34f   : >> { %9670 = vst [vmem:[#allocation10_spill] sm:$0xff] %v9590_v28  ;;  %v3763_v28 = vadd.f32 %v6871_v4, %v3710_v44  ;;  %v3815_v4 = vadd.f32 %v3802_v3, %v3762_v32 }
 0x350   : >> { %v9594_v41 = vpop.f32.mrf.mxu1 }
 0x351   : >> { %9672 = vst [vmem:[#allocation12_spill] sm:$0xff] %v9594_v41  ;;  %v3816_v60 = vadd.f32 %v6891_v19, %v3763_v28  ;;  %v3868_v20 = vadd.f32 %v3855_v50, %v3815_v4 }
 0x353   : >> { %v3869_v33 = vadd.f32 %v6911_v31, %v3816_v60  ;;  %v3921_v17 = vadd.f32 %v9552_v55, %v3868_v20 }
 0x355   : >> { %v3922_v53 = vadd.f32 %v6931_v21, %v3869_v33  ;;  %v3974_v21 = vadd.f32 %v9560_v23, %v3921_v17 }
 0x356   : >> { %v9679_v8 = vld [vmem:[#allocation10_spill] sm:$0xff] }
 0x357   : >> { %v3975_v44 = vadd.f32 %v6951_v56, %v3922_v53  ;;  %v4027_v56 = vadd.f32 %v9562_v49, %v3974_v21 }
 0x361   : >> { %v9596_v15 = vpop.f32.mrf.mxu0 }
 0x362   : >> { %9673 = vst [vmem:[#allocation13_spill] sm:$0xff] %v9596_v15  ;;  %v9598_v10 = vpop.f32.mrf.mxu1  ;;  %v3711_v15 = vadd.f32 %v6852_v48, %v3656_v1  ;;  %v3920_v48 = vadd.f32 %v3905_v22, %v3867_v18 }
 0x363   : >> { %9674 = vst [vmem:[#allocation14_spill] sm:$0xff] %v9598_v10  ;;  %v9600_v35 = vpop.f32.mrf.mxu0 }
 0x364   : >> { %9675 = vst [vmem:[#allocation15_spill] sm:$0xff] %v9600_v35  ;;  %v9602_v47 = vpop.f32.mrf.mxu1  ;;  %v3764_v12 = vadd.f32 %v6872_v24, %v3711_v15  ;;  %v3973_v57 = vadd.f32 %v3958_v34, %v3920_v48  ;;  %v4028_v24 = vadd.f32 %v9554_v45, %v3975_v44 }
 0x365   : >> { %v9604_v2 = vpop.f32.mrf.mxu0 }
 0x366   : >> { %v9606_v29 = vpop.f32.mrf.mxu1  ;;  %v3817_v54 = vadd.f32 %v6892_v62, %v3764_v12  ;;  %v4026_v3 = vadd.f32 %v9556_v25, %v3973_v57  ;;  %v4081_v46 = vadd.f32 %v9564_v9, %v4028_v24  ;;  %v4080_v25 = vadd.f32 %v9576_v52, %v4027_v56 }
 0x367   : >> { %v9608_v41 = vpop.f32.mrf.mxu0 }
 0x368   : >> { %v9610_v10 = vpop.f32.mrf.mxu1  ;;  %v3870_v1 = vadd.f32 %v6912_v6, %v3817_v54  ;;  %v4134_v55 = vadd.f32 %v9566_v37, %v4081_v46  ;;  %v4133_v11 = vadd.f32 %v9578_v43, %v4080_v25  ;;  %v9681_v54 = vld [vmem:[#allocation12_spill] sm:$0xff] }
 0x369   : >> { %9676 = vst [vmem:[#allocation16_spill] sm:$0xff] %v9610_v10  ;;  %v9678_v52 = vld [vmem:[#allocation13_spill] sm:$0xff] }
 0x36a   : >> { %v3923_v63 = vadd.f32 %v9550_v51, %v3870_v1  ;;  %v4079_v51 = vadd.f32 %v9568_v40, %v4026_v3  ;;  %v4187_v23 = vadd.f32 %v9580_v26, %v4134_v55  ;;  %v9682_v18 = vld [vmem:[#allocation14_spill] sm:$0xff] }
 0x36b   : >> { %v9680_v32 = vld [vmem:[#allocation15_spill] sm:$0xff] }
 0x36c   : >> { %v3976_v5 = vadd.f32 %v6952_v30, %v3923_v63  ;;  %v4132_v30 = vadd.f32 %v9570_v13, %v4079_v51  ;;  %v4240_v49 = vadd.f32 %v9582_v38, %v4187_v23  ;;  %v9677_v13 = vld [vmem:[#allocation11_spill] sm:$0xff] }
 0x36d   : >> { %v4186_v14 = vadd.f32 %v9677_v13, %v4133_v11 }
 0x36e   : >> { %v4029_v6 = vadd.f32 %v9558_v39, %v3976_v5  ;;  %v4185_v39 = vadd.f32 %v9584_v27, %v4132_v30  ;;  %v4293_v60 = vadd.f32 %v9678_v52, %v4240_v49 }
 0x36f   : >> { %v4239_v43 = vadd.f32 %v9681_v54, %v4186_v14 }
 0x370   : >> { %v4082_v45 = vadd.f32 %v9572_v42, %v4029_v6  ;;  %v4238_v15 = vadd.f32 %v9586_v7, %v4185_v39  ;;  %v4346_v38 = vadd.f32 %v9682_v18, %v4293_v60  ;;  %v9683_v57 = vld [vmem:[#allocation16_spill] sm:$0xff] }
 0x371   : >> { %v4292_v53 = vadd.f32 %v9608_v41, %v4239_v43  ;;  %v9685_v43 = vld [vmem:[#allocation7_spill] sm:$0xff] }
 0x372   : >> { %v4135_v28 = vadd.f32 %v9574_v0, %v4082_v45  ;;  %v4291_v27 = vadd.f32 %v9680_v32, %v4238_v15 }
 0x373   : >> { %v4345_v17 = vadd.f32 %v9683_v57, %v4292_v53 }
 0x374   : >> { %v4188_v37 = vadd.f32 %v9588_v16, %v4135_v28  ;;  %v4344_v7 = vadd.f32 %v9602_v47, %v4291_v27 }
 0x376   : >> { %v4241_v0 = vadd.f32 %v9679_v8, %v4188_v37 }
 0x378   : >> { %v4294_v16 = vadd.f32 %v9604_v2, %v4241_v0 }
 0x37a   : >> { %v4347_v20 = vadd.f32 %v9606_v29, %v4294_v16 }
 0x381   : >> { %v9612_v35 = vpop.f32.mrf.mxu0 }
 0x382   : >> { %v9614_v59 = vpop.f32.mrf.mxu1  ;;  %v4399_v1 = vadd.f32 %v9612_v35, %v4346_v38 }
 0x383   : >> { %v4382_v36 = vpop.f32.mrf.mxu0 }
 0x384   : >> { %v4435_v58 = vpop.f32.mrf.mxu1  ;;  %v4397_v44 = vadd.f32 %v4382_v36, %v4344_v7  ;;  %v4452_v24 = vadd.f32 %v9614_v59, %v4399_v1 }
 0x385   : >> { %v7112_v61 = vpop.f32.mrf.mxu0 }
 0x386   : >> { %v7132_v10 = vpop.f32.mrf.mxu1  ;;  %v4400_v5 = vadd.f32 %v7112_v61, %v4347_v20  ;;  %v4450_v21 = vadd.f32 %v4435_v58, %v4397_v44  ;;  %v9686_v20 = vld [vmem:[#allocation8_spill] sm:$0xff] }
 0x387   : >> { %v4385_v19 = vpop.f32.mrf.mxu0 }
 0x388   : >> { %v4438_v62 = vpop.f32.mrf.mxu1  ;;  %v4398_v2 = vadd.f32 %v4385_v19, %v4345_v17  ;;  %v4453_v47 = vadd.f32 %v7132_v10, %v4400_v5 }
 0x38a   : >> { %v4451_v35 = vadd.f32 %v4438_v62, %v4398_v2 }
 0x3a1   : >> { %v7151_v31 = vpop.f32.mrf.mxu0 }
 0x3a2   : >> { %v7171_v22 = vpop.f32.mrf.mxu1  ;;  %v4505_v46 = vadd.f32 %v7151_v31, %v4452_v24 }
 0x3a3   : >> { %v4488_v50 = vpop.f32.mrf.mxu0 }
 0x3a4   : >> { %v4541_v34 = vpop.f32.mrf.mxu1  ;;  %v4503_v51 = vadd.f32 %v4488_v50, %v4450_v21  ;;  %v4558_v55 = vadd.f32 %v7171_v22, %v4505_v46  ;;  %v9687_v21 = vld [vmem:[#allocation9_spill] sm:$0xff] }
 0x3a5   : >> { %v7152_v9 = vpop.f32.mrf.mxu0 }
 0x3a6   : >> { %v7172_v40 = vpop.f32.mrf.mxu1  ;;  %v4506_v45 = vadd.f32 %v7152_v9, %v4453_v47  ;;  %v4556_v36 = vadd.f32 %v4541_v34, %v4503_v51  ;;  %v5760_v9 = vld [vmem:[#allocation3] ss:$0 sm:$0xff] }
 0x3a7   : >> { %v4491_v42 = vpop.f32.mrf.mxu0  ;;  %v3553_v18 = vadd.f32 %v5760_v9, %v9685_v43  ;;  %v3556_v44 = vadd.f32 %v5760_v9, %v9686_v20  ;;  %v3554_v2 = vadd.f32 %v5760_v9, %v9687_v21 }
 0x3a8   : >> { %v4544_v26 = vpop.f32.mrf.mxu1  ;;  %v4504_v30 = vadd.f32 %v4491_v42, %v4451_v35  ;;  %v4559_v28 = vadd.f32 %v7172_v40, %v4506_v45 }
 0x3aa   : >> { %v4557_v39 = vadd.f32 %v4544_v26, %v4504_v30 }
 0x3c1   : >> { %v7191_v12 = vpop.f32.mrf.mxu0 }
 0x3c2   : >> { %v7211_v33 = vpop.f32.mrf.mxu1  ;;  %v4611_v25 = vadd.f32 %v7191_v12, %v4558_v55  ;;  %v9684_v12 = vld [vmem:[#allocation6_spill] sm:$0xff] }
 0x3c3   : >> { %v4594_v4 = vpop.f32.mrf.mxu0  ;;  %v3555_v8 = vadd.f32 %v5760_v9, %v9684_v12 }
 0x3c4   : >> { %v4667_v48 = vpop.f32.mrf.mxu1  ;;  %v4609_v59 = vadd.f32 %v4594_v4, %v4556_v36  ;;  %v4684_v58 = vadd.f32 %v7211_v33, %v4611_v25 }
 0x3c5   : >> { %v7192_v63 = vpop.f32.mrf.mxu0 }
 0x3c6   : >> { %v7212_v3 = vpop.f32.mrf.mxu1  ;;  %v4612_v19 = vadd.f32 %v7192_v63, %v4559_v28  ;;  %v4682_v11 = vadd.f32 %v4667_v48, %v4609_v59  ;;  %v3559_v48 = vmax.f32 %v3555_v8, 0.0 }
 0x3c7   : >> { %v4597_v6 = vpop.f32.mrf.mxu0 }
 0x3c8   : >> { %v4670_v41 = vpop.f32.mrf.mxu1  ;;  %v4610_v10 = vadd.f32 %v4597_v6, %v4557_v39  ;;  %v4685_v37 = vadd.f32 %v7212_v3, %v4612_v19  ;;  %v3557_v3 = vmax.f32 %v3553_v18, 0.0 }
 0x3ca   : >> { %v4683_v15 = vadd.f32 %v4670_v41, %v4610_v10 }
 0x3e1   : >> { %v7231_v56 = vpop.f32.mrf.mxu0 }
 0x3e2   : >> { %v7251_v29 = vpop.f32.mrf.mxu1  ;;  %v4758_v50 = vadd.f32 %v7231_v56, %v4684_v58  ;;  %v3560_v56 = vmax.f32 %v3556_v44, 0.0 }
 0x3e3   : >> { %v4741_v23 = vpop.f32.mrf.mxu0 }
 0x3e4   : >> { %v4803_v61 = vpop.f32.mrf.mxu1  ;;  %v4756_v62 = vadd.f32 %v4741_v23, %v4682_v11  ;;  %v4820_v34 = vadd.f32 %v7251_v29, %v4758_v50  ;;  %v3558_v29 = vmax.f32 %v3554_v2, 0.0 }
 0x3e5   : >> { %v7232_v31 = vpop.f32.mrf.mxu0 }
 0x3e6   : >> { %v7252_v49 = vpop.f32.mrf.mxu1  ;;  %v4759_v42 = vadd.f32 %v7232_v31, %v4685_v37  ;;  %v4818_v40 = vadd.f32 %v4803_v61, %v4756_v62 }
 0x3e7   : >> { %v4744_v22 = vpop.f32.mrf.mxu0 }
 0x3e8   : >> { %v4806_v13 = vpop.f32.mrf.mxu1  ;;  %v4757_v52 = vadd.f32 %v4744_v22, %v4683_v15  ;;  %v4821_v32 = vadd.f32 %v7252_v49, %v4759_v42 }
 0x3ea   : >> { %v4819_v16 = vadd.f32 %v4806_v13, %v4757_v52 }
 0x401   : >> { %v7271_v14 = vpop.f32.mrf.mxu0 }
 0x402   : >> { %v4896_v60 = vadd.f32 %v7271_v14, %v4820_v34  ;;  %v7291_v26 = vpop.f32.mrf.mxu1 }
 0x403   : >> { %v4879_v0 = vpop.f32.mrf.mxu0 }
 0x404   : >> { %v4958_v27 = vadd.f32 %v7291_v26, %v4896_v60  ;;  %v4894_v33 = vadd.f32 %v4879_v0, %v4818_v40  ;;  %v4941_v54 = vpop.f32.mrf.mxu1 }
 0x405   : >> { %v7272_v38 = vpop.f32.mrf.mxu0 }
 0x406   : >> { %v4962_v4 = vadd.f32 %v5760_v9, %v4958_v27  ;;  %v4956_v7 = vadd.f32 %v4941_v54, %v4894_v33  ;;  %v4897_v53 = vadd.f32 %v7272_v38, %v4821_v32  ;;  %v7292_v1 = vpop.f32.mrf.mxu1 }
 0x407   : >> { %v4882_v63 = vpop.f32.mrf.mxu0 }
 0x408   : >> { %v4966_v57 = vmax.f32 %v4962_v4, 0.0  ;;  %v4960_v17 = vadd.f32 %v5760_v9, %v4956_v7  ;;  %v4959_v24 = vadd.f32 %v7292_v1, %v4897_v53  ;;  %v4895_v5 = vadd.f32 %v4882_v63, %v4819_v16  ;;  %v4944_v46 = vpop.f32.mrf.mxu1 }
 0x40a   : >> { %v4970_v6 = vmax.f32 %v3559_v48, %v4966_v57  ;;  %v4964_v47 = vmax.f32 %v4960_v17, 0.0  ;;  %v4963_v51 = vadd.f32 %v5760_v9, %v4959_v24  ;;  %v4957_v41 = vadd.f32 %v4944_v46, %v4895_v5 }
 0x40c   : >> { %4974 = vst [vmem:[#allocation2 + $0x10] sm:$0xff] %v4970_v6  ;;  %v4968_v35 = vmax.f32 %v3557_v3, %v4964_v47  ;;  %v4967_v55 = vmax.f32 %v4963_v51, 0.0  ;;  %v4961_v45 = vadd.f32 %v5760_v9, %v4957_v41 }
 0x40e   : >> { %4972 = vst [vmem:[#allocation2] sm:$0xff] %v4968_v35  ;;  %v4971_v36 = vmax.f32 %v3560_v56, %v4967_v55  ;;  %v4965_v30 = vmax.f32 %v4961_v45, 0.0 }
 0x410   : >> { %4975 = vst [vmem:[#allocation2 + $0x18] sm:$0xf] %v4971_v36  ;;  %v4969_v25 = vmax.f32 %v3558_v29, %v4965_v30 }
 0x412   : >> { %4973 = vst [vmem:[#allocation2 + $0x8] sm:$0xff] %v4969_v25 }
 0x417   : >> { %v4978_v23 = vld [vmem:[#allocation2 + $0x10] ss:$2 sm:$0x3f]  ;;  %v4982_v28 = vld [vmem:[#allocation2 + $0x11] ss:$2 sm:$0x3f] }
 0x418   : >> { %v4984_v59 = vmax.f32 %v4978_v23, %v4982_v28 }
 0x419   : >> { %v4976_v61 = vld [vmem:[#allocation2] ss:$2 sm:$0xff]  ;;  %v4980_v39 = vld [vmem:[#allocation2 + $0x1] ss:$2 sm:$0xff] }
 0x41a   : >> { %v5791_v58 = vpack.c.bf16 %v4984_v59, %v4984_v59  ;;  %v4983_v19 = vmax.f32 %v4976_v61, %v4980_v39  ;;  %189 = sbr.rel (!%p187_p1) target bundleno = 32 (0x20), region = 108 }
 0x41c   : >> { %4996 = vst [vmem:[%s4994_s11 + $0x4] sm:$0x7] %v5791_v58  ;;  %v5790_v31 = vpack.c.bf16 %v4983_v19, %v4983_v19 }
 0x41e   : >> { %4995 = vst [vmem:[%s4994_s11] sm:$0xf] %v5790_v31 }
 0x41f PF: > { %s14_s12 = sadd.s32 1, %s7797_s12  }
 0x420   : > { %p11_p2 = scmp.ge.s32.totalorder %s14_s12, 4  }
 0x422   :  { %13 = sbr.rel (!%p11_p2) target bundleno = 1 (0x1), region = 119 }
 0x427   :  { %5018 = vsyncpa [#allocation4], 1 }
 0x428   :  { %5020 = vsyncpa [#allocation4 + $0x1], 1 }

// kernel: cnn_forward.5
= control target key start
LH: loop header
LB: loop body
LE: loop exit
PB: predicated region body
PF: predicated region fallthrough
CT: control target
= control target key end

     0   :  { %vm5967_vm0 = vmmov 0   ;;  %s7315_s1 = inlined_call_operand.vmem [shape: bf16[6272,128], index: 1, kind: input, shape index: {}]   ;;  %s7316_s0 = inlined_call_operand.vmem [shape: bf16[8,6272], index: 0, kind: input, shape index: {}]   ;;  %s7317_s2 = inlined_call_operand.vmem [shape: f32[1,128], index: 2, kind: input, shape index: {}]   ;;  %s7318_s3 = inlined_call_operand.vmem [shape: bf16[128,128], index: 3, kind: input, shape index: {}]   ;;  %s7319_s4 = inlined_call_operand.vmem [shape: f32[1,128], index: 4, kind: input, shape index: {}]   ;;  %s7320_s5 = inlined_call_operand.vmem [shape: f32[8,128], index: 5, kind: output, shape index: {}]  }
   0x1   :  { %v5517_v0 = vld [vmem:[%s7315_s1 + $0x78] sm:$0xff]   ;;  %v5521_v4 = vld [vmem:[%s7315_s1 + $0x70] sm:$0xff]   ;;  %v5525_v8 = vld [vmem:[%s7315_s1 + $0x68] sm:$0xff]  }
   0x2   :  { %v5518_v1 = vld [vmem:[%s7315_s1 + $0x38] sm:$0xff]   ;;  %4929 = vmatprep.subr.bf16.mxu0 %v5517_v0  ;;  %v5522_v5 = vld [vmem:[%s7315_s1 + $0x30] sm:$0xff]   ;;  %v5526_v9 = vld [vmem:[%s7315_s1 + $0x28] sm:$0xff]  }
   0x3   :  { %v5519_v2 = vld [vmem:[%s7315_s1 + $0xf8] sm:$0xff]   ;;  %4930 = vmatpush3.bf16.msra.mxu0 %v5518_v1  ;;  %v5523_v6 = vld [vmem:[%s7315_s1 + $0xf0] sm:$0xff]   ;;  %v5527_v10 = vld [vmem:[%s7315_s1 + $0xe8] sm:$0xff]  }
   0x4   :  { %v5520_v3 = vld [vmem:[%s7315_s1 + $0xb8] sm:$0xff]   ;;  %4951 = vmatprep.subr.bf16.mxu1 %v5519_v2  ;;  %4931 = vmatprep.subr.bf16.mxu0 %v5521_v4  ;;  %v5524_v7 = vld [vmem:[%s7315_s1 + $0xb0] sm:$0xff]   ;;  %v5528_v11 = vld [vmem:[%s7315_s1 + $0xa8] sm:$0xff]  }
   0x5   :  { %4952 = vmatpush3.bf16.msra.mxu1 %v5520_v3  ;;  %v5529_v12 = vld [vmem:[%s7315_s1 + $0x60] sm:$0xff]   ;;  %v5533_v16 = vld [vmem:[%s7315_s1 + $0x58] sm:$0xff]   ;;  %v5537_v20 = vld [vmem:[%s7315_s1 + $0x50] sm:$0xff]  }
   0x6   :  { %4953 = vmatprep.subr.bf16.mxu1 %v5523_v6  ;;  %v5530_v13 = vld [vmem:[%s7315_s1 + $0x20] sm:$0xff]   ;;  %v5534_v17 = vld [vmem:[%s7315_s1 + $0x18] sm:$0xff]   ;;  %v5538_v21 = vld [vmem:[%s7315_s1 + $0x10] sm:$0xff]  }
   0x7   :  { %4932 = vmatpush3.bf16.msra.mxu0 %v5522_v5  ;;  %v5531_v14 = vld [vmem:[%s7315_s1 + $0xe0] sm:$0xff]   ;;  %v5535_v18 = vld [vmem:[%s7315_s1 + $0xd8] sm:$0xff]   ;;  %v5539_v22 = vld [vmem:[%s7315_s1 + $0xd0] sm:$0xff]  }
   0x8   :  { %4933 = vmatprep.subr.bf16.mxu0 %v5525_v8  ;;  %v5532_v15 = vld [vmem:[%s7315_s1 + $0xa0] sm:$0xff]   ;;  %v5536_v19 = vld [vmem:[%s7315_s1 + $0x98] sm:$0xff]   ;;  %v5540_v23 = vld [vmem:[%s7315_s1 + $0x90] sm:$0xff]  }
   0x9   :  { %4954 = vmatpush3.bf16.msra.mxu1 %v5524_v7  ;;  %v5541_v24 = vld [vmem:[%s7315_s1 + $0x48] sm:$0xff]   ;;  %v5545_v28 = vld [vmem:[%s7315_s1 + $0x40] sm:$0xff]   ;;  %v5551_v35 = vld [vmem:[%s7315_s1 + $0x178] sm:$0xff]  }
   0xa   :  { %4955 = vmatprep.subr.bf16.mxu1 %v5527_v10  ;;  %v5542_v25 = vld [vmem:[%s7315_s1 + $0x8] sm:$0xff]   ;;  %v5546_v29 = vld [vmem:[%s7315_s1] sm:$0xff]   ;;  %v5554_v39 = vld [vmem:[%s7315_s1 + $0x138] sm:$0xff]  }
   0xb   :  { %4934 = vmatpush3.bf16.msra.mxu0 %v5526_v9  ;;  %v5543_v26 = vld [vmem:[%s7315_s1 + $0xc8] sm:$0xff]   ;;  %v5547_v30 = vld [vmem:[%s7315_s1 + $0xc0] sm:$0xff]   ;;  %v5555_v40 = vld [vmem:[%s7315_s1 + $0x1f8] sm:$0xff]  }
   0xc   :  { %4935 = vmatprep.subr.bf16.mxu0 %v5529_v12  ;;  %v5544_v27 = vld [vmem:[%s7315_s1 + $0x88] sm:$0xff]   ;;  %v21_v31 = vld [vmem:[%s7316_s0] sm:$0xff]  ;;  %v5556_v41 = vld [vmem:[%s7315_s1 + $0x1b8] sm:$0xff]  }
   0xd   :  { %4956 = vmatpush3.bf16.msra.mxu1 %v5528_v11  ;;  %v4479_v32 = vcombine.low %v21_v31, %v21_v31  ;;  %v4480_v33 = vcombine.high %v21_v31, %v21_v31  ;;  %v5550_v34 = vld [vmem:[%s7315_s1 + $0x80] sm:$0xff]   ;;  %v22_v36 = vld [vmem:[%s7316_s0 + $0x8] sm:$0xff]  ;;  %v5557_v42 = vld [vmem:[%s7315_s1 + $0x170] sm:$0xff]  }
   0xe   :  { %4957 = vmatprep.subr.bf16.mxu1 %v5531_v14  ;;  %v4481_v37 = vcombine.low %v22_v36, %v22_v36  ;;  %v4482_v38 = vcombine.high %v22_v36, %v22_v36  ;;  %v5558_v43 = vld [vmem:[%s7315_s1 + $0x130] sm:$0xff]   ;;  %v5561_v46 = vld [vmem:[%s7315_s1 + $0x168] sm:$0xff]   ;;  %v5565_v50 = vld [vmem:[%s7315_s1 + $0x160] sm:$0xff]  }
   0xf   :  { %4936 = vmatpush3.bf16.msra.mxu0 %v5530_v13  ;;  %3393 = vmatprep.mubr.bf16.mxu0 %v4480_v33  ;;  %v5559_v44 = vld [vmem:[%s7315_s1 + $0x1f0] sm:$0xff]   ;;  %v5562_v47 = vld [vmem:[%s7315_s1 + $0x128] sm:$0xff]   ;;  %v5566_v51 = vld [vmem:[%s7315_s1 + $0x120] sm:$0xff]  }
  0x10   :  { %4937 = vmatprep.subr.bf16.mxu0 %v5533_v16  ;;  %3433 = vmatprep.mubr.bf16.mxu1 %v4482_v38  ;;  %v5560_v45 = vld [vmem:[%s7315_s1 + $0x1b0] sm:$0xff]   ;;  %v5563_v48 = vld [vmem:[%s7315_s1 + $0x1e8] sm:$0xff]   ;;  %v5567_v52 = vld [vmem:[%s7315_s1 + $0x1e0] sm:$0xff]  }
  0x11   :  { %4958 = vmatpush3.bf16.msra.mxu1 %v5532_v15  ;;  %v5564_v49 = vld [vmem:[%s7315_s1 + $0x1a8] sm:$0xff]   ;;  %v5568_v53 = vld [vmem:[%s7315_s1 + $0x1a0] sm:$0xff]   ;;  %v5569_v54 = vld [vmem:[%s7315_s1 + $0x158] sm:$0xff]  }
  0x12   :  { %4959 = vmatprep.subr.bf16.mxu1 %v5535_v18  ;;  %v5570_v55 = vld [vmem:[%s7315_s1 + $0x118] sm:$0xff]   ;;  %v5573_v58 = vld [vmem:[%s7315_s1 + $0x150] sm:$0xff]   ;;  %v5577_v62 = vld [vmem:[%s7315_s1 + $0x148] sm:$0xff]  }
  0x13   :  { %4938 = vmatpush3.bf16.msra.mxu0 %v5534_v17  ;;  %v5571_v56 = vld [vmem:[%s7315_s1 + $0x1d8] sm:$0xff]   ;;  %v5574_v59 = vld [vmem:[%s7315_s1 + $0x110] sm:$0xff]   ;;  %v5578_v63 = vld [vmem:[%s7315_s1 + $0x108] sm:$0xff]  }
  0x14   :  { %4939 = vmatprep.subr.bf16.mxu0 %v5537_v20  ;;  %v5572_v57 = vld [vmem:[%s7315_s1 + $0x198] sm:$0xff]   ;;  %v5575_v60 = vld [vmem:[%s7315_s1 + $0x1d0] sm:$0xff]   ;;  %v5579_v0 = vld [vmem:[%s7315_s1 + $0x1c8] sm:$0xff]  }
  0x15   :  { %4960 = vmatpush3.bf16.msra.mxu1 %v5536_v19  ;;  %v5576_v61 = vld [vmem:[%s7315_s1 + $0x190] sm:$0xff]   ;;  %v5580_v1 = vld [vmem:[%s7315_s1 + $0x188] sm:$0xff]   ;;  %v5581_v2 = vld [vmem:[%s7315_s1 + $0x140] sm:$0xff]  }
  0x16   :  { %4961 = vmatprep.subr.bf16.mxu1 %v5539_v22  ;;  %v5582_v3 = vld [vmem:[%s7315_s1 + $0x100] sm:$0xff]   ;;  %v23_v5 = vld [vmem:[%s7316_s0 + $0x10] sm:$0xff]  ;;  %v5587_v9 = vld [vmem:[%s7315_s1 + $0x278] sm:$0xff]  }
  0x17   :  { %4940 = vmatpush3.bf16.msra.mxu0 %v5538_v21  ;;  %v5583_v4 = vld [vmem:[%s7315_s1 + $0x1c0] sm:$0xff]   ;;  %v4483_v6 = vcombine.low %v23_v5, %v23_v5  ;;  %v4484_v7 = vcombine.high %v23_v5, %v23_v5  ;;  %v24_v10 = vld [vmem:[%s7316_s0 + $0x18] sm:$0xff]  ;;  %v5593_v16 = vld [vmem:[%s7315_s1 + $0x270] sm:$0xff]  }
  0x18   :  { %4941 = vmatprep.subr.bf16.mxu0 %v5541_v24  ;;  %v5586_v8 = vld [vmem:[%s7315_s1 + $0x180] sm:$0xff]   ;;  %v4485_v11 = vcombine.low %v24_v10, %v24_v10  ;;  %v4486_v12 = vcombine.high %v24_v10, %v24_v10  ;;  %v5590_v13 = vld [vmem:[%s7315_s1 + $0x238] sm:$0xff]   ;;  %v5594_v17 = vld [vmem:[%s7315_s1 + $0x230] sm:$0xff]  }
  0x19   :  { %4962 = vmatpush3.bf16.msra.mxu1 %v5540_v23  ;;  %v5591_v14 = vld [vmem:[%s7315_s1 + $0x2f8] sm:$0xff]   ;;  %v5595_v18 = vld [vmem:[%s7315_s1 + $0x2f0] sm:$0xff]   ;;  %v5597_v20 = vld [vmem:[%s7315_s1 + $0x268] sm:$0xff]  }
  0x1a   :  { %4963 = vmatprep.subr.bf16.mxu1 %v5543_v26  ;;  %v5592_v15 = vld [vmem:[%s7315_s1 + $0x2b8] sm:$0xff]   ;;  %v5596_v19 = vld [vmem:[%s7315_s1 + $0x2b0] sm:$0xff]   ;;  %v5598_v21 = vld [vmem:[%s7315_s1 + $0x228] sm:$0xff]  }
  0x1b   :  { %4942 = vmatpush3.bf16.msra.mxu0 %v5542_v25  ;;  %v5599_v22 = vld [vmem:[%s7315_s1 + $0x2e8] sm:$0xff]   ;;  %v5601_v24 = vld [vmem:[%s7315_s1 + $0x260] sm:$0xff]   ;;  %v5608_v31 = vld [vmem:[%s7315_s1 + $0x298] sm:$0xff]  }
  0x1c   :  { %4943 = vmatprep.subr.bf16.mxu0 %v5545_v28  ;;  %v5600_v23 = vld [vmem:[%s7315_s1 + $0x2a8] sm:$0xff]   ;;  %v5602_v25 = vld [vmem:[%s7315_s1 + $0x220] sm:$0xff]   ;;  %v5605_v28 = vld [vmem:[%s7315_s1 + $0x258] sm:$0xff]  }
  0x1d   :  { %4964 = vmatpush3.bf16.msra.mxu1 %v5544_v27  ;;  %v5603_v26 = vld [vmem:[%s7315_s1 + $0x2e0] sm:$0xff]   ;;  %v5610_v33 = vld [vmem:[%s7315_s1 + $0x210] sm:$0xff]   ;;  %v5613_v36 = vld [vmem:[%s7315_s1 + $0x248] sm:$0xff]  }
  0x1e   :  { %4965 = vmatprep.subr.bf16.mxu1 %v5547_v30  ;;  %v5604_v27 = vld [vmem:[%s7315_s1 + $0x2a0] sm:$0xff]   ;;  %v5607_v30 = vld [vmem:[%s7315_s1 + $0x2d8] sm:$0xff]   ;;  %v5615_v38 = vld [vmem:[%s7315_s1 + $0x2c8] sm:$0xff]  }
  0x1f   :  { %4944 = vmatpush3.bf16.msra.mxu0 %v5546_v29  ;;  %v5606_v29 = vld [vmem:[%s7315_s1 + $0x218] sm:$0xff]   ;;  %v5649_v10 = vld [vmem:[%s7315_s1 + $0x348] sm:$0xff]  }
  0x20   :  { %4973 = vmatprep.subr.bf16.mxu0 %v5551_v35  ;;  %v5612_v35 = vld [vmem:[%s7315_s1 + $0x290] sm:$0xff]   ;;  %v5644_v5 = vld [vmem:[%s7315_s1 + $0x398] sm:$0xff]  }
  0x21   :  { %4966 = vmatpush3.bf16.msra.mxu1 %v5550_v34  ;;  %v5611_v34 = vld [vmem:[%s7315_s1 + $0x2d0] sm:$0xff]  }
  0x22   :  { %3394 = vmatmul.mubr.bf16.vlgmr.msra.gmra.mxu0 %v4479_v32  ;;  %4995 = vmatprep.subr.bf16.mxu1 %v5555_v40  ;;  %v5609_v32 = vld [vmem:[%s7315_s1 + $0x250] sm:$0xff]   ;;  %v5617_v40 = vld [vmem:[%s7315_s1 + $0x240] sm:$0xff]  }
  0x23   :  { %4974 = vmatpush3.bf16.msra.mxu0 %v5554_v39  ;;  %3473 = vmatprep.mubr.bf16.mxu0 %v4484_v7  ;;  %v5616_v39 = vld [vmem:[%s7315_s1 + $0x288] sm:$0xff]   ;;  %v5646_v7 = vld [vmem:[%s7315_s1 + $0x310] sm:$0xff]  }
  0x24   :  { %3434 = vmatmul.mubr.bf16.vlgmr.msra.gmra.mxu1 %v4481_v37  ;;  %4975 = vmatprep.subr.bf16.mxu0 %v5557_v42  ;;  %v5614_v37 = vld [vmem:[%s7315_s1 + $0x208] sm:$0xff]   ;;  %v5619_v42 = vld [vmem:[%s7315_s1 + $0x2c0] sm:$0xff]  }
  0x25   :  { %4996 = vmatpush3.bf16.msra.mxu1 %v5556_v41  ;;  %3513 = vmatprep.mubr.bf16.mxu1 %v4486_v12  ;;  %v5618_v41 = vld [vmem:[%s7315_s1 + $0x200] sm:$0xff]   ;;  %v5651_v12 = vld [vmem:[%s7315_s1 + $0x3c8] sm:$0xff]  }
  0x26   :  { %4997 = vmatprep.subr.bf16.mxu1 %v5559_v44 }
  0x27   :  { %4976 = vmatpush3.bf16.msra.mxu0 %v5558_v43  ;;  %v25_v43 = vld [vmem:[%s7316_s0 + $0x20] sm:$0xff] }
  0x28   :  { %4977 = vmatprep.subr.bf16.mxu0 %v5561_v46  ;;  %v4487_v44 = vcombine.low %v25_v43, %v25_v43  ;;  %v5622_v46 = vld [vmem:[%s7315_s1 + $0x280] sm:$0xff]  }
  0x29   :  { %4998 = vmatpush3.bf16.msra.mxu1 %v5560_v45  ;;  %v4488_v45 = vcombine.high %v25_v43, %v25_v43  ;;  %v5680_v43 = vld [vmem:[%s7315_s1 + $0x498] sm:$0xff]  }
  0x2a   :  { %4999 = vmatprep.subr.bf16.mxu1 %v5563_v48  ;;  %v26_v48 = vld [vmem:[%s7316_s0 + $0x28] sm:$0xff] }
  0x2b   :  { %4978 = vmatpush3.bf16.msra.mxu0 %v5562_v47  ;;  %v5623_v47 = vld [vmem:[%s7315_s1 + $0x378] sm:$0xff]  }
  0x2c   :  { %4979 = vmatprep.subr.bf16.mxu0 %v5565_v50  ;;  %v4490_v50 = vcombine.high %v26_v48, %v26_v48 }
  0x2d   :  { %5000 = vmatpush3.bf16.msra.mxu1 %v5564_v49  ;;  %v4489_v49 = vcombine.low %v26_v48, %v26_v48  ;;  %v5685_v48 = vld [vmem:[%s7315_s1 + $0x448] sm:$0xff]  }
  0x2e   :  { %5001 = vmatprep.subr.bf16.mxu1 %v5567_v52  ;;  %v5627_v52 = vld [vmem:[%s7315_s1 + $0x3f8] sm:$0xff]  }
  0x2f   :  { %4980 = vmatpush3.bf16.msra.mxu0 %v5566_v51  ;;  %v5626_v51 = vld [vmem:[%s7315_s1 + $0x338] sm:$0xff]  }
  0x30   :  { %4981 = vmatprep.subr.bf16.mxu0 %v5569_v54  ;;  %v5629_v54 = vld [vmem:[%s7315_s1 + $0x370] sm:$0xff]  }
  0x31   :  { %5002 = vmatpush3.bf16.msra.mxu1 %v5568_v53  ;;  %v5628_v53 = vld [vmem:[%s7315_s1 + $0x3b8] sm:$0xff]  }
  0x32   :  { %5003 = vmatprep.subr.bf16.mxu1 %v5571_v56  ;;  %v5631_v56 = vld [vmem:[%s7315_s1 + $0x3f0] sm:$0xff]  }
  0x33   :  { %4982 = vmatpush3.bf16.msra.mxu0 %v5570_v55  ;;  %v5630_v55 = vld [vmem:[%s7315_s1 + $0x330] sm:$0xff]  }
  0x34   :  { %4983 = vmatprep.subr.bf16.mxu0 %v5573_v58  ;;  %v5633_v58 = vld [vmem:[%s7315_s1 + $0x368] sm:$0xff]  }
  0x35   :  { %5004 = vmatpush3.bf16.msra.mxu1 %v5572_v57  ;;  %v5632_v57 = vld [vmem:[%s7315_s1 + $0x3b0] sm:$0xff]  }
  0x36   :  { %5005 = vmatprep.subr.bf16.mxu1 %v5575_v60  ;;  %v5635_v60 = vld [vmem:[%s7315_s1 + $0x3e8] sm:$0xff]  }
  0x37   :  { %4984 = vmatpush3.bf16.msra.mxu0 %v5574_v59  ;;  %v5634_v59 = vld [vmem:[%s7315_s1 + $0x328] sm:$0xff]  }
  0x38   :  { %4985 = vmatprep.subr.bf16.mxu0 %v5577_v62  ;;  %v5637_v62 = vld [vmem:[%s7315_s1 + $0x360] sm:$0xff]  }
  0x39   :  { %5006 = vmatpush3.bf16.msra.mxu1 %v5576_v61  ;;  %v5636_v61 = vld [vmem:[%s7315_s1 + $0x3a8] sm:$0xff]  }
  0x3a   :  { %5007 = vmatprep.subr.bf16.mxu1 %v5579_v0  ;;  %v5639_v0 = vld [vmem:[%s7315_s1 + $0x3e0] sm:$0xff]  }
  0x3b   :  { %4986 = vmatpush3.bf16.msra.mxu0 %v5578_v63  ;;  %v5638_v63 = vld [vmem:[%s7315_s1 + $0x320] sm:$0xff]  }
  0x3c   :  { %4987 = vmatprep.subr.bf16.mxu0 %v5581_v2  ;;  %v5641_v2 = vld [vmem:[%s7315_s1 + $0x358] sm:$0xff]  }
  0x3d   :  { %5008 = vmatpush3.bf16.msra.mxu1 %v5580_v1  ;;  %v5640_v1 = vld [vmem:[%s7315_s1 + $0x3a0] sm:$0xff]  }
  0x3e   :  { %5009 = vmatprep.subr.bf16.mxu1 %v5583_v4  ;;  %v5643_v4 = vld [vmem:[%s7315_s1 + $0x3d8] sm:$0xff]  }
  0x3f   :  { %4988 = vmatpush3.bf16.msra.mxu0 %v5582_v3  ;;  %v5642_v3 = vld [vmem:[%s7315_s1 + $0x318] sm:$0xff]  }
  0x40   :  { %5017 = vmatprep.subr.bf16.mxu0 %v5587_v9  ;;  %v5648_v9 = vld [vmem:[%s7315_s1 + $0x390] sm:$0xff]  }
  0x41   :  { %5010 = vmatpush3.bf16.msra.mxu1 %v5586_v8  ;;  %v5647_v8 = vld [vmem:[%s7315_s1 + $0x3d0] sm:$0xff]  }
  0x42   :  { %3474 = vmatmul.mubr.bf16.vlgmr.msra.gmra.mxu0 %v4483_v6  ;;  %5039 = vmatprep.subr.bf16.mxu1 %v5591_v14  ;;  %v5645_v6 = vld [vmem:[%s7315_s1 + $0x350] sm:$0xff]   ;;  %v5653_v14 = vld [vmem:[%s7315_s1 + $0x340] sm:$0xff]  }
  0x43   :  { %5018 = vmatpush3.bf16.msra.mxu0 %v5590_v13  ;;  %3553 = vmatprep.mubr.bf16.mxu0 %v4488_v45  ;;  %v5652_v13 = vld [vmem:[%s7315_s1 + $0x388] sm:$0xff]   ;;  %v5682_v45 = vld [vmem:[%s7315_s1 + $0x410] sm:$0xff]  }
  0x44   :  { %3514 = vmatmul.mubr.bf16.vlgmr.msra.gmra.mxu1 %v4485_v11  ;;  %5019 = vmatprep.subr.bf16.mxu0 %v5593_v16  ;;  %v5650_v11 = vld [vmem:[%s7315_s1 + $0x308] sm:$0xff]   ;;  %v5655_v16 = vld [vmem:[%s7315_s1 + $0x3c0] sm:$0xff]  }
  0x45   :  { %5040 = vmatpush3.bf16.msra.mxu1 %v5592_v15  ;;  %3593 = vmatprep.mubr.bf16.mxu1 %v4490_v50  ;;  %v5654_v15 = vld [vmem:[%s7315_s1 + $0x300] sm:$0xff]   ;;  %v5687_v50 = vld [vmem:[%s7315_s1 + $0x4c8] sm:$0xff]  }
  0x46   :  { %5041 = vmatprep.subr.bf16.mxu1 %v5595_v18 }
  0x47   :  { %5020 = vmatpush3.bf16.msra.mxu0 %v5594_v17  ;;  %v27_v17 = vld [vmem:[%s7316_s0 + $0x30] sm:$0xff] }
  0x48   :  { %5021 = vmatprep.subr.bf16.mxu0 %v5597_v20  ;;  %v4491_v18 = vcombine.low %v27_v17, %v27_v17  ;;  %v5658_v20 = vld [vmem:[%s7315_s1 + $0x380] sm:$0xff]  }
  0x49   :  { %5042 = vmatpush3.bf16.msra.mxu1 %v5596_v19  ;;  %v4492_v19 = vcombine.high %v27_v17, %v27_v17  ;;  %v5716_v17 = vld [vmem:[%s7315_s1 + $0x598] sm:$0xff]  }
  0x4a   :  { %5043 = vmatprep.subr.bf16.mxu1 %v5599_v22  ;;  %v28_v22 = vld [vmem:[%s7316_s0 + $0x38] sm:$0xff] }
  0x4b   :  { %5022 = vmatpush3.bf16.msra.mxu0 %v5598_v21  ;;  %v5659_v21 = vld [vmem:[%s7315_s1 + $0x478] sm:$0xff]  }
  0x4c   :  { %5023 = vmatprep.subr.bf16.mxu0 %v5601_v24  ;;  %v4494_v24 = vcombine.high %v28_v22, %v28_v22 }
  0x4d   :  { %5044 = vmatpush3.bf16.msra.mxu1 %v5600_v23  ;;  %v4493_v23 = vcombine.low %v28_v22, %v28_v22  ;;  %v5721_v22 = vld [vmem:[%s7315_s1 + $0x548] sm:$0xff]  }
  0x4e   :  { %5045 = vmatprep.subr.bf16.mxu1 %v5603_v26  ;;  %v5663_v26 = vld [vmem:[%s7315_s1 + $0x4f8] sm:$0xff]  }
  0x4f   :  { %5024 = vmatpush3.bf16.msra.mxu0 %v5602_v25  ;;  %v5662_v25 = vld [vmem:[%s7315_s1 + $0x438] sm:$0xff]  }
  0x50   :  { %5025 = vmatprep.subr.bf16.mxu0 %v5605_v28  ;;  %v5665_v28 = vld [vmem:[%s7315_s1 + $0x470] sm:$0xff]  }
  0x51   :  { %5046 = vmatpush3.bf16.msra.mxu1 %v5604_v27  ;;  %v5664_v27 = vld [vmem:[%s7315_s1 + $0x4b8] sm:$0xff]  }
  0x52   :  { %5047 = vmatprep.subr.bf16.mxu1 %v5607_v30  ;;  %v5667_v30 = vld [vmem:[%s7315_s1 + $0x4f0] sm:$0xff]  }
  0x53   :  { %5026 = vmatpush3.bf16.msra.mxu0 %v5606_v29  ;;  %v5666_v29 = vld [vmem:[%s7315_s1 + $0x430] sm:$0xff]  }
  0x54   :  { %5027 = vmatprep.subr.bf16.mxu0 %v5609_v32  ;;  %v5669_v32 = vld [vmem:[%s7315_s1 + $0x468] sm:$0xff]  }
  0x55   :  { %5048 = vmatpush3.bf16.msra.mxu1 %v5608_v31  ;;  %v5668_v31 = vld [vmem:[%s7315_s1 + $0x4b0] sm:$0xff]  }
  0x56   :  { %5049 = vmatprep.subr.bf16.mxu1 %v5611_v34  ;;  %v5671_v34 = vld [vmem:[%s7315_s1 + $0x4e8] sm:$0xff]  }
  0x57   :  { %5028 = vmatpush3.bf16.msra.mxu0 %v5610_v33  ;;  %v5670_v33 = vld [vmem:[%s7315_s1 + $0x428] sm:$0xff]  }
  0x58   :  { %5029 = vmatprep.subr.bf16.mxu0 %v5613_v36  ;;  %v5673_v36 = vld [vmem:[%s7315_s1 + $0x460] sm:$0xff]  }
  0x59   :  { %5050 = vmatpush3.bf16.msra.mxu1 %v5612_v35  ;;  %v5672_v35 = vld [vmem:[%s7315_s1 + $0x4a8] sm:$0xff]  }
  0x5a   :  { %5051 = vmatprep.subr.bf16.mxu1 %v5615_v38  ;;  %v5675_v38 = vld [vmem:[%s7315_s1 + $0x4e0] sm:$0xff]  }
  0x5b   :  { %5030 = vmatpush3.bf16.msra.mxu0 %v5614_v37  ;;  %v5674_v37 = vld [vmem:[%s7315_s1 + $0x420] sm:$0xff]  }
  0x5c   :  { %5031 = vmatprep.subr.bf16.mxu0 %v5617_v40  ;;  %v5677_v40 = vld [vmem:[%s7315_s1 + $0x458] sm:$0xff]  }
  0x5d   :  { %5052 = vmatpush3.bf16.msra.mxu1 %v5616_v39  ;;  %v5676_v39 = vld [vmem:[%s7315_s1 + $0x4a0] sm:$0xff]  }
  0x5e   :  { %5053 = vmatprep.subr.bf16.mxu1 %v5619_v42  ;;  %v5679_v42 = vld [vmem:[%s7315_s1 + $0x4d8] sm:$0xff]  }
  0x5f   :  { %5032 = vmatpush3.bf16.msra.mxu0 %v5618_v41  ;;  %v5678_v41 = vld [vmem:[%s7315_s1 + $0x418] sm:$0xff]  }
  0x60   :  { %5061 = vmatprep.subr.bf16.mxu0 %v5623_v47  ;;  %v5684_v47 = vld [vmem:[%s7315_s1 + $0x490] sm:$0xff]  }
  0x61   :  { %5054 = vmatpush3.bf16.msra.mxu1 %v5622_v46  ;;  %v5683_v46 = vld [vmem:[%s7315_s1 + $0x4d0] sm:$0xff]  }
  0x62   :  { %3554 = vmatmul.mubr.bf16.vlgmr.msra.gmra.mxu0 %v4487_v44  ;;  %5083 = vmatprep.subr.bf16.mxu1 %v5627_v52  ;;  %v5681_v44 = vld [vmem:[%s7315_s1 + $0x450] sm:$0xff]   ;;  %v5689_v52 = vld [vmem:[%s7315_s1 + $0x440] sm:$0xff]  }
  0x63   :  { %5062 = vmatpush3.bf16.msra.mxu0 %v5626_v51  ;;  %3633 = vmatprep.mubr.bf16.mxu0 %v4492_v19  ;;  %v5688_v51 = vld [vmem:[%s7315_s1 + $0x488] sm:$0xff]   ;;  %v5718_v19 = vld [vmem:[%s7315_s1 + $0x510] sm:$0xff]  }
  0x64   :  { %3594 = vmatmul.mubr.bf16.vlgmr.msra.gmra.mxu1 %v4489_v49  ;;  %5063 = vmatprep.subr.bf16.mxu0 %v5629_v54  ;;  %v5686_v49 = vld [vmem:[%s7315_s1 + $0x408] sm:$0xff]   ;;  %v5691_v54 = vld [vmem:[%s7315_s1 + $0x4c0] sm:$0xff]  }
  0x65   :  { %5084 = vmatpush3.bf16.msra.mxu1 %v5628_v53  ;;  %3673 = vmatprep.mubr.bf16.mxu1 %v4494_v24  ;;  %v5690_v53 = vld [vmem:[%s7315_s1 + $0x400] sm:$0xff]   ;;  %v5723_v24 = vld [vmem:[%s7315_s1 + $0x5c8] sm:$0xff]  }
  0x66   :  { %5085 = vmatprep.subr.bf16.mxu1 %v5631_v56 }
  0x67   :  { %5064 = vmatpush3.bf16.msra.mxu0 %v5630_v55  ;;  %v29_v55 = vld [vmem:[%s7316_s0 + $0x40] sm:$0xff] }
  0x68   :  { %5065 = vmatprep.subr.bf16.mxu0 %v5633_v58  ;;  %v4495_v56 = vcombine.low %v29_v55, %v29_v55  ;;  %v5694_v58 = vld [vmem:[%s7315_s1 + $0x480] sm:$0xff]  }
  0x69   :  { %5086 = vmatpush3.bf16.msra.mxu1 %v5632_v57  ;;  %v4496_v57 = vcombine.high %v29_v55, %v29_v55  ;;  %v5752_v55 = vld [vmem:[%s7315_s1 + $0x698] sm:$0xff]  }
  0x6a   :  { %5087 = vmatprep.subr.bf16.mxu1 %v5635_v60  ;;  %v30_v60 = vld [vmem:[%s7316_s0 + $0x48] sm:$0xff] }
  0x6b   :  { %5066 = vmatpush3.bf16.msra.mxu0 %v5634_v59  ;;  %v5695_v59 = vld [vmem:[%s7315_s1 + $0x578] sm:$0xff]  }
  0x6c   :  { %5067 = vmatprep.subr.bf16.mxu0 %v5637_v62  ;;  %v4498_v62 = vcombine.high %v30_v60, %v30_v60 }
  0x6d   :  { %5088 = vmatpush3.bf16.msra.mxu1 %v5636_v61  ;;  %v4497_v61 = vcombine.low %v30_v60, %v30_v60  ;;  %v5757_v60 = vld [vmem:[%s7315_s1 + $0x648] sm:$0xff]  }
  0x6e   :  { %5089 = vmatprep.subr.bf16.mxu1 %v5639_v0  ;;  %v5699_v0 = vld [vmem:[%s7315_s1 + $0x5f8] sm:$0xff]  }
  0x6f   :  { %5068 = vmatpush3.bf16.msra.mxu0 %v5638_v63  ;;  %v5698_v63 = vld [vmem:[%s7315_s1 + $0x538] sm:$0xff]  }
  0x70   :  { %5069 = vmatprep.subr.bf16.mxu0 %v5641_v2  ;;  %v5701_v2 = vld [vmem:[%s7315_s1 + $0x570] sm:$0xff]  }
  0x71   :  { %5090 = vmatpush3.bf16.msra.mxu1 %v5640_v1  ;;  %v5700_v1 = vld [vmem:[%s7315_s1 + $0x5b8] sm:$0xff]  }
  0x72   :  { %5091 = vmatprep.subr.bf16.mxu1 %v5643_v4  ;;  %v5703_v4 = vld [vmem:[%s7315_s1 + $0x5f0] sm:$0xff]  }
  0x73   :  { %5070 = vmatpush3.bf16.msra.mxu0 %v5642_v3  ;;  %v5702_v3 = vld [vmem:[%s7315_s1 + $0x530] sm:$0xff]  }
  0x74   :  { %5071 = vmatprep.subr.bf16.mxu0 %v5645_v6  ;;  %v5705_v6 = vld [vmem:[%s7315_s1 + $0x568] sm:$0xff]  }
  0x75   :  { %5092 = vmatpush3.bf16.msra.mxu1 %v5644_v5  ;;  %v5704_v5 = vld [vmem:[%s7315_s1 + $0x5b0] sm:$0xff]  }
  0x76   :  { %5093 = vmatprep.subr.bf16.mxu1 %v5647_v8  ;;  %v5707_v8 = vld [vmem:[%s7315_s1 + $0x5e8] sm:$0xff]  }
  0x77   :  { %5072 = vmatpush3.bf16.msra.mxu0 %v5646_v7  ;;  %v5706_v7 = vld [vmem:[%s7315_s1 + $0x528] sm:$0xff]  }
  0x78   :  { %5073 = vmatprep.subr.bf16.mxu0 %v5649_v10  ;;  %v5709_v10 = vld [vmem:[%s7315_s1 + $0x560] sm:$0xff]  }
  0x79   :  { %5094 = vmatpush3.bf16.msra.mxu1 %v5648_v9  ;;  %v5708_v9 = vld [vmem:[%s7315_s1 + $0x5a8] sm:$0xff]  }
  0x7a   :  { %5095 = vmatprep.subr.bf16.mxu1 %v5651_v12  ;;  %v5711_v12 = vld [vmem:[%s7315_s1 + $0x5e0] sm:$0xff]  }
  0x7b   :  { %5074 = vmatpush3.bf16.msra.mxu0 %v5650_v11  ;;  %v5710_v11 = vld [vmem:[%s7315_s1 + $0x520] sm:$0xff]  }
  0x7c   :  { %5075 = vmatprep.subr.bf16.mxu0 %v5653_v14  ;;  %v5713_v14 = vld [vmem:[%s7315_s1 + $0x558] sm:$0xff]  }
  0x7d   :  { %5096 = vmatpush3.bf16.msra.mxu1 %v5652_v13  ;;  %v5712_v13 = vld [vmem:[%s7315_s1 + $0x5a0] sm:$0xff]  }
  0x7e   :  { %5097 = vmatprep.subr.bf16.mxu1 %v5655_v16  ;;  %v5715_v16 = vld [vmem:[%s7315_s1 + $0x5d8] sm:$0xff]  }
  0x7f   :  { %5076 = vmatpush3.bf16.msra.mxu0 %v5654_v15  ;;  %v5714_v15 = vld [vmem:[%s7315_s1 + $0x518] sm:$0xff]  }
  0x80   :  { %5105 = vmatprep.subr.bf16.mxu0 %v5659_v21  ;;  %v5720_v21 = vld [vmem:[%s7315_s1 + $0x590] sm:$0xff]  }
  0x81   :  { %5098 = vmatpush3.bf16.msra.mxu1 %v5658_v20  ;;  %v5719_v20 = vld [vmem:[%s7315_s1 + $0x5d0] sm:$0xff]  }
  0x82   :  { %3634 = vmatmul.mubr.bf16.vlgmr.msra.gmra.mxu0 %v4491_v18  ;;  %5127 = vmatprep.subr.bf16.mxu1 %v5663_v26  ;;  %v5717_v18 = vld [vmem:[%s7315_s1 + $0x550] sm:$0xff]   ;;  %v5725_v26 = vld [vmem:[%s7315_s1 + $0x540] sm:$0xff]  }
  0x83   :  { %5106 = vmatpush3.bf16.msra.mxu0 %v5662_v25  ;;  %3713 = vmatprep.mubr.bf16.mxu0 %v4496_v57  ;;  %v5724_v25 = vld [vmem:[%s7315_s1 + $0x588] sm:$0xff]   ;;  %v5754_v57 = vld [vmem:[%s7315_s1 + $0x610] sm:$0xff]  }
  0x84   :  { %3674 = vmatmul.mubr.bf16.vlgmr.msra.gmra.mxu1 %v4493_v23  ;;  %5107 = vmatprep.subr.bf16.mxu0 %v5665_v28  ;;  %v5722_v23 = vld [vmem:[%s7315_s1 + $0x508] sm:$0xff]   ;;  %v5727_v28 = vld [vmem:[%s7315_s1 + $0x5c0] sm:$0xff]  }
  0x85   :  { %5128 = vmatpush3.bf16.msra.mxu1 %v5664_v27  ;;  %3753 = vmatprep.mubr.bf16.mxu1 %v4498_v62  ;;  %v5726_v27 = vld [vmem:[%s7315_s1 + $0x500] sm:$0xff]   ;;  %v5759_v62 = vld [vmem:[%s7315_s1 + $0x6c8] sm:$0xff]  }
  0x86   :  { %5129 = vmatprep.subr.bf16.mxu1 %v5667_v30 }
  0x87   :  { %5108 = vmatpush3.bf16.msra.mxu0 %v5666_v29  ;;  %v31_v29 = vld [vmem:[%s7316_s0 + $0x50] sm:$0xff] }
  0x88   :  { %5109 = vmatprep.subr.bf16.mxu0 %v5669_v32  ;;  %v4499_v30 = vcombine.low %v31_v29, %v31_v29  ;;  %v5730_v32 = vld [vmem:[%s7315_s1 + $0x580] sm:$0xff]  }
  0x89   :  { %5130 = vmatpush3.bf16.msra.mxu1 %v5668_v31  ;;  %v4500_v31 = vcombine.high %v31_v29, %v31_v29 }
  0x8a   :  { %5131 = vmatprep.subr.bf16.mxu1 %v5671_v34  ;;  %v32_v34 = vld [vmem:[%s7316_s0 + $0x58] sm:$0xff] }
  0x8b   :  { %5110 = vmatpush3.bf16.msra.mxu0 %v5670_v33  ;;  %v5731_v33 = vld [vmem:[%s7315_s1 + $0x678] sm:$0xff]  }
  0x8c   :  { %5111 = vmatprep.subr.bf16.mxu0 %v5673_v36  ;;  %v4502_v36 = vcombine.high %v32_v34, %v32_v34 }
  0x8d   :  { %5132 = vmatpush3.bf16.msra.mxu1 %v5672_v35  ;;  %v4501_v35 = vcombine.low %v32_v34, %v32_v34  ;;  %v5780_v34 = vld [vmem:[%s7315_s1 + $0x7a8] sm:$0xff]  }
  0x8e   :  { %5133 = vmatprep.subr.bf16.mxu1 %v5675_v38  ;;  %v5735_v38 = vld [vmem:[%s7315_s1 + $0x6f8] sm:$0xff]  }
  0x8f   :  { %5112 = vmatpush3.bf16.msra.mxu0 %v5674_v37  ;;  %v5734_v37 = vld [vmem:[%s7315_s1 + $0x638] sm:$0xff]  }
  0x90   :  { %5113 = vmatprep.subr.bf16.mxu0 %v5677_v40  ;;  %v5737_v40 = vld [vmem:[%s7315_s1 + $0x670] sm:$0xff]  }
  0x91   :  { %5134 = vmatpush3.bf16.msra.mxu1 %v5676_v39  ;;  %v5736_v39 = vld [vmem:[%s7315_s1 + $0x6b8] sm:$0xff]  }
  0x92   :  { %5135 = vmatprep.subr.bf16.mxu1 %v5679_v42  ;;  %v5739_v42 = vld [vmem:[%s7315_s1 + $0x6f0] sm:$0xff]  }
  0x93   :  { %5114 = vmatpush3.bf16.msra.mxu0 %v5678_v41  ;;  %v5738_v41 = vld [vmem:[%s7315_s1 + $0x630] sm:$0xff]  }
  0x94   :  { %5115 = vmatprep.subr.bf16.mxu0 %v5681_v44  ;;  %v5741_v44 = vld [vmem:[%s7315_s1 + $0x668] sm:$0xff]  }
  0x95   :  { %5136 = vmatpush3.bf16.msra.mxu1 %v5680_v43  ;;  %v5740_v43 = vld [vmem:[%s7315_s1 + $0x6b0] sm:$0xff]  }
  0x96   :  { %5137 = vmatprep.subr.bf16.mxu1 %v5683_v46  ;;  %v5743_v46 = vld [vmem:[%s7315_s1 + $0x6e8] sm:$0xff]  }
  0x97   :  { %5116 = vmatpush3.bf16.msra.mxu0 %v5682_v45  ;;  %v5742_v45 = vld [vmem:[%s7315_s1 + $0x628] sm:$0xff]  }
  0x98   :  { %5117 = vmatprep.subr.bf16.mxu0 %v5685_v48  ;;  %v5745_v48 = vld [vmem:[%s7315_s1 + $0x660] sm:$0xff]  }
  0x99   :  { %5138 = vmatpush3.bf16.msra.mxu1 %v5684_v47  ;;  %v5744_v47 = vld [vmem:[%s7315_s1 + $0x6a8] sm:$0xff]  }
  0x9a   :  { %5139 = vmatprep.subr.bf16.mxu1 %v5687_v50  ;;  %v5747_v50 = vld [vmem:[%s7315_s1 + $0x6e0] sm:$0xff]  }
  0x9b   :  { %5118 = vmatpush3.bf16.msra.mxu0 %v5686_v49  ;;  %v5746_v49 = vld [vmem:[%s7315_s1 + $0x620] sm:$0xff]  }
  0x9c   :  { %5119 = vmatprep.subr.bf16.mxu0 %v5689_v52  ;;  %v5749_v52 = vld [vmem:[%s7315_s1 + $0x658] sm:$0xff]  }
  0x9d   :  { %5140 = vmatpush3.bf16.msra.mxu1 %v5688_v51  ;;  %v5748_v51 = vld [vmem:[%s7315_s1 + $0x6a0] sm:$0xff]  }
  0x9e   :  { %5141 = vmatprep.subr.bf16.mxu1 %v5691_v54  ;;  %v5751_v54 = vld [vmem:[%s7315_s1 + $0x6d8] sm:$0xff]  }
  0x9f   :  { %5120 = vmatpush3.bf16.msra.mxu0 %v5690_v53  ;;  %v5750_v53 = vld [vmem:[%s7315_s1 + $0x618] sm:$0xff]  }
  0xa0   :  { %5149 = vmatprep.subr.bf16.mxu0 %v5695_v59  ;;  %v5756_v59 = vld [vmem:[%s7315_s1 + $0x690] sm:$0xff]  }
  0xa1   :  { %5142 = vmatpush3.bf16.msra.mxu1 %v5694_v58  ;;  %v5755_v58 = vld [vmem:[%s7315_s1 + $0x6d0] sm:$0xff]  }
  0xa2   :  { %3714 = vmatmul.mubr.bf16.vlgmr.msra.gmra.mxu0 %v4495_v56  ;;  %5171 = vmatprep.subr.bf16.mxu1 %v5699_v0  ;;  %v5753_v56 = vld [vmem:[%s7315_s1 + $0x650] sm:$0xff]   ;;  %v5761_v0 = vld [vmem:[%s7315_s1 + $0x640] sm:$0xff]  }
  0xa3   :  { %5150 = vmatpush3.bf16.msra.mxu0 %v5698_v63  ;;  %3793 = vmatprep.mubr.bf16.mxu0 %v4500_v31  ;;  %v5760_v63 = vld [vmem:[%s7315_s1 + $0x688] sm:$0xff]  }
  0xa4   :  { %3754 = vmatmul.mubr.bf16.vlgmr.msra.gmra.mxu1 %v4497_v61  ;;  %5151 = vmatprep.subr.bf16.mxu0 %v5701_v2  ;;  %v5758_v61 = vld [vmem:[%s7315_s1 + $0x608] sm:$0xff]   ;;  %v5763_v2 = vld [vmem:[%s7315_s1 + $0x6c0] sm:$0xff]  }
  0xa5   :  { %5172 = vmatpush3.bf16.msra.mxu1 %v5700_v1  ;;  %3833 = vmatprep.mubr.bf16.mxu1 %v4502_v36  ;;  %v5762_v1 = vld [vmem:[%s7315_s1 + $0x600] sm:$0xff]   ;;  %v5777_v31 = vld [vmem:[%s7315_s1 + $0x768] sm:$0xff]  }
  0xa6   :  { %5173 = vmatprep.subr.bf16.mxu1 %v5703_v4  ;;  %v5782_v36 = vld [vmem:[%s7315_s1 + $0x720] sm:$0xff]  }
  0xa7   :  { %5152 = vmatpush3.bf16.msra.mxu0 %v5702_v3  ;;  %v33_v3 = vld [vmem:[%s7316_s0 + $0x60] sm:$0xff] }
  0xa8   :  { %5153 = vmatprep.subr.bf16.mxu0 %v5705_v6  ;;  %v4504_v6 = vcombine.high %v33_v3, %v33_v3 }
  0xa9   :  { %5174 = vmatpush3.bf16.msra.mxu1 %v5704_v5  ;;  %v4503_v5 = vcombine.low %v33_v3, %v33_v3 }
  0xaa   :  { %5175 = vmatprep.subr.bf16.mxu1 %v5707_v8  ;;  %v5767_v8 = vld [vmem:[%s7315_s1 + $0x778] sm:$0xff]  }
  0xab   :  { %5154 = vmatpush3.bf16.msra.mxu0 %v5706_v7  ;;  %v5766_v7 = vld [vmem:[%s7315_s1 + $0x680] sm:$0xff]  }
  0xac   :  { %5155 = vmatprep.subr.bf16.mxu0 %v5709_v10 }
  0xad   :  { %5176 = vmatpush3.bf16.msra.mxu1 %v5708_v9  ;;  %v34_v9 = vld [vmem:[%s7316_s0 + $0x68] sm:$0xff] }
  0xae   :  { %5177 = vmatprep.subr.bf16.mxu1 %v5711_v12  ;;  %v4505_v12 = vcombine.low %v34_v9, %v34_v9 }
  0xaf   :  { %5156 = vmatpush3.bf16.msra.mxu0 %v5710_v11 }
  0xb0   :  { %5157 = vmatprep.subr.bf16.mxu0 %v5713_v14  ;;  %v5770_v14 = vld [vmem:[%s7315_s1 + $0x738] sm:$0xff]  }
  0xb1   :  { %5178 = vmatpush3.bf16.msra.mxu1 %v5712_v13  ;;  %v4506_v13 = vcombine.high %v34_v9, %v34_v9 }
  0xb2   :  { %5179 = vmatprep.subr.bf16.mxu1 %v5715_v16 }
  0xb3   :  { %5158 = vmatpush3.bf16.msra.mxu0 %v5714_v15  ;;  %v4478_v15 = vld [vmem:[%s7317_s2] ss:$0 sm:$0xff] }
  0xb4   :  { %5159 = vmatprep.subr.bf16.mxu0 %v5717_v18 }
  0xb5   :  { %5180 = vmatpush3.bf16.msra.mxu1 %v5716_v17  ;;  %v5771_v17 = vld [vmem:[%s7315_s1 + $0x7f8] sm:$0xff]  }
  0xb6   :  { %5181 = vmatprep.subr.bf16.mxu1 %v5719_v20 }
  0xb7   :  { %5160 = vmatpush3.bf16.msra.mxu0 %v5718_v19 }
  0xb8   :  { %5161 = vmatprep.subr.bf16.mxu0 %v5721_v22 }
  0xb9   :  { %5182 = vmatpush3.bf16.msra.mxu1 %v5720_v21  ;;  %v5772_v21 = vld [vmem:[%s7315_s1 + $0x7b8] sm:$0xff]  }
  0xba   :  { %5183 = vmatprep.subr.bf16.mxu1 %v5723_v24 }
  0xbb   :  { %5162 = vmatpush3.bf16.msra.mxu0 %v5722_v23  ;;  %v5773_v23 = vld [vmem:[%s7315_s1 + $0x770] sm:$0xff]  }
  0xbc   :  { %5163 = vmatprep.subr.bf16.mxu0 %v5725_v26 }
  0xbd   :  { %5184 = vmatpush3.bf16.msra.mxu1 %v5724_v25 }
  0xbe   :  { %5185 = vmatprep.subr.bf16.mxu1 %v5727_v28  ;;  %v5775_v28 = vld [vmem:[%s7315_s1 + $0x7f0] sm:$0xff]  }
  0xbf   :  { %5164 = vmatpush3.bf16.msra.mxu0 %v5726_v27  ;;  %v5774_v27 = vld [vmem:[%s7315_s1 + $0x730] sm:$0xff]  }
  0xc0   :  { %5193 = vmatprep.subr.bf16.mxu0 %v5731_v33  ;;  %v5779_v33 = vld [vmem:[%s7315_s1 + $0x7e8] sm:$0xff]  }
  0xc1   :  { %5186 = vmatpush3.bf16.msra.mxu1 %v5730_v32  ;;  %v5778_v32 = vld [vmem:[%s7315_s1 + $0x728] sm:$0xff]  }
  0xc2   :  { %3794 = vmatmul.mubr.bf16.vlgmr.msra.gmra.mxu0 %v4499_v30  ;;  %5215 = vmatprep.subr.bf16.mxu1 %v5735_v38  ;;  %v5776_v30 = vld [vmem:[%s7315_s1 + $0x7b0] sm:$0xff]   ;;  %v5784_v38 = vld [vmem:[%s7315_s1 + $0x7a0] sm:$0xff]  }
  0xc3   :  { %5194 = vmatpush3.bf16.msra.mxu0 %v5734_v37  ;;  %3873 = vmatprep.mubr.bf16.mxu0 %v4504_v6  ;;  %v5783_v37 = vld [vmem:[%s7315_s1 + $0x7e0] sm:$0xff]  }
  0xc4   :  { %3834 = vmatmul.mubr.bf16.vlgmr.msra.gmra.mxu1 %v4501_v35  ;;  %5195 = vmatprep.subr.bf16.mxu0 %v5737_v40  ;;  %v5781_v35 = vld [vmem:[%s7315_s1 + $0x760] sm:$0xff]   ;;  %v5786_v40 = vld [vmem:[%s7315_s1 + $0x718] sm:$0xff]  }
  0xc5   :  { %5216 = vmatpush3.bf16.msra.mxu1 %v5736_v39  ;;  %3913 = vmatprep.mubr.bf16.mxu1 %v4506_v13  ;;  %v5785_v39 = vld [vmem:[%s7315_s1 + $0x758] sm:$0xff]   ;;  %v5810_v13 = vld [vmem:[%s7315_s1 + $0x830] sm:$0xff]  }
  0xc6   :  { %5217 = vmatprep.subr.bf16.mxu1 %v5739_v42  ;;  %v5788_v42 = vld [vmem:[%s7315_s1 + $0x798] sm:$0xff]  }
  0xc7   :  { %5196 = vmatpush3.bf16.msra.mxu0 %v5738_v41  ;;  %v5787_v41 = vld [vmem:[%s7315_s1 + $0x7d8] sm:$0xff]  }
  0xc8   :  { %5197 = vmatprep.subr.bf16.mxu0 %v5741_v44  ;;  %v5790_v44 = vld [vmem:[%s7315_s1 + $0x710] sm:$0xff]  }
  0xc9   :  { %5218 = vmatpush3.bf16.msra.mxu1 %v5740_v43  ;;  %v5789_v43 = vld [vmem:[%s7315_s1 + $0x750] sm:$0xff]  }
  0xca   :  { %5219 = vmatprep.subr.bf16.mxu1 %v5743_v46  ;;  %v5792_v46 = vld [vmem:[%s7315_s1 + $0x790] sm:$0xff]  }
  0xcb   :  { %5198 = vmatpush3.bf16.msra.mxu0 %v5742_v45  ;;  %v5791_v45 = vld [vmem:[%s7315_s1 + $0x7d0] sm:$0xff]  }
  0xcc   :  { %5199 = vmatprep.subr.bf16.mxu0 %v5745_v48  ;;  %v5794_v48 = vld [vmem:[%s7315_s1 + $0x708] sm:$0xff]  }
  0xcd   :  { %5220 = vmatpush3.bf16.msra.mxu1 %v5744_v47  ;;  %v5793_v47 = vld [vmem:[%s7315_s1 + $0x748] sm:$0xff]  }
  0xce   :  { %5221 = vmatprep.subr.bf16.mxu1 %v5747_v50  ;;  %v5796_v50 = vld [vmem:[%s7315_s1 + $0x788] sm:$0xff]  }
  0xcf   :  { %5200 = vmatpush3.bf16.msra.mxu0 %v5746_v49  ;;  %v5795_v49 = vld [vmem:[%s7315_s1 + $0x7c8] sm:$0xff]  }
  0xd0   :  { %5201 = vmatprep.subr.bf16.mxu0 %v5749_v52  ;;  %v5798_v52 = vld [vmem:[%s7315_s1 + $0x700] sm:$0xff]  }
  0xd1   :  { %5222 = vmatpush3.bf16.msra.mxu1 %v5748_v51  ;;  %v5797_v51 = vld [vmem:[%s7315_s1 + $0x740] sm:$0xff]  }
  0xd2   :  { %5223 = vmatprep.subr.bf16.mxu1 %v5751_v54 }
  0xd3   :  { %5202 = vmatpush3.bf16.msra.mxu0 %v5750_v53  ;;  %v5799_v53 = vld [vmem:[%s7315_s1 + $0x7c0] sm:$0xff]  }
  0xd4   :  { %5203 = vmatprep.subr.bf16.mxu0 %v5753_v56 }
  0xd5   :  { %5224 = vmatpush3.bf16.msra.mxu1 %v5752_v55  ;;  %v35_v55 = vld [vmem:[%s7316_s0 + $0x70] sm:$0xff] }
  0xd6   :  { %5225 = vmatprep.subr.bf16.mxu1 %v5755_v58  ;;  %v4507_v56 = vcombine.low %v35_v55, %v35_v55  ;;  %v5802_v58 = vld [vmem:[%s7315_s1 + $0x780] sm:$0xff]  }
  0xd7   :  { %5204 = vmatpush3.bf16.msra.mxu0 %v5754_v57  ;;  %v4508_v57 = vcombine.high %v35_v55, %v35_v55 }
  0xd8   :  { %5205 = vmatprep.subr.bf16.mxu0 %v5757_v60  ;;  %v5803_v60 = vld [vmem:[%s7315_s1 + $0x878] sm:$0xff]  }
  0xd9   :  { %5226 = vmatpush3.bf16.msra.mxu1 %v5756_v59 }
  0xda   :  { %5227 = vmatprep.subr.bf16.mxu1 %v5759_v62 }
  0xdb   :  { %5206 = vmatpush3.bf16.msra.mxu0 %v5758_v61  ;;  %v36_v61 = vld [vmem:[%s7316_s0 + $0x78] sm:$0xff] }
  0xdc   :  { %5207 = vmatprep.subr.bf16.mxu0 %v5761_v0  ;;  %v4509_v0 = vcombine.low %v36_v61, %v36_v61 }
  0xdd   :  { %5228 = vmatpush3.bf16.msra.mxu1 %v5760_v63 }
  0xde   :  { %5229 = vmatprep.subr.bf16.mxu1 %v5763_v2  ;;  %v5806_v2 = vld [vmem:[%s7315_s1 + $0x838] sm:$0xff]  }
  0xdf   :  { %5208 = vmatpush3.bf16.msra.mxu0 %v5762_v1  ;;  %v4510_v1 = vcombine.high %v36_v61, %v36_v61 }
  0xe0   :  { %5237 = vmatprep.subr.bf16.mxu0 %v5767_v8 }
  0xe1   :  { %5230 = vmatpush3.bf16.msra.mxu1 %v5766_v7  ;;  %v5808_v7 = vld [vmem:[%s7315_s1 + $0x8b8] sm:$0xff]  }
  0xe2   :  { %v4945_v4 = vpop.f32.mrf.mxu0  ;;  %3874 = vmatmul.mubr.bf16.vlgmr.msra.gmra.mxu0 %v4503_v5  ;;  %5259 = vmatprep.subr.bf16.mxu1 %v5771_v17  ;;  %v5807_v5 = vld [vmem:[%s7315_s1 + $0x8f8] sm:$0xff]   ;;  %v5813_v17 = vld [vmem:[%s7315_s1 + $0x868] sm:$0xff]  }
  0xe3   :  { %5238 = vmatpush3.bf16.msra.mxu0 %v5770_v14  ;;  %3953 = vmatprep.mubr.bf16.mxu0 %v4508_v57  ;;  %v5811_v14 = vld [vmem:[%s7315_s1 + $0x8f0] sm:$0xff]  }
  0xe4   :  { %v4946_v10 = vpop.f32.mrf.mxu0  ;;  %v4967_v11 = vpop.f32.mrf.mxu1  ;;  %3914 = vmatmul.mubr.bf16.vlgmr.msra.gmra.mxu1 %v4505_v12  ;;  %5239 = vmatprep.subr.bf16.mxu0 %v5773_v23  ;;  %v5819_v23 = vld [vmem:[%s7315_s1 + $0x8e0] sm:$0xff]  }
  0xe5   :  { %v4947_v16 = vadd.f32 %v4946_v10, %v4945_v4  ;;  %5260 = vmatpush3.bf16.msra.mxu1 %v5772_v21  ;;  %3993 = vmatprep.mubr.bf16.mxu1 %v4510_v1  ;;  %v5809_v10 = vld [vmem:[%s7315_s1 + $0x870] sm:$0xff]   ;;  %v5817_v21 = vld [vmem:[%s7315_s1 + $0x860] sm:$0xff]  }
  0xe6   :  { %v4948_v18 = vpop.f32.mrf.mxu0  ;;  %v4968_v19 = vpop.f32.mrf.mxu1  ;;  %5261 = vmatprep.subr.bf16.mxu1 %v5775_v28  ;;  %v5824_v28 = vld [vmem:[%s7315_s1 + $0x898] sm:$0xff]   ;;  %v5847_v1 = vld [vmem:[%s7315_s1 + $0x9f0] sm:$0xff]  }
  0xe7   :  { %v3396_v20 = vadd.f32 %v4947_v16, %v4478_v15  ;;  %v4969_v22 = vadd.f32 %v4968_v19, %v4967_v11  ;;  %5240 = vmatpush3.bf16.msra.mxu0 %v5774_v27  ;;  %v5812_v16 = vld [vmem:[%s7315_s1 + $0x8b0] sm:$0xff]   ;;  %v5814_v18 = vld [vmem:[%s7315_s1 + $0x828] sm:$0xff]   ;;  %v5823_v27 = vld [vmem:[%s7315_s1 + $0x8d8] sm:$0xff]  }
  0xe8   :  { %v4949_v24 = vpop.f32.mrf.mxu0  ;;  %v4970_v25 = vpop.f32.mrf.mxu1  ;;  %5241 = vmatprep.subr.bf16.mxu0 %v5777_v31  ;;  %v5815_v19 = vld [vmem:[%s7315_s1 + $0x8e8] sm:$0xff]   ;;  %v5827_v31 = vld [vmem:[%s7315_s1 + $0x8d0] sm:$0xff]  }
  0xe9   :  { %v6730_v26 = vadd.f32 %v4969_v22, %v3396_v20  ;;  %5262 = vmatpush3.bf16.msra.mxu1 %v5776_v30  ;;  %v5816_v20 = vld [vmem:[%s7315_s1 + $0x8a8] sm:$0xff]   ;;  %v5818_v22 = vld [vmem:[%s7315_s1 + $0x820] sm:$0xff]   ;;  %v5821_v25 = vld [vmem:[%s7315_s1 + $0x858] sm:$0xff]  }
  0xea   :  { %v4971_v29 = vpop.f32.mrf.mxu1  ;;  %5263 = vmatprep.subr.bf16.mxu1 %v5779_v33  ;;  %v5820_v24 = vld [vmem:[%s7315_s1 + $0x8a0] sm:$0xff]   ;;  %v5826_v30 = vld [vmem:[%s7315_s1 + $0x810] sm:$0xff]   ;;  %v5829_v33 = vld [vmem:[%s7315_s1 + $0x848] sm:$0xff]  }
  0xeb   :  { %5242 = vmatpush3.bf16.msra.mxu0 %v5778_v32  ;;  %v5825_v29 = vld [vmem:[%s7315_s1 + $0x850] sm:$0xff]  }
  0xec   :  { %5243 = vmatprep.subr.bf16.mxu0 %v5781_v35  ;;  %v5828_v32 = vld [vmem:[%s7315_s1 + $0x890] sm:$0xff]   ;;  %v5831_v35 = vld [vmem:[%s7315_s1 + $0x8c8] sm:$0xff]  }
  0xed   :  { %5264 = vmatpush3.bf16.msra.mxu1 %v5780_v34  ;;  %v5830_v34 = vld [vmem:[%s7315_s1 + $0x808] sm:$0xff]  }
  0xee   :  { %5265 = vmatprep.subr.bf16.mxu1 %v5783_v37  ;;  %v5833_v37 = vld [vmem:[%s7315_s1 + $0x840] sm:$0xff]  }
  0xef   :  { %5244 = vmatpush3.bf16.msra.mxu0 %v5782_v36  ;;  %v5832_v36 = vld [vmem:[%s7315_s1 + $0x888] sm:$0xff]  }
  0xf0   :  { %5245 = vmatprep.subr.bf16.mxu0 %v5785_v39  ;;  %v5835_v39 = vld [vmem:[%s7315_s1 + $0x8c0] sm:$0xff]  }
  0xf1   :  { %5266 = vmatpush3.bf16.msra.mxu1 %v5784_v38  ;;  %v5834_v38 = vld [vmem:[%s7315_s1 + $0x800] sm:$0xff]  }
  0xf2   :  { %5267 = vmatprep.subr.bf16.mxu1 %v5787_v41 }
  0xf3   :  { %5246 = vmatpush3.bf16.msra.mxu0 %v5786_v40  ;;  %v37_v40 = vld [vmem:[%s7316_s0 + $0x80] sm:$0xff] }
  0xf4   :  { %5247 = vmatprep.subr.bf16.mxu0 %v5789_v43  ;;  %v4512_v43 = vcombine.high %v37_v40, %v37_v40 }
  0xf5   :  { %5268 = vmatpush3.bf16.msra.mxu1 %v5788_v42  ;;  %v4511_v42 = vcombine.low %v37_v40, %v37_v40 }
  0xf6   :  { %5269 = vmatprep.subr.bf16.mxu1 %v5791_v45  ;;  %v5839_v45 = vld [vmem:[%s7315_s1 + $0x978] sm:$0xff]  }
  0xf7   :  { %5248 = vmatpush3.bf16.msra.mxu0 %v5790_v44  ;;  %v5838_v44 = vld [vmem:[%s7315_s1 + $0x880] sm:$0xff]  }
  0xf8   :  { %5249 = vmatprep.subr.bf16.mxu0 %v5793_v47 }
  0xf9   :  { %5270 = vmatpush3.bf16.msra.mxu1 %v5792_v46 }
  0xfa   :  { %5271 = vmatprep.subr.bf16.mxu1 %v5795_v49 }
  0xfb   :  { %5250 = vmatpush3.bf16.msra.mxu0 %v5794_v48  ;;  %v38_v48 = vld [vmem:[%s7316_s0 + $0x88] sm:$0xff] }
  0xfc   :  { %5251 = vmatprep.subr.bf16.mxu0 %v5797_v51  ;;  %v4514_v51 = vcombine.high %v38_v48, %v38_v48 }
  0xfd   :  { %5272 = vmatpush3.bf16.msra.mxu1 %v5796_v50  ;;  %v4513_v50 = vcombine.low %v38_v48, %v38_v48 }
  0xfe   :  { %5273 = vmatprep.subr.bf16.mxu1 %v5799_v53 }
  0xff   :  { %5252 = vmatpush3.bf16.msra.mxu0 %v5798_v52  ;;  %v5842_v52 = vld [vmem:[%s7315_s1 + $0x938] sm:$0xff]  }
 0x100   :  { %5281 = vmatprep.subr.bf16.mxu0 %v5803_v60 }
 0x101   :  { %5274 = vmatpush3.bf16.msra.mxu1 %v5802_v58  ;;  %v5844_v58 = vld [vmem:[%s7315_s1 + $0x9b8] sm:$0xff]  }
 0x102   :  { %v4989_v54 = vpop.f32.mrf.mxu0  ;;  %3954 = vmatmul.mubr.bf16.vlgmr.msra.gmra.mxu0 %v4507_v56  ;;  %5303 = vmatprep.subr.bf16.mxu1 %v5807_v5  ;;  %v5843_v56 = vld [vmem:[%s7315_s1 + $0x9f8] sm:$0xff]   ;;  %v5851_v5 = vld [vmem:[%s7315_s1 + $0x9e8] sm:$0xff]  }
 0x103   :  { %5282 = vmatpush3.bf16.msra.mxu0 %v5806_v2  ;;  %4033 = vmatprep.mubr.bf16.mxu0 %v4512_v43  ;;  %v5848_v2 = vld [vmem:[%s7315_s1 + $0x9b0] sm:$0xff]   ;;  %v5880_v43 = vld [vmem:[%s7315_s1 + $0xab8] sm:$0xff]  }
 0x104   :  { %v4990_v59 = vpop.f32.mrf.mxu0  ;;  %v5011_v63 = vpop.f32.mrf.mxu1  ;;  %3994 = vmatmul.mubr.bf16.vlgmr.msra.gmra.mxu1 %v4509_v0  ;;  %5283 = vmatprep.subr.bf16.mxu0 %v5809_v10  ;;  %v5856_v10 = vld [vmem:[%s7315_s1 + $0x9a0] sm:$0xff]  }
 0x105   :  { %v4991_v62 = vadd.f32 %v4990_v59, %v4989_v54  ;;  %5304 = vmatpush3.bf16.msra.mxu1 %v5808_v7  ;;  %4073 = vmatprep.mubr.bf16.mxu1 %v4514_v51  ;;  %v5853_v7 = vld [vmem:[%s7315_s1 + $0x960] sm:$0xff]  }
 0x106   :  { %v4992_v3 = vpop.f32.mrf.mxu0  ;;  %v5012_v6 = vpop.f32.mrf.mxu1  ;;  %5305 = vmatprep.subr.bf16.mxu1 %v5811_v14  ;;  %v5860_v14 = vld [vmem:[%s7315_s1 + $0x998] sm:$0xff]  }
 0x107   :  { %v3476_v4 = vadd.f32 %v4991_v62, %v6730_v26  ;;  %v5013_v8 = vadd.f32 %v5012_v6, %v5011_v63  ;;  %5284 = vmatpush3.bf16.msra.mxu0 %v5810_v13  ;;  %v5822_v26 = vld [vmem:[%s7315_s1 + $0x818] sm:$0xff]   ;;  %v5845_v62 = vld [vmem:[%s7315_s1 + $0x970] sm:$0xff]   ;;  %v5849_v3 = vld [vmem:[%s7315_s1 + $0x968] sm:$0xff]  }
 0x108   :  { %v4993_v9 = vpop.f32.mrf.mxu0  ;;  %v5014_v11 = vpop.f32.mrf.mxu1  ;;  %5285 = vmatprep.subr.bf16.mxu0 %v5813_v17  ;;  %v5846_v63 = vld [vmem:[%s7315_s1 + $0x930] sm:$0xff]   ;;  %v5852_v6 = vld [vmem:[%s7315_s1 + $0x9a8] sm:$0xff]   ;;  %v5859_v13 = vld [vmem:[%s7315_s1 + $0x9d8] sm:$0xff]  }
 0x109   :  { %v6835_v12 = vadd.f32 %v5013_v8, %v3476_v4  ;;  %5306 = vmatpush3.bf16.msra.mxu1 %v5812_v16  ;;  %v5850_v4 = vld [vmem:[%s7315_s1 + $0x928] sm:$0xff]   ;;  %v5854_v8 = vld [vmem:[%s7315_s1 + $0x920] sm:$0xff]   ;;  %v5857_v11 = vld [vmem:[%s7315_s1 + $0x958] sm:$0xff]  }
 0x10a   :  { %v5015_v15 = vpop.f32.mrf.mxu1  ;;  %5307 = vmatprep.subr.bf16.mxu1 %v5815_v19  ;;  %v5855_v9 = vld [vmem:[%s7315_s1 + $0x9e0] sm:$0xff]   ;;  %v5862_v16 = vld [vmem:[%s7315_s1 + $0x910] sm:$0xff]   ;;  %v5865_v19 = vld [vmem:[%s7315_s1 + $0x948] sm:$0xff]  }
 0x10b   :  { %5286 = vmatpush3.bf16.msra.mxu0 %v5814_v18  ;;  %v5861_v15 = vld [vmem:[%s7315_s1 + $0x950] sm:$0xff]  }
 0x10c   :  { %5287 = vmatprep.subr.bf16.mxu0 %v5817_v21  ;;  %v5863_v17 = vld [vmem:[%s7315_s1 + $0x9d0] sm:$0xff]   ;;  %v5867_v21 = vld [vmem:[%s7315_s1 + $0x9c8] sm:$0xff]  }
 0x10d   :  { %5308 = vmatpush3.bf16.msra.mxu1 %v5816_v20  ;;  %v5864_v18 = vld [vmem:[%s7315_s1 + $0x990] sm:$0xff]   ;;  %v5866_v20 = vld [vmem:[%s7315_s1 + $0x908] sm:$0xff]  }
 0x10e   :  { %5309 = vmatprep.subr.bf16.mxu1 %v5819_v23  ;;  %v5869_v23 = vld [vmem:[%s7315_s1 + $0x940] sm:$0xff]  }
 0x10f   :  { %5288 = vmatpush3.bf16.msra.mxu0 %v5818_v22  ;;  %v5868_v22 = vld [vmem:[%s7315_s1 + $0x988] sm:$0xff]  }
 0x110   :  { %5289 = vmatprep.subr.bf16.mxu0 %v5821_v25  ;;  %v5871_v25 = vld [vmem:[%s7315_s1 + $0x9c0] sm:$0xff]  }
 0x111   :  { %5310 = vmatpush3.bf16.msra.mxu1 %v5820_v24  ;;  %v5870_v24 = vld [vmem:[%s7315_s1 + $0x900] sm:$0xff]  }
 0x112   :  { %5311 = vmatprep.subr.bf16.mxu1 %v5823_v27 }
 0x113   :  { %5290 = vmatpush3.bf16.msra.mxu0 %v5822_v26  ;;  %v39_v26 = vld [vmem:[%s7316_s0 + $0x90] sm:$0xff] }
 0x114   :  { %5291 = vmatprep.subr.bf16.mxu0 %v5825_v29  ;;  %v4516_v29 = vcombine.high %v39_v26, %v39_v26 }
 0x115   :  { %5312 = vmatpush3.bf16.msra.mxu1 %v5824_v28  ;;  %v4515_v28 = vcombine.low %v39_v26, %v39_v26 }
 0x116   :  { %5313 = vmatprep.subr.bf16.mxu1 %v5827_v31  ;;  %v5875_v31 = vld [vmem:[%s7315_s1 + $0xa78] sm:$0xff]  }
 0x117   :  { %5292 = vmatpush3.bf16.msra.mxu0 %v5826_v30  ;;  %v5874_v30 = vld [vmem:[%s7315_s1 + $0x980] sm:$0xff]  }
 0x118   :  { %5293 = vmatprep.subr.bf16.mxu0 %v5829_v33 }
 0x119   :  { %5314 = vmatpush3.bf16.msra.mxu1 %v5828_v32  ;;  %v40_v32 = vld [vmem:[%s7316_s0 + $0x98] sm:$0xff] }
 0x11a   :  { %5315 = vmatprep.subr.bf16.mxu1 %v5831_v35  ;;  %v4517_v35 = vcombine.low %v40_v32, %v40_v32 }
 0x11b   :  { %5294 = vmatpush3.bf16.msra.mxu0 %v5830_v34 }
 0x11c   :  { %5295 = vmatprep.subr.bf16.mxu0 %v5833_v37  ;;  %v5878_v37 = vld [vmem:[%s7315_s1 + $0xa38] sm:$0xff]  }
 0x11d   :  { %5316 = vmatpush3.bf16.msra.mxu1 %v5832_v36  ;;  %v4518_v36 = vcombine.high %v40_v32, %v40_v32  ;;  %v5917_v32 = vld [vmem:[%s7315_s1 + $0xb70] sm:$0xff]  }
 0x11e   :  { %5317 = vmatprep.subr.bf16.mxu1 %v5835_v39  ;;  %v5879_v39 = vld [vmem:[%s7315_s1 + $0xaf8] sm:$0xff]  }
 0x11f   :  { %5296 = vmatpush3.bf16.msra.mxu0 %v5834_v38 }
 0x120   :  { %5325 = vmatprep.subr.bf16.mxu0 %v5839_v45  ;;  %v5881_v45 = vld [vmem:[%s7315_s1 + $0xa70] sm:$0xff]  }
 0x121   :  { %5318 = vmatpush3.bf16.msra.mxu1 %v5838_v44 }
 0x122   :  { %v5033_v41 = vpop.f32.mrf.mxu0  ;;  %4034 = vmatmul.mubr.bf16.vlgmr.msra.gmra.mxu0 %v4511_v42  ;;  %5347 = vmatprep.subr.bf16.mxu1 %v5843_v56  ;;  %v5888_v56 = vld [vmem:[%s7315_s1 + $0xaa8] sm:$0xff]  }
 0x123   :  { %5326 = vmatpush3.bf16.msra.mxu0 %v5842_v52  ;;  %4113 = vmatprep.mubr.bf16.mxu0 %v4516_v29  ;;  %v5884_v52 = vld [vmem:[%s7315_s1 + $0xab0] sm:$0xff]   ;;  %v5916_v29 = vld [vmem:[%s7315_s1 + $0xbb8] sm:$0xff]  }
 0x124   :  { %v5034_v46 = vpop.f32.mrf.mxu0  ;;  %v5055_v47 = vpop.f32.mrf.mxu1  ;;  %4074 = vmatmul.mubr.bf16.vlgmr.msra.gmra.mxu1 %v4513_v50  ;;  %5327 = vmatprep.subr.bf16.mxu0 %v5845_v62  ;;  %v5883_v50 = vld [vmem:[%s7315_s1 + $0xaf0] sm:$0xff]   ;;  %v5894_v62 = vld [vmem:[%s7315_s1 + $0xa18] sm:$0xff]  }
 0x125   :  { %v5035_v49 = vadd.f32 %v5034_v46, %v5033_v41  ;;  %5348 = vmatpush3.bf16.msra.mxu1 %v5844_v58  ;;  %4153 = vmatprep.mubr.bf16.mxu1 %v4518_v36  ;;  %v5890_v58 = vld [vmem:[%s7315_s1 + $0xa20] sm:$0xff]   ;;  %v5919_v36 = vld [vmem:[%s7315_s1 + $0xbf0] sm:$0xff]  }
 0x126   :  { %v5036_v53 = vpop.f32.mrf.mxu0  ;;  %v5056_v54 = vpop.f32.mrf.mxu1  ;;  %5349 = vmatprep.subr.bf16.mxu1 %v5847_v1  ;;  %v5897_v1 = vld [vmem:[%s7315_s1 + $0xa50] sm:$0xff]  }
 0x127   :  { %v3556_v55 = vadd.f32 %v5035_v49, %v6835_v12  ;;  %v5057_v57 = vadd.f32 %v5056_v54, %v5055_v47  ;;  %5328 = vmatpush3.bf16.msra.mxu0 %v5846_v63  ;;  %v5858_v12 = vld [vmem:[%s7315_s1 + $0x918] sm:$0xff]   ;;  %v5882_v49 = vld [vmem:[%s7315_s1 + $0xa30] sm:$0xff]   ;;  %v5885_v53 = vld [vmem:[%s7315_s1 + $0xa68] sm:$0xff]  }
 0x128   :  { %v5037_v59 = vpop.f32.mrf.mxu0  ;;  %v5058_v60 = vpop.f32.mrf.mxu1  ;;  %5329 = vmatprep.subr.bf16.mxu0 %v5849_v3  ;;  %v5886_v54 = vld [vmem:[%s7315_s1 + $0xa28] sm:$0xff]   ;;  %v5895_v63 = vld [vmem:[%s7315_s1 + $0xad8] sm:$0xff]   ;;  %v5899_v3 = vld [vmem:[%s7315_s1 + $0xad0] sm:$0xff]  }
 0x129   :  { %v6937_v61 = vadd.f32 %v5057_v57, %v3556_v55  ;;  %5350 = vmatpush3.bf16.msra.mxu1 %v5848_v2  ;;  %v5887_v55 = vld [vmem:[%s7315_s1 + $0xae8] sm:$0xff]   ;;  %v5889_v57 = vld [vmem:[%s7315_s1 + $0xa60] sm:$0xff]   ;;  %v5898_v2 = vld [vmem:[%s7315_s1 + $0xa10] sm:$0xff]  }
 0x12a   :  { %v5059_v0 = vpop.f32.mrf.mxu1  ;;  %5351 = vmatprep.subr.bf16.mxu1 %v5851_v5  ;;  %v5891_v59 = vld [vmem:[%s7315_s1 + $0xae0] sm:$0xff]   ;;  %v5901_v5 = vld [vmem:[%s7315_s1 + $0xa48] sm:$0xff]  }
 0x12b   :  { %5330 = vmatpush3.bf16.msra.mxu0 %v5850_v4  ;;  %v5892_v60 = vld [vmem:[%s7315_s1 + $0xaa0] sm:$0xff]   ;;  %v5896_v0 = vld [vmem:[%s7315_s1 + $0xa98] sm:$0xff]   ;;  %v5900_v4 = vld [vmem:[%s7315_s1 + $0xa90] sm:$0xff]  }
 0x12c   :  { %5331 = vmatprep.subr.bf16.mxu0 %v5853_v7  ;;  %v5903_v7 = vld [vmem:[%s7315_s1 + $0xac8] sm:$0xff]  }
 0x12d   :  { %5352 = vmatpush3.bf16.msra.mxu1 %v5852_v6  ;;  %v5902_v6 = vld [vmem:[%s7315_s1 + $0xa08] sm:$0xff]  }
 0x12e   :  { %5353 = vmatprep.subr.bf16.mxu1 %v5855_v9  ;;  %v5905_v9 = vld [vmem:[%s7315_s1 + $0xa40] sm:$0xff]  }
 0x12f   :  { %5332 = vmatpush3.bf16.msra.mxu0 %v5854_v8  ;;  %v5904_v8 = vld [vmem:[%s7315_s1 + $0xa88] sm:$0xff]  }
 0x130   :  { %5333 = vmatprep.subr.bf16.mxu0 %v5857_v11  ;;  %v5907_v11 = vld [vmem:[%s7315_s1 + $0xac0] sm:$0xff]  }
 0x131   :  { %5354 = vmatpush3.bf16.msra.mxu1 %v5856_v10  ;;  %v5906_v10 = vld [vmem:[%s7315_s1 + $0xa00] sm:$0xff]  }
 0x132   :  { %5355 = vmatprep.subr.bf16.mxu1 %v5859_v13  ;;  %v41_v13 = vld [vmem:[%s7316_s0 + $0xa0] sm:$0xff] }
 0x133   :  { %5334 = vmatpush3.bf16.msra.mxu0 %v5858_v12 }
 0x134   :  { %5335 = vmatprep.subr.bf16.mxu0 %v5861_v15  ;;  %v4520_v15 = vcombine.high %v41_v13, %v41_v13 }
 0x135   :  { %5356 = vmatpush3.bf16.msra.mxu1 %v5860_v14  ;;  %v4519_v14 = vcombine.low %v41_v13, %v41_v13 }
 0x136   :  { %5357 = vmatprep.subr.bf16.mxu1 %v5863_v17 }
 0x137   :  { %5336 = vmatpush3.bf16.msra.mxu0 %v5862_v16  ;;  %v5910_v16 = vld [vmem:[%s7315_s1 + $0xa80] sm:$0xff]  }
 0x138   :  { %5337 = vmatprep.subr.bf16.mxu0 %v5865_v19  ;;  %v42_v19 = vld [vmem:[%s7316_s0 + $0xa8] sm:$0xff] }
 0x139   :  { %5358 = vmatpush3.bf16.msra.mxu1 %v5864_v18  ;;  %v5911_v18 = vld [vmem:[%s7315_s1 + $0xb78] sm:$0xff]  }
 0x13a   :  { %5359 = vmatprep.subr.bf16.mxu1 %v5867_v21 }
 0x13b   :  { %5338 = vmatpush3.bf16.msra.mxu0 %v5866_v20 }
 0x13c   :  { %5339 = vmatprep.subr.bf16.mxu0 %v5869_v23  ;;  %v4522_v23 = vcombine.high %v42_v19, %v42_v19 }
 0x13d   :  { %5360 = vmatpush3.bf16.msra.mxu1 %v5868_v22  ;;  %v4521_v22 = vcombine.low %v42_v19, %v42_v19 }
 0x13e   :  { %5361 = vmatprep.subr.bf16.mxu1 %v5871_v25 }
 0x13f   :  { %5340 = vmatpush3.bf16.msra.mxu0 %v5870_v24  ;;  %v5914_v24 = vld [vmem:[%s7315_s1 + $0xb38] sm:$0xff]  }
 0x140   :  { %5369 = vmatprep.subr.bf16.mxu0 %v5875_v31 }
 0x141   :  { %5362 = vmatpush3.bf16.msra.mxu1 %v5874_v30 }
 0x142   :  { %v5077_v27 = vpop.f32.mrf.mxu0  ;;  %4114 = vmatmul.mubr.bf16.vlgmr.msra.gmra.mxu0 %v4515_v28  ;;  %5391 = vmatprep.subr.bf16.mxu1 %v5879_v39  ;;  %v5921_v39 = vld [vmem:[%s7315_s1 + $0xb68] sm:$0xff]  }
 0x143   :  { %5370 = vmatpush3.bf16.msra.mxu0 %v5878_v37  ;;  %4193 = vmatprep.mubr.bf16.mxu0 %v4520_v15  ;;  %v5950_v15 = vld [vmem:[%s7315_s1 + $0xc30] sm:$0xff]  }
 0x144   :  { %v5078_v33 = vpop.f32.mrf.mxu0  ;;  %v5099_v34 = vpop.f32.mrf.mxu1  ;;  %4154 = vmatmul.mubr.bf16.vlgmr.msra.gmra.mxu1 %v4517_v35  ;;  %5371 = vmatprep.subr.bf16.mxu0 %v5881_v45  ;;  %v5918_v35 = vld [vmem:[%s7315_s1 + $0xb30] sm:$0xff]   ;;  %v5927_v45 = vld [vmem:[%s7315_s1 + $0xbe0] sm:$0xff]  }
 0x145   :  { %v5079_v38 = vadd.f32 %v5078_v33, %v5077_v27  ;;  %5392 = vmatpush3.bf16.msra.mxu1 %v5880_v43  ;;  %v5915_v27 = vld [vmem:[%s7315_s1 + $0xbf8] sm:$0xff]   ;;  %4233 = vmatprep.mubr.bf16.mxu1 %v4522_v23  ;;  %v5925_v43 = vld [vmem:[%s7315_s1 + $0xb60] sm:$0xff]   ;;  %v5954_v23 = vld [vmem:[%s7315_s1 + $0xc10] sm:$0xff]  }
 0x146   :  { %v5080_v40 = vpop.f32.mrf.mxu0  ;;  %v5100_v41 = vpop.f32.mrf.mxu1  ;;  %5393 = vmatprep.subr.bf16.mxu1 %v5883_v50  ;;  %v5932_v50 = vld [vmem:[%s7315_s1 + $0xb98] sm:$0xff]  }
 0x147   :  { %v3636_v42 = vadd.f32 %v5079_v38, %v6937_v61  ;;  %v5101_v44 = vadd.f32 %v5100_v41, %v5099_v34  ;;  %5372 = vmatpush3.bf16.msra.mxu0 %v5882_v49  ;;  %v5893_v61 = vld [vmem:[%s7315_s1 + $0xa58] sm:$0xff]   ;;  %v5920_v38 = vld [vmem:[%s7315_s1 + $0xbb0] sm:$0xff]   ;;  %v5922_v40 = vld [vmem:[%s7315_s1 + $0xb28] sm:$0xff]  }
 0x148   :  { %v5081_v46 = vpop.f32.mrf.mxu0  ;;  %v5102_v47 = vpop.f32.mrf.mxu1  ;;  %5373 = vmatprep.subr.bf16.mxu0 %v5885_v53  ;;  %v5923_v41 = vld [vmem:[%s7315_s1 + $0xbe8] sm:$0xff]   ;;  %v5931_v49 = vld [vmem:[%s7315_s1 + $0xbd8] sm:$0xff]   ;;  %v5935_v53 = vld [vmem:[%s7315_s1 + $0xbd0] sm:$0xff]  }
 0x149   :  { %v7045_v48 = vadd.f32 %v5101_v44, %v3636_v42  ;;  %5394 = vmatpush3.bf16.msra.mxu1 %v5884_v52  ;;  %v5924_v42 = vld [vmem:[%s7315_s1 + $0xba8] sm:$0xff]   ;;  %v5926_v44 = vld [vmem:[%s7315_s1 + $0xb20] sm:$0xff]   ;;  %v5929_v47 = vld [vmem:[%s7315_s1 + $0xb58] sm:$0xff]  }
 0x14a   :  { %v5103_v51 = vpop.f32.mrf.mxu1  ;;  %5395 = vmatprep.subr.bf16.mxu1 %v5887_v55  ;;  %v5928_v46 = vld [vmem:[%s7315_s1 + $0xba0] sm:$0xff]   ;;  %v5934_v52 = vld [vmem:[%s7315_s1 + $0xb10] sm:$0xff]   ;;  %v5937_v55 = vld [vmem:[%s7315_s1 + $0xb48] sm:$0xff]  }
 0x14b   :  { %5374 = vmatpush3.bf16.msra.mxu0 %v5886_v54  ;;  %v5933_v51 = vld [vmem:[%s7315_s1 + $0xb50] sm:$0xff]  }
 0x14c   :  { %5375 = vmatprep.subr.bf16.mxu0 %v5889_v57  ;;  %v5936_v54 = vld [vmem:[%s7315_s1 + $0xb90] sm:$0xff]   ;;  %v5939_v57 = vld [vmem:[%s7315_s1 + $0xbc8] sm:$0xff]  }
 0x14d   :  { %5396 = vmatpush3.bf16.msra.mxu1 %v5888_v56  ;;  %v5938_v56 = vld [vmem:[%s7315_s1 + $0xb08] sm:$0xff]  }
 0x14e   :  { %5397 = vmatprep.subr.bf16.mxu1 %v5891_v59  ;;  %v5941_v59 = vld [vmem:[%s7315_s1 + $0xb40] sm:$0xff]  }
 0x14f   :  { %5376 = vmatpush3.bf16.msra.mxu0 %v5890_v58  ;;  %v5940_v58 = vld [vmem:[%s7315_s1 + $0xb88] sm:$0xff]  }
 0x150   :  { %5377 = vmatprep.subr.bf16.mxu0 %v5893_v61  ;;  %v5943_v61 = vld [vmem:[%s7315_s1 + $0xbc0] sm:$0xff]  }
 0x151   :  { %5398 = vmatpush3.bf16.msra.mxu1 %v5892_v60  ;;  %v5942_v60 = vld [vmem:[%s7315_s1 + $0xb00] sm:$0xff]  }
 0x152   :  { %5399 = vmatprep.subr.bf16.mxu1 %v5895_v63 }
 0x153   :  { %5378 = vmatpush3.bf16.msra.mxu0 %v5894_v62  ;;  %v43_v62 = vld [vmem:[%s7316_s0 + $0xb0] sm:$0xff] }
 0x154   :  { %5379 = vmatprep.subr.bf16.mxu0 %v5897_v1  ;;  %v4524_v1 = vcombine.high %v43_v62, %v43_v62 }
 0x155   :  { %5400 = vmatpush3.bf16.msra.mxu1 %v5896_v0  ;;  %v4523_v0 = vcombine.low %v43_v62, %v43_v62 }
 0x156   :  { %5401 = vmatprep.subr.bf16.mxu1 %v5899_v3  ;;  %v5966_v3 = vmov 0.0  }
 0x157   :  { %5380 = vmatpush3.bf16.msra.mxu0 %v5898_v2  ;;  %v5946_v2 = vld [vmem:[%s7315_s1 + $0xb80] sm:$0xff]  }
 0x158   :  { %5381 = vmatprep.subr.bf16.mxu0 %v5901_v5 }
 0x159   :  { %5402 = vmatpush3.bf16.msra.mxu1 %v5900_v4  ;;  %v44_v4 = vld [vmem:[%s7316_s0 + $0xb8] sm:$0xff] }
 0x15a   :  { %5403 = vmatprep.subr.bf16.mxu1 %v5903_v7  ;;  %v4525_v7 = vcombine.low %v44_v4, %v44_v4 }
 0x15b   :  { %5382 = vmatpush3.bf16.msra.mxu0 %v5902_v6 }
 0x15c   :  { %5383 = vmatprep.subr.bf16.mxu0 %v5905_v9  ;;  %v5949_v9 = vld [vmem:[%s7315_s1 + $0xc38] sm:$0xff]  }
 0x15d   :  { %5404 = vmatpush3.bf16.msra.mxu1 %v5904_v8  ;;  %v4526_v8 = vcombine.high %v44_v4, %v44_v4 }
 0x15e   :  { %5405 = vmatprep.subr.bf16.mxu1 %v5907_v11 }
 0x15f   :  { %5384 = vmatpush3.bf16.msra.mxu0 %v5906_v10 }
 0x160   :  { %5413 = vmatprep.subr.bf16.mxu0 %v5911_v18 }
 0x161   :  { %5406 = vmatpush3.bf16.msra.mxu1 %v5910_v16 }
 0x162   :  { %v5121_v12 = vpop.f32.mrf.mxu0  ;;  %4194 = vmatmul.mubr.bf16.vlgmr.msra.gmra.mxu0 %v4519_v14  ;;  %5435 = vmatprep.subr.bf16.mxu1 %v5915_v27 }
 0x163   :  { %5414 = vmatpush3.bf16.msra.mxu0 %v5914_v24  ;;  %4273 = vmatprep.mubr.bf16.mxu0 %v4524_v1  ;;  %v5955_v24 = vld [vmem:[%s7315_s1 + $0xc08] sm:$0xff]  }
 0x164   :  { %v5122_v17 = vpop.f32.mrf.mxu0  ;;  %v5143_v21 = vpop.f32.mrf.mxu1  ;;  %4234 = vmatmul.mubr.bf16.vlgmr.msra.gmra.mxu1 %v4521_v22  ;;  %5415 = vmatprep.subr.bf16.mxu0 %v5917_v32  ;;  %v5953_v22 = vld [vmem:[%s7315_s1 + $0xc18] sm:$0xff]  }
 0x165   :  { %v5123_v20 = vadd.f32 %v5122_v17, %v5121_v12  ;;  %5436 = vmatpush3.bf16.msra.mxu1 %v5916_v29  ;;  %4313 = vmatprep.mubr.bf16.mxu1 %v4526_v8 }
 0x166   :  { %v5124_v25 = vpop.f32.mrf.mxu0  ;;  %v5144_v28 = vpop.f32.mrf.mxu1  ;;  %5437 = vmatprep.subr.bf16.mxu1 %v5919_v36 }
 0x167   :  { %v3716_v26 = vadd.f32 %v5123_v20, %v7045_v48  ;;  %v5145_v30 = vadd.f32 %v5144_v28, %v5143_v21  ;;  %5416 = vmatpush3.bf16.msra.mxu0 %v5918_v35  ;;  %v5930_v48 = vld [vmem:[%s7315_s1 + $0xb18] sm:$0xff]   ;;  %v5951_v20 = vld [vmem:[%s7315_s1 + $0xc28] sm:$0xff]   ;;  %v5952_v21 = vld [vmem:[%s7315_s1 + $0xc20] sm:$0xff]  }
 0x168   :  { %v5125_v31 = vpop.f32.mrf.mxu0  ;;  %v5146_v33 = vpop.f32.mrf.mxu1  ;;  %5417 = vmatprep.subr.bf16.mxu0 %v5921_v39  ;;  %v5956_v25 = vld [vmem:[%s7315_s1 + $0xc00] sm:$0xff]  }
 0x169   :  { %v7150_v34 = vadd.f32 %v5145_v30, %v3716_v26  ;;  %5438 = vmatpush3.bf16.msra.mxu1 %v5920_v38  ;;  %v5957_v26 = vld [vmem:[%s7316_s0 + $0xc0] ss:$0 sps:$4 sm:$0xff]  }
 0x16a   :  { %v5147_v37 = vpop.f32.mrf.mxu1  ;;  %5439 = vmatprep.subr.bf16.mxu1 %v5923_v41 }
 0x16b   :  { %5418 = vmatpush3.bf16.msra.mxu0 %v5922_v40 }
 0x16c   :  { %5419 = vmatprep.subr.bf16.mxu0 %v5925_v43 }
 0x16d   :  { %5440 = vmatpush3.bf16.msra.mxu1 %v5924_v42 }
 0x16e   :  { %5441 = vmatprep.subr.bf16.mxu1 %v5927_v45 }
 0x16f   :  { %5420 = vmatpush3.bf16.msra.mxu0 %v5926_v44 }
 0x170   :  { %5421 = vmatprep.subr.bf16.mxu0 %v5929_v47 }
 0x171   :  { %5442 = vmatpush3.bf16.msra.mxu1 %v5928_v46 }
 0x172   :  { %5443 = vmatprep.subr.bf16.mxu1 %v5931_v49  ;;  %v5958_v49 = vld [vmem:[%s7318_s3 + $0x38] sm:$0xff]  }
 0x173   :  { %5422 = vmatpush3.bf16.msra.mxu0 %v5930_v48 }
 0x174   :  { %5423 = vmatprep.subr.bf16.mxu0 %v5933_v51 }
 0x175   :  { %5444 = vmatpush3.bf16.msra.mxu1 %v5932_v50 }
 0x176   :  { %5445 = vmatprep.subr.bf16.mxu1 %v5935_v53  ;;  %v5960_v53 = vld [vmem:[%s7318_s3 + $0x28] sm:$0xff]  }
 0x177   :  { %5424 = vmatpush3.bf16.msra.mxu0 %v5934_v52  ;;  %v5959_v52 = vld [vmem:[%s7318_s3 + $0x30] sm:$0xff]  }
 0x178   :  { %5425 = vmatprep.subr.bf16.mxu0 %v5937_v55  ;;  %v5962_v55 = vld [vmem:[%s7318_s3 + $0x18] sm:$0xff]  }
 0x179   :  { %5446 = vmatpush3.bf16.msra.mxu1 %v5936_v54  ;;  %v5961_v54 = vld [vmem:[%s7318_s3 + $0x20] sm:$0xff]  }
 0x17a   :  { %5447 = vmatprep.subr.bf16.mxu1 %v5939_v57  ;;  %v5964_v57 = vld [vmem:[%s7318_s3 + $0x8] sm:$0xff]  }
 0x17b   :  { %5426 = vmatpush3.bf16.msra.mxu0 %v5938_v56  ;;  %v5963_v56 = vld [vmem:[%s7318_s3 + $0x10] sm:$0xff]  }
 0x17c   :  { %5427 = vmatprep.subr.bf16.mxu0 %v5941_v59 }
 0x17d   :  { %5448 = vmatpush3.bf16.msra.mxu1 %v5940_v58 }
 0x17e   :  { %5449 = vmatprep.subr.bf16.mxu1 %v5943_v61 }
 0x17f   :  { %5428 = vmatpush3.bf16.msra.mxu0 %v5942_v60  ;;  %v5965_v60 = vld [vmem:[%s7318_s3] sm:$0xff]  }
 0x180   :  { %5475 = vmatprep.subr.bf16.mxu0 %v5966_v3 }
 0x181   :  { %5450 = vmatpush3.bf16.msra.mxu1 %v5946_v2 }
 0x182   :  { %v5165_v63 = vpop.f32.mrf.mxu0  ;;  %4274 = vmatmul.mubr.bf16.vlgmr.msra.gmra.mxu0 %v4523_v0  ;;  %5495 = vmatprep.subr.bf16.mxu1 %v5966_v3 }
 0x183   :  { %5476 = vmatpush3.bf16.msra.mxu0 %v5949_v9  ;;  %5491 = vmatprep.mubr.msk.bf16.mxu0 %vm5967_vm0, %v5966_v3 }
 0x184   :  { %v5166_v5 = vpop.f32.mrf.mxu0  ;;  %v5187_v6 = vpop.f32.mrf.mxu1  ;;  %4314 = vmatmul.mubr.bf16.vlgmr.msra.gmra.mxu1 %v4525_v7  ;;  %5477 = vmatprep.subr.bf16.mxu0 %v5966_v3 }
 0x185   :  { %v5167_v10 = vadd.f32 %v5166_v5, %v5165_v63  ;;  %5511 = vmatprep.mubr.msk.bf16.mxu1 %vm5967_vm0, %v5966_v3  ;;  %5496 = vmatpush3.bf16.msra.mxu1 %v5958_v49  ;;  %v4920_v49 = vld [vmem:[%s7319_s4] ss:$0 sm:$0xff] }
 0x186   :  { %v5168_v11 = vpop.f32.mrf.mxu0  ;;  %v5188_v12 = vpop.f32.mrf.mxu1  ;;  %5497 = vmatprep.subr.bf16.mxu1 %v5966_v3 }
 0x187   :  { %v3796_v13 = vadd.f32 %v5167_v10, %v7150_v34  ;;  %v5189_v14 = vadd.f32 %v5188_v12, %v5187_v6  ;;  %5478 = vmatpush3.bf16.msra.mxu0 %v5950_v15 }
 0x188   :  { %v5169_v16 = vpop.f32.mrf.mxu0  ;;  %v5190_v17 = vpop.f32.mrf.mxu1  ;;  %5479 = vmatprep.subr.bf16.mxu0 %v5966_v3 }
 0x189   :  { %v3836_v18 = vadd.f32 %v5189_v14, %v3796_v13  ;;  %5498 = vmatpush3.bf16.msra.mxu1 %v5959_v52 }
 0x18a   :  { %v5191_v19 = vpop.f32.mrf.mxu1  ;;  %5499 = vmatprep.subr.bf16.mxu1 %v5966_v3 }
 0x18b   :  { %5480 = vmatpush3.bf16.msra.mxu0 %v5951_v20 }
 0x18c   :  { %5481 = vmatprep.subr.bf16.mxu0 %v5966_v3 }
 0x18d   :  { %5500 = vmatpush3.bf16.msra.mxu1 %v5960_v53 }
 0x18e   :  { %5501 = vmatprep.subr.bf16.mxu1 %v5966_v3 }
 0x18f   :  { %5482 = vmatpush3.bf16.msra.mxu0 %v5952_v21 }
 0x190   :  { %5483 = vmatprep.subr.bf16.mxu0 %v5966_v3 }
 0x191   :  { %5502 = vmatpush3.bf16.msra.mxu1 %v5961_v54 }
 0x192   :  { %5503 = vmatprep.subr.bf16.mxu1 %v5966_v3 }
 0x193   :  { %5484 = vmatpush3.bf16.msra.mxu0 %v5953_v22 }
 0x194   :  { %5485 = vmatprep.subr.bf16.mxu0 %v5966_v3 }
 0x195   :  { %5504 = vmatpush3.bf16.msra.mxu1 %v5962_v55 }
 0x196   :  { %5505 = vmatprep.subr.bf16.mxu1 %v5966_v3 }
 0x197   :  { %5486 = vmatpush3.bf16.msra.mxu0 %v5954_v23 }
 0x198   :  { %5487 = vmatprep.subr.bf16.mxu0 %v5966_v3 }
 0x199   :  { %5506 = vmatpush3.bf16.msra.mxu1 %v5963_v56 }
 0x19a   :  { %5507 = vmatprep.subr.bf16.mxu1 %v5966_v3 }
 0x19b   :  { %5488 = vmatpush3.bf16.msra.mxu0 %v5955_v24 }
 0x19c   :  { %5489 = vmatprep.subr.bf16.mxu0 %v5966_v3 }
 0x19d   :  { %5508 = vmatpush3.bf16.msra.mxu1 %v5964_v57 }
 0x19e   :  { %5509 = vmatprep.subr.bf16.mxu1 %v5966_v3 }
 0x19f   :  { %5490 = vmatpush3.bf16.msra.mxu0 %v5956_v25 }
 0x1a1   :  { %5510 = vmatpush3.bf16.msra.mxu1 %v5965_v60 }
 0x1a2   :  { %v5209_v27 = vpop.f32.mrf.mxu0  ;;  %5492 = vmatmul.mubr.bf16.vlgmr.msra.gmra.mxu0 %v5957_v26 }
 0x1a4   :  { %v5210_v28 = vpop.f32.mrf.mxu0  ;;  %v5231_v29 = vpop.f32.mrf.mxu1 }
 0x1a5   :  { %v5211_v30 = vadd.f32 %v5210_v28, %v5209_v27 }
 0x1a6   :  { %v5212_v31 = vpop.f32.mrf.mxu0  ;;  %v5232_v32 = vpop.f32.mrf.mxu1 }
 0x1a7   :  { %v3876_v33 = vadd.f32 %v5211_v30, %v3836_v18  ;;  %v5233_v34 = vadd.f32 %v5232_v32, %v5231_v29 }
 0x1a8   :  { %v5213_v35 = vpop.f32.mrf.mxu0  ;;  %v5234_v36 = vpop.f32.mrf.mxu1 }
 0x1a9   :  { %v3916_v37 = vadd.f32 %v5233_v34, %v3876_v33 }
 0x1aa   :  { %v5235_v38 = vpop.f32.mrf.mxu1 }
 0x1c2   :  { %v5253_v39 = vpop.f32.mrf.mxu0 }
 0x1c4   :  { %v5254_v40 = vpop.f32.mrf.mxu0  ;;  %v5275_v41 = vpop.f32.mrf.mxu1 }
 0x1c5   :  { %v5255_v42 = vadd.f32 %v5254_v40, %v5253_v39 }
 0x1c6   :  { %v5256_v43 = vpop.f32.mrf.mxu0  ;;  %v5276_v44 = vpop.f32.mrf.mxu1 }
 0x1c7   :  { %v3956_v45 = vadd.f32 %v5255_v42, %v3916_v37  ;;  %v5277_v46 = vadd.f32 %v5276_v44, %v5275_v41 }
 0x1c8   :  { %v5257_v47 = vpop.f32.mrf.mxu0  ;;  %v5278_v48 = vpop.f32.mrf.mxu1 }
 0x1c9   :  { %v3996_v50 = vadd.f32 %v5277_v46, %v3956_v45 }
 0x1ca   :  { %v5279_v51 = vpop.f32.mrf.mxu1 }
 0x1e2   :  { %v5297_v58 = vpop.f32.mrf.mxu0 }
 0x1e4   :  { %v5298_v59 = vpop.f32.mrf.mxu0  ;;  %v5319_v62 = vpop.f32.mrf.mxu1 }
 0x1e5   :  { %v5299_v61 = vadd.f32 %v5298_v59, %v5297_v58 }
 0x1e6   :  { %v5300_v63 = vpop.f32.mrf.mxu0  ;;  %v5320_v1 = vpop.f32.mrf.mxu1 }
 0x1e7   :  { %v4036_v0 = vadd.f32 %v5299_v61, %v3996_v50  ;;  %v5321_v2 = vadd.f32 %v5320_v1, %v5319_v62 }
 0x1e8   :  { %v5301_v4 = vpop.f32.mrf.mxu0  ;;  %v5322_v5 = vpop.f32.mrf.mxu1 }
 0x1e9   :  { %v4076_v6 = vadd.f32 %v5321_v2, %v4036_v0 }
 0x1ea   :  { %v5323_v7 = vpop.f32.mrf.mxu1 }
 0x202   :  { %v5341_v8 = vpop.f32.mrf.mxu0 }
 0x204   :  { %v5342_v9 = vpop.f32.mrf.mxu0  ;;  %v5363_v10 = vpop.f32.mrf.mxu1 }
 0x205   :  { %v5343_v3 = vadd.f32 %v5342_v9, %v5341_v8 }
 0x206   :  { %v5344_v11 = vpop.f32.mrf.mxu0  ;;  %v5364_v12 = vpop.f32.mrf.mxu1 }
 0x207   :  { %v4116_v13 = vadd.f32 %v5343_v3, %v4076_v6  ;;  %v5365_v14 = vadd.f32 %v5364_v12, %v5363_v10 }
 0x208   :  { %v5345_v15 = vpop.f32.mrf.mxu0  ;;  %v5366_v16 = vpop.f32.mrf.mxu1 }
 0x209   :  { %v4156_v17 = vadd.f32 %v5365_v14, %v4116_v13 }
 0x20a   :  { %v5367_v18 = vpop.f32.mrf.mxu1 }
 0x222   :  { %v5385_v19 = vpop.f32.mrf.mxu0 }
 0x224   :  { %v5386_v20 = vpop.f32.mrf.mxu0  ;;  %v5407_v21 = vpop.f32.mrf.mxu1 }
 0x225   :  { %v5387_v35 = vadd.f32 %v5386_v20, %v5385_v19 }
 0x226   :  { %v5388_v22 = vpop.f32.mrf.mxu0  ;;  %v5408_v23 = vpop.f32.mrf.mxu1 }
 0x227   :  { %v4196_v36 = vadd.f32 %v5387_v35, %v4156_v17  ;;  %v5409_v37 = vadd.f32 %v5408_v23, %v5407_v21 }
 0x228   :  { %v5389_v24 = vpop.f32.mrf.mxu0  ;;  %v5410_v25 = vpop.f32.mrf.mxu1 }
 0x229   :  { %v4236_v39 = vadd.f32 %v5409_v37, %v4196_v36 }
 0x22a   :  { %v5411_v26 = vpop.f32.mrf.mxu1 }
 0x242   :  { %v5429_v27 = vpop.f32.mrf.mxu0 }
 0x244   :  { %v5430_v28 = vpop.f32.mrf.mxu0  ;;  %v5451_v29 = vpop.f32.mrf.mxu1 }
 0x245   :  { %v5431_v38 = vadd.f32 %v5430_v28, %v5429_v27 }
 0x246   :  { %v5432_v30 = vpop.f32.mrf.mxu0  ;;  %v5452_v31 = vpop.f32.mrf.mxu1 }
 0x247   :  { %v4276_v40 = vadd.f32 %v5431_v38, %v4236_v39  ;;  %v5453_v41 = vadd.f32 %v5452_v31, %v5451_v29 }
 0x248   :  { %v5433_v32 = vpop.f32.mrf.mxu0  ;;  %v5454_v33 = vpop.f32.mrf.mxu1 }
 0x249   :  { %v4316_v42 = vadd.f32 %v5453_v41, %v4276_v40 }
 0x24a   :  { %v5455_v34 = vpop.f32.mrf.mxu1 }
 0x262   :  { %v4355_v43 = vpop.f32.mrf.mxu0 }
 0x263   :  { %v4356_v44 = vadd.f32 %v4355_v43, %v4316_v42 }
 0x264   :  { %v5493_v45 = vpop.f32.mrf.mxu0 }
 0x265   :  { %v4361_v46 = vpack.c.bf16 %v4356_v44, %v4356_v44 }
 0x266   :  { %v4358_v47 = vpop.f32.mrf.mxu0 }
 0x267   :  { %5512 = vmatmul.mubr.bf16.vlgmr.msra.gmra.mxu1 %v4361_v46 }
 0x268   :  { %v5494_v48 = vpop.f32.mrf.mxu0 }
 0x327   :  { %v4467_v50 = vpop.f32.mrf.mxu1 }
 0x328   :  { %v4468_v51 = vadd.f32 %v4920_v49, %v4467_v50 }
 0x329   :  { %v5513_v52 = vpop.f32.mrf.mxu1 }
 0x32a   :  { %4473 = vst [vmem:[%s7320_s5] sm:$0xff] %v4468_v51 }
 0x32b   :  { %v4470_v53 = vpop.f32.mrf.mxu1 }
 0x32d   :  { %v5514_v54 = vpop.f32.mrf.mxu1 }

</bundles_post_ra>
